<compile_context>
chip_gen: v5e
topology: v5e:2x2
jax: 0.10.0
libtpu: 0.0.40
codegen_flags: <defaults>
</compile_context>

<pallas_src>
import jax
import jax.numpy as jnp
from jax.experimental import pallas as pl
from jax.experimental.pallas import tpu as pltpu

LRELU_SLOPE = 0.2
BN_EPS = 1e-5


def _lrelu(x):
    return jnp.where(x > 0, x, LRELU_SLOPE * x)


# --------------------------------------------------------------------------
# Kernel 1: fused conv1 + LeakyReLU + conv2 + bn2(batch stats) + LeakyReLU.
#
# col_ref holds conv1's im2col rows laid out so that conv2's stride-2 4x4
# windows become *contiguous static slices*:
#   col_ref[(kh%2)*2 + (kw%2), n, ho + kh//2, wo + kw//2, :]  ==
#       im2col row of the (zero padded) x1 position (2*ho+kh, 2*wo+kw).
# Border positions hold zero rows, so lrelu(0 @ W1) = 0 reproduces conv2's
# zero padding of x1 exactly.
# --------------------------------------------------------------------------
def _fused_conv_kernel(col_ref, w1_ref, w2_ref, g_ref, b_ref, o_ref):
    nb = col_ref.shape[1]
    m = nb * 64                                    # rows = (n, ho, wo)
    w1 = w1_ref[...]                               # (64, 64) bf16

    acc = jnp.zeros((m, 128), jnp.float32)
    for kh in range(4):
        for kw in range(4):
            t = (kh % 2) * 2 + (kw % 2)
            slab = col_ref[t, :, pl.ds(kh // 2, 8), pl.ds(kw // 2, 8), :]
            slab = slab.reshape(m, 64).astype(jnp.bfloat16)
            # conv1 for exactly the x1 pixels this conv2 tap touches.
            x1 = jnp.dot(slab, w1, preferred_element_type=jnp.float32)
            x1 = _lrelu(x1).astype(jnp.bfloat16)
            acc = acc + jnp.dot(x1, w2_ref[kh * 4 + kw],
                                preferred_element_type=jnp.float32)

    # bn2 (training-mode batch stats over N*H*W rows, per output channel).
    mean = jnp.mean(acc, axis=0, keepdims=True)
    var = jnp.mean(jnp.square(acc - mean), axis=0, keepdims=True)
    y = (acc - mean) * jax.lax.rsqrt(var + BN_EPS) * g_ref[...] + b_ref[...]
    o_ref[...] = _lrelu(y).astype(o_ref.dtype)


def fused_conv(colp, w1, w2, gamma, beta, out_dtype=jnp.bfloat16):
    _, N, _, _, kdepth = colp.shape
    M = N * 64
    return pl.pallas_call(
        _fused_conv_kernel,
        out_shape=jax.ShapeDtypeStruct((M, 128), out_dtype),
        grid_spec=pltpu.PrefetchScalarGridSpec(
            num_scalar_prefetch=0,
            grid=(1,),
            in_specs=[
                pl.BlockSpec((4, N, 9, 9, kdepth),
                             lambda i: (0, 0, 0, 0, 0)),        # columns
                pl.BlockSpec((64, 64), lambda i: (0, 0)),       # w1
                pl.BlockSpec((16, 64, 128), lambda i: (0, 0, 0)),  # w2 taps
                pl.BlockSpec((1, 128), lambda i: (0, 0)),       # bn2 gamma
                pl.BlockSpec((1, 128), lambda i: (0, 0)),       # bn2 beta
            ],
            out_specs=pl.BlockSpec((M, 128), lambda i: (0, 0)),
        ),
        compiler_params=pltpu.CompilerParams(
            dimension_semantics=("arbitrary",)),
    )(colp, w1, w2, gamma, beta)


# --------------------------------------------------------------------------
# Kernel 2: lin3 (K-tiled matmul, D split across cores) + bias + bn3 +
# LeakyReLU + head partials (packed [logit | fc + projection]), fused.
# The f32 x3 output block is the K accumulator (no scratch).
# --------------------------------------------------------------------------
def _lin3_head_kernel(x_ref, w_ref, b3_ref, g3_ref, bt3_ref,
                      lab_ref, wh_ref, we_ref, be_ref,
                      x3_ref, head_ref):
    k = pl.program_id(1)

    @pl.when(k == 0)
    def _():
        x3_ref[...] = jnp.zeros_like(x3_ref)

    x3_ref[...] += jnp.dot(x_ref[...], w_ref[...],
                           preferred_element_type=jnp.float32)

    @pl.when(k == pl.num_programs(1) - 1)
    def _():
        # lin3 bias, BatchNorm over the batch axis (1x1 spatial), LeakyReLU.
        o3 = x3_ref[...] + b3_ref[...]
        mean = jnp.mean(o3, axis=0, keepdims=True)
        var = jnp.mean(jnp.square(o3 - mean), axis=0, keepdims=True)
        x3 = _lrelu((o3 - mean) * jax.lax.rsqrt(var + BN_EPS) * g3_ref[...]
                    + bt3_ref[...])
        x3_ref[...] = x3

        # Head partials for this D block: col 0 = logit_lin partial,
        # col 1 = fc partial + projection (row-wise dot) partial.
        h = jnp.dot(x3, wh_ref[...], preferred_element_type=jnp.float32)
        emb = (jnp.dot(lab_ref[...], we_ref[...],
                       preferred_element_type=jnp.float32) + be_ref[...])
        proj = jnp.sum(x3 * emb, axis=-1, keepdims=True)
        lane = jax.lax.broadcasted_iota(jnp.int32, h.shape, 1)
        packed = h + jnp.where(lane == 1, proj, 0.0)
        head_ref[...] = packed.reshape(head_ref.shape)


def lin3_head(x, w3, b3, g3, bt3, labels, wh, we, be, *, tk=1024, dsplit=2):
    B, K = x.shape
    _, D = w3.shape
    NC = labels.shape[1]
    assert K % tk == 0 and D % dsplit == 0
    dn = D // dsplit
    return pl.pallas_call(
        _lin3_head_kernel,
        out_shape=(jax.ShapeDtypeStruct((B, D), jnp.float32),
                   jax.ShapeDtypeStruct((dsplit, B, 2), jnp.float32)),
        grid_spec=pltpu.PrefetchScalarGridSpec(
            num_scalar_prefetch=0,
            grid=(dsplit, K // tk),
            in_specs=[
                pl.BlockSpec((B, tk), lambda d, k: (0, k)),    # activations
                pl.BlockSpec((tk, dn), lambda d, k: (k, d)),   # lin3 weight
                pl.BlockSpec((1, dn), lambda d, k: (0, d)),    # lin3 bias
                pl.BlockSpec((1, dn), lambda d, k: (0, d)),    # bn3 gamma
                pl.BlockSpec((1, dn), lambda d, k: (0, d)),    # bn3 beta
                pl.BlockSpec((B, NC), lambda d, k: (0, 0)),    # labels
                pl.BlockSpec((dn, 2), lambda d, k: (d, 0)),    # [logit|fc] W
                pl.BlockSpec((NC, dn), lambda d, k: (0, d)),   # embed W
                pl.BlockSpec((1, dn), lambda d, k: (0, d)),    # embed bias
            ],
            out_specs=(pl.BlockSpec((B, dn), lambda d, k: (0, d)),
                       pl.BlockSpec((1, B, 2), lambda d, k: (d, 0, 0))),
        ),
        compiler_params=pltpu.CompilerParams(
            dimension_semantics=("parallel", "arbitrary")),
    )(x, w3, b3, g3, bt3, labels, wh, we, be)


# --------------------------------------------------------------------------
# Glue: conv1 column construction, parameter init (PyTorch layout),
# matmul-ready param prep, forward wrapper, pure-JAX reference.
# --------------------------------------------------------------------------
def build_conv1_columns(x_nchw, nc=3):
    """(N,3,32,32) NCHW -> (4, N, 9, 9, 64) f32 parity-split conv1 im2col
    columns of the zero-padded x1 grid (zero rows at x1's padding)."""
    N = x_nchw.shape[0]
    x = jnp.transpose(x_nchw, (0, 2, 3, 1)).astype(jnp.float32)
    x = jnp.pad(x, ((0, 0), (1, 1), (1, 1), (0, 4 - nc)))      # (N,34,34,4)
    cols = []
    for kh in range(4):
        for kw in range(4):
            cols.append(x[:, kh:kh + 31:2, kw:kw + 31:2, :])   # (N,16,16,4)
    col1 = jnp.stack(cols, axis=3).reshape(N, 16, 16, 64)      # (kh,kw,c)
    col1p = jnp.pad(col1, ((0, 0), (1, 1), (1, 1), (0, 0)))    # (N,18,18,64)
    col6 = col1p.reshape(N, 9, 2, 9, 2, 64).transpose(2, 4, 0, 1, 3, 5)
    return col6.reshape(4, N, 9, 9, 64)                        # (rp*2+cp,...)


def init_params(key, nc=3, ndf=64, num_classes=3):
    ks = jax.random.split(key, 8)

    def nrm(k, shape, scale):
        return scale * jax.random.normal(k, shape, jnp.float32)

    p = {}
    p["conv1_w"] = nrm(ks[0], (ndf, nc, 4, 4), 0.05)           # Conv2d(3,64)
    p["conv2_w"] = nrm(ks[1], (ndf * 2, ndf, 4, 4), 0.05)      # Conv2d(64,128)
    p["bn2_g"] = jnp.ones((ndf * 2,), jnp.float32)
    p["bn2_b"] = jnp.zeros((ndf * 2,), jnp.float32)
    p["lin3_w"] = nrm(ks[2], (ndf * 16, 128 * 8 * 8), 0.01)    # Linear(8192,1024)
    p["lin3_b"] = nrm(ks[3], (ndf * 16,), 0.01)
    p["bn3_g"] = jnp.ones((ndf * 16,), jnp.float32)
    p["bn3_b"] = jnp.zeros((ndf * 16,), jnp.float32)
    p["logit_w"] = nrm(ks[4], (1, ndf * 16), 0.02)             # Linear(1024,1)
    p["logit_b"] = jnp.zeros((1,), jnp.float32)
    p["embed_w"] = nrm(ks[5], (ndf * 16, num_classes), 0.02)   # Linear(3,1024)
    p["embed_b"] = jnp.zeros((ndf * 16,), jnp.float32)
    p["fc_w"] = nrm(ks[6], (1, ndf * 16), 0.02)                # Linear(1024,1)
    p["fc_b"] = jnp.zeros((1,), jnp.float32)
    # TODO(synk): conv3 / spectral_norm are unused in forward(); no params.
    return p


def prepare_params(p, nc=3, ndf=64, num_classes=3):
    """One-time conversion from PyTorch layout to matmul-ready kernel layout."""
    D = ndf * 16
    q = {}
    # conv1: (Cout,Cin,kh,kw) -> (kh,kw,Cin_pad4,Cout) -> (64,64) bf16.
    w1 = jnp.transpose(p["conv1_w"], (2, 3, 1, 0))
    w1 = jnp.pad(w1, ((0, 0), (0, 0), (0, 4 - nc), (0, 0)))
    q["w1"] = w1.reshape(64, ndf).astype(jnp.bfloat16)
    # conv2 per-tap weights: (16, Cin, Cout) bf16, taps ordered kh*4+kw.
    q["w2"] = (jnp.transpose(p["conv2_w"], (2, 3, 1, 0))
               .reshape(16, ndf, ndf * 2).astype(jnp.bfloat16))
    q["bn2_g"] = p["bn2_g"].reshape(1, -1)
    q["bn2_b"] = p["bn2_b"].reshape(1, -1)
    # lin3: permute K axis from NCHW-flatten (c,h,w) to NHWC-flatten (h,w,c)
    # order, transpose to (8192, 1024), bf16.
    w3 = p["lin3_w"].reshape(D, ndf * 2, 8, 8)
    w3 = jnp.transpose(w3, (0, 2, 3, 1)).reshape(D, -1)
    q["w3"] = w3.T.astype(jnp.bfloat16)
    q["lin3_b"] = p["lin3_b"].reshape(1, D)
    q["bn3_g"] = p["bn3_g"].reshape(1, D)
    q["bn3_b"] = p["bn3_b"].reshape(1, D)
    # Head: pack logit_lin (col 0) and fc (col 1) into one (D, 2) weight.
    q["wh"] = jnp.concatenate([p["logit_w"].T, p["fc_w"].T], axis=1)
    q["logit_b"] = p["logit_b"]
    q["fc_b"] = p["fc_b"]
    q["we"] = p["embed_w"].T                                   # (NC, D)
    q["be"] = p["embed_b"].reshape(1, D)
    return q


def discriminator_forward(prep, x_nchw, labels, nc=3, ndf=64):
    N = x_nchw.shape[0]

    # Fused conv1 + lrelu + conv2 + bn2 + lrelu (single pallas_call).
    colp = build_conv1_columns(x_nchw, nc=nc)
    x2 = fused_conv(colp, prep["w1"], prep["w2"],
                    prep["bn2_g"], prep["bn2_b"])              # (N*64, 128) bf16

    # Flatten: rows are (n,h,w), columns c -> per-sample (h,w,c) order; the
    # lin3 weight K axis was permuted to match, so no transpose is needed.
    x2_flat = x2.reshape(N, 8 * 8 * ndf * 2)

    # lin3 + bn3 + lrelu + head partials (D split across 2 blocks / cores).
    x3, head = lin3_head(
        x2_flat, prep["w3"], prep["lin3_b"], prep["bn3_g"], prep["bn3_b"],
        labels.astype(jnp.float32), prep["wh"], prep["we"], prep["be"],
        tk=1024, dsplit=2)

    # Tiny XLA epilogue: combine per-D-block head partials, add biases,
    # apply sigmoid.
    hp = jnp.sum(head, axis=0)                                 # (N, 2)
    out_logit = hp[:, 0:1] + prep["logit_b"]
    sig = jax.nn.sigmoid(hp[:, 1:2] + prep["fc_b"])
    return sig.reshape(-1), out_logit, x3


def reference_forward(p, x_nchw, labels):
    """Pure-JAX reference mirroring the PyTorch module (and the kernels'
    bf16 quantization points) for a correctness cross-check."""
    f32 = jnp.float32

    def q(a):
        return a.astype(jnp.bfloat16).astype(f32)

    x = q(x_nchw)
    x1 = jax.lax.conv_general_dilated(
        x, q(p["conv1_w"]), (2, 2), ((1, 1), (1, 1)),
        dimension_numbers=("NCHW", "OIHW", "NCHW"))
    x1 = q(_lrelu(x1))
    o2 = jax.lax.conv_general_dilated(
        x1, q(p["conv2_w"]), (2, 2), ((1, 1), (1, 1)),
        dimension_numbers=("NCHW", "OIHW", "NCHW"))
    m2 = o2.mean(axis=(0, 2, 3), keepdims=True)
    v2 = ((o2 - m2) ** 2).mean(axis=(0, 2, 3), keepdims=True)
    g2 = p["bn2_g"].reshape(1, -1, 1, 1)
    b2 = p["bn2_b"].reshape(1, -1, 1, 1)
    x2 = q(_lrelu((o2 - m2) * jax.lax.rsqrt(v2 + BN_EPS) * g2 + b2))
    xf = x2.reshape(x2.shape[0], -1)                           # NCHW flatten
    o3 = xf @ q(p["lin3_w"]).T + p["lin3_b"]
    m3 = o3.mean(axis=0, keepdims=True)
    v3 = ((o3 - m3) ** 2).mean(axis=0, keepdims=True)
    x3 = _lrelu((o3 - m3) * jax.lax.rsqrt(v3 + BN_EPS) * p["bn3_g"]
                + p["bn3_b"])
    out_logit = x3 @ p["logit_w"].T + p["logit_b"]
    fco = x3 @ p["fc_w"].T + p["fc_b"]
    emb = labels @ p["embed_w"].T + p["embed_b"]
    out = fco + jnp.sum(x3 * emb, axis=-1, keepdims=True)
    return jax.nn.sigmoid(out).reshape(-1), out_logit, x3


if __name__ == "__main__":
    key = jax.random.PRNGKey(0)
    kp, kx, kl = jax.random.split(key, 3)
    params = init_params(kp)
    prep = prepare_params(params)

    N = 2
    x = jax.random.normal(kx, (N, 3, 32, 32), jnp.float32)     # NCHW input
    labels = jax.nn.one_hot(jax.random.randint(kl, (N,), 0, 3), 3,
                            dtype=jnp.float32)                 # (N, 3)

    fwd = jax.jit(discriminator_forward)
    sig, out_logit, feat = fwd(prep, x, labels)
    jax.block_until_ready((sig, out_logit, feat))

    assert sig.shape == (N,)
    assert out_logit.shape == (N, 1)
    assert feat.shape == (N, 1024)
    assert bool(jnp.all(jnp.isfinite(sig)))
    assert bool(jnp.all((sig >= 0.0) & (sig <= 1.0)))

    # Cross-check against the pure-JAX reference (loose tolerances: batch-2
    # BatchNorm is numerically touchy, diffs here are accumulation-order only).
    r_sig, r_logit, r_feat = reference_forward(params, x, labels)
    assert float(jnp.max(jnp.abs(feat - r_feat))) < 0.2
    assert float(jnp.max(jnp.abs(out_logit - r_logit))) < 0.15
    assert float(jnp.max(jnp.abs(sig - r_sig))) < 0.1

    print("KERNEL_OK")
</pallas_src>

<mosaic_0001>
module attributes {stable_mosaic.version = 11 : i64} {
  func.func @_fused_conv_kernel(%arg0: i32, %arg1: memref<4x2x9x9x64xf32, #tpu.memory_space<vmem>>, %arg2: memref<64x64xbf16, #tpu.memory_space<vmem>>, %arg3: memref<16x64x128xbf16, #tpu.memory_space<vmem>>, %arg4: memref<1x128xf32, #tpu.memory_space<vmem>>, %arg5: memref<1x128xf32, #tpu.memory_space<vmem>>, %arg6: memref<128x128xbf16, #tpu.memory_space<vmem>>) attributes {dimension_semantics = [#tpu.dimension_semantics<arbitrary>], iteration_bounds = array<i64: 1>, scalar_prefetch = 0 : i64, scratch_operands = 0 : i64, tpu.core_type = #tpu.core_type<tc>, window_params = [{pipeline_mode = #tpu.pipeline_mode<synchronous>, transform_indices = @transform_0, window_bounds = array<i64: 4, 2, 9, 9, 64>}, {pipeline_mode = #tpu.pipeline_mode<synchronous>, transform_indices = @transform_1, window_bounds = array<i64: 64, 64>}, {pipeline_mode = #tpu.pipeline_mode<synchronous>, transform_indices = @transform_2, window_bounds = array<i64: 16, 64, 128>}, {pipeline_mode = #tpu.pipeline_mode<synchronous>, transform_indices = @transform_3, window_bounds = array<i64: 1, 128>}, {pipeline_mode = #tpu.pipeline_mode<synchronous>, transform_indices = @transform_4, window_bounds = array<i64: 1, 128>}, {pipeline_mode = #tpu.pipeline_mode<synchronous>, transform_indices = @transform_5, window_bounds = array<i64: 128, 128>}]} {
    %c0 = arith.constant 0 : index
    %c0_0 = arith.constant 0 : index
    %0 = vector.load %arg2[%c0, %c0_0] : memref<64x64xbf16, #tpu.memory_space<vmem>>, vector<64x64xbf16>
    %cst = arith.constant 0.000000e+00 : f32
    %1 = vector.broadcast %cst : f32 to vector<128x128xf32>
    %c0_1 = arith.constant 0 : index
    %c0_2 = arith.constant 0 : index
    %c0_3 = arith.constant 0 : index
    %c0_4 = arith.constant 0 : index
    %c0_5 = arith.constant 0 : index
    %2 = vector.load %arg1[%c0_1, %c0_2, %c0_3, %c0_4, %c0_5] : memref<4x2x9x9x64xf32, #tpu.memory_space<vmem>>, vector<1x2x8x8x64xf32>
    %3 = vector.shape_cast %2 : vector<1x2x8x8x64xf32> to vector<2x8x8x64xf32>
    %4 = vector.shape_cast %3 : vector<2x8x8x64xf32> to vector<128x64xf32>
    %5 = arith.truncf %4 : vector<128x64xf32> to vector<128x64xbf16>
    %cst_6 = arith.constant dense<0.000000e+00> : vector<128x64xf32>
    %6 = tpu.matmul %5, %0, %cst_6 {dimension_numbers = #tpu.dot_dimension_numbers<[1], [0], [0], [1], [0, 0, 1, 1], [], []>} : vector<128x64xbf16>, vector<64x64xbf16>, vector<128x64xf32> -> vector<128x64xf32>
    %cst_7 = arith.constant 0.000000e+00 : f32
    %7 = vector.broadcast %cst_7 : f32 to vector<128x64xf32>
    %8 = arith.cmpf ogt, %6, %7 : vector<128x64xf32>
    %cst_8 = arith.constant 2.000000e-01 : f32
    %9 = vector.broadcast %cst_8 : f32 to vector<128x64xf32>
    %10 = arith.mulf %9, %6 : vector<128x64xf32>
    %11 = arith.select %8, %6, %10 : vector<128x64xi1>, vector<128x64xf32>
    %12 = arith.truncf %11 : vector<128x64xf32> to vector<128x64xbf16>
    %c0_9 = arith.constant 0 : index
    %c0_10 = arith.constant 0 : index
    %c0_11 = arith.constant 0 : index
    %13 = vector.load %arg3[%c0_9, %c0_10, %c0_11] : memref<16x64x128xbf16, #tpu.memory_space<vmem>>, vector<1x64x128xbf16>
    %14 = vector.shape_cast %13 : vector<1x64x128xbf16> to vector<64x128xbf16>
    %cst_12 = arith.constant dense<0.000000e+00> : vector<128x128xf32>
    %15 = tpu.matmul %12, %14, %cst_12 {dimension_numbers = #tpu.dot_dimension_numbers<[1], [0], [0], [1], [0, 0, 1, 1], [], []>} : vector<128x64xbf16>, vector<64x128xbf16>, vector<128x128xf32> -> vector<128x128xf32>
    %16 = arith.addf %1, %15 : vector<128x128xf32>
    %c1 = arith.constant 1 : index
    %c0_13 = arith.constant 0 : index
    %c0_14 = arith.constant 0 : index
    %c0_15 = arith.constant 0 : index
    %c0_16 = arith.constant 0 : index
    %17 = vector.load %arg1[%c1, %c0_13, %c0_14, %c0_15, %c0_16] : memref<4x2x9x9x64xf32, #tpu.memory_space<vmem>>, vector<1x2x8x8x64xf32>
    %18 = vector.shape_cast %17 : vector<1x2x8x8x64xf32> to vector<2x8x8x64xf32>
    %19 = vector.shape_cast %18 : vector<2x8x8x64xf32> to vector<128x64xf32>
    %20 = arith.truncf %19 : vector<128x64xf32> to vector<128x64xbf16>
    %cst_17 = arith.constant dense<0.000000e+00> : vector<128x64xf32>
    %21 = tpu.matmul %20, %0, %cst_17 {dimension_numbers = #tpu.dot_dimension_numbers<[1], [0], [0], [1], [0, 0, 1, 1], [], []>} : vector<128x64xbf16>, vector<64x64xbf16>, vector<128x64xf32> -> vector<128x64xf32>
    %cst_18 = arith.constant 0.000000e+00 : f32
    %22 = vector.broadcast %cst_18 : f32 to vector<128x64xf32>
    %23 = arith.cmpf ogt, %21, %22 : vector<128x64xf32>
    %cst_19 = arith.constant 2.000000e-01 : f32
    %24 = vector.broadcast %cst_19 : f32 to vector<128x64xf32>
    %25 = arith.mulf %24, %21 : vector<128x64xf32>
    %26 = arith.select %23, %21, %25 : vector<128x64xi1>, vector<128x64xf32>
    %27 = arith.truncf %26 : vector<128x64xf32> to vector<128x64xbf16>
    %c1_20 = arith.constant 1 : index
    %c0_21 = arith.constant 0 : index
    %c0_22 = arith.constant 0 : index
    %28 = vector.load %arg3[%c1_20, %c0_21, %c0_22] : memref<16x64x128xbf16, #tpu.memory_space<vmem>>, vector<1x64x128xbf16>
    %29 = vector.shape_cast %28 : vector<1x64x128xbf16> to vector<64x128xbf16>
    %cst_23 = arith.constant dense<0.000000e+00> : vector<128x128xf32>
    %30 = tpu.matmul %27, %29, %cst_23 {dimension_numbers = #tpu.dot_dimension_numbers<[1], [0], [0], [1], [0, 0, 1, 1], [], []>} : vector<128x64xbf16>, vector<64x128xbf16>, vector<128x128xf32> -> vector<128x128xf32>
    %31 = arith.addf %16, %30 : vector<128x128xf32>
    %c0_24 = arith.constant 0 : index
    %c0_25 = arith.constant 0 : index
    %c0_26 = arith.constant 0 : index
    %c1_27 = arith.constant 1 : index
    %c0_28 = arith.constant 0 : index
    %32 = vector.load %arg1[%c0_24, %c0_25, %c0_26, %c1_27, %c0_28] : memref<4x2x9x9x64xf32, #tpu.memory_space<vmem>>, vector<1x2x8x8x64xf32>
    %33 = vector.shape_cast %32 : vector<1x2x8x8x64xf32> to vector<2x8x8x64xf32>
    %34 = vector.shape_cast %33 : vector<2x8x8x64xf32> to vector<128x64xf32>
    %35 = arith.truncf %34 : vector<128x64xf32> to vector<128x64xbf16>
    %cst_29 = arith.constant dense<0.000000e+00> : vector<128x64xf32>
    %36 = tpu.matmul %35, %0, %cst_29 {dimension_numbers = #tpu.dot_dimension_numbers<[1], [0], [0], [1], [0, 0, 1, 1], [], []>} : vector<128x64xbf16>, vector<64x64xbf16>, vector<128x64xf32> -> vector<128x64xf32>
    %cst_30 = arith.constant 0.000000e+00 : f32
    %37 = vector.broadcast %cst_30 : f32 to vector<128x64xf32>
    %38 = arith.cmpf ogt, %36, %37 : vector<128x64xf32>
    %cst_31 = arith.constant 2.000000e-01 : f32
    %39 = vector.broadcast %cst_31 : f32 to vector<128x64xf32>
    %40 = arith.mulf %39, %36 : vector<128x64xf32>
    %41 = arith.select %38, %36, %40 : vector<128x64xi1>, vector<128x64xf32>
    %42 = arith.truncf %41 : vector<128x64xf32> to vector<128x64xbf16>
    %c2 = arith.constant 2 : index
    %c0_32 = arith.constant 0 : index
    %c0_33 = arith.constant 0 : index
    %43 = vector.load %arg3[%c2, %c0_32, %c0_33] : memref<16x64x128xbf16, #tpu.memory_space<vmem>>, vector<1x64x128xbf16>
    %44 = vector.shape_cast %43 : vector<1x64x128xbf16> to vector<64x128xbf16>
    %cst_34 = arith.constant dense<0.000000e+00> : vector<128x128xf32>
    %45 = tpu.matmul %42, %44, %cst_34 {dimension_numbers = #tpu.dot_dimension_numbers<[1], [0], [0], [1], [0, 0, 1, 1], [], []>} : vector<128x64xbf16>, vector<64x128xbf16>, vector<128x128xf32> -> vector<128x128xf32>
    %46 = arith.addf %31, %45 : vector<128x128xf32>
    %c1_35 = arith.constant 1 : index
    %c0_36 = arith.constant 0 : index
    %c0_37 = arith.constant 0 : index
    %c1_38 = arith.constant 1 : index
    %c0_39 = arith.constant 0 : index
    %47 = vector.load %arg1[%c1_35, %c0_36, %c0_37, %c1_38, %c0_39] : memref<4x2x9x9x64xf32, #tpu.memory_space<vmem>>, vector<1x2x8x8x64xf32>
    %48 = vector.shape_cast %47 : vector<1x2x8x8x64xf32> to vector<2x8x8x64xf32>
    %49 = vector.shape_cast %48 : vector<2x8x8x64xf32> to vector<128x64xf32>
    %50 = arith.truncf %49 : vector<128x64xf32> to vector<128x64xbf16>
    %cst_40 = arith.constant dense<0.000000e+00> : vector<128x64xf32>
    %51 = tpu.matmul %50, %0, %cst_40 {dimension_numbers = #tpu.dot_dimension_numbers<[1], [0], [0], [1], [0, 0, 1, 1], [], []>} : vector<128x64xbf16>, vector<64x64xbf16>, vector<128x64xf32> -> vector<128x64xf32>
    %cst_41 = arith.constant 0.000000e+00 : f32
    %52 = vector.broadcast %cst_41 : f32 to vector<128x64xf32>
    %53 = arith.cmpf ogt, %51, %52 : vector<128x64xf32>
    %cst_42 = arith.constant 2.000000e-01 : f32
    %54 = vector.broadcast %cst_42 : f32 to vector<128x64xf32>
    %55 = arith.mulf %54, %51 : vector<128x64xf32>
    %56 = arith.select %53, %51, %55 : vector<128x64xi1>, vector<128x64xf32>
    %57 = arith.truncf %56 : vector<128x64xf32> to vector<128x64xbf16>
    %c3 = arith.constant 3 : index
    %c0_43 = arith.constant 0 : index
    %c0_44 = arith.constant 0 : index
    %58 = vector.load %arg3[%c3, %c0_43, %c0_44] : memref<16x64x128xbf16, #tpu.memory_space<vmem>>, vector<1x64x128xbf16>
    %59 = vector.shape_cast %58 : vector<1x64x128xbf16> to vector<64x128xbf16>
    %cst_45 = arith.constant dense<0.000000e+00> : vector<128x128xf32>
    %60 = tpu.matmul %57, %59, %cst_45 {dimension_numbers = #tpu.dot_dimension_numbers<[1], [0], [0], [1], [0, 0, 1, 1], [], []>} : vector<128x64xbf16>, vector<64x128xbf16>, vector<128x128xf32> -> vector<128x128xf32>
    %61 = arith.addf %46, %60 : vector<128x128xf32>
    %c2_46 = arith.constant 2 : index
    %c0_47 = arith.constant 0 : index
    %c0_48 = arith.constant 0 : index
    %c0_49 = arith.constant 0 : index
    %c0_50 = arith.constant 0 : index
    %62 = vector.load %arg1[%c2_46, %c0_47, %c0_48, %c0_49, %c0_50] : memref<4x2x9x9x64xf32, #tpu.memory_space<vmem>>, vector<1x2x8x8x64xf32>
    %63 = vector.shape_cast %62 : vector<1x2x8x8x64xf32> to vector<2x8x8x64xf32>
    %64 = vector.shape_cast %63 : vector<2x8x8x64xf32> to vector<128x64xf32>
    %65 = arith.truncf %64 : vector<128x64xf32> to vector<128x64xbf16>
    %cst_51 = arith.constant dense<0.000000e+00> : vector<128x64xf32>
    %66 = tpu.matmul %65, %0, %cst_51 {dimension_numbers = #tpu.dot_dimension_numbers<[1], [0], [0], [1], [0, 0, 1, 1], [], []>} : vector<128x64xbf16>, vector<64x64xbf16>, vector<128x64xf32> -> vector<128x64xf32>
    %cst_52 = arith.constant 0.000000e+00 : f32
    %67 = vector.broadcast %cst_52 : f32 to vector<128x64xf32>
    %68 = arith.cmpf ogt, %66, %67 : vector<128x64xf32>
    %cst_53 = arith.constant 2.000000e-01 : f32
    %69 = vector.broadcast %cst_53 : f32 to vector<128x64xf32>
    %70 = arith.mulf %69, %66 : vector<128x64xf32>
    %71 = arith.select %68, %66, %70 : vector<128x64xi1>, vector<128x64xf32>
    %72 = arith.truncf %71 : vector<128x64xf32> to vector<128x64xbf16>
    %c4 = arith.constant 4 : index
    %c0_54 = arith.constant 0 : index
    %c0_55 = arith.constant 0 : index
    %73 = vector.load %arg3[%c4, %c0_54, %c0_55] : memref<16x64x128xbf16, #tpu.memory_space<vmem>>, vector<1x64x128xbf16>
    %74 = vector.shape_cast %73 : vector<1x64x128xbf16> to vector<64x128xbf16>
    %cst_56 = arith.constant dense<0.000000e+00> : vector<128x128xf32>
    %75 = tpu.matmul %72, %74, %cst_56 {dimension_numbers = #tpu.dot_dimension_numbers<[1], [0], [0], [1], [0, 0, 1, 1], [], []>} : vector<128x64xbf16>, vector<64x128xbf16>, vector<128x128xf32> -> vector<128x128xf32>
    %76 = arith.addf %61, %75 : vector<128x128xf32>
    %c3_57 = arith.constant 3 : index
    %c0_58 = arith.constant 0 : index
    %c0_59 = arith.constant 0 : index
    %c0_60 = arith.constant 0 : index
    %c0_61 = arith.constant 0 : index
    %77 = vector.load %arg1[%c3_57, %c0_58, %c0_59, %c0_60, %c0_61] : memref<4x2x9x9x64xf32, #tpu.memory_space<vmem>>, vector<1x2x8x8x64xf32>
    %78 = vector.shape_cast %77 : vector<1x2x8x8x64xf32> to vector<2x8x8x64xf32>
    %79 = vector.shape_cast %78 : vector<2x8x8x64xf32> to vector<128x64xf32>
    %80 = arith.truncf %79 : vector<128x64xf32> to vector<128x64xbf16>
    %cst_62 = arith.constant dense<0.000000e+00> : vector<128x64xf32>
    %81 = tpu.matmul %80, %0, %cst_62 {dimension_numbers = #tpu.dot_dimension_numbers<[1], [0], [0], [1], [0, 0, 1, 1], [], []>} : vector<128x64xbf16>, vector<64x64xbf16>, vector<128x64xf32> -> vector<128x64xf32>
    %cst_63 = arith.constant 0.000000e+00 : f32
    %82 = vector.broadcast %cst_63 : f32 to vector<128x64xf32>
    %83 = arith.cmpf ogt, %81, %82 : vector<128x64xf32>
    %cst_64 = arith.constant 2.000000e-01 : f32
    %84 = vector.broadcast %cst_64 : f32 to vector<128x64xf32>
    %85 = arith.mulf %84, %81 : vector<128x64xf32>
    %86 = arith.select %83, %81, %85 : vector<128x64xi1>, vector<128x64xf32>
    %87 = arith.truncf %86 : vector<128x64xf32> to vector<128x64xbf16>
    %c5 = arith.constant 5 : index
    %c0_65 = arith.constant 0 : index
    %c0_66 = arith.constant 0 : index
    %88 = vector.load %arg3[%c5, %c0_65, %c0_66] : memref<16x64x128xbf16, #tpu.memory_space<vmem>>, vector<1x64x128xbf16>
    %89 = vector.shape_cast %88 : vector<1x64x128xbf16> to vector<64x128xbf16>
    %cst_67 = arith.constant dense<0.000000e+00> : vector<128x128xf32>
    %90 = tpu.matmul %87, %89, %cst_67 {dimension_numbers = #tpu.dot_dimension_numbers<[1], [0], [0], [1], [0, 0, 1, 1], [], []>} : vector<128x64xbf16>, vector<64x128xbf16>, vector<128x128xf32> -> vector<128x128xf32>
    %91 = arith.addf %76, %90 : vector<128x128xf32>
    %c2_68 = arith.constant 2 : index
    %c0_69 = arith.constant 0 : index
    %c0_70 = arith.constant 0 : index
    %c1_71 = arith.constant 1 : index
    %c0_72 = arith.constant 0 : index
    %92 = vector.load %arg1[%c2_68, %c0_69, %c0_70, %c1_71, %c0_72] : memref<4x2x9x9x64xf32, #tpu.memory_space<vmem>>, vector<1x2x8x8x64xf32>
    %93 = vector.shape_cast %92 : vector<1x2x8x8x64xf32> to vector<2x8x8x64xf32>
    %94 = vector.shape_cast %93 : vector<2x8x8x64xf32> to vector<128x64xf32>
    %95 = arith.truncf %94 : vector<128x64xf32> to vector<128x64xbf16>
    %cst_73 = arith.constant dense<0.000000e+00> : vector<128x64xf32>
    %96 = tpu.matmul %95, %0, %cst_73 {dimension_numbers = #tpu.dot_dimension_numbers<[1], [0], [0], [1], [0, 0, 1, 1], [], []>} : vector<128x64xbf16>, vector<64x64xbf16>, vector<128x64xf32> -> vector<128x64xf32>
    %cst_74 = arith.constant 0.000000e+00 : f32
    %97 = vector.broadcast %cst_74 : f32 to vector<128x64xf32>
    %98 = arith.cmpf ogt, %96, %97 : vector<128x64xf32>
    %cst_75 = arith.constant 2.000000e-01 : f32
    %99 = vector.broadcast %cst_75 : f32 to vector<128x64xf32>
    %100 = arith.mulf %99, %96 : vector<128x64xf32>
    %101 = arith.select %98, %96, %100 : vector<128x64xi1>, vector<128x64xf32>
    %102 = arith.truncf %101 : vector<128x64xf32> to vector<128x64xbf16>
    %c6 = arith.constant 6 : index
    %c0_76 = arith.constant 0 : index
    %c0_77 = arith.constant 0 : index
    %103 = vector.load %arg3[%c6, %c0_76, %c0_77] : memref<16x64x128xbf16, #tpu.memory_space<vmem>>, vector<1x64x128xbf16>
    %104 = vector.shape_cast %103 : vector<1x64x128xbf16> to vector<64x128xbf16>
    %cst_78 = arith.constant dense<0.000000e+00> : vector<128x128xf32>
    %105 = tpu.matmul %102, %104, %cst_78 {dimension_numbers = #tpu.dot_dimension_numbers<[1], [0], [0], [1], [0, 0, 1, 1], [], []>} : vector<128x64xbf16>, vector<64x128xbf16>, vector<128x128xf32> -> vector<128x128xf32>
    %106 = arith.addf %91, %105 : vector<128x128xf32>
    %c3_79 = arith.constant 3 : index
    %c0_80 = arith.constant 0 : index
    %c0_81 = arith.constant 0 : index
    %c1_82 = arith.constant 1 : index
    %c0_83 = arith.constant 0 : index
    %107 = vector.load %arg1[%c3_79, %c0_80, %c0_81, %c1_82, %c0_83] : memref<4x2x9x9x64xf32, #tpu.memory_space<vmem>>, vector<1x2x8x8x64xf32>
    %108 = vector.shape_cast %107 : vector<1x2x8x8x64xf32> to vector<2x8x8x64xf32>
    %109 = vector.shape_cast %108 : vector<2x8x8x64xf32> to vector<128x64xf32>
    %110 = arith.truncf %109 : vector<128x64xf32> to vector<128x64xbf16>
    %cst_84 = arith.constant dense<0.000000e+00> : vector<128x64xf32>
    %111 = tpu.matmul %110, %0, %cst_84 {dimension_numbers = #tpu.dot_dimension_numbers<[1], [0], [0], [1], [0, 0, 1, 1], [], []>} : vector<128x64xbf16>, vector<64x64xbf16>, vector<128x64xf32> -> vector<128x64xf32>
    %cst_85 = arith.constant 0.000000e+00 : f32
    %112 = vector.broadcast %cst_85 : f32 to vector<128x64xf32>
    %113 = arith.cmpf ogt, %111, %112 : vector<128x64xf32>
    %cst_86 = arith.constant 2.000000e-01 : f32
    %114 = vector.broadcast %cst_86 : f32 to vector<128x64xf32>
    %115 = arith.mulf %114, %111 : vector<128x64xf32>
    %116 = arith.select %113, %111, %115 : vector<128x64xi1>, vector<128x64xf32>
    %117 = arith.truncf %116 : vector<128x64xf32> to vector<128x64xbf16>
    %c7 = arith.constant 7 : index
    %c0_87 = arith.constant 0 : index
    %c0_88 = arith.constant 0 : index
    %118 = vector.load %arg3[%c7, %c0_87, %c0_88] : memref<16x64x128xbf16, #tpu.memory_space<vmem>>, vector<1x64x128xbf16>
    %119 = vector.shape_cast %118 : vector<1x64x128xbf16> to vector<64x128xbf16>
    %cst_89 = arith.constant dense<0.000000e+00> : vector<128x128xf32>
    %120 = tpu.matmul %117, %119, %cst_89 {dimension_numbers = #tpu.dot_dimension_numbers<[1], [0], [0], [1], [0, 0, 1, 1], [], []>} : vector<128x64xbf16>, vector<64x128xbf16>, vector<128x128xf32> -> vector<128x128xf32>
    %121 = arith.addf %106, %120 : vector<128x128xf32>
    %c0_90 = arith.constant 0 : index
    %c0_91 = arith.constant 0 : index
    %c1_92 = arith.constant 1 : index
    %c0_93 = arith.constant 0 : index
    %c0_94 = arith.constant 0 : index
    %122 = vector.load %arg1[%c0_90, %c0_91, %c1_92, %c0_93, %c0_94] : memref<4x2x9x9x64xf32, #tpu.memory_space<vmem>>, vector<1x2x8x8x64xf32>
    %123 = vector.shape_cast %122 : vector<1x2x8x8x64xf32> to vector<2x8x8x64xf32>
    %124 = vector.shape_cast %123 : vector<2x8x8x64xf32> to vector<128x64xf32>
    %125 = arith.truncf %124 : vector<128x64xf32> to vector<128x64xbf16>
    %cst_95 = arith.constant dense<0.000000e+00> : vector<128x64xf32>
    %126 = tpu.matmul %125, %0, %cst_95 {dimension_numbers = #tpu.dot_dimension_numbers<[1], [0], [0], [1], [0, 0, 1, 1], [], []>} : vector<128x64xbf16>, vector<64x64xbf16>, vector<128x64xf32> -> vector<128x64xf32>
    %cst_96 = arith.constant 0.000000e+00 : f32
    %127 = vector.broadcast %cst_96 : f32 to vector<128x64xf32>
    %128 = arith.cmpf ogt, %126, %127 : vector<128x64xf32>
    %cst_97 = arith.constant 2.000000e-01 : f32
    %129 = vector.broadcast %cst_97 : f32 to vector<128x64xf32>
    %130 = arith.mulf %129, %126 : vector<128x64xf32>
    %131 = arith.select %128, %126, %130 : vector<128x64xi1>, vector<128x64xf32>
    %132 = arith.truncf %131 : vector<128x64xf32> to vector<128x64xbf16>
    %c8 = arith.constant 8 : index
    %c0_98 = arith.constant 0 : index
    %c0_99 = arith.constant 0 : index
    %133 = vector.load %arg3[%c8, %c0_98, %c0_99] : memref<16x64x128xbf16, #tpu.memory_space<vmem>>, vector<1x64x128xbf16>
    %134 = vector.shape_cast %133 : vector<1x64x128xbf16> to vector<64x128xbf16>
    %cst_100 = arith.constant dense<0.000000e+00> : vector<128x128xf32>
    %135 = tpu.matmul %132, %134, %cst_100 {dimension_numbers = #tpu.dot_dimension_numbers<[1], [0], [0], [1], [0, 0, 1, 1], [], []>} : vector<128x64xbf16>, vector<64x128xbf16>, vector<128x128xf32> -> vector<128x128xf32>
    %136 = arith.addf %121, %135 : vector<128x128xf32>
    %c1_101 = arith.constant 1 : index
    %c0_102 = arith.constant 0 : index
    %c1_103 = arith.constant 1 : index
    %c0_104 = arith.constant 0 : index
    %c0_105 = arith.constant 0 : index
    %137 = vector.load %arg1[%c1_101, %c0_102, %c1_103, %c0_104, %c0_105] : memref<4x2x9x9x64xf32, #tpu.memory_space<vmem>>, vector<1x2x8x8x64xf32>
    %138 = vector.shape_cast %137 : vector<1x2x8x8x64xf32> to vector<2x8x8x64xf32>
    %139 = vector.shape_cast %138 : vector<2x8x8x64xf32> to vector<128x64xf32>
    %140 = arith.truncf %139 : vector<128x64xf32> to vector<128x64xbf16>
    %cst_106 = arith.constant dense<0.000000e+00> : vector<128x64xf32>
    %141 = tpu.matmul %140, %0, %cst_106 {dimension_numbers = #tpu.dot_dimension_numbers<[1], [0], [0], [1], [0, 0, 1, 1], [], []>} : vector<128x64xbf16>, vector<64x64xbf16>, vector<128x64xf32> -> vector<128x64xf32>
    %cst_107 = arith.constant 0.000000e+00 : f32
    %142 = vector.broadcast %cst_107 : f32 to vector<128x64xf32>
    %143 = arith.cmpf ogt, %141, %142 : vector<128x64xf32>
    %cst_108 = arith.constant 2.000000e-01 : f32
    %144 = vector.broadcast %cst_108 : f32 to vector<128x64xf32>
    %145 = arith.mulf %144, %141 : vector<128x64xf32>
    %146 = arith.select %143, %141, %145 : vector<128x64xi1>, vector<128x64xf32>
    %147 = arith.truncf %146 : vector<128x64xf32> to vector<128x64xbf16>
    %c9 = arith.constant 9 : index
    %c0_109 = arith.constant 0 : index
    %c0_110 = arith.constant 0 : index
    %148 = vector.load %arg3[%c9, %c0_109, %c0_110] : memref<16x64x128xbf16, #tpu.memory_space<vmem>>, vector<1x64x128xbf16>
    %149 = vector.shape_cast %148 : vector<1x64x128xbf16> to vector<64x128xbf16>
    %cst_111 = arith.constant dense<0.000000e+00> : vector<128x128xf32>
    %150 = tpu.matmul %147, %149, %cst_111 {dimension_numbers = #tpu.dot_dimension_numbers<[1], [0], [0], [1], [0, 0, 1, 1], [], []>} : vector<128x64xbf16>, vector<64x128xbf16>, vector<128x128xf32> -> vector<128x128xf32>
    %151 = arith.addf %136, %150 : vector<128x128xf32>
    %c0_112 = arith.constant 0 : index
    %c0_113 = arith.constant 0 : index
    %c1_114 = arith.constant 1 : index
    %c1_115 = arith.constant 1 : index
    %c0_116 = arith.constant 0 : index
    %152 = vector.load %arg1[%c0_112, %c0_113, %c1_114, %c1_115, %c0_116] : memref<4x2x9x9x64xf32, #tpu.memory_space<vmem>>, vector<1x2x8x8x64xf32>
    %153 = vector.shape_cast %152 : vector<1x2x8x8x64xf32> to vector<2x8x8x64xf32>
    %154 = vector.shape_cast %153 : vector<2x8x8x64xf32> to vector<128x64xf32>
    %155 = arith.truncf %154 : vector<128x64xf32> to vector<128x64xbf16>
    %cst_117 = arith.constant dense<0.000000e+00> : vector<128x64xf32>
    %156 = tpu.matmul %155, %0, %cst_117 {dimension_numbers = #tpu.dot_dimension_numbers<[1], [0], [0], [1], [0, 0, 1, 1], [], []>} : vector<128x64xbf16>, vector<64x64xbf16>, vector<128x64xf32> -> vector<128x64xf32>
    %cst_118 = arith.constant 0.000000e+00 : f32
    %157 = vector.broadcast %cst_118 : f32 to vector<128x64xf32>
    %158 = arith.cmpf ogt, %156, %157 : vector<128x64xf32>
    %cst_119 = arith.constant 2.000000e-01 : f32
    %159 = vector.broadcast %cst_119 : f32 to vector<128x64xf32>
    %160 = arith.mulf %159, %156 : vector<128x64xf32>
    %161 = arith.select %158, %156, %160 : vector<128x64xi1>, vector<128x64xf32>
    %162 = arith.truncf %161 : vector<128x64xf32> to vector<128x64xbf16>
    %c10 = arith.constant 10 : index
    %c0_120 = arith.constant 0 : index
    %c0_121 = arith.constant 0 : index
    %163 = vector.load %arg3[%c10, %c0_120, %c0_121] : memref<16x64x128xbf16, #tpu.memory_space<vmem>>, vector<1x64x128xbf16>
    %164 = vector.shape_cast %163 : vector<1x64x128xbf16> to vector<64x128xbf16>
    %cst_122 = arith.constant dense<0.000000e+00> : vector<128x128xf32>
    %165 = tpu.matmul %162, %164, %cst_122 {dimension_numbers = #tpu.dot_dimension_numbers<[1], [0], [0], [1], [0, 0, 1, 1], [], []>} : vector<128x64xbf16>, vector<64x128xbf16>, vector<128x128xf32> -> vector<128x128xf32>
    %166 = arith.addf %151, %165 : vector<128x128xf32>
    %c1_123 = arith.constant 1 : index
    %c0_124 = arith.constant 0 : index
    %c1_125 = arith.constant 1 : index
    %c1_126 = arith.constant 1 : index
    %c0_127 = arith.constant 0 : index
    %167 = vector.load %arg1[%c1_123, %c0_124, %c1_125, %c1_126, %c0_127] : memref<4x2x9x9x64xf32, #tpu.memory_space<vmem>>, vector<1x2x8x8x64xf32>
    %168 = vector.shape_cast %167 : vector<1x2x8x8x64xf32> to vector<2x8x8x64xf32>
    %169 = vector.shape_cast %168 : vector<2x8x8x64xf32> to vector<128x64xf32>
    %170 = arith.truncf %169 : vector<128x64xf32> to vector<128x64xbf16>
    %cst_128 = arith.constant dense<0.000000e+00> : vector<128x64xf32>
    %171 = tpu.matmul %170, %0, %cst_128 {dimension_numbers = #tpu.dot_dimension_numbers<[1], [0], [0], [1], [0, 0, 1, 1], [], []>} : vector<128x64xbf16>, vector<64x64xbf16>, vector<128x64xf32> -> vector<128x64xf32>
    %cst_129 = arith.constant 0.000000e+00 : f32
    %172 = vector.broadcast %cst_129 : f32 to vector<128x64xf32>
    %173 = arith.cmpf ogt, %171, %172 : vector<128x64xf32>
    %cst_130 = arith.constant 2.000000e-01 : f32
    %174 = vector.broadcast %cst_130 : f32 to vector<128x64xf32>
    %175 = arith.mulf %174, %171 : vector<128x64xf32>
    %176 = arith.select %173, %171, %175 : vector<128x64xi1>, vector<128x64xf32>
    %177 = arith.truncf %176 : vector<128x64xf32> to vector<128x64xbf16>
    %c11 = arith.constant 11 : index
    %c0_131 = arith.constant 0 : index
    %c0_132 = arith.constant 0 : index
    %178 = vector.load %arg3[%c11, %c0_131, %c0_132] : memref<16x64x128xbf16, #tpu.memory_space<vmem>>, vector<1x64x128xbf16>
    %179 = vector.shape_cast %178 : vector<1x64x128xbf16> to vector<64x128xbf16>
    %cst_133 = arith.constant dense<0.000000e+00> : vector<128x128xf32>
    %180 = tpu.matmul %177, %179, %cst_133 {dimension_numbers = #tpu.dot_dimension_numbers<[1], [0], [0], [1], [0, 0, 1, 1], [], []>} : vector<128x64xbf16>, vector<64x128xbf16>, vector<128x128xf32> -> vector<128x128xf32>
    %181 = arith.addf %166, %180 : vector<128x128xf32>
    %c2_134 = arith.constant 2 : index
    %c0_135 = arith.constant 0 : index
    %c1_136 = arith.constant 1 : index
    %c0_137 = arith.constant 0 : index
    %c0_138 = arith.constant 0 : index
    %182 = vector.load %arg1[%c2_134, %c0_135, %c1_136, %c0_137, %c0_138] : memref<4x2x9x9x64xf32, #tpu.memory_space<vmem>>, vector<1x2x8x8x64xf32>
    %183 = vector.shape_cast %182 : vector<1x2x8x8x64xf32> to vector<2x8x8x64xf32>
    %184 = vector.shape_cast %183 : vector<2x8x8x64xf32> to vector<128x64xf32>
    %185 = arith.truncf %184 : vector<128x64xf32> to vector<128x64xbf16>
    %cst_139 = arith.constant dense<0.000000e+00> : vector<128x64xf32>
    %186 = tpu.matmul %185, %0, %cst_139 {dimension_numbers = #tpu.dot_dimension_numbers<[1], [0], [0], [1], [0, 0, 1, 1], [], []>} : vector<128x64xbf16>, vector<64x64xbf16>, vector<128x64xf32> -> vector<128x64xf32>
    %cst_140 = arith.constant 0.000000e+00 : f32
    %187 = vector.broadcast %cst_140 : f32 to vector<128x64xf32>
    %188 = arith.cmpf ogt, %186, %187 : vector<128x64xf32>
    %cst_141 = arith.constant 2.000000e-01 : f32
    %189 = vector.broadcast %cst_141 : f32 to vector<128x64xf32>
    %190 = arith.mulf %189, %186 : vector<128x64xf32>
    %191 = arith.select %188, %186, %190 : vector<128x64xi1>, vector<128x64xf32>
    %192 = arith.truncf %191 : vector<128x64xf32> to vector<128x64xbf16>
    %c12 = arith.constant 12 : index
    %c0_142 = arith.constant 0 : index
    %c0_143 = arith.constant 0 : index
    %193 = vector.load %arg3[%c12, %c0_142, %c0_143] : memref<16x64x128xbf16, #tpu.memory_space<vmem>>, vector<1x64x128xbf16>
    %194 = vector.shape_cast %193 : vector<1x64x128xbf16> to vector<64x128xbf16>
    %cst_144 = arith.constant dense<0.000000e+00> : vector<128x128xf32>
    %195 = tpu.matmul %192, %194, %cst_144 {dimension_numbers = #tpu.dot_dimension_numbers<[1], [0], [0], [1], [0, 0, 1, 1], [], []>} : vector<128x64xbf16>, vector<64x128xbf16>, vector<128x128xf32> -> vector<128x128xf32>
    %196 = arith.addf %181, %195 : vector<128x128xf32>
    %c3_145 = arith.constant 3 : index
    %c0_146 = arith.constant 0 : index
    %c1_147 = arith.constant 1 : index
    %c0_148 = arith.constant 0 : index
    %c0_149 = arith.constant 0 : index
    %197 = vector.load %arg1[%c3_145, %c0_146, %c1_147, %c0_148, %c0_149] : memref<4x2x9x9x64xf32, #tpu.memory_space<vmem>>, vector<1x2x8x8x64xf32>
    %198 = vector.shape_cast %197 : vector<1x2x8x8x64xf32> to vector<2x8x8x64xf32>
    %199 = vector.shape_cast %198 : vector<2x8x8x64xf32> to vector<128x64xf32>
    %200 = arith.truncf %199 : vector<128x64xf32> to vector<128x64xbf16>
    %cst_150 = arith.constant dense<0.000000e+00> : vector<128x64xf32>
    %201 = tpu.matmul %200, %0, %cst_150 {dimension_numbers = #tpu.dot_dimension_numbers<[1], [0], [0], [1], [0, 0, 1, 1], [], []>} : vector<128x64xbf16>, vector<64x64xbf16>, vector<128x64xf32> -> vector<128x64xf32>
    %cst_151 = arith.constant 0.000000e+00 : f32
    %202 = vector.broadcast %cst_151 : f32 to vector<128x64xf32>
    %203 = arith.cmpf ogt, %201, %202 : vector<128x64xf32>
    %cst_152 = arith.constant 2.000000e-01 : f32
    %204 = vector.broadcast %cst_152 : f32 to vector<128x64xf32>
    %205 = arith.mulf %204, %201 : vector<128x64xf32>
    %206 = arith.select %203, %201, %205 : vector<128x64xi1>, vector<128x64xf32>
    %207 = arith.truncf %206 : vector<128x64xf32> to vector<128x64xbf16>
    %c13 = arith.constant 13 : index
    %c0_153 = arith.constant 0 : index
    %c0_154 = arith.constant 0 : index
    %208 = vector.load %arg3[%c13, %c0_153, %c0_154] : memref<16x64x128xbf16, #tpu.memory_space<vmem>>, vector<1x64x128xbf16>
    %209 = vector.shape_cast %208 : vector<1x64x128xbf16> to vector<64x128xbf16>
    %cst_155 = arith.constant dense<0.000000e+00> : vector<128x128xf32>
    %210 = tpu.matmul %207, %209, %cst_155 {dimension_numbers = #tpu.dot_dimension_numbers<[1], [0], [0], [1], [0, 0, 1, 1], [], []>} : vector<128x64xbf16>, vector<64x128xbf16>, vector<128x128xf32> -> vector<128x128xf32>
    %211 = arith.addf %196, %210 : vector<128x128xf32>
    %c2_156 = arith.constant 2 : index
    %c0_157 = arith.constant 0 : index
    %c1_158 = arith.constant 1 : index
    %c1_159 = arith.constant 1 : index
    %c0_160 = arith.constant 0 : index
    %212 = vector.load %arg1[%c2_156, %c0_157, %c1_158, %c1_159, %c0_160] : memref<4x2x9x9x64xf32, #tpu.memory_space<vmem>>, vector<1x2x8x8x64xf32>
    %213 = vector.shape_cast %212 : vector<1x2x8x8x64xf32> to vector<2x8x8x64xf32>
    %214 = vector.shape_cast %213 : vector<2x8x8x64xf32> to vector<128x64xf32>
    %215 = arith.truncf %214 : vector<128x64xf32> to vector<128x64xbf16>
    %cst_161 = arith.constant dense<0.000000e+00> : vector<128x64xf32>
    %216 = tpu.matmul %215, %0, %cst_161 {dimension_numbers = #tpu.dot_dimension_numbers<[1], [0], [0], [1], [0, 0, 1, 1], [], []>} : vector<128x64xbf16>, vector<64x64xbf16>, vector<128x64xf32> -> vector<128x64xf32>
    %cst_162 = arith.constant 0.000000e+00 : f32
    %217 = vector.broadcast %cst_162 : f32 to vector<128x64xf32>
    %218 = arith.cmpf ogt, %216, %217 : vector<128x64xf32>
    %cst_163 = arith.constant 2.000000e-01 : f32
    %219 = vector.broadcast %cst_163 : f32 to vector<128x64xf32>
    %220 = arith.mulf %219, %216 : vector<128x64xf32>
    %221 = arith.select %218, %216, %220 : vector<128x64xi1>, vector<128x64xf32>
    %222 = arith.truncf %221 : vector<128x64xf32> to vector<128x64xbf16>
    %c14 = arith.constant 14 : index
    %c0_164 = arith.constant 0 : index
    %c0_165 = arith.constant 0 : index
    %223 = vector.load %arg3[%c14, %c0_164, %c0_165] : memref<16x64x128xbf16, #tpu.memory_space<vmem>>, vector<1x64x128xbf16>
    %224 = vector.shape_cast %223 : vector<1x64x128xbf16> to vector<64x128xbf16>
    %cst_166 = arith.constant dense<0.000000e+00> : vector<128x128xf32>
    %225 = tpu.matmul %222, %224, %cst_166 {dimension_numbers = #tpu.dot_dimension_numbers<[1], [0], [0], [1], [0, 0, 1, 1], [], []>} : vector<128x64xbf16>, vector<64x128xbf16>, vector<128x128xf32> -> vector<128x128xf32>
    %226 = arith.addf %211, %225 : vector<128x128xf32>
    %c3_167 = arith.constant 3 : index
    %c0_168 = arith.constant 0 : index
    %c1_169 = arith.constant 1 : index
    %c1_170 = arith.constant 1 : index
    %c0_171 = arith.constant 0 : index
    %227 = vector.load %arg1[%c3_167, %c0_168, %c1_169, %c1_170, %c0_171] : memref<4x2x9x9x64xf32, #tpu.memory_space<vmem>>, vector<1x2x8x8x64xf32>
    %228 = vector.shape_cast %227 : vector<1x2x8x8x64xf32> to vector<2x8x8x64xf32>
    %229 = vector.shape_cast %228 : vector<2x8x8x64xf32> to vector<128x64xf32>
    %230 = arith.truncf %229 : vector<128x64xf32> to vector<128x64xbf16>
    %cst_172 = arith.constant dense<0.000000e+00> : vector<128x64xf32>
    %231 = tpu.matmul %230, %0, %cst_172 {dimension_numbers = #tpu.dot_dimension_numbers<[1], [0], [0], [1], [0, 0, 1, 1], [], []>} : vector<128x64xbf16>, vector<64x64xbf16>, vector<128x64xf32> -> vector<128x64xf32>
    %cst_173 = arith.constant 0.000000e+00 : f32
    %232 = vector.broadcast %cst_173 : f32 to vector<128x64xf32>
    %233 = arith.cmpf ogt, %231, %232 : vector<128x64xf32>
    %cst_174 = arith.constant 2.000000e-01 : f32
    %234 = vector.broadcast %cst_174 : f32 to vector<128x64xf32>
    %235 = arith.mulf %234, %231 : vector<128x64xf32>
    %236 = arith.select %233, %231, %235 : vector<128x64xi1>, vector<128x64xf32>
    %237 = arith.truncf %236 : vector<128x64xf32> to vector<128x64xbf16>
    %c15 = arith.constant 15 : index
    %c0_175 = arith.constant 0 : index
    %c0_176 = arith.constant 0 : index
    %238 = vector.load %arg3[%c15, %c0_175, %c0_176] : memref<16x64x128xbf16, #tpu.memory_space<vmem>>, vector<1x64x128xbf16>
    %239 = vector.shape_cast %238 : vector<1x64x128xbf16> to vector<64x128xbf16>
    %cst_177 = arith.constant dense<0.000000e+00> : vector<128x128xf32>
    %240 = tpu.matmul %237, %239, %cst_177 {dimension_numbers = #tpu.dot_dimension_numbers<[1], [0], [0], [1], [0, 0, 1, 1], [], []>} : vector<128x64xbf16>, vector<64x128xbf16>, vector<128x128xf32> -> vector<128x128xf32>
    %241 = arith.addf %226, %240 : vector<128x128xf32>
    %cst_178 = arith.constant dense<0.000000e+00> : vector<128xf32>
    %242 = vector.multi_reduction <add>, %241, %cst_178 [0] : vector<128x128xf32> to vector<128xf32>
    %243 = vector.shape_cast %242 : vector<128xf32> to vector<1x128xf32>
    %cst_179 = arith.constant 1.280000e+02 : f32
    %244 = vector.broadcast %cst_179 : f32 to vector<1x128xf32>
    %245 = arith.divf %243, %244 : vector<1x128xf32>
    %246 = vector.broadcast %245 : vector<1x128xf32> to vector<128x128xf32>
    %247 = arith.subf %241, %246 : vector<128x128xf32>
    %248 = arith.mulf %247, %247 : vector<128x128xf32>
    %cst_180 = arith.constant dense<0.000000e+00> : vector<128xf32>
    %249 = vector.multi_reduction <add>, %248, %cst_180 [0] : vector<128x128xf32> to vector<128xf32>
    %250 = vector.shape_cast %249 : vector<128xf32> to vector<1x128xf32>
    %cst_181 = arith.constant 1.280000e+02 : f32
    %251 = vector.broadcast %cst_181 : f32 to vector<1x128xf32>
    %252 = arith.divf %250, %251 : vector<1x128xf32>
    %253 = vector.broadcast %245 : vector<1x128xf32> to vector<128x128xf32>
    %254 = arith.subf %241, %253 : vector<128x128xf32>
    %cst_182 = arith.constant 9.99999974E-6 : f32
    %255 = vector.broadcast %cst_182 : f32 to vector<1x128xf32>
    %256 = arith.addf %252, %255 : vector<1x128xf32>
    %257 = math.rsqrt %256 : vector<1x128xf32>
    %258 = vector.broadcast %257 : vector<1x128xf32> to vector<128x128xf32>
    %259 = arith.mulf %254, %258 : vector<128x128xf32>
    %c0_183 = arith.constant 0 : index
    %c0_184 = arith.constant 0 : index
    %260 = vector.load %arg4[%c0_183, %c0_184] : memref<1x128xf32, #tpu.memory_space<vmem>>, vector<1x128xf32>
    %261 = vector.broadcast %260 : vector<1x128xf32> to vector<128x128xf32>
    %262 = arith.mulf %259, %261 : vector<128x128xf32>
    %c0_185 = arith.constant 0 : index
    %c0_186 = arith.constant 0 : index
    %263 = vector.load %arg5[%c0_185, %c0_186] : memref<1x128xf32, #tpu.memory_space<vmem>>, vector<1x128xf32>
    %264 = vector.broadcast %263 : vector<1x128xf32> to vector<128x128xf32>
    %265 = arith.addf %262, %264 : vector<128x128xf32>
    %cst_187 = arith.constant 0.000000e+00 : f32
    %266 = vector.broadcast %cst_187 : f32 to vector<128x128xf32>
    %267 = arith.cmpf ogt, %265, %266 : vector<128x128xf32>
    %cst_188 = arith.constant 2.000000e-01 : f32
    %268 = vector.broadcast %cst_188 : f32 to vector<128x128xf32>
    %269 = arith.mulf %268, %265 : vector<128x128xf32>
    %270 = arith.select %267, %265, %269 : vector<128x128xi1>, vector<128x128xf32>
    %271 = arith.truncf %270 : vector<128x128xf32> to vector<128x128xbf16>
    %c0_189 = arith.constant 0 : index
    %c0_190 = arith.constant 0 : index
    %272 = vector.load %arg6[%c0_189, %c0_190] : memref<128x128xbf16, #tpu.memory_space<vmem>>, vector<128x128xbf16>
    tpu.vector_store %arg6[%c0_189, %c0_190], %271 {strides = array<i32>} : memref<128x128xbf16, #tpu.memory_space<vmem>>, vector<128x128xbf16>,
    return
  }
  func.func @transform_0(%arg0: i32) -> (i32, i32, i32, i32, i32) {
    %c0_i32 = arith.constant 0 : i32
    %c0_i32_0 = arith.constant 0 : i32
    %c0_i32_1 = arith.constant 0 : i32
    %c0_i32_2 = arith.constant 0 : i32
    %c0_i32_3 = arith.constant 0 : i32
    %c0_i32_4 = arith.constant 0 : i32
    return %c0_i32, %c0_i32_0, %c0_i32_1, %c0_i32_2, %c0_i32_3 : i32, i32, i32, i32, i32
  }
  func.func @transform_1(%arg0: i32) -> (i32, i32) {
    %c0_i32 = arith.constant 0 : i32
    %c0_i32_0 = arith.constant 0 : i32
    %c0_i32_1 = arith.constant 0 : i32
    return %c0_i32, %c0_i32_0 : i32, i32
  }
  func.func @transform_2(%arg0: i32) -> (i32, i32, i32) {
    %c0_i32 = arith.constant 0 : i32
    %c0_i32_0 = arith.constant 0 : i32
    %c0_i32_1 = arith.constant 0 : i32
    %c0_i32_2 = arith.constant 0 : i32
    return %c0_i32, %c0_i32_0, %c0_i32_1 : i32, i32, i32
  }
  func.func @transform_3(%arg0: i32) -> (i32, i32) {
    %c0_i32 = arith.constant 0 : i32
    %c0_i32_0 = arith.constant 0 : i32
    %c0_i32_1 = arith.constant 0 : i32
    return %c0_i32, %c0_i32_0 : i32, i32
  }
  func.func @transform_4(%arg0: i32) -> (i32, i32) {
    %c0_i32 = arith.constant 0 : i32
    %c0_i32_0 = arith.constant 0 : i32
    %c0_i32_1 = arith.constant 0 : i32
    return %c0_i32, %c0_i32_0 : i32, i32
  }
  func.func @transform_5(%arg0: i32) -> (i32, i32) {
    %c0_i32 = arith.constant 0 : i32
    %c0_i32_0 = arith.constant 0 : i32
    %c0_i32_1 = arith.constant 0 : i32
    return %c0_i32, %c0_i32_0 : i32, i32
  }
}

module attributes {stable_mosaic.version = 11 : i64} {
  func.func @_lin3_head_kernel(%arg0: i32, %arg1: i32, %arg2: memref<2x1024xbf16, #tpu.memory_space<vmem>>, %arg3: memref<1024x512xbf16, #tpu.memory_space<vmem>>, %arg4: memref<1x512xf32, #tpu.memory_space<vmem>>, %arg5: memref<1x512xf32, #tpu.memory_space<vmem>>, %arg6: memref<1x512xf32, #tpu.memory_space<vmem>>, %arg7: memref<2x3xf32, #tpu.memory_space<vmem>>, %arg8: memref<512x2xf32, #tpu.memory_space<vmem>>, %arg9: memref<3x512xf32, #tpu.memory_space<vmem>>, %arg10: memref<1x512xf32, #tpu.memory_space<vmem>>, %arg11: memref<2x512xf32, #tpu.memory_space<vmem>>, %arg12: memref<1x2x2xf32, #tpu.memory_space<vmem>>) attributes {dimension_semantics = [#tpu.dimension_semantics<parallel>, #tpu.dimension_semantics<arbitrary>], iteration_bounds = array<i64: 2, 8>, scalar_prefetch = 0 : i64, scratch_operands = 0 : i64, tpu.core_type = #tpu.core_type<tc>, window_params = [{transform_indices = @transform_0, window_bounds = array<i64: 2, 1024>}, {transform_indices = @transform_1, window_bounds = array<i64: 1024, 512>}, {transform_indices = @transform_2, window_bounds = array<i64: 1, 512>}, {transform_indices = @transform_3, window_bounds = array<i64: 1, 512>}, {transform_indices = @transform_4, window_bounds = array<i64: 1, 512>}, {pipeline_mode = #tpu.pipeline_mode<synchronous>, transform_indices = @transform_5, window_bounds = array<i64: 2, 3>}, {transform_indices = @transform_6, window_bounds = array<i64: 512, 2>}, {transform_indices = @transform_7, window_bounds = array<i64: 3, 512>}, {transform_indices = @transform_8, window_bounds = array<i64: 1, 512>}, {transform_indices = @transform_9, window_bounds = array<i64: 2, 512>}, {transform_indices = @transform_10, window_bounds = array<i64: 1, 2, 2>}]} {
    %c0_i32 = arith.constant 0 : i32
    %0 = arith.cmpi eq, %arg1, %c0_i32 : i32
    %1 = arith.extui %0 : i1 to i32
    %c0_i32_0 = arith.constant 0 : i32
    %2 = arith.cmpi ne, %1, %c0_i32_0 : i32
    scf.if %2 {
      %cst_9 = arith.constant 0.000000e+00 : f32
      %12 = vector.broadcast %cst_9 : f32 to vector<2x512xf32>
      %c0_10 = arith.constant 0 : index
      %c0_11 = arith.constant 0 : index
      %13 = vector.load %arg11[%c0_10, %c0_11] : memref<2x512xf32, #tpu.memory_space<vmem>>, vector<2x512xf32>
      tpu.vector_store %arg11[%c0_10, %c0_11], %12 {strides = array<i32>} : memref<2x512xf32, #tpu.memory_space<vmem>>, vector<2x512xf32>,
    } else {
    }
    %c0 = arith.constant 0 : index
    %c0_1 = arith.constant 0 : index
    %3 = vector.load %arg11[%c0, %c0_1] : memref<2x512xf32, #tpu.memory_space<vmem>>, vector<2x512xf32>
    %c0_2 = arith.constant 0 : index
    %c0_3 = arith.constant 0 : index
    %4 = vector.load %arg2[%c0_2, %c0_3] : memref<2x1024xbf16, #tpu.memory_space<vmem>>, vector<2x1024xbf16>
    %c0_4 = arith.constant 0 : index
    %c0_5 = arith.constant 0 : index
    %5 = vector.load %arg3[%c0_4, %c0_5] : memref<1024x512xbf16, #tpu.memory_space<vmem>>, vector<1024x512xbf16>
    %cst = arith.constant dense<0.000000e+00> : vector<2x512xf32>
    %6 = tpu.matmul %4, %5, %cst {dimension_numbers = #tpu.dot_dimension_numbers<[1], [0], [0], [1], [0, 0, 1, 1], [], []>} : vector<2x1024xbf16>, vector<1024x512xbf16>, vector<2x512xf32> -> vector<2x512xf32>
    %7 = arith.addf %3, %6 : vector<2x512xf32>
    %c0_6 = arith.constant 0 : index
    %c0_7 = arith.constant 0 : index
    %8 = vector.load %arg11[%c0_6, %c0_7] : memref<2x512xf32, #tpu.memory_space<vmem>>, vector<2x512xf32>
    tpu.vector_store %arg11[%c0_6, %c0_7], %7 {strides = array<i32>} : memref<2x512xf32, #tpu.memory_space<vmem>>, vector<2x512xf32>,
    %c7_i32 = arith.constant 7 : i32
    %9 = arith.cmpi eq, %arg1, %c7_i32 : i32
    %10 = arith.extui %9 : i1 to i32
    %c0_i32_8 = arith.constant 0 : i32
    %11 = arith.cmpi ne, %10, %c0_i32_8 : i32
    scf.if %11 {
      %c0_9 = arith.constant 0 : index
      %c0_10 = arith.constant 0 : index
      %12 = vector.load %arg11[%c0_9, %c0_10] : memref<2x512xf32, #tpu.memory_space<vmem>>, vector<2x512xf32>
      %c0_11 = arith.constant 0 : index
      %c0_12 = arith.constant 0 : index
      %13 = vector.load %arg4[%c0_11, %c0_12] : memref<1x512xf32, #tpu.memory_space<vmem>>, vector<1x512xf32>
      %14 = vector.broadcast %13 : vector<1x512xf32> to vector<2x512xf32>
      %15 = arith.addf %12, %14 : vector<2x512xf32>
      %cst_13 = arith.constant dense<0.000000e+00> : vector<512xf32>
      %16 = vector.multi_reduction <add>, %15, %cst_13 [0] : vector<2x512xf32> to vector<512xf32>
      %17 = vector.shape_cast %16 : vector<512xf32> to vector<1x512xf32>
      %cst_14 = arith.constant 2.000000e+00 : f32
      %18 = vector.broadcast %cst_14 : f32 to vector<1x512xf32>
      %19 = arith.divf %17, %18 : vector<1x512xf32>
      %20 = vector.broadcast %19 : vector<1x512xf32> to vector<2x512xf32>
      %21 = arith.subf %15, %20 : vector<2x512xf32>
      %22 = arith.mulf %21, %21 : vector<2x512xf32>
      %cst_15 = arith.constant dense<0.000000e+00> : vector<512xf32>
      %23 = vector.multi_reduction <add>, %22, %cst_15 [0] : vector<2x512xf32> to vector<512xf32>
      %24 = vector.shape_cast %23 : vector<512xf32> to vector<1x512xf32>
      %cst_16 = arith.constant 2.000000e+00 : f32
      %25 = vector.broadcast %cst_16 : f32 to vector<1x512xf32>
      %26 = arith.divf %24, %25 : vector<1x512xf32>
      %27 = vector.broadcast %19 : vector<1x512xf32> to vector<2x512xf32>
      %28 = arith.subf %15, %27 : vector<2x512xf32>
      %cst_17 = arith.constant 9.99999974E-6 : f32
      %29 = vector.broadcast %cst_17 : f32 to vector<1x512xf32>
      %30 = arith.addf %26, %29 : vector<1x512xf32>
      %31 = math.rsqrt %30 : vector<1x512xf32>
      %32 = vector.broadcast %31 : vector<1x512xf32> to vector<2x512xf32>
      %33 = arith.mulf %28, %32 : vector<2x512xf32>
      %c0_18 = arith.constant 0 : index
      %c0_19 = arith.constant 0 : index
      %34 = vector.load %arg5[%c0_18, %c0_19] : memref<1x512xf32, #tpu.memory_space<vmem>>, vector<1x512xf32>
      %35 = vector.broadcast %34 : vector<1x512xf32> to vector<2x512xf32>
      %36 = arith.mulf %33, %35 : vector<2x512xf32>
      %c0_20 = arith.constant 0 : index
      %c0_21 = arith.constant 0 : index
      %37 = vector.load %arg6[%c0_20, %c0_21] : memref<1x512xf32, #tpu.memory_space<vmem>>, vector<1x512xf32>
      %38 = vector.broadcast %37 : vector<1x512xf32> to vector<2x512xf32>
      %39 = arith.addf %36, %38 : vector<2x512xf32>
      %cst_22 = arith.constant 0.000000e+00 : f32
      %40 = vector.broadcast %cst_22 : f32 to vector<2x512xf32>
      %41 = arith.cmpf ogt, %39, %40 : vector<2x512xf32>
      %cst_23 = arith.constant 2.000000e-01 : f32
      %42 = vector.broadcast %cst_23 : f32 to vector<2x512xf32>
      %43 = arith.mulf %42, %39 : vector<2x512xf32>
      %44 = arith.select %41, %39, %43 : vector<2x512xi1>, vector<2x512xf32>
      %c0_24 = arith.constant 0 : index
      %c0_25 = arith.constant 0 : index
      %45 = vector.load %arg11[%c0_24, %c0_25] : memref<2x512xf32, #tpu.memory_space<vmem>>, vector<2x512xf32>
      tpu.vector_store %arg11[%c0_24, %c0_25], %44 {strides = array<i32>} : memref<2x512xf32, #tpu.memory_space<vmem>>, vector<2x512xf32>,
      %c0_26 = arith.constant 0 : index
      %c0_27 = arith.constant 0 : index
      %46 = vector.load %arg8[%c0_26, %c0_27] : memref<512x2xf32, #tpu.memory_space<vmem>>, vector<512x2xf32>
      %cst_28 = arith.constant dense<0.000000e+00> : vector<2x2xf32>
      %47 = tpu.matmul %44, %46, %cst_28 {dimension_numbers = #tpu.dot_dimension_numbers<[1], [0], [0], [1], [0, 0, 1, 1], [], []>} : vector<2x512xf32>, vector<512x2xf32>, vector<2x2xf32> -> vector<2x2xf32>
      %c0_29 = arith.constant 0 : index
      %c0_30 = arith.constant 0 : index
      %48 = vector.load %arg7[%c0_29, %c0_30] : memref<2x3xf32, #tpu.memory_space<vmem>>, vector<2x3xf32>
      %c0_31 = arith.constant 0 : index
      %c0_32 = arith.constant 0 : index
      %49 = vector.load %arg9[%c0_31, %c0_32] : memref<3x512xf32, #tpu.memory_space<vmem>>, vector<3x512xf32>
      %cst_33 = arith.constant dense<0.000000e+00> : vector<2x512xf32>
      %50 = tpu.matmul %48, %49, %cst_33 {dimension_numbers = #tpu.dot_dimension_numbers<[1], [0], [0], [1], [0, 0, 1, 1], [], []>} : vector<2x3xf32>, vector<3x512xf32>, vector<2x512xf32> -> vector<2x512xf32>
      %c0_34 = arith.constant 0 : index
      %c0_35 = arith.constant 0 : index
      %51 = vector.load %arg10[%c0_34, %c0_35] : memref<1x512xf32, #tpu.memory_space<vmem>>, vector<1x512xf32>
      %52 = vector.broadcast %51 : vector<1x512xf32> to vector<2x512xf32>
      %53 = arith.addf %50, %52 : vector<2x512xf32>
      %54 = arith.mulf %44, %53 : vector<2x512xf32>
      %cst_36 = arith.constant dense<0.000000e+00> : vector<2xf32>
      %55 = vector.multi_reduction <add>, %54, %cst_36 [1] : vector<2x512xf32> to vector<2xf32>
      %56 = vector.shape_cast %55 : vector<2xf32> to vector<2x1xf32>
      %57 = tpu.iota {dimensions = array<i32: 1>} : vector<2x2xi32>
      %c1_i32 = arith.constant 1 : i32
      %58 = vector.broadcast %c1_i32 : i32 to vector<2x2xi32>
      %59 = arith.cmpi eq, %57, %58 : vector<2x2xi32>
      %cst_37 = arith.constant 0.000000e+00 : f32
      %60 = vector.shape_cast %56 : vector<2x1xf32> to vector<2x1xf32>
      %61 = vector.broadcast %60 : vector<2x1xf32> to vector<2x2xf32>
      %62 = vector.broadcast %cst_37 : f32 to vector<2x2xf32>
      %63 = arith.select %59, %61, %62 : vector<2x2xi1>, vector<2x2xf32>
      %64 = arith.addf %47, %63 : vector<2x2xf32>
      %65 = vector.shape_cast %64 : vector<2x2xf32> to vector<1x2x2xf32>
      %c0_38 = arith.constant 0 : index
      %c0_39 = arith.constant 0 : index
      %c0_40 = arith.constant 0 : index
      %66 = vector.load %arg12[%c0_38, %c0_39, %c0_40] : memref<1x2x2xf32, #tpu.memory_space<vmem>>, vector<1x2x2xf32>
      tpu.vector_store %arg12[%c0_38, %c0_39, %c0_40], %65 {strides = array<i32>} : memref<1x2x2xf32, #tpu.memory_space<vmem>>, vector<1x2x2xf32>,
    } else {
    }
    return
  }
  func.func @transform_0(%arg0: i32, %arg1: i32) -> (i32, i32) {
    %c0_i32 = arith.constant 0 : i32
    %c0_i32_0 = arith.constant 0 : i32
    return %c0_i32, %arg1 : i32, i32
  }
  func.func @transform_1(%arg0: i32, %arg1: i32) -> (i32, i32) {
    %c0_i32 = arith.constant 0 : i32
    return %arg1, %arg0 : i32, i32
  }
  func.func @transform_2(%arg0: i32, %arg1: i32) -> (i32, i32) {
    %c0_i32 = arith.constant 0 : i32
    %c0_i32_0 = arith.constant 0 : i32
    return %c0_i32, %arg0 : i32, i32
  }
  func.func @transform_3(%arg0: i32, %arg1: i32) -> (i32, i32) {
    %c0_i32 = arith.constant 0 : i32
    %c0_i32_0 = arith.constant 0 : i32
    return %c0_i32, %arg0 : i32, i32
  }
  func.func @transform_4(%arg0: i32, %arg1: i32) -> (i32, i32) {
    %c0_i32 = arith.constant 0 : i32
    %c0_i32_0 = arith.constant 0 : i32
    return %c0_i32, %arg0 : i32, i32
  }
  func.func @transform_5(%arg0: i32, %arg1: i32) -> (i32, i32) {
    %c0_i32 = arith.constant 0 : i32
    %c0_i32_0 = arith.constant 0 : i32
    %c0_i32_1 = arith.constant 0 : i32
    return %c0_i32, %c0_i32_0 : i32, i32
  }
  func.func @transform_6(%arg0: i32, %arg1: i32) -> (i32, i32) {
    %c0_i32 = arith.constant 0 : i32
    %c0_i32_0 = arith.constant 0 : i32
    return %arg0, %c0_i32 : i32, i32
  }
  func.func @transform_7(%arg0: i32, %arg1: i32) -> (i32, i32) {
    %c0_i32 = arith.constant 0 : i32
    %c0_i32_0 = arith.constant 0 : i32
    return %c0_i32, %arg0 : i32, i32
  }
  func.func @transform_8(%arg0: i32, %arg1: i32) -> (i32, i32) {
    %c0_i32 = arith.constant 0 : i32
    %c0_i32_0 = arith.constant 0 : i32
    return %c0_i32, %arg0 : i32, i32
  }
  func.func @transform_9(%arg0: i32, %arg1: i32) -> (i32, i32) {
    %c0_i32 = arith.constant 0 : i32
    %c0_i32_0 = arith.constant 0 : i32
    return %c0_i32, %arg0 : i32, i32
  }
  func.func @transform_10(%arg0: i32, %arg1: i32) -> (i32, i32, i32) {
    %c0_i32 = arith.constant 0 : i32
    %c0_i32_0 = arith.constant 0 : i32
    %c0_i32_1 = arith.constant 0 : i32
    return %arg0, %c0_i32, %c0_i32_0 : i32, i32, i32
  }
}

</mosaic_0001>

<bundles_post_ra>
// kernel: discriminator_forward.3
= control target key start
LH: loop header
LB: loop body
LE: loop exit
PB: predicated region body
PF: predicated region fallthrough
CT: control target
= control target key end

     0   :  { %s6391_s0 = inlined_call_operand.vmem [shape: bf16[2,8192], index: 0, kind: input, shape index: {}]   ;;  %s6392_s1 = inlined_call_operand.hbm [shape: bf16[8192,1024], index: 1, kind: input, shape index: {}]   ;;  %s6393_s2 = inlined_call_operand.hbm [shape: f32[1,1024], index: 2, kind: input, shape index: {}]   ;;  %s6394_s3 = inlined_call_operand.hbm [shape: f32[1,1024], index: 3, kind: input, shape index: {}]   ;;  %s6395_s4 = inlined_call_operand.hbm [shape: f32[1,1024], index: 4, kind: input, shape index: {}]   ;;  %s6396_s5 = inlined_call_operand.hbm [shape: f32[2,3], index: 5, kind: input, shape index: {}]   ;;  %s6397_s6 = inlined_call_operand.vmem [shape: f32[1024,2], index: 6, kind: input, shape index: {}]   ;;  %s6398_s7 = inlined_call_operand.hbm [shape: f32[3,1024], index: 7, kind: input, shape index: {}]   ;;  %s6399_s8 = inlined_call_operand.hbm [shape: f32[1,1024], index: 8, kind: input, shape index: {}]   ;;  %s6400_s9 = inlined_call_operand.hbm [shape: f32[2,1024], index: 9, kind: output, shape index: {0}]   ;;  %s6401_s10 = inlined_call_operand.vmem [shape: f32[2,2,2], index: 10, kind: output, shape index: {1}]  }
   0x1   :  { %6422 = sst [smem:[#allocation34_spill]] %s6391_s0 }
   0x2   :  { %6423 = sst [smem:[#allocation35_spill]] %s6392_s1 }
   0x3   :  { %6424 = sst [smem:[#allocation36_spill]] %s6393_s2 }
   0x4   :  { %6425 = sst [smem:[#allocation37_spill]] %s6394_s3 }
   0x5   :  { %6426 = sst [smem:[#allocation38_spill]] %s6395_s4 }
   0x6   :  { %6427 = sst [smem:[#allocation39_spill]] %s6396_s5 }
   0x7   :  { %6428 = sst [smem:[#allocation40_spill]] %s6397_s6 }
   0x8   :  { %6429 = sst [smem:[#allocation41_spill]] %s6398_s7 }
   0x9   :  { %6430 = sst [smem:[#allocation42_spill]] %s6399_s8 }
   0xa   :  { %6431 = sst [smem:[#allocation43_spill]] %s6400_s9 }
   0xb   :  { %6432 = sst [smem:[#allocation44_spill]] %s6401_s10 }
   0xc   :  { %16 = vsyncpa [#allocation3], 0 }
   0xd   :  { %18 = vsyncpa [#allocation3 + $0x1], 0 }
   0xe   :  { %19 = vsyncpa [#allocation6], 0 }
   0xf   :  { %21 = vsyncpa [#allocation6 + $0x1], 0 }
  0x10   :  { %22 = vsyncpa [#allocation9], 0 }
  0x11   :  { %24 = vsyncpa [#allocation9 + $0x1], 0 }
  0x12   :  { %25 = vsyncpa [#allocation12], 0 }
  0x13   :  { %27 = vsyncpa [#allocation12 + $0x1], 0 }
  0x14   :  { %28 = vsyncpa [#allocation4], 0 }
  0x15   :  { %30 = vsyncpa [#allocation4 + $0x1], 0  ;;  %s5346_s13 = smov 0   ;;  %s5348_s14 = smov 0  }
  0x16   :  { %s5350_s15 = smov 0   ;;  %s5352_s16 = smov 0  }
  0x17   :  { %s5354_s17 = smov 0   ;;  %s5356_s18 = smov 0  }
  0x18   :  { %s5358_s19 = smov 0   ;;  %s5360_s20 = smov 0  }
  0x19   :  { %s5362_s21 = smov 0   ;;  %s5364_s22 = smov 0  }
  0x1a   :  { %s5366_s23 = smov 0  }
  0x1b LB: > { %6433 = sst [smem:[#allocation21_spill]] %s5243_s13  ;;  %s5400_s24 = sadd.s32 4294967295, %s5283_s23   ;;  %s5283_s23 = sphi %s5366_s23, %s36_s23   ;;  %s5279_s22 = sphi %s5364_s22, %s6499_s22   ;;  %s5275_s21 = sphi %s5362_s21, %s6492_s21   ;;  %s5271_s20 = sphi %s5360_s20, %s6498_s20   ;;  %s5267_s19 = sphi %s5358_s19, %s6491_s19   ;;  %s5263_s18 = sphi %s5356_s18, %s6497_s18   ;;  %s5259_s17 = sphi %s5354_s17, %s6496_s17   ;;  %s5255_s16 = sphi %s5352_s16, %s6489_s16   ;;  %s5251_s15 = sphi %s5350_s15, %s6495_s15   ;;  %s5247_s14 = sphi %s5348_s14, %s6494_s14   ;;  %s5243_s13 = sphi %s5346_s13, %s6488_s13  }
  0x1c   : > { %6434 = sst [smem:[#allocation22_spill]] %s5247_s14  ;;  %s3443_s25 = sadd.s32 4294967294, %s5283_s23  }
  0x1d   : > { %6435 = sst [smem:[#allocation23_spill]] %s5259_s17  ;;  %p96_p0 = scmp.ne.s32.totalorder %s5259_s17, %s5255_s16 }
  0x1e   : > { %6436 = sst [smem:[#allocation24_spill]] %s5267_s19  ;;  %p97_p1 = scmp.eq.s32.totalorder %s5400_s24, 0 }
  0x1f   : > { %6437 = sst [smem:[#allocation25_spill]] %s5271_s20  ;;  %p122_p2 = scmp.ne.s32.totalorder %s5247_s14, %s5243_s13 }
  0x20   : > { %6438 = sst [smem:[#allocation26_spill]] %s5275_s21  ;;  %p297_p3 = scmp.eq.s32.totalorder %s5400_s24, 15 }
  0x21   : > { %6439 = sst [smem:[#allocation27_spill]] %s5400_s24  ;;  %p5410_p4 = por %p97_p1, %p96_p0 }
  0x22   : > { %p303_p5 = scmp.eq.s32.totalorder %s3443_s25, 15  ;;  %p5416_p6 = por %p122_p2, %p97_p1 }
  0x23   : > { %s6440_s26 = scalar_select %p5410_p4, 1, 0 }
  0x24   : > { %s6442_s27 = scalar_select %p5416_p6, 1, 0 }
  0x25   : > { %6441 = sst [smem:[#allocation28_spill]] %s6440_s26  ;;  %p3444_p7 = scmp.ge.s32.totalorder %s5283_s23, 1 }
  0x26   : > { %6443 = sst [smem:[#allocation29_spill]] %s6442_s27  ;;  %p5421_p8 = por %p303_p5, %p122_p2 }
  0x27   : > { %p336_p9 = scmp.lt.s32.totalorder %s5283_s23, 17  ;;  %s6446_s5 = sld [smem:[#allocation39_spill]] }
  0x28   : > { %s6444_s28 = scalar_select %p5421_p8, 1, 0 }
  0x29   : > { %p5429_p10 = pnand %p3444_p7, %p336_p9  ;;  %s5285_s16 = smov [#allocation10]  }
  0x2a   : > { %6445 = sst [smem:[#allocation30_spill]] %s6444_s28  ;;  %s350_s25 = sshll.u32 %s5285_s16, 4  ;;  %s351_s25 = int_to_ptr.vmem [resolvable:$true] %s350_s25 }
  0x2b   : > { %p4792_p11 = pneg %p5429_p10  ;;  %p91_p13 = scmp.eq.s32.totalorder %s5283_s23, 0 }
  0x2c   : > { %p116_p0 = scmp.ne.s32.totalorder %s5251_s15, %s5247_s14  ;;  %p4820_p2 = scmp.lt.s32.totalorder %s5283_s23, 16 }
  0x2d   : > { %s348_s11 = sshll.u32 %s6446_s5, 4  ;;  %p4793_p12 = pnand %p4792_p11, %p97_p1  ;;  %s349_s11 = int_to_ptr.hbm [resolvable:$true] %s348_s11 }
  0x2e   : > { %s5444_s30 = sshll.u32 %s5279_s22, 2  ;;  %s5447_s5 = sand.u32 1, %s5283_s23  }
  0x2f   : > { %4795 = dma.hbm_to_vmem [thread:$0]  (!%p4793_p12), %s349_s11, 32, %s351_s25, [#allocation9]  }
  0x30   : > { %p118_p5 = por %p116_p0, %p91_p13  ;;  %p5453_p7 = por %p297_p3, %p116_p0 }
  0x31   : > { %s396_s11 = sand.u32 1, %s5251_s15   ;;  %s6450_s2 = sld [smem:[#allocation36_spill]] }
  0x32   : > { %s6448_s16 = scalar_select %p5453_p7, 1, 0 }
  0x33   : > { %s5458_s25 = sshll.u32 %s396_s11, 2  ;;  %p5467_p3 = pnand %p4820_p2, %p118_p5 }
  0x34   : > { %6449 = sst [smem:[#allocation31_spill]] %s6448_s16  ;;  %s398_s10 = scalar_lea.vmem [#allocation5], %s5458_s25 }
  0x35   : > { %s406_s6 = sshll.u32 %s398_s10, 4  ;;  %s3458_s28 = sshll.u32 %s396_s11, 4  ;;  %s407_s6 = int_to_ptr.vmem [resolvable:$true] %s406_s6 }
  0x36   : > { %s4516_s29 = sshll.u32 %s5279_s22, 4  ;;  %s464_s10 = scalar_lea.vmem [#allocation11], %s3458_s28 }
  0x37   : > { %s402_s13 = scalar_lea.hbm %s6450_s2, %s5444_s30  ;;  %s473_s2 = sshll.u32 %s464_s10, 4  ;;  %s474_s2 = int_to_ptr.vmem [resolvable:$true] %s473_s2 }
  0x38   : > { %s404_s9 = sshll.u32 %s402_s13, 4  ;;  %s6412_s13 = scalar_lea.sflag [#allocation6], %s5447_s5  ;;  %s405_s9 = int_to_ptr.hbm [resolvable:$true] %s404_s9 }
  0x39   : > { %4802 = dma.hbm_to_vmem [thread:$0]  (!%p5467_p3), %s405_s9, 64, %s407_s6, %s6412_s13  }
  0x3a   : > { %s6452_s7 = sld [smem:[#allocation41_spill]]  ;;  %s6411_s11 = scalar_lea.sflag [#allocation12], %s5447_s5 }
  0x3b   : > { %s45_s6 = sadd.s32 1, %s5275_s21  ;;  %s83_s9 = sadd.s32 1, %s5263_s18 }
  0x3c   : > { %p46_p9 = scmp.ge.s32.totalorder %s45_s6, 8  ;;  %p90_p11 = scmp.ne.s32.totalorder %s5263_s18, %s5259_s17 }
  0x3d   : > { %s369_s28 = sand.u32 1, %s5263_s18   ;;  %s4515_s10 = sshll.u32 %s5275_s21, 10 }
  0x3e   : > { %s6501_s6 = smov (%p46_p9, %s45_s6), 0  ;;  %s6454_s0 = sadd.s32 1, %s5279_s22 }
  0x3f   : > { %6453 = sst [smem:[#allocation32_spill]] %s6501_s6  ;;  %s6503_s0 = smov (!%p46_p9, %s6454_s0), %s5279_s22 }
  0x40   : > { %s469_s19 = scalar_lea.hbm %s6452_s7, %s4516_s29  ;;  %p5500_p12 = por %p91_p13, %p90_p11 }
  0x41   : > { %s471_s27 = sshll.u32 %s469_s19, 4  ;;  %s78_s19 = ssub.s32 %s5275_s21, %s6501_s6  ;;  %s472_s27 = int_to_ptr.hbm [resolvable:$true] %s471_s27 }
  0x42   : > { %4811 = dma.hbm_to_vmem [thread:$0]  (!%p5467_p3), %s472_s27, 256, %s474_s2, %s6411_s11  }
  0x43   : > { %p50_p0 = scmp.ge.s32.totalorder %s6503_s0, 2  ;;  %s3447_s2 = sshll.u32 %s369_s28, 11 }
  0x44   : > { %s379_s27 = sadd.s32 %s4515_s10, %s5444_s30  ;;  %s6457_s1 = sld [smem:[#allocation35_spill]] }
  0x45   : > { %s6505_s0 = smov (%p50_p0, %s6503_s0), 0  ;;  %s3451_s29 = sshll.u32 %s379_s27, 2 }
  0x46   : > { %6456 = sst [smem:[#allocation33_spill]] %s6505_s0  ;;  %s79_s11 = ssub.s32 %s5279_s22, %s6505_s0 }
  0x47   : > { %s80_s6 = sor.u32 %s79_s11, %s78_s19  ;;  %p107_p13 = scmp.eq.s32.totalorder %s79_s11, 0 }
  0x48   : > { %p81_p5 = scmp.eq.s32.totalorder %s80_s6, 0  ;;  %s6458_s24 = sadd.s32 1, %s5251_s15 }
  0x49   : > { %s5515_s26 = scalar_select %p107_p13, %s5251_s15, %s6458_s24  }
  0x4a   : > { %s381_s14 = scalar_lea.hbm %s6457_s1, %s3451_s29  ;;  %s373_s10 = scalar_lea.vmem [#allocation2], %s3447_s2 }
  0x4b   : > { %s382_s21 = sshll.u32 %s381_s14, 4  ;;  %s384_s27 = sshll.u32 %s373_s10, 4  ;;  %s383_s21 = int_to_ptr.hbm [resolvable:$true] %s382_s21  ;;  %s385_s27 = int_to_ptr.vmem [resolvable:$true] %s384_s27 }
  0x4c   : > { %s5518_s17 = scalar_select %p81_p5, %s5263_s18, %s83_s9  }
  0x4d   : > { %p4797_p9 = pnand %p4820_p2, %p5500_p12  ;;  %s370_s7 = scalar_lea.sflag [#allocation3], %s369_s28 }
  0x4e   : > { %s5286_s13 = smov 512   ;;  %s5287_s11 = smov 256  }
  0x4f   : > { %s5288_s14 = smov 16   ;;  %s6459_s3 = sld [smem:[#allocation37_spill]] }
  0x50   : > { %4799 = dma.hbm_to_vmem [thread:$0]  (!%p4797_p9), %s383_s21, 32768, %s385_s27, %s370_s7, %s5286_s13, %s5287_s11, %s5288_s14  }
  0x51   : > { %s417_s2 = scalar_lea.vmem [#allocation7], %s5458_s25  ;;  %s6460_s20 = scalar_lea.sflag [#allocation6], %s5447_s5 }
  0x52   : > { %s425_s29 = sshll.u32 %s417_s2, 4  ;;  %s6461_s4 = sld [smem:[#allocation38_spill]]  ;;  %s426_s29 = int_to_ptr.vmem [resolvable:$true] %s425_s29 }
  0x53   : > { %s436_s27 = scalar_lea.vmem [#allocation8], %s5458_s25  ;;  %s433_s11 = scalar_lea.sflag [#allocation9], %s5447_s5 }
  0x54   : > { %s444_s7 = sshll.u32 %s436_s27, 4  ;;  %s6462_s8 = sld [smem:[#allocation42_spill]]  ;;  %s445_s7 = int_to_ptr.vmem [resolvable:$true] %s444_s7 }
  0x55   : > { %s421_s9 = scalar_lea.hbm %s6459_s3, %s5444_s30 }
  0x56   : > { %s423_s19 = sshll.u32 %s421_s9, 4  ;;  %s484_s9 = scalar_lea.vmem [#allocation13], %s5458_s25  ;;  %s424_s19 = int_to_ptr.hbm [resolvable:$true] %s423_s19 }
  0x57   : > { %4805 = dma.hbm_to_vmem [thread:$0]  (!%p5467_p3), %s424_s19, 64, %s426_s29, %s6460_s20  }
  0x58   : > { %s440_s21 = scalar_lea.hbm %s6461_s4, %s5444_s30  ;;  %s492_s2 = sshll.u32 %s484_s9, 4  ;;  %s493_s2 = int_to_ptr.vmem [resolvable:$true] %s492_s2 }
  0x59   : > { %s442_s13 = sshll.u32 %s440_s21, 4  ;;  %s6463_s19 = scalar_lea.sflag [#allocation12], %s5447_s5  ;;  %s443_s13 = int_to_ptr.hbm [resolvable:$true] %s442_s13 }
  0x5a   : > { %4808 = dma.hbm_to_vmem [thread:$0]  (!%p5467_p3), %s443_s13, 64, %s445_s7, %s433_s11  }
  0x5b   : > { %s488_s6 = scalar_lea.hbm %s6462_s8, %s5444_s30  ;;  %501 = sbr.rel (%p5429_p10) target bundleno = 912 (0x390), region = 56 }
  0x5c   : > { %s490_s1 = sshll.u32 %s488_s6, 4  ;;  %s6464_s29 = sld [smem:[#allocation23_spill]] (!%p5429_p10)  ;;  %s491_s1 = int_to_ptr.hbm [resolvable:$true] %s490_s1 }
  0x5d   : > { %4814 = dma.hbm_to_vmem [thread:$0]  (!%p5467_p3), %s491_s1, 64, %s493_s2, %s6463_s19  }
  0x62   : > { %s503_s28 = sand.u32 1, %s6464_s29  }
  0x63   : > { %s3464_s10 = sshll.u32 %s503_s28, 11  ;;  %s504_s21 = scalar_lea.sflag [#allocation3], %s503_s28 }
  0x64   : > { %s5553_s27 = scalar_lea.vmem [#allocation2], %s3464_s10 }
  0x65   : > { %5218 = dma.done.wait (%p5410_p4), %s504_s21, 32768  }
  0x66   : > { %5220 = vsyncadd (%p5410_p4), %s504_s21, 4294934528  ;;  %s6466_s30 = sld [smem:[#allocation27_spill]] }
  0x67   : > { %s6467_s25 = sld [smem:[#allocation22_spill]] }
  0x6c   : > { %s513_s5 = sand.u32 1, %s6466_s30  }
  0x6d   : > { %s5561_s1 = sand.u32 1, %s6467_s25   ;;  %s514_s7 = scalar_lea.sflag [#allocation6], %s513_s5 }
  0x6e   : > { %s5564_s12 = sshll.u32 %s5561_s1, 2 }
  0x6f   : > { %5222 = dma.done.wait (%p5416_p6), %s514_s7, 128  }
  0x70   : > { %5224 = vsyncadd (%p5416_p6), %s514_s7, 4294967168  ;;  %s534_s14 = scalar_lea.sflag [#allocation9], %s513_s5 }
  0x71   : > { %5226 = dma.done.wait (%p5416_p6), %s534_s14, 64  }
  0x72   : > { %5228 = vsyncadd (%p5416_p6), %s534_s14, 4294967232 }
  0x73   : > { %5230 = dma.done.wait (%p97_p1), [#allocation9], 32  }
  0x74   : > { %5232 = vsyncadd (%p97_p1), [#allocation9], 4294967264  ;;  %s3469_s6 = sshll.u32 %s5561_s1, 4  ;;  %s549_s9 = scalar_lea.sflag [#allocation12], %s513_s5 }
  0x75   : > { %s5582_s2 = scalar_lea.vmem [#allocation11], %s3469_s6 }
  0x76   : > { %5234 = dma.done.wait (%p5416_p6), %s549_s9, 320  }
  0x77   : > { %5236 = vsyncadd (%p5416_p6), %s549_s9, 4294966976  ;;  %s6469_s19 = sld [smem:[#allocation24_spill]]  ;;  %s3471_s20 = sshll.u32 %s5561_s1, 3 }
  0x78   : > { %s6470_s29 = sld [smem:[#allocation25_spill]]  ;;  %s562_s8 = scalar_lea.vmem [#allocation13], %s5564_s12 }
  0x79   : > { %s6471_s25 = sld [smem:[#allocation34_spill]]  ;;  %s5610_s0 = scalar_lea.vmem [#allocation14], %s3471_s20 }
  0x7a   : > { %s6472_s6 = sld [smem:[#allocation40_spill]] }
  0x7b   : > { %s6473_s3 = sld [smem:[#allocation44_spill]] }
  0x7d   : > { %s3472_s28 = sshll.u32 %s6469_s19, 3  ;;  %p3476_p6 = scmp.ne.s32.totalorder %s6469_s19, 0 }
  0x7e   : > { %p639_p1 = scmp.lt.s32.totalorder %s3472_s28, 63  ;;  %s3473_s10 = sshll.u32 %s6470_s29, 6 }
  0x7f   : > { %p649_p4 = scmp.lt.s32.totalorder %s3473_s10, 127  ;;  %p657_p10 = scmp.lt.s32.totalorder %s6470_s29, 1 }
  0x80   : > { %s6507_s28 = smov (!%p639_p1, %s3472_s28), 63  ;;  %664 = sbr.rel (%p3476_p6) target bundleno = 135 (0x87), region = 88 }
  0x81   : > { %s6509_s10 = smov (!%p649_p4, %s3473_s10), 127  ;;  %s641_s16 = scalar_lea.vmem %s6471_s25, %s6507_s28 }
  0x82   : > { %s3474_s5 = sshll.u32 %s6509_s10, 3  ;;  %s6511_s29 = smov (!%p657_p10, %s6470_s29), 1 }
  0x83   : > { %s5601_s9 = scalar_lea.vmem %s6472_s6, %s3474_s5  ;;  %s3475_s24 = sshll.u32 %s6511_s29, 1 }
  0x84   : > { %s5607_s4 = scalar_lea.vmem %s6473_s3, %s3475_s24 }
  0x85   : > { %v5289_v0 = vmov 0.0  }
  0x86   : > { %665 = vst [vmem:[%s5610_s0] sm:$0xff] %v5289_v0 }
  0x87 PF: > { %v3591_v1 = vld [vmem:[%s5553_s27 + $0xe0] sm:$0xf]  ;;  %v4547_v2 = vld [vmem:[%s5553_s27 + $0xec] sm:$0xf0]  ;;  %vm2645_vm0 = vcmask 1041408   ;;  %vm2647_vm1 = vcmask 1045508  }
  0x88   : > { %v3719_v3 = vld [vmem:[%s5553_s27 + $0x1e0] sm:$0xf]  ;;  %v3592_v4 = vor.u32 %v4547_v2, %v3591_v1  ;;  %v4579_v5 = vld [vmem:[%s5553_s27 + $0x1ec] sm:$0xf0]  ;;  %vm2649_vm2 = vcmask 1043456  }
  0x89   : > { %v3847_v6 = vld [vmem:[%s5553_s27 + $0x2e0] sm:$0xf]  ;;  %v4611_v7 = vld [vmem:[%s5553_s27 + $0x2ec] sm:$0xf0]  ;;  %v3720_v8 = vor.u32 %v4579_v5, %v3719_v3 }
  0x8a   : > { %v3848_v9 = vor.u32 %v4611_v7, %v3847_v6  ;;  %v3975_v10 = vld [vmem:[%s5553_s27 + $0x3e0] sm:$0xf]  ;;  %v4643_v11 = vld [vmem:[%s5553_s27 + $0x3ec] sm:$0xf0]  ;;  %2222 = vmatpush.bf16.msra.mxu0 %v3592_v4 }
  0x8b   : > { %v3575_v12 = vld [vmem:[%s5553_s27 + $0xc0] sm:$0xf]  ;;  %v3976_v13 = vor.u32 %v4643_v11, %v3975_v10  ;;  %v4543_v14 = vld [vmem:[%s5553_s27 + $0xcc] sm:$0xf0]  ;;  %2235 = vmatpush.bf16.msra.mxu1 %v3720_v8 }
  0x8c   : > { %v3703_v15 = vld [vmem:[%s5553_s27 + $0x1c0] sm:$0xf]  ;;  %v4575_v16 = vld [vmem:[%s5553_s27 + $0x1cc] sm:$0xf0]  ;;  %2248 = vmatpush.bf16.msra.mxu2 %v3848_v9  ;;  %v3576_v17 = vor.u32 %v4543_v14, %v3575_v12 }
  0x8d   : > { %v3704_v18 = vor.u32 %v4575_v16, %v3703_v15  ;;  %v3831_v19 = vld [vmem:[%s5553_s27 + $0x2c0] sm:$0xf]  ;;  %v4607_v20 = vld [vmem:[%s5553_s27 + $0x2cc] sm:$0xf0]  ;;  %2261 = vmatpush.bf16.msra.mxu3 %v3976_v13 }
  0x8e   : > { %v3959_v21 = vld [vmem:[%s5553_s27 + $0x3c0] sm:$0xf]  ;;  %v3832_v22 = vor.u32 %v4607_v20, %v3831_v19  ;;  %v4639_v23 = vld [vmem:[%s5553_s27 + $0x3cc] sm:$0xf0]  ;;  %2223 = vmatpush.bf16.msra.mxu0 %v3576_v17 }
  0x8f   : > { %v3559_v24 = vld [vmem:[%s5553_s27 + $0xa0] sm:$0xf]  ;;  %v4539_v25 = vld [vmem:[%s5553_s27 + $0xac] sm:$0xf0]  ;;  %v3960_v26 = vor.u32 %v4639_v23, %v3959_v21  ;;  %2236 = vmatpush.bf16.msra.mxu1 %v3704_v18 }
  0x90   : > { %v3687_v27 = vld [vmem:[%s5553_s27 + $0x1a0] sm:$0xf]  ;;  %v4571_v28 = vld [vmem:[%s5553_s27 + $0x1ac] sm:$0xf0]  ;;  %v3560_v30 = vor.u32 %v4539_v25, %v3559_v24  ;;  %2249 = vmatpush.bf16.msra.mxu2 %v3832_v22 }
  0x91   : > { %v3815_v29 = vld [vmem:[%s5553_s27 + $0x2a0] sm:$0xf]  ;;  %v4603_v31 = vld [vmem:[%s5553_s27 + $0x2ac] sm:$0xf0]  ;;  %v3688_v34 = vor.u32 %v4571_v28, %v3687_v27  ;;  %2262 = vmatpush.bf16.msra.mxu3 %v3960_v26 }
  0x92   : > { %v3943_v32 = vld [vmem:[%s5553_s27 + $0x3a0] sm:$0xf]  ;;  %v4635_v33 = vld [vmem:[%s5553_s27 + $0x3ac] sm:$0xf0]  ;;  %v3816_v35 = vor.u32 %v4603_v31, %v3815_v29  ;;  %2224 = vmatpush.bf16.msra.mxu0 %v3560_v30 }
  0x93   : > { %v3543_v36 = vld [vmem:[%s5553_s27 + $0x80] sm:$0xf]  ;;  %v4535_v37 = vld [vmem:[%s5553_s27 + $0x8c] sm:$0xf0]  ;;  %v3944_v39 = vor.u32 %v4635_v33, %v3943_v32  ;;  %2237 = vmatpush.bf16.msra.mxu1 %v3688_v34 }
  0x94   : > { %v3671_v38 = vld [vmem:[%s5553_s27 + $0x180] sm:$0xf]  ;;  %v4567_v40 = vld [vmem:[%s5553_s27 + $0x18c] sm:$0xf0]  ;;  %v3544_v45 = vor.u32 %v4535_v37, %v3543_v36  ;;  %2250 = vmatpush.bf16.msra.mxu2 %v3816_v35 }
  0x95   : > { %v3799_v41 = vld [vmem:[%s5553_s27 + $0x280] sm:$0xf]  ;;  %v4599_v42 = vld [vmem:[%s5553_s27 + $0x28c] sm:$0xf0]  ;;  %v3672_v46 = vor.u32 %v4567_v40, %v3671_v38  ;;  %2263 = vmatpush.bf16.msra.mxu3 %v3944_v39 }
  0x96   : > { %v3927_v43 = vld [vmem:[%s5553_s27 + $0x380] sm:$0xf]  ;;  %v4631_v44 = vld [vmem:[%s5553_s27 + $0x38c] sm:$0xf0]  ;;  %v3800_v47 = vor.u32 %v4599_v42, %v3799_v41  ;;  %2225 = vmatpush.bf16.msra.mxu0 %v3544_v45 }
  0x97   : > { %v3527_v48 = vld [vmem:[%s5553_s27 + $0x60] sm:$0xf]  ;;  %v4531_v49 = vld [vmem:[%s5553_s27 + $0x6c] sm:$0xf0]  ;;  %v3928_v51 = vor.u32 %v4631_v44, %v3927_v43  ;;  %2238 = vmatpush.bf16.msra.mxu1 %v3672_v46 }
  0x98   : > { %v3655_v50 = vld [vmem:[%s5553_s27 + $0x160] sm:$0xf]  ;;  %v4563_v52 = vld [vmem:[%s5553_s27 + $0x16c] sm:$0xf0]  ;;  %v3528_v57 = vor.u32 %v4531_v49, %v3527_v48  ;;  %2251 = vmatpush.bf16.msra.mxu2 %v3800_v47 }
  0x99   : > { %v3783_v53 = vld [vmem:[%s5553_s27 + $0x260] sm:$0xf]  ;;  %v4595_v54 = vld [vmem:[%s5553_s27 + $0x26c] sm:$0xf0]  ;;  %v3656_v58 = vor.u32 %v4563_v52, %v3655_v50  ;;  %2264 = vmatpush.bf16.msra.mxu3 %v3928_v51 }
  0x9a   : > { %v3911_v55 = vld [vmem:[%s5553_s27 + $0x360] sm:$0xf]  ;;  %v4627_v56 = vld [vmem:[%s5553_s27 + $0x36c] sm:$0xf0]  ;;  %v3784_v59 = vor.u32 %v4595_v54, %v3783_v53  ;;  %2226 = vmatpush.bf16.msra.mxu0 %v3528_v57 }
  0x9b   : > { %v3511_v60 = vld [vmem:[%s5553_s27 + $0x40] sm:$0xf]  ;;  %v4527_v61 = vld [vmem:[%s5553_s27 + $0x4c] sm:$0xf0]  ;;  %v3912_v63 = vor.u32 %v4627_v56, %v3911_v55  ;;  %2239 = vmatpush.bf16.msra.mxu1 %v3656_v58 }
  0x9c   : > { %v3639_v62 = vld [vmem:[%s5553_s27 + $0x140] sm:$0xf]  ;;  %v4559_v0 = vld [vmem:[%s5553_s27 + $0x14c] sm:$0xf0]  ;;  %v3512_v5 = vor.u32 %v4527_v61, %v3511_v60  ;;  %2252 = vmatpush.bf16.msra.mxu2 %v3784_v59  ;;  %v667_v60 = vld [vmem:[%s641_s16] sm:$0xff] }
  0x9d   : > { %v3767_v1 = vld [vmem:[%s5553_s27 + $0x240] sm:$0xf]  ;;  %v4591_v2 = vld [vmem:[%s5553_s27 + $0x24c] sm:$0xf0]  ;;  %v3640_v6 = vor.u32 %v4559_v0, %v3639_v62  ;;  %2265 = vmatpush.bf16.msra.mxu3 %v3912_v63  ;;  %925 = vst [vmem:[#allocation1] ss:$9 sm:$0xff] %v667_v60 }
  0x9e   : > { %v3895_v3 = vld [vmem:[%s5553_s27 + $0x340] sm:$0xf]  ;;  %v4623_v4 = vld [vmem:[%s5553_s27 + $0x34c] sm:$0xf0]  ;;  %v3768_v7 = vor.u32 %v4591_v2, %v3767_v1  ;;  %2227 = vmatpush.bf16.msra.mxu0 %v3512_v5 }
  0x9f   : > { %v3495_v8 = vld [vmem:[%s5553_s27 + $0x20] sm:$0xf]  ;;  %v4523_v9 = vld [vmem:[%s5553_s27 + $0x2c] sm:$0xf0]  ;;  %v3896_v11 = vor.u32 %v4623_v4, %v3895_v3  ;;  %2240 = vmatpush.bf16.msra.mxu1 %v3640_v6 }
  0xa0   : > { %v3623_v10 = vld [vmem:[%s5553_s27 + $0x120] sm:$0xf]  ;;  %v4555_v12 = vld [vmem:[%s5553_s27 + $0x12c] sm:$0xf0]  ;;  %v3496_v17 = vor.u32 %v4523_v9, %v3495_v8  ;;  %2253 = vmatpush.bf16.msra.mxu2 %v3768_v7 }
  0xa1   : > { %v3751_v13 = vld [vmem:[%s5553_s27 + $0x220] sm:$0xf]  ;;  %v4587_v14 = vld [vmem:[%s5553_s27 + $0x22c] sm:$0xf0]  ;;  %v3624_v20 = vor.u32 %v4555_v12, %v3623_v10  ;;  %2266 = vmatpush.bf16.msra.mxu3 %v3896_v11 }
  0xa2   : > { %v3879_v15 = vld [vmem:[%s5553_s27 + $0x320] sm:$0xf]  ;;  %v4619_v16 = vld [vmem:[%s5553_s27 + $0x32c] sm:$0xf0]  ;;  %v3752_v21 = vor.u32 %v4587_v14, %v3751_v13  ;;  %2228 = vmatpush.bf16.msra.mxu0 %v3496_v17 }
  0xa3   : > { %v3479_v18 = vld [vmem:[%s5553_s27] sm:$0xf]  ;;  %v4519_v19 = vld [vmem:[%s5553_s27 + $0xc] sm:$0xf0]  ;;  %v3880_v25 = vor.u32 %v4619_v16, %v3879_v15  ;;  %2241 = vmatpush.bf16.msra.mxu1 %v3624_v20 }
  0xa4   : > { %v3607_v22 = vld [vmem:[%s5553_s27 + $0x100] sm:$0xf]  ;;  %v4551_v23 = vld [vmem:[%s5553_s27 + $0x10c] sm:$0xf0]  ;;  %v3480_v32 = vor.u32 %v4519_v19, %v3479_v18  ;;  %2254 = vmatpush.bf16.msra.mxu2 %v3752_v21 }
  0xa5   : > { %v3735_v24 = vld [vmem:[%s5553_s27 + $0x200] sm:$0xf]  ;;  %v4583_v26 = vld [vmem:[%s5553_s27 + $0x20c] sm:$0xf0]  ;;  %v3608_v36 = vor.u32 %v4551_v23, %v3607_v22  ;;  %2267 = vmatpush.bf16.msra.mxu3 %v3880_v25  ;;  %v5721_v22 = vld [vmem:[#allocation1] sm:$0xff] }
  0xa6   : > { %v3863_v27 = vld [vmem:[%s5553_s27 + $0x300] sm:$0xf]  ;;  %v4615_v28 = vld [vmem:[%s5553_s27 + $0x30c] sm:$0xf0]  ;;  %v3736_v37 = vor.u32 %v4583_v26, %v3735_v24  ;;  %2229 = vmatpush.bf16.msra.mxu0 %v3480_v32 }
  0xa7   : > { %v4103_v29 = vld [vmem:[%s5553_s27 + $0x4e0] sm:$0xf]  ;;  %v4675_v30 = vld [vmem:[%s5553_s27 + $0x4ec] sm:$0xf0]  ;;  %v3864_v40 = vor.u32 %v4615_v28, %v3863_v27  ;;  %2242 = vmatpush.bf16.msra.mxu1 %v3608_v36 }
  0xa8   : > { %v4231_v31 = vld [vmem:[%s5553_s27 + $0x5e0] sm:$0xf]  ;;  %v4707_v33 = vld [vmem:[%s5553_s27 + $0x5ec] sm:$0xf0]  ;;  %v4104_v41 = vor.u32 %v4675_v30, %v4103_v29  ;;  %2255 = vmatpush.bf16.msra.mxu2 %v3736_v37 }
  0xa9   : > { %v4359_v34 = vld [vmem:[%s5553_s27 + $0x6e0] sm:$0xf]  ;;  %v4739_v35 = vld [vmem:[%s5553_s27 + $0x6ec] sm:$0xf0]  ;;  %v4232_v42 = vor.u32 %v4707_v33, %v4231_v31  ;;  %2268 = vmatpush.bf16.msra.mxu3 %v3864_v40  ;;  %2230 = vmatmul.bf16.vlgmr.msra.gmra.mxu0 %v5721_v22 }
  0xaa   : > { %v4487_v38 = vld [vmem:[%s5553_s27 + $0x7e0] sm:$0xf]  ;;  %v4771_v39 = vld [vmem:[%s5553_s27 + $0x7ec] sm:$0xf0]  ;;  %v4360_v43 = vor.u32 %v4739_v35, %v4359_v34  ;;  %2274 = vmatpush.bf16.msrb.mxu0 %v4104_v41 }
  0xab   : > { %v4087_v44 = vld [vmem:[%s5553_s27 + $0x4c0] sm:$0xf]  ;;  %v4671_v45 = vld [vmem:[%s5553_s27 + $0x4cc] sm:$0xf0]  ;;  %v4488_v47 = vor.u32 %v4771_v39, %v4487_v38  ;;  %2287 = vmatpush.bf16.msrb.mxu1 %v4232_v42 }
  0xac   : > { %v4215_v46 = vld [vmem:[%s5553_s27 + $0x5c0] sm:$0xf]  ;;  %v4703_v48 = vld [vmem:[%s5553_s27 + $0x5cc] sm:$0xf0]  ;;  %v4088_v53 = vor.u32 %v4671_v45, %v4087_v44  ;;  %2300 = vmatpush.bf16.msrb.mxu2 %v4360_v43 }
  0xad   : > { %v4343_v49 = vld [vmem:[%s5553_s27 + $0x6c0] sm:$0xf]  ;;  %v4735_v50 = vld [vmem:[%s5553_s27 + $0x6cc] sm:$0xf0]  ;;  %v4216_v56 = vor.u32 %v4703_v48, %v4215_v46  ;;  %2313 = vmatpush.bf16.msrb.mxu3 %v4488_v47 }
  0xae   : > { %v4471_v51 = vld [vmem:[%s5553_s27 + $0x7c0] sm:$0xf]  ;;  %v4767_v52 = vld [vmem:[%s5553_s27 + $0x7cc] sm:$0xf0]  ;;  %v4344_v57 = vor.u32 %v4735_v50, %v4343_v49  ;;  %2275 = vmatpush.bf16.msrb.mxu0 %v4088_v53 }
  0xaf   : > { %v4071_v54 = vld [vmem:[%s5553_s27 + $0x4a0] sm:$0xf]  ;;  %v4667_v55 = vld [vmem:[%s5553_s27 + $0x4ac] sm:$0xf0]  ;;  %v4472_v61 = vor.u32 %v4767_v52, %v4471_v51  ;;  %2288 = vmatpush.bf16.msrb.mxu1 %v4216_v56 }
  0xb0   : > { %v4199_v58 = vld [vmem:[%s5553_s27 + $0x5a0] sm:$0xf]  ;;  %v4699_v59 = vld [vmem:[%s5553_s27 + $0x5ac] sm:$0xf0]  ;;  %v4072_v2 = vor.u32 %v4667_v55, %v4071_v54  ;;  %2301 = vmatpush.bf16.msrb.mxu2 %v4344_v57 }
  0xb1   : > { %v4327_v62 = vld [vmem:[%s5553_s27 + $0x6a0] sm:$0xf]  ;;  %v4731_v63 = vld [vmem:[%s5553_s27 + $0x6ac] sm:$0xf0]  ;;  %v4200_v3 = vor.u32 %v4699_v59, %v4199_v58  ;;  %2314 = vmatpush.bf16.msrb.mxu3 %v4472_v61 }
  0xb2   : > { %v4455_v0 = vld [vmem:[%s5553_s27 + $0x7a0] sm:$0xf]  ;;  %v4763_v1 = vld [vmem:[%s5553_s27 + $0x7ac] sm:$0xf0]  ;;  %v4328_v4 = vor.u32 %v4731_v63, %v4327_v62  ;;  %2276 = vmatpush.bf16.msrb.mxu0 %v4072_v2  ;;  %v4545_v2 = vld [vmem:[%s5553_s27 + $0xe4] sm:$0xf] }
  0xb3   : > { %v4055_v5 = vld [vmem:[%s5553_s27 + $0x480] sm:$0xf]  ;;  %v4663_v6 = vld [vmem:[%s5553_s27 + $0x48c] sm:$0xf0]  ;;  %v4456_v8 = vor.u32 %v4763_v1, %v4455_v0  ;;  %2289 = vmatpush.bf16.msrb.mxu1 %v4200_v3  ;;  %v3593_v3 = vld [vmem:[%s5553_s27 + $0xf0] sm:$0xf0] }
  0xb4   : > { %v4183_v7 = vld [vmem:[%s5553_s27 + $0x580] sm:$0xf]  ;;  %v4695_v9 = vld [vmem:[%s5553_s27 + $0x58c] sm:$0xf0]  ;;  %v4056_v15 = vor.u32 %v4663_v6, %v4055_v5  ;;  %2302 = vmatpush.bf16.msrb.mxu2 %v4328_v4  ;;  %v4577_v4 = vld [vmem:[%s5553_s27 + $0x1e4] sm:$0xf] }
  0xb5   : > { %v4311_v10 = vld [vmem:[%s5553_s27 + $0x680] sm:$0xf]  ;;  %v4727_v11 = vld [vmem:[%s5553_s27 + $0x68c] sm:$0xf0]  ;;  %v4184_v19 = vor.u32 %v4695_v9, %v4183_v7  ;;  %2315 = vmatpush.bf16.msrb.mxu3 %v4456_v8  ;;  %v3721_v6 = vld [vmem:[%s5553_s27 + $0x1f0] sm:$0xf0] }
  0xb6   : > { %v4439_v12 = vld [vmem:[%s5553_s27 + $0x780] sm:$0xf]  ;;  %v4759_v13 = vld [vmem:[%s5553_s27 + $0x78c] sm:$0xf0]  ;;  %v4312_v20 = vor.u32 %v4727_v11, %v4311_v10  ;;  %2277 = vmatpush.bf16.msrb.mxu0 %v4056_v15  ;;  %v4609_v7 = vld [vmem:[%s5553_s27 + $0x2e4] sm:$0xf]  ;;  %v3724_v15 = vor.u32 %v4577_v4, %v3721_v6 }
  0xb7   : > { %v4039_v14 = vld [vmem:[%s5553_s27 + $0x460] sm:$0xf]  ;;  %v4659_v16 = vld [vmem:[%s5553_s27 + $0x46c] sm:$0xf0]  ;;  %v4440_v24 = vor.u32 %v4759_v13, %v4439_v12  ;;  %2290 = vmatpush.bf16.msrb.mxu1 %v4184_v19  ;;  %v3849_v8 = vld [vmem:[%s5553_s27 + $0x2f0] sm:$0xf0] }
  0xb8   : > { %v4167_v17 = vld [vmem:[%s5553_s27 + $0x560] sm:$0xf]  ;;  %v4691_v18 = vld [vmem:[%s5553_s27 + $0x56c] sm:$0xf0]  ;;  %v4040_v30 = vor.u32 %v4659_v16, %v4039_v14  ;;  %2303 = vmatpush.bf16.msrb.mxu2 %v4312_v20  ;;  %v4641_v11 = vld [vmem:[%s5553_s27 + $0x3e4] sm:$0xf]  ;;  %v3596_v14 = vor.u32 %v4545_v2, %v3593_v3  ;;  %v3852_v16 = vor.u32 %v4609_v7, %v3849_v8 }
  0xb9   : > { %v5719_v21 = vld [vmem:[#allocation1 + $0x12] sm:$0xff]  ;;  %v5723_v23 = vld [vmem:[#allocation1 + $0x1b] sm:$0xff]  ;;  %v4295_v25 = vld [vmem:[%s5553_s27 + $0x660] sm:$0xf]  ;;  %v4168_v31 = vor.u32 %v4691_v18, %v4167_v17  ;;  %2316 = vmatpush.bf16.msrb.mxu3 %v4440_v24 }
  0xba   : > { %v4723_v26 = vld [vmem:[%s5553_s27 + $0x66c] sm:$0xf0]  ;;  %2256 = vmatmul.bf16.vlgmr.msra.gmra.mxu2 %v5719_v21  ;;  %v5728_v27 = vld [vmem:[#allocation1 + $0x9] sm:$0xff]  ;;  %2269 = vmatmul.bf16.vlgmr.msra.gmra.mxu3 %v5723_v23  ;;  %v3977_v12 = vld [vmem:[%s5553_s27 + $0x3f0] sm:$0xf0] }
  0xbb   : > { %v4423_v28 = vld [vmem:[%s5553_s27 + $0x760] sm:$0xf]  ;;  %v4755_v29 = vld [vmem:[%s5553_s27 + $0x76c] sm:$0xf0]  ;;  %2243 = vmatmul.bf16.vlgmr.msra.gmra.mxu1 %v5728_v27  ;;  %v4296_v32 = vor.u32 %v4723_v26, %v4295_v25  ;;  %2278 = vmatpush.bf16.msrb.mxu0 %v4040_v30  ;;  %v4541_v17 = vld [vmem:[%s5553_s27 + $0xc4] sm:$0xf]  ;;  %v3980_v20 = vor.u32 %v4641_v11, %v3977_v12 }
  0xbc   : > { %v4023_v33 = vld [vmem:[%s5553_s27 + $0x440] sm:$0xf]  ;;  %v4655_v34 = vld [vmem:[%s5553_s27 + $0x44c] sm:$0xf0]  ;;  %v4424_v36 = vor.u32 %v4755_v29, %v4423_v28  ;;  %2291 = vmatpush.bf16.msrb.mxu1 %v4168_v31  ;;  %v3577_v18 = vld [vmem:[%s5553_s27 + $0xd0] sm:$0xf0] }
  0xbd   : > { %v4151_v35 = vld [vmem:[%s5553_s27 + $0x540] sm:$0xf]  ;;  %v4687_v37 = vld [vmem:[%s5553_s27 + $0x54c] sm:$0xf0]  ;;  %v4024_v42 = vor.u32 %v4655_v34, %v4023_v33  ;;  %2304 = vmatpush.bf16.msrb.mxu2 %v4296_v32  ;;  %v4573_v19 = vld [vmem:[%s5553_s27 + $0x1c4] sm:$0xf]  ;;  %v3580_v31 = vor.u32 %v4541_v17, %v3577_v18 }
  0xbe   : > { %v4279_v38 = vld [vmem:[%s5553_s27 + $0x640] sm:$0xf]  ;;  %v4719_v39 = vld [vmem:[%s5553_s27 + $0x64c] sm:$0xf0]  ;;  %v4152_v43 = vor.u32 %v4687_v37, %v4151_v35  ;;  %2317 = vmatpush.bf16.msrb.mxu3 %v4424_v36  ;;  %v3705_v24 = vld [vmem:[%s5553_s27 + $0x1d0] sm:$0xf0] }
  0xbf   : > { %v4407_v40 = vld [vmem:[%s5553_s27 + $0x740] sm:$0xf]  ;;  %v4751_v41 = vld [vmem:[%s5553_s27 + $0x74c] sm:$0xf0]  ;;  %v4280_v44 = vor.u32 %v4719_v39, %v4279_v38  ;;  %2279 = vmatpush.bf16.msrb.mxu0 %v4024_v42  ;;  %v4605_v25 = vld [vmem:[%s5553_s27 + $0x2c4] sm:$0xf]  ;;  %v3708_v35 = vor.u32 %v4573_v19, %v3705_v24 }
  0xc0   : > { %v4007_v45 = vld [vmem:[%s5553_s27 + $0x420] sm:$0xf]  ;;  %v4651_v46 = vld [vmem:[%s5553_s27 + $0x42c] sm:$0xf0]  ;;  %v4408_v48 = vor.u32 %v4751_v41, %v4407_v40  ;;  %2292 = vmatpush.bf16.msrb.mxu1 %v4152_v43  ;;  %v3833_v26 = vld [vmem:[%s5553_s27 + $0x2d0] sm:$0xf0] }
  0xc1   : > { %v4135_v47 = vld [vmem:[%s5553_s27 + $0x520] sm:$0xf]  ;;  %v4683_v49 = vld [vmem:[%s5553_s27 + $0x52c] sm:$0xf0]  ;;  %v4008_v54 = vor.u32 %v4651_v46, %v4007_v45  ;;  %2305 = vmatpush.bf16.msrb.mxu2 %v4280_v44  ;;  %v4637_v28 = vld [vmem:[%s5553_s27 + $0x3c4] sm:$0xf]  ;;  %v3836_v36 = vor.u32 %v4605_v25, %v3833_v26 }
  0xc2   : > { %v4263_v50 = vld [vmem:[%s5553_s27 + $0x620] sm:$0xf]  ;;  %v4715_v51 = vld [vmem:[%s5553_s27 + $0x62c] sm:$0xf0]  ;;  %v4136_v57 = vor.u32 %v4683_v49, %v4135_v47  ;;  %2318 = vmatpush.bf16.msrb.mxu3 %v4408_v48  ;;  %v3961_v29 = vld [vmem:[%s5553_s27 + $0x3d0] sm:$0xf0] }
  0xc3   : > { %v4391_v52 = vld [vmem:[%s5553_s27 + $0x720] sm:$0xf]  ;;  %v4747_v53 = vld [vmem:[%s5553_s27 + $0x72c] sm:$0xf0]  ;;  %v4264_v58 = vor.u32 %v4715_v51, %v4263_v50  ;;  %2280 = vmatpush.bf16.msrb.mxu0 %v4008_v54  ;;  %v5779_v33 = vld [vmem:[#allocation1 + $0x3f] sm:$0xff]  ;;  %v3964_v40 = vor.u32 %v4637_v28, %v3961_v29 }
  0xc4   : > { %v3991_v55 = vld [vmem:[%s5553_s27 + $0x400] sm:$0xf]  ;;  %v4647_v56 = vld [vmem:[%s5553_s27 + $0x40c] sm:$0xf0]  ;;  %v4392_v62 = vor.u32 %v4747_v53, %v4391_v52  ;;  %2293 = vmatpush.bf16.msrb.mxu1 %v4136_v57  ;;  %v4537_v34 = vld [vmem:[%s5553_s27 + $0xa4] sm:$0xf] }
  0xc5   : > { %v4119_v59 = vld [vmem:[%s5553_s27 + $0x500] sm:$0xf]  ;;  %v4679_v60 = vld [vmem:[%s5553_s27 + $0x50c] sm:$0xf0]  ;;  %v3992_v5 = vor.u32 %v4647_v56, %v3991_v55  ;;  %2306 = vmatpush.bf16.msrb.mxu2 %v4264_v58  ;;  %v3561_v37 = vld [vmem:[%s5553_s27 + $0xb0] sm:$0xf0] }
  0xc6   : > { %v4247_v61 = vld [vmem:[%s5553_s27 + $0x600] sm:$0xf]  ;;  %v4711_v63 = vld [vmem:[%s5553_s27 + $0x60c] sm:$0xf0]  ;;  %v4120_v9 = vor.u32 %v4679_v60, %v4119_v59  ;;  %2319 = vmatpush.bf16.msrb.mxu3 %v4392_v62  ;;  %v4569_v38 = vld [vmem:[%s5553_s27 + $0x1a4] sm:$0xf]  ;;  %v3564_v46 = vor.u32 %v4537_v34, %v3561_v37 }
  0xc7   : > { %v4375_v0 = vld [vmem:[%s5553_s27 + $0x700] sm:$0xf]  ;;  %v4743_v1 = vld [vmem:[%s5553_s27 + $0x70c] sm:$0xf0]  ;;  %v4248_v10 = vor.u32 %v4711_v63, %v4247_v61  ;;  %2281 = vmatpush.bf16.msrb.mxu0 %v3992_v5  ;;  %v5784_v39 = vld [vmem:[#allocation1 + $0x2d] sm:$0xff] }
  0xc8   : > { %v4376_v13 = vor.u32 %v4743_v1, %v4375_v0  ;;  %2294 = vmatpush.bf16.msrb.mxu1 %v4120_v9  ;;  %v5775_v30 = vld [vmem:[#allocation1 + $0x36] sm:$0xff]  ;;  %v5777_v32 = vld [vmem:[#allocation1 + $0x24] sm:$0xff]  ;;  %v4601_v42 = vld [vmem:[%s5553_s27 + $0x2a4] sm:$0xf] }
  0xc9   : > { %2307 = vmatpush.bf16.msrb.mxu2 %v4248_v10  ;;  %v3689_v41 = vld [vmem:[%s5553_s27 + $0x1b0] sm:$0xf0]  ;;  %v4633_v44 = vld [vmem:[%s5553_s27 + $0x3a4] sm:$0xf] }
  0xca   : > { %2320 = vmatpush.bf16.msrb.mxu3 %v4376_v13  ;;  %v3817_v43 = vld [vmem:[%s5553_s27 + $0x2b0] sm:$0xf0]  ;;  %2282 = vmatmul.bf16.vlgmr.msrb.gmra.mxu0 %v5777_v32  ;;  %v3692_v47 = vor.u32 %v4569_v38, %v3689_v41  ;;  %v4533_v49 = vld [vmem:[%s5553_s27 + $0x84] sm:$0xf] }
  0xcb   : > { %2326 = vmatpush.bf16.msra.mxu0 %v3596_v14  ;;  %v3945_v45 = vld [vmem:[%s5553_s27 + $0x3b0] sm:$0xf0]  ;;  %2295 = vmatmul.bf16.vlgmr.msrb.gmra.mxu1 %v5784_v39  ;;  %v3820_v48 = vor.u32 %v4601_v42, %v3817_v43  ;;  %v4565_v51 = vld [vmem:[%s5553_s27 + $0x184] sm:$0xf] }
  0xcc   : > { %2339 = vmatpush.bf16.msra.mxu1 %v3724_v15  ;;  %2308 = vmatmul.bf16.vlgmr.msrb.gmra.mxu2 %v5775_v30  ;;  %v3545_v50 = vld [vmem:[%s5553_s27 + $0x90] sm:$0xf0]  ;;  %v3948_v52 = vor.u32 %v4633_v44, %v3945_v45  ;;  %v4597_v54 = vld [vmem:[%s5553_s27 + $0x284] sm:$0xf] }
  0xcd   : > { %2352 = vmatpush.bf16.msra.mxu2 %v3852_v16  ;;  %2321 = vmatmul.bf16.vlgmr.msrb.gmra.mxu3 %v5779_v33  ;;  %v3673_v53 = vld [vmem:[%s5553_s27 + $0x190] sm:$0xf0]  ;;  %v4629_v56 = vld [vmem:[%s5553_s27 + $0x384] sm:$0xf]  ;;  %v3548_v58 = vor.u32 %v4533_v49, %v3545_v50 }
  0xce   : > { %2365 = vmatpush.bf16.msra.mxu3 %v3980_v20  ;;  %v3801_v55 = vld [vmem:[%s5553_s27 + $0x290] sm:$0xf0]  ;;  %v3676_v59 = vor.u32 %v4565_v51, %v3673_v53  ;;  %v4529_v61 = vld [vmem:[%s5553_s27 + $0x64] sm:$0xf] }
  0xcf   : > { %2327 = vmatpush.bf16.msra.mxu0 %v3580_v31  ;;  %v3929_v57 = vld [vmem:[%s5553_s27 + $0x390] sm:$0xf0]  ;;  %v3804_v60 = vor.u32 %v4597_v54, %v3801_v55  ;;  %v4561_v63 = vld [vmem:[%s5553_s27 + $0x164] sm:$0xf] }
  0xd0   : > { %2340 = vmatpush.bf16.msra.mxu1 %v3708_v35  ;;  %v3529_v62 = vld [vmem:[%s5553_s27 + $0x70] sm:$0xf0]  ;;  %v3932_v0 = vor.u32 %v4629_v56, %v3929_v57  ;;  %v4593_v2 = vld [vmem:[%s5553_s27 + $0x264] sm:$0xf] }
  0xd1   : > { %2353 = vmatpush.bf16.msra.mxu2 %v3836_v36  ;;  %v3657_v1 = vld [vmem:[%s5553_s27 + $0x170] sm:$0xf0]  ;;  %v4625_v4 = vld [vmem:[%s5553_s27 + $0x364] sm:$0xf]  ;;  %v3532_v6 = vor.u32 %v4529_v61, %v3529_v62 }
  0xd2   : > { %2366 = vmatpush.bf16.msra.mxu3 %v3964_v40  ;;  %v3785_v3 = vld [vmem:[%s5553_s27 + $0x270] sm:$0xf0]  ;;  %v3660_v7 = vor.u32 %v4561_v63, %v3657_v1  ;;  %v4525_v9 = vld [vmem:[%s5553_s27 + $0x44] sm:$0xf] }
  0xd3   : > { %2328 = vmatpush.bf16.msra.mxu0 %v3564_v46  ;;  %v3913_v5 = vld [vmem:[%s5553_s27 + $0x370] sm:$0xf0]  ;;  %v3788_v8 = vor.u32 %v4593_v2, %v3785_v3  ;;  %v4557_v11 = vld [vmem:[%s5553_s27 + $0x144] sm:$0xf] }
  0xd4   : > { %2341 = vmatpush.bf16.msra.mxu1 %v3692_v47  ;;  %v3513_v10 = vld [vmem:[%s5553_s27 + $0x50] sm:$0xf0]  ;;  %v3916_v12 = vor.u32 %v4625_v4, %v3913_v5  ;;  %v4589_v14 = vld [vmem:[%s5553_s27 + $0x244] sm:$0xf] }
  0xd5   : > { %2354 = vmatpush.bf16.msra.mxu2 %v3820_v48  ;;  %v3641_v13 = vld [vmem:[%s5553_s27 + $0x150] sm:$0xf0]  ;;  %v4621_v16 = vld [vmem:[%s5553_s27 + $0x344] sm:$0xf]  ;;  %v3516_v18 = vor.u32 %v4525_v9, %v3513_v10 }
  0xd6   : > { %2367 = vmatpush.bf16.msra.mxu3 %v3948_v52  ;;  %v3769_v15 = vld [vmem:[%s5553_s27 + $0x250] sm:$0xf0]  ;;  %v3644_v19 = vor.u32 %v4557_v11, %v3641_v13  ;;  %v4521_v24 = vld [vmem:[%s5553_s27 + $0x24] sm:$0xf] }
  0xd7   : > { %2329 = vmatpush.bf16.msra.mxu0 %v3548_v58  ;;  %v3897_v17 = vld [vmem:[%s5553_s27 + $0x350] sm:$0xf0]  ;;  %v3772_v20 = vor.u32 %v4589_v14, %v3769_v15  ;;  %v4553_v26 = vld [vmem:[%s5553_s27 + $0x124] sm:$0xf] }
  0xd8   : > { %2342 = vmatpush.bf16.msra.mxu1 %v3676_v59  ;;  %v3497_v25 = vld [vmem:[%s5553_s27 + $0x30] sm:$0xf0]  ;;  %v3900_v28 = vor.u32 %v4621_v16, %v3897_v17  ;;  %v4585_v31 = vld [vmem:[%s5553_s27 + $0x224] sm:$0xf] }
  0xd9   : > { %2355 = vmatpush.bf16.msra.mxu2 %v3804_v60  ;;  %v3625_v29 = vld [vmem:[%s5553_s27 + $0x130] sm:$0xf0]  ;;  %v4617_v35 = vld [vmem:[%s5553_s27 + $0x324] sm:$0xf]  ;;  %v3500_v37 = vor.u32 %v4521_v24, %v3497_v25 }
  0xda   : > { %2368 = vmatpush.bf16.msra.mxu3 %v3932_v0  ;;  %v3753_v34 = vld [vmem:[%s5553_s27 + $0x230] sm:$0xf0]  ;;  %v4517_v38 = vld [vmem:[%s5553_s27 + $0x4] sm:$0xf]  ;;  %v3628_v41 = vor.u32 %v4553_v26, %v3625_v29 }
  0xdb   : > { %2330 = vmatpush.bf16.msra.mxu0 %v3532_v6  ;;  %v3881_v36 = vld [vmem:[%s5553_s27 + $0x330] sm:$0xf0]  ;;  %v3756_v42 = vor.u32 %v4585_v31, %v3753_v34  ;;  %v4549_v43 = vld [vmem:[%s5553_s27 + $0x104] sm:$0xf] }
  0xdc   : > { %2343 = vmatpush.bf16.msra.mxu1 %v3660_v7  ;;  %v3481_v40 = vld [vmem:[%s5553_s27 + $0x10] sm:$0xf0]  ;;  %v4581_v45 = vld [vmem:[%s5553_s27 + $0x204] sm:$0xf]  ;;  %v3884_v46 = vor.u32 %v4617_v35, %v3881_v36 }
  0xdd   : > { %2356 = vmatpush.bf16.msra.mxu2 %v3788_v8  ;;  %v3609_v44 = vld [vmem:[%s5553_s27 + $0x110] sm:$0xf0]  ;;  %v4613_v48 = vld [vmem:[%s5553_s27 + $0x304] sm:$0xf]  ;;  %v3484_v53 = vor.u32 %v4517_v38, %v3481_v40 }
  0xde   : > { %2369 = vmatpush.bf16.msra.mxu3 %v3916_v12  ;;  %v3737_v47 = vld [vmem:[%s5553_s27 + $0x210] sm:$0xf0]  ;;  %v4673_v50 = vld [vmem:[%s5553_s27 + $0x4e4] sm:$0xf]  ;;  %v3612_v57 = vor.u32 %v4549_v43, %v3609_v44 }
  0xdf   : > { %2331 = vmatpush.bf16.msra.mxu0 %v3516_v18  ;;  %v3865_v49 = vld [vmem:[%s5553_s27 + $0x310] sm:$0xf0]  ;;  %v4705_v52 = vld [vmem:[%s5553_s27 + $0x5e4] sm:$0xf]  ;;  %v3740_v58 = vor.u32 %v4581_v45, %v3737_v47 }
  0xe0   : > { %2344 = vmatpush.bf16.msra.mxu1 %v3644_v19  ;;  %v4105_v51 = vld [vmem:[%s5553_s27 + $0x4f0] sm:$0xf0]  ;;  %v4737_v55 = vld [vmem:[%s5553_s27 + $0x6e4] sm:$0xf]  ;;  %v3868_v61 = vor.u32 %v4613_v48, %v3865_v49 }
  0xe1   : > { %2357 = vmatpush.bf16.msra.mxu2 %v3772_v20  ;;  %v4233_v54 = vld [vmem:[%s5553_s27 + $0x5f0] sm:$0xf0]  ;;  %v4769_v59 = vld [vmem:[%s5553_s27 + $0x7e4] sm:$0xf]  ;;  %v4108_v62 = vor.u32 %v4673_v50, %v4105_v51 }
  0xe2   : > { %2370 = vmatpush.bf16.msra.mxu3 %v3900_v28  ;;  %v4361_v56 = vld [vmem:[%s5553_s27 + $0x6f0] sm:$0xf0]  ;;  %v4236_v63 = vor.u32 %v4705_v52, %v4233_v54  ;;  %v4669_v1 = vld [vmem:[%s5553_s27 + $0x4c4] sm:$0xf] }
  0xe3   : > { %2332 = vmatpush.bf16.msra.mxu0 %v3500_v37  ;;  %v4489_v60 = vld [vmem:[%s5553_s27 + $0x7f0] sm:$0xf0]  ;;  %v4364_v0 = vor.u32 %v4737_v55, %v4361_v56  ;;  %v4701_v3 = vld [vmem:[%s5553_s27 + $0x5c4] sm:$0xf] }
  0xe4   : > { %2345 = vmatpush.bf16.msra.mxu1 %v3628_v41  ;;  %v4089_v2 = vld [vmem:[%s5553_s27 + $0x4d0] sm:$0xf0]  ;;  %v4492_v4 = vor.u32 %v4769_v59, %v4489_v60  ;;  %v4733_v6 = vld [vmem:[%s5553_s27 + $0x6c4] sm:$0xf] }
  0xe5   : > { %2358 = vmatpush.bf16.msra.mxu2 %v3756_v42  ;;  %v4217_v5 = vld [vmem:[%s5553_s27 + $0x5d0] sm:$0xf0]  ;;  %v4765_v8 = vld [vmem:[%s5553_s27 + $0x7c4] sm:$0xf]  ;;  %v4092_v10 = vor.u32 %v4669_v1, %v4089_v2 }
  0xe6   : > { %2371 = vmatpush.bf16.msra.mxu3 %v3884_v46  ;;  %v4345_v7 = vld [vmem:[%s5553_s27 + $0x6d0] sm:$0xf0]  ;;  %v4220_v11 = vor.u32 %v4701_v3, %v4217_v5  ;;  %v4665_v13 = vld [vmem:[%s5553_s27 + $0x4a4] sm:$0xf] }
  0xe7   : > { %2333 = vmatpush.bf16.msra.mxu0 %v3484_v53  ;;  %v4473_v9 = vld [vmem:[%s5553_s27 + $0x7d0] sm:$0xf0]  ;;  %v4348_v12 = vor.u32 %v4733_v6, %v4345_v7  ;;  %v4697_v15 = vld [vmem:[%s5553_s27 + $0x5a4] sm:$0xf] }
  0xe8   : > { %2346 = vmatpush.bf16.msra.mxu1 %v3612_v57  ;;  %v4073_v14 = vld [vmem:[%s5553_s27 + $0x4b0] sm:$0xf0]  ;;  %v4476_v16 = vor.u32 %v4765_v8, %v4473_v9  ;;  %v4729_v18 = vld [vmem:[%s5553_s27 + $0x6a4] sm:$0xf] }
  0xe9   : > { %2359 = vmatpush.bf16.msra.mxu2 %v3740_v58  ;;  %v4201_v17 = vld [vmem:[%s5553_s27 + $0x5b0] sm:$0xf0]  ;;  %v4761_v20 = vld [vmem:[%s5553_s27 + $0x7a4] sm:$0xf]  ;;  %v4076_v25 = vor.u32 %v4665_v13, %v4073_v14 }
  0xea   : > { %2372 = vmatpush.bf16.msra.mxu3 %v3868_v61  ;;  %v4329_v19 = vld [vmem:[%s5553_s27 + $0x6b0] sm:$0xf0]  ;;  %2334 = vmatmul.bf16.vlgmr.msra.gmra.mxu0 %v5721_v22  ;;  %v4204_v26 = vor.u32 %v4697_v15, %v4201_v17  ;;  %v4661_v29 = vld [vmem:[%s5553_s27 + $0x484] sm:$0xf] }
  0xeb   : > { %2378 = vmatpush.bf16.msrb.mxu0 %v4108_v62  ;;  %v4457_v24 = vld [vmem:[%s5553_s27 + $0x7b0] sm:$0xf0]  ;;  %2347 = vmatmul.bf16.vlgmr.msra.gmra.mxu1 %v5728_v27  ;;  %v4332_v28 = vor.u32 %v4729_v18, %v4329_v19  ;;  %v4693_v34 = vld [vmem:[%s5553_s27 + $0x584] sm:$0xf] }
  0xec   : > { %2391 = vmatpush.bf16.msrb.mxu1 %v4236_v63  ;;  %2360 = vmatmul.bf16.vlgmr.msra.gmra.mxu2 %v5719_v21  ;;  %v4057_v31 = vld [vmem:[%s5553_s27 + $0x490] sm:$0xf0]  ;;  %v4460_v35 = vor.u32 %v4761_v20, %v4457_v24  ;;  %v4725_v37 = vld [vmem:[%s5553_s27 + $0x684] sm:$0xf] }
  0xed   : > { %2404 = vmatpush.bf16.msrb.mxu2 %v4364_v0  ;;  %2373 = vmatmul.bf16.vlgmr.msra.gmra.mxu3 %v5723_v23  ;;  %v4185_v36 = vld [vmem:[%s5553_s27 + $0x590] sm:$0xf0]  ;;  %v4757_v40 = vld [vmem:[%s5553_s27 + $0x784] sm:$0xf]  ;;  %v4060_v42 = vor.u32 %v4661_v29, %v4057_v31  ;;  %v3599_v31 = vld [vmem:[%s5553_s27 + $0xe8] sm:$0xf] }
  0xee   : > { %2417 = vmatpush.bf16.msrb.mxu3 %v4492_v4  ;;  %v4313_v38 = vld [vmem:[%s5553_s27 + $0x690] sm:$0xf0]  ;;  %v4188_v43 = vor.u32 %v4693_v34, %v4185_v36  ;;  %v4657_v45 = vld [vmem:[%s5553_s27 + $0x464] sm:$0xf]  ;;  %v4548_v34 = vld [vmem:[%s5553_s27 + $0xf4] sm:$0xf0] }
  0xef   : > { %2379 = vmatpush.bf16.msrb.mxu0 %v4092_v10  ;;  %v4441_v41 = vld [vmem:[%s5553_s27 + $0x790] sm:$0xf0]  ;;  %v4316_v44 = vor.u32 %v4725_v37, %v4313_v38  ;;  %v4689_v47 = vld [vmem:[%s5553_s27 + $0x564] sm:$0xf]  ;;  %v4580_v37 = vld [vmem:[%s5553_s27 + $0x1f4] sm:$0xf0] }
  0xf0   : > { %2392 = vmatpush.bf16.msrb.mxu1 %v4220_v11  ;;  %v4041_v46 = vld [vmem:[%s5553_s27 + $0x470] sm:$0xf0]  ;;  %v4444_v48 = vor.u32 %v4757_v40, %v4441_v41  ;;  %v4721_v50 = vld [vmem:[%s5553_s27 + $0x664] sm:$0xf]  ;;  %v3855_v38 = vld [vmem:[%s5553_s27 + $0x2e8] sm:$0xf] }
  0xf1   : > { %2405 = vmatpush.bf16.msrb.mxu2 %v4348_v12  ;;  %v4169_v49 = vld [vmem:[%s5553_s27 + $0x570] sm:$0xf0]  ;;  %v4753_v52 = vld [vmem:[%s5553_s27 + $0x764] sm:$0xf]  ;;  %v4044_v54 = vor.u32 %v4657_v45, %v4041_v46  ;;  %v4612_v40 = vld [vmem:[%s5553_s27 + $0x2f4] sm:$0xf0]  ;;  %v3600_v46 = vor.u32 %v4548_v34, %v3599_v31 }
  0xf2   : > { %2418 = vmatpush.bf16.msrb.mxu3 %v4476_v16  ;;  %v4297_v51 = vld [vmem:[%s5553_s27 + $0x670] sm:$0xf0]  ;;  %v4172_v55 = vor.u32 %v4689_v47, %v4169_v49  ;;  %v4653_v57 = vld [vmem:[%s5553_s27 + $0x444] sm:$0xf]  ;;  %v3583_v49 = vld [vmem:[%s5553_s27 + $0xc8] sm:$0xf] }
  0xf3   : > { %2380 = vmatpush.bf16.msrb.mxu0 %v4076_v25  ;;  %v4425_v53 = vld [vmem:[%s5553_s27 + $0x770] sm:$0xf0]  ;;  %v4300_v56 = vor.u32 %v4721_v50, %v4297_v51  ;;  %v4685_v59 = vld [vmem:[%s5553_s27 + $0x544] sm:$0xf]  ;;  %v4544_v50 = vld [vmem:[%s5553_s27 + $0xd4] sm:$0xf0] }
  0xf4   : > { %2393 = vmatpush.bf16.msrb.mxu1 %v4204_v26  ;;  %v4025_v58 = vld [vmem:[%s5553_s27 + $0x450] sm:$0xf0]  ;;  %v4428_v60 = vor.u32 %v4753_v52, %v4425_v53  ;;  %v4717_v62 = vld [vmem:[%s5553_s27 + $0x644] sm:$0xf]  ;;  %v3711_v51 = vld [vmem:[%s5553_s27 + $0x1c8] sm:$0xf] }
  0xf5   : > { %2406 = vmatpush.bf16.msrb.mxu2 %v4332_v28  ;;  %v4153_v61 = vld [vmem:[%s5553_s27 + $0x550] sm:$0xf0]  ;;  %v4749_v0 = vld [vmem:[%s5553_s27 + $0x744] sm:$0xf]  ;;  %v4028_v2 = vor.u32 %v4653_v57, %v4025_v58  ;;  %v4576_v53 = vld [vmem:[%s5553_s27 + $0x1d4] sm:$0xf0]  ;;  %v3584_v58 = vor.u32 %v4544_v50, %v3583_v49 }
  0xf6   : > { %2419 = vmatpush.bf16.msrb.mxu3 %v4460_v35  ;;  %v4281_v63 = vld [vmem:[%s5553_s27 + $0x650] sm:$0xf0]  ;;  %v4156_v3 = vor.u32 %v4685_v59, %v4153_v61  ;;  %v4649_v5 = vld [vmem:[%s5553_s27 + $0x424] sm:$0xf]  ;;  %v3727_v35 = vld [vmem:[%s5553_s27 + $0x1e8] sm:$0xf]  ;;  %v3712_v59 = vor.u32 %v4576_v53, %v3711_v51 }
  0xf7   : > { %2381 = vmatpush.bf16.msrb.mxu0 %v4060_v42  ;;  %v4409_v1 = vld [vmem:[%s5553_s27 + $0x750] sm:$0xf0]  ;;  %v4284_v4 = vor.u32 %v4717_v62, %v4281_v63  ;;  %v4681_v7 = vld [vmem:[%s5553_s27 + $0x524] sm:$0xf]  ;;  %v3728_v47 = vor.u32 %v4580_v37, %v3727_v35  ;;  %v4640_v57 = vld [vmem:[%s5553_s27 + $0x3d4] sm:$0xf0] }
  0xf8   : > { %2394 = vmatpush.bf16.msrb.mxu1 %v4188_v43  ;;  %v4009_v6 = vld [vmem:[%s5553_s27 + $0x430] sm:$0xf0]  ;;  %v4412_v8 = vor.u32 %v4749_v0, %v4409_v1  ;;  %v4713_v10 = vld [vmem:[%s5553_s27 + $0x624] sm:$0xf]  ;;  %v3983_v43 = vld [vmem:[%s5553_s27 + $0x3e8] sm:$0xf] }
  0xf9   : > { %2407 = vmatpush.bf16.msrb.mxu2 %v4316_v44  ;;  %v4137_v9 = vld [vmem:[%s5553_s27 + $0x530] sm:$0xf0]  ;;  %v4745_v12 = vld [vmem:[%s5553_s27 + $0x724] sm:$0xf]  ;;  %v4012_v14 = vor.u32 %v4649_v5, %v4009_v6  ;;  %v4644_v44 = vld [vmem:[%s5553_s27 + $0x3f4] sm:$0xf0] }
  0xfa   : > { %2420 = vmatpush.bf16.msrb.mxu3 %v4444_v48  ;;  %v4265_v11 = vld [vmem:[%s5553_s27 + $0x630] sm:$0xf0]  ;;  %v4645_v15 = vld [vmem:[%s5553_s27 + $0x404] sm:$0xf]  ;;  %v4140_v17 = vor.u32 %v4681_v7, %v4137_v9  ;;  %v3856_v48 = vor.u32 %v4612_v40, %v3855_v38  ;;  %v3984_v52 = vor.u32 %v4644_v44, %v3983_v43  ;;  %v3567_v61 = vld [vmem:[%s5553_s27 + $0xa8] sm:$0xf] }
  0xfb   : > { %2382 = vmatpush.bf16.msrb.mxu0 %v4044_v54  ;;  %v4393_v13 = vld [vmem:[%s5553_s27 + $0x730] sm:$0xf0]  ;;  %v4268_v18 = vor.u32 %v4713_v10, %v4265_v11  ;;  %v4677_v19 = vld [vmem:[%s5553_s27 + $0x504] sm:$0xf]  ;;  %v3839_v54 = vld [vmem:[%s5553_s27 + $0x2c8] sm:$0xf] }
  0xfc   : > { %2395 = vmatpush.bf16.msrb.mxu1 %v4172_v55  ;;  %v3993_v16 = vld [vmem:[%s5553_s27 + $0x410] sm:$0xf0]  ;;  %v4709_v24 = vld [vmem:[%s5553_s27 + $0x604] sm:$0xf]  ;;  %v4396_v25 = vor.u32 %v4745_v12, %v4393_v13  ;;  %v4608_v55 = vld [vmem:[%s5553_s27 + $0x2d4] sm:$0xf0] }
  0xfd   : > { %2408 = vmatpush.bf16.msrb.mxu2 %v4300_v56  ;;  %v4121_v20 = vld [vmem:[%s5553_s27 + $0x510] sm:$0xf0]  ;;  %v4741_v28 = vld [vmem:[%s5553_s27 + $0x704] sm:$0xf]  ;;  %v3996_v36 = vor.u32 %v4645_v15, %v3993_v16  ;;  %v3967_v56 = vld [vmem:[%s5553_s27 + $0x3c8] sm:$0xf] }
  0xfe   : > { %2421 = vmatpush.bf16.msrb.mxu3 %v4428_v60  ;;  %v4249_v26 = vld [vmem:[%s5553_s27 + $0x610] sm:$0xf0]  ;;  %v4124_v41 = vor.u32 %v4677_v19, %v4121_v20  ;;  %v3840_v60 = vor.u32 %v4608_v55, %v3839_v54  ;;  %v4540_v62 = vld [vmem:[%s5553_s27 + $0xb4] sm:$0xf0]  ;;  %v3695_v63 = vld [vmem:[%s5553_s27 + $0x1a8] sm:$0xf]  ;;  %v3968_v0 = vor.u32 %v4640_v57, %v3967_v56 }
  0xff   : > { %2383 = vmatpush.bf16.msrb.mxu0 %v4028_v2  ;;  %v4377_v29 = vld [vmem:[%s5553_s27 + $0x710] sm:$0xf0]  ;;  %v4252_v42 = vor.u32 %v4709_v24, %v4249_v26  ;;  %v4572_v1 = vld [vmem:[%s5553_s27 + $0x1b4] sm:$0xf0]  ;;  %v3823_v2 = vld [vmem:[%s5553_s27 + $0x2a8] sm:$0xf] }
 0x100   : > { %2396 = vmatpush.bf16.msrb.mxu1 %v4156_v3  ;;  %v4380_v45 = vor.u32 %v4741_v28, %v4377_v29  ;;  %v4604_v3 = vld [vmem:[%s5553_s27 + $0x2b4] sm:$0xf0]  ;;  %v3696_v6 = vor.u32 %v4572_v1, %v3695_v63  ;;  %v3679_v9 = vld [vmem:[%s5553_s27 + $0x188] sm:$0xf] }
 0x101   : > { %2409 = vmatpush.bf16.msrb.mxu2 %v4284_v4  ;;  %v3951_v4 = vld [vmem:[%s5553_s27 + $0x3a8] sm:$0xf]  ;;  %v4636_v5 = vld [vmem:[%s5553_s27 + $0x3b4] sm:$0xf0]  ;;  %v3824_v7 = vor.u32 %v4604_v3, %v3823_v2 }
 0x102   : > { %2422 = vmatpush.bf16.msrb.mxu3 %v4412_v8  ;;  %v3551_v8 = vld [vmem:[%s5553_s27 + $0x88] sm:$0xf]  ;;  %v4568_v10 = vld [vmem:[%s5553_s27 + $0x194] sm:$0xf0] }
 0x103   : > { %2384 = vmatpush.bf16.msrb.mxu0 %v4012_v14  ;;  %v3807_v11 = vld [vmem:[%s5553_s27 + $0x288] sm:$0xf]  ;;  %v4600_v12 = vld [vmem:[%s5553_s27 + $0x294] sm:$0xf0]  ;;  %v3680_v15 = vor.u32 %v4568_v10, %v3679_v9 }
 0x104   : > { %2397 = vmatpush.bf16.msrb.mxu1 %v4140_v17  ;;  %v4632_v13 = vld [vmem:[%s5553_s27 + $0x394] sm:$0xf0]  ;;  %v3808_v16 = vor.u32 %v4600_v12, %v3807_v11  ;;  %v3535_v17 = vld [vmem:[%s5553_s27 + $0x68] sm:$0xf] }
 0x105   : > { %2410 = vmatpush.bf16.msrb.mxu2 %v4268_v18  ;;  %v4532_v18 = vld [vmem:[%s5553_s27 + $0x74] sm:$0xf0]  ;;  %v3663_v19 = vld [vmem:[%s5553_s27 + $0x168] sm:$0xf] }
 0x106   : > { %2423 = vmatpush.bf16.msrb.mxu3 %v4396_v25  ;;  %v4564_v24 = vld [vmem:[%s5553_s27 + $0x174] sm:$0xf0]  ;;  %v3791_v25 = vld [vmem:[%s5553_s27 + $0x268] sm:$0xf]  ;;  %v3536_v31 = vor.u32 %v4532_v18, %v3535_v17 }
 0x107   : > { %2385 = vmatpush.bf16.msrb.mxu0 %v3996_v36  ;;  %v4596_v26 = vld [vmem:[%s5553_s27 + $0x274] sm:$0xf0]  ;;  %v3919_v28 = vld [vmem:[%s5553_s27 + $0x368] sm:$0xf]  ;;  %v3664_v34 = vor.u32 %v4564_v24, %v3663_v19 }
 0x108   : > { %2398 = vmatpush.bf16.msrb.mxu1 %v4124_v41  ;;  %v4628_v29 = vld [vmem:[%s5553_s27 + $0x374] sm:$0xf0]  ;;  %v3792_v35 = vor.u32 %v4596_v26, %v3791_v25  ;;  %v3519_v36 = vld [vmem:[%s5553_s27 + $0x48] sm:$0xf] }
 0x109   : > { %2411 = vmatpush.bf16.msrb.mxu2 %v4252_v42  ;;  %v4528_v37 = vld [vmem:[%s5553_s27 + $0x54] sm:$0xf0]  ;;  %v3647_v38 = vld [vmem:[%s5553_s27 + $0x148] sm:$0xf]  ;;  %v3920_v40 = vor.u32 %v4628_v29, %v3919_v28 }
 0x10a   : > { %2424 = vmatpush.bf16.msrb.mxu3 %v4380_v45  ;;  %2386 = vmatmul.bf16.vlgmr.msrb.gmra.mxu0 %v5777_v32  ;;  %v4536_v32 = vld [vmem:[%s5553_s27 + $0x94] sm:$0xf0]  ;;  %v3775_v42 = vld [vmem:[%s5553_s27 + $0x248] sm:$0xf] }
 0x10b   : > { %2430 = vmatpush.bf16.msra.mxu0 %v3600_v46  ;;  %2399 = vmatmul.bf16.vlgmr.msrb.gmra.mxu1 %v5784_v39  ;;  %v3935_v39 = vld [vmem:[%s5553_s27 + $0x388] sm:$0xf]  ;;  %v3552_v14 = vor.u32 %v4536_v32, %v3551_v8  ;;  %v4560_v41 = vld [vmem:[%s5553_s27 + $0x154] sm:$0xf0]  ;;  %v3520_v46 = vor.u32 %v4528_v37, %v3519_v36 }
 0x10c   : > { %2443 = vmatpush.bf16.msra.mxu1 %v3728_v47  ;;  %2412 = vmatmul.bf16.vlgmr.msrb.gmra.mxu2 %v5775_v30  ;;  %v3568_v30 = vor.u32 %v4540_v62, %v3567_v61  ;;  %v3936_v20 = vor.u32 %v4632_v13, %v3935_v39  ;;  %v4592_v43 = vld [vmem:[%s5553_s27 + $0x254] sm:$0xf0]  ;;  %v3903_v44 = vld [vmem:[%s5553_s27 + $0x348] sm:$0xf]  ;;  %v3648_v47 = vor.u32 %v4560_v41, %v3647_v38 }
 0x10d   : > { %2456 = vmatpush.bf16.msra.mxu2 %v3856_v48  ;;  %2425 = vmatmul.bf16.vlgmr.msrb.gmra.mxu3 %v5779_v33  ;;  %v3952_v33 = vor.u32 %v4636_v5, %v3951_v4  ;;  %v4624_v45 = vld [vmem:[%s5553_s27 + $0x354] sm:$0xf0]  ;;  %v3776_v48 = vor.u32 %v4592_v43, %v3775_v42  ;;  %v3503_v49 = vld [vmem:[%s5553_s27 + $0x28] sm:$0xf] }
 0x10e   : > { %2469 = vmatpush.bf16.msra.mxu3 %v3984_v52  ;;  %v4524_v50 = vld [vmem:[%s5553_s27 + $0x34] sm:$0xf0]  ;;  %v3631_v51 = vld [vmem:[%s5553_s27 + $0x128] sm:$0xf]  ;;  %v3904_v52 = vor.u32 %v4624_v45, %v3903_v44 }
 0x10f   : > { %2431 = vmatpush.bf16.msra.mxu0 %v3584_v58  ;;  %v4556_v53 = vld [vmem:[%s5553_s27 + $0x134] sm:$0xf0]  ;;  %v3759_v54 = vld [vmem:[%s5553_s27 + $0x228] sm:$0xf]  ;;  %v3504_v58 = vor.u32 %v4524_v50, %v3503_v49 }
 0x110   : > { %2444 = vmatpush.bf16.msra.mxu1 %v3712_v59  ;;  %v4588_v55 = vld [vmem:[%s5553_s27 + $0x234] sm:$0xf0]  ;;  %v3887_v56 = vld [vmem:[%s5553_s27 + $0x328] sm:$0xf]  ;;  %v3632_v61 = vor.u32 %v4556_v53, %v3631_v51 }
 0x111   : > { %2457 = vmatpush.bf16.msra.mxu2 %v3840_v60  ;;  %v4620_v57 = vld [vmem:[%s5553_s27 + $0x334] sm:$0xf0]  ;;  %v3487_v59 = vld [vmem:[%s5553_s27 + $0x8] sm:$0xf]  ;;  %v3760_v62 = vor.u32 %v4588_v55, %v3759_v54 }
 0x112   : > { %2470 = vmatpush.bf16.msra.mxu3 %v3968_v0  ;;  %v4520_v60 = vld [vmem:[%s5553_s27 + $0x14] sm:$0xf0]  ;;  %v3615_v63 = vld [vmem:[%s5553_s27 + $0x108] sm:$0xf]  ;;  %v3888_v2 = vor.u32 %v4620_v57, %v3887_v56 }
 0x113   : > { %2432 = vmatpush.bf16.msra.mxu0 %v3568_v30  ;;  %v4552_v0 = vld [vmem:[%s5553_s27 + $0x114] sm:$0xf0]  ;;  %v3743_v1 = vld [vmem:[%s5553_s27 + $0x208] sm:$0xf]  ;;  %v3488_v8 = vor.u32 %v4520_v60, %v3487_v59 }
 0x114   : > { %2445 = vmatpush.bf16.msra.mxu1 %v3696_v6  ;;  %v4584_v3 = vld [vmem:[%s5553_s27 + $0x214] sm:$0xf0]  ;;  %v3871_v4 = vld [vmem:[%s5553_s27 + $0x308] sm:$0xf]  ;;  %v3616_v10 = vor.u32 %v4552_v0, %v3615_v63 }
 0x115   : > { %2458 = vmatpush.bf16.msra.mxu2 %v3824_v7  ;;  %v4616_v5 = vld [vmem:[%s5553_s27 + $0x314] sm:$0xf0]  ;;  %v4111_v30 = vld [vmem:[%s5553_s27 + $0x4e8] sm:$0xf]  ;;  %v3744_v11 = vor.u32 %v4584_v3, %v3743_v1 }
 0x116   : > { %2471 = vmatpush.bf16.msra.mxu3 %v3952_v33  ;;  %v4676_v6 = vld [vmem:[%s5553_s27 + $0x4f4] sm:$0xf0]  ;;  %v4239_v7 = vld [vmem:[%s5553_s27 + $0x5e8] sm:$0xf]  ;;  %v3872_v13 = vor.u32 %v4616_v5, %v3871_v4 }
 0x117   : > { %2433 = vmatpush.bf16.msra.mxu0 %v3552_v14  ;;  %v4708_v32 = vld [vmem:[%s5553_s27 + $0x5f4] sm:$0xf0]  ;;  %v4367_v9 = vld [vmem:[%s5553_s27 + $0x6e8] sm:$0xf]  ;;  %v4112_v14 = vor.u32 %v4676_v6, %v4111_v30 }
 0x118   : > { %2446 = vmatpush.bf16.msra.mxu1 %v3680_v15  ;;  %v4740_v33 = vld [vmem:[%s5553_s27 + $0x6f4] sm:$0xf0]  ;;  %v4495_v12 = vld [vmem:[%s5553_s27 + $0x7e8] sm:$0xf]  ;;  %v4240_v15 = vor.u32 %v4708_v32, %v4239_v7 }
 0x119   : > { %2459 = vmatpush.bf16.msra.mxu2 %v3808_v16  ;;  %v4772_v39 = vld [vmem:[%s5553_s27 + $0x7f4] sm:$0xf0]  ;;  %v4368_v16 = vor.u32 %v4740_v33, %v4367_v9  ;;  %v4095_v17 = vld [vmem:[%s5553_s27 + $0x4c8] sm:$0xf] }
 0x11a   : > { %2472 = vmatpush.bf16.msra.mxu3 %v3936_v20  ;;  %v4672_v18 = vld [vmem:[%s5553_s27 + $0x4d4] sm:$0xf0]  ;;  %v4223_v19 = vld [vmem:[%s5553_s27 + $0x5c8] sm:$0xf]  ;;  %v4496_v20 = vor.u32 %v4772_v39, %v4495_v12 }
 0x11b   : > { %2434 = vmatpush.bf16.msra.mxu0 %v3536_v31  ;;  %v4704_v24 = vld [vmem:[%s5553_s27 + $0x5d4] sm:$0xf0]  ;;  %v4351_v25 = vld [vmem:[%s5553_s27 + $0x6c8] sm:$0xf]  ;;  %v4096_v31 = vor.u32 %v4672_v18, %v4095_v17 }
 0x11c   : > { %2447 = vmatpush.bf16.msra.mxu1 %v3664_v34  ;;  %v4736_v26 = vld [vmem:[%s5553_s27 + $0x6d4] sm:$0xf0]  ;;  %v4479_v28 = vld [vmem:[%s5553_s27 + $0x7c8] sm:$0xf]  ;;  %v4224_v34 = vor.u32 %v4704_v24, %v4223_v19 }
 0x11d   : > { %2460 = vmatpush.bf16.msra.mxu2 %v3792_v35  ;;  %v4768_v29 = vld [vmem:[%s5553_s27 + $0x7d4] sm:$0xf0]  ;;  %v4352_v35 = vor.u32 %v4736_v26, %v4351_v25  ;;  %v4079_v36 = vld [vmem:[%s5553_s27 + $0x4a8] sm:$0xf] }
 0x11e   : > { %2473 = vmatpush.bf16.msra.mxu3 %v3920_v40  ;;  %v4668_v37 = vld [vmem:[%s5553_s27 + $0x4b4] sm:$0xf0]  ;;  %v4207_v38 = vld [vmem:[%s5553_s27 + $0x5a8] sm:$0xf]  ;;  %v4480_v40 = vor.u32 %v4768_v29, %v4479_v28 }
 0x11f   : > { %2435 = vmatpush.bf16.msra.mxu0 %v3520_v46  ;;  %v4700_v41 = vld [vmem:[%s5553_s27 + $0x5b4] sm:$0xf0]  ;;  %v4335_v42 = vld [vmem:[%s5553_s27 + $0x6a8] sm:$0xf]  ;;  %v4080_v46 = vor.u32 %v4668_v37, %v4079_v36 }
 0x120   : > { %2448 = vmatpush.bf16.msra.mxu1 %v3648_v47  ;;  %v4732_v43 = vld [vmem:[%s5553_s27 + $0x6b4] sm:$0xf0]  ;;  %v4463_v44 = vld [vmem:[%s5553_s27 + $0x7a8] sm:$0xf]  ;;  %v4208_v47 = vor.u32 %v4700_v41, %v4207_v38 }
 0x121   : > { %2461 = vmatpush.bf16.msra.mxu2 %v3776_v48  ;;  %v4764_v45 = vld [vmem:[%s5553_s27 + $0x7b4] sm:$0xf0]  ;;  %v4336_v48 = vor.u32 %v4732_v43, %v4335_v42  ;;  %v4191_v50 = vld [vmem:[%s5553_s27 + $0x588] sm:$0xf] }
 0x122   : > { %2474 = vmatpush.bf16.msra.mxu3 %v3904_v52  ;;  %v4664_v49 = vld [vmem:[%s5553_s27 + $0x494] sm:$0xf0]  ;;  %v4447_v53 = vld [vmem:[%s5553_s27 + $0x788] sm:$0xf] }
 0x123   : > { %2436 = vmatpush.bf16.msra.mxu0 %v3504_v58  ;;  %v4696_v51 = vld [vmem:[%s5553_s27 + $0x594] sm:$0xf0]  ;;  %v4047_v57 = vld [vmem:[%s5553_s27 + $0x468] sm:$0xf] }
 0x124   : > { %2449 = vmatpush.bf16.msra.mxu1 %v3632_v61  ;;  %v4728_v52 = vld [vmem:[%s5553_s27 + $0x694] sm:$0xf0]  ;;  %v4192_v55 = vor.u32 %v4696_v51, %v4191_v50  ;;  %v4175_v59 = vld [vmem:[%s5553_s27 + $0x568] sm:$0xf]  ;;  %v4610_v51 = vld [vmem:[%s5553_s27 + $0x2ec] sm:$0xf] }
 0x125   : > { %2462 = vmatpush.bf16.msra.mxu2 %v3760_v62  ;;  %v4660_v58 = vld [vmem:[%s5553_s27 + $0x474] sm:$0xf0]  ;;  %v4303_v62 = vld [vmem:[%s5553_s27 + $0x668] sm:$0xf] }
 0x126   : > { %2475 = vmatpush.bf16.msra.mxu3 %v3888_v2  ;;  %v4692_v61 = vld [vmem:[%s5553_s27 + $0x574] sm:$0xf0]  ;;  %v4431_v0 = vld [vmem:[%s5553_s27 + $0x768] sm:$0xf]  ;;  %v4048_v2 = vor.u32 %v4660_v58, %v4047_v57  ;;  %v2231_v12 = vpop.f32.mrf.mxu0 }
 0x127   : > { %2437 = vmatpush.bf16.msra.mxu0 %v3488_v8  ;;  %v4724_v63 = vld [vmem:[%s5553_s27 + $0x674] sm:$0xf0]  ;;  %v4176_v3 = vor.u32 %v4692_v61, %v4175_v59  ;;  %v4031_v5 = vld [vmem:[%s5553_s27 + $0x448] sm:$0xf] }
 0x128   : > { %2450 = vmatpush.bf16.msra.mxu1 %v3616_v10  ;;  %v4756_v1 = vld [vmem:[%s5553_s27 + $0x774] sm:$0xf0]  ;;  %v4304_v4 = vor.u32 %v4724_v63, %v4303_v62  ;;  %v4159_v6 = vld [vmem:[%s5553_s27 + $0x548] sm:$0xf]  ;;  %v4542_v62 = vld [vmem:[%s5553_s27 + $0xcc] sm:$0xf] }
 0x129   : > { %2463 = vmatpush.bf16.msra.mxu2 %v3744_v11  ;;  %v4656_v30 = vld [vmem:[%s5553_s27 + $0x454] sm:$0xf0]  ;;  %v4432_v7 = vor.u32 %v4756_v1, %v4431_v0  ;;  %v4287_v32 = vld [vmem:[%s5553_s27 + $0x648] sm:$0xf]  ;;  %v3585_v63 = vld [vmem:[%s5553_s27 + $0xd8] sm:$0xf0] }
 0x12a   : > { %2476 = vmatpush.bf16.msra.mxu3 %v3872_v13  ;;  %2438 = vmatmul.bf16.vlgmr.msra.gmra.mxu0 %v5721_v22  ;;  %v4464_v22 = vor.u32 %v4764_v45, %v4463_v44  ;;  %v4688_v8 = vld [vmem:[%s5553_s27 + $0x554] sm:$0xf0]  ;;  %v4415_v33 = vld [vmem:[%s5553_s27 + $0x748] sm:$0xf]  ;;  %v4032_v11 = vor.u32 %v4656_v30, %v4031_v5  ;;  %v4574_v0 = vld [vmem:[%s5553_s27 + $0x1cc] sm:$0xf] }
 0x12b   : > { %2482 = vmatpush.bf16.msrb.mxu0 %v4112_v14  ;;  %2451 = vmatmul.bf16.vlgmr.msra.gmra.mxu1 %v5728_v27  ;;  %v4760_v27 = vld [vmem:[%s5553_s27 + $0x794] sm:$0xf0]  ;;  %v4160_v39 = vor.u32 %v4688_v8, %v4159_v6  ;;  %v4015_v14 = vld [vmem:[%s5553_s27 + $0x428] sm:$0xf]  ;;  %v4638_v5 = vld [vmem:[%s5553_s27 + $0x3cc] sm:$0xf] }
 0x12c   : > { %2495 = vmatpush.bf16.msrb.mxu1 %v4240_v15  ;;  %2464 = vmatmul.bf16.vlgmr.msra.gmra.mxu2 %v5719_v21  ;;  %v4063_v21 = vld [vmem:[%s5553_s27 + $0x488] sm:$0xf]  ;;  %v4448_v60 = vor.u32 %v4760_v27, %v4447_v53  ;;  %v4720_v9 = vld [vmem:[%s5553_s27 + $0x654] sm:$0xf0]  ;;  %v3969_v30 = vld [vmem:[%s5553_s27 + $0x3d8] sm:$0xf0] }
 0x12d   : > { %2508 = vmatpush.bf16.msrb.mxu2 %v4368_v16  ;;  %2477 = vmatmul.bf16.vlgmr.msra.gmra.mxu3 %v5723_v23  ;;  %v4319_v23 = vld [vmem:[%s5553_s27 + $0x688] sm:$0xf]  ;;  %v4064_v54 = vor.u32 %v4664_v49, %v4063_v21  ;;  %v4752_v10 = vld [vmem:[%s5553_s27 + $0x754] sm:$0xf0]  ;;  %v4288_v13 = vor.u32 %v4720_v9, %v4287_v32  ;;  %v3601_v21 = vld [vmem:[%s5553_s27 + $0xf8] sm:$0xf0] }
 0x12e   : > { %2521 = vmatpush.bf16.msrb.mxu3 %v4496_v20  ;;  %v4320_v56 = vor.u32 %v4728_v52, %v4319_v23  ;;  %v4652_v15 = vld [vmem:[%s5553_s27 + $0x434] sm:$0xf0]  ;;  %v4143_v16 = vld [vmem:[%s5553_s27 + $0x528] sm:$0xf]  ;;  %v4416_v18 = vor.u32 %v4752_v10, %v4415_v33  ;;  %v4578_v49 = vld [vmem:[%s5553_s27 + $0x1ec] sm:$0xf]  ;;  %v2233_v53 = vpop.f32.mrf.mxu0 }
 0x12f   : > { %2483 = vmatpush.bf16.msrb.mxu0 %v4096_v31  ;;  %v4684_v19 = vld [vmem:[%s5553_s27 + $0x534] sm:$0xf0]  ;;  %v4271_v20 = vld [vmem:[%s5553_s27 + $0x628] sm:$0xf]  ;;  %v4016_v29 = vor.u32 %v4652_v15, %v4015_v14  ;;  %v3857_v23 = vld [vmem:[%s5553_s27 + $0x2f8] sm:$0xf0] }
 0x130   : > { %2496 = vmatpush.bf16.msrb.mxu1 %v4224_v34  ;;  %v4716_v24 = vld [vmem:[%s5553_s27 + $0x634] sm:$0xf0]  ;;  %v4399_v26 = vld [vmem:[%s5553_s27 + $0x728] sm:$0xf]  ;;  %v3860_v61 = vor.u32 %v4610_v51, %v3857_v23  ;;  %v4538_v33 = vld [vmem:[%s5553_s27 + $0xac] sm:$0xf] }
 0x131   : > { %2509 = vmatpush.bf16.msrb.mxu2 %v4352_v35  ;;  %v4748_v28 = vld [vmem:[%s5553_s27 + $0x734] sm:$0xf0]  ;;  %v3999_v31 = vld [vmem:[%s5553_s27 + $0x408] sm:$0xf]  ;;  %v4144_v35 = vor.u32 %v4684_v19, %v4143_v16  ;;  %v4272_v36 = vor.u32 %v4716_v24, %v4271_v20  ;;  %v3569_v10 = vld [vmem:[%s5553_s27 + $0xb8] sm:$0xf0] }
 0x132   : > { %2522 = vmatpush.bf16.msrb.mxu3 %v4480_v40  ;;  %v4648_v34 = vld [vmem:[%s5553_s27 + $0x414] sm:$0xf0]  ;;  %v4127_v37 = vld [vmem:[%s5553_s27 + $0x508] sm:$0xf]  ;;  %v4400_v42 = vor.u32 %v4748_v28, %v4399_v26  ;;  %v4602_v14 = vld [vmem:[%s5553_s27 + $0x2ac] sm:$0xf]  ;;  %v3572_v20 = vor.u32 %v4538_v33, %v3569_v10 }
 0x133   : > { %2484 = vmatpush.bf16.msrb.mxu0 %v4080_v46  ;;  %v4680_v38 = vld [vmem:[%s5553_s27 + $0x514] sm:$0xf0]  ;;  %v4255_v40 = vld [vmem:[%s5553_s27 + $0x608] sm:$0xf]  ;;  %v4000_v50 = vor.u32 %v4648_v34, %v3999_v31  ;;  %v3825_v15 = vld [vmem:[%s5553_s27 + $0x2b8] sm:$0xf0] }
 0x134   : > { %2497 = vmatpush.bf16.msrb.mxu1 %v4208_v47  ;;  %v4712_v43 = vld [vmem:[%s5553_s27 + $0x614] sm:$0xf0]  ;;  %v4383_v44 = vld [vmem:[%s5553_s27 + $0x708] sm:$0xf]  ;;  %v4128_v27 = vor.u32 %v4680_v38, %v4127_v37  ;;  %v6066_v16 = vld [vmem:[#allocation1 + $0x24] sm:$0xff]  ;;  %v3828_v26 = vor.u32 %v4602_v14, %v3825_v15 }
 0x135   : > { %2510 = vmatpush.bf16.msrb.mxu2 %v4336_v48  ;;  %v4744_v45 = vld [vmem:[%s5553_s27 + $0x714] sm:$0xf0]  ;;  %v4546_v48 = vld [vmem:[%s5553_s27 + $0xec] sm:$0xf]  ;;  %v3953_v19 = vld [vmem:[%s5553_s27 + $0x3b8] sm:$0xf0] }
 0x136   : > { %2523 = vmatpush.bf16.msrb.mxu3 %v4464_v22  ;;  %v3729_v22 = vld [vmem:[%s5553_s27 + $0x1f8] sm:$0xf0]  ;;  %v4384_v58 = vor.u32 %v4744_v45, %v4383_v44  ;;  %v3604_v59 = vor.u32 %v4546_v48, %v3601_v21  ;;  %v6074_v24 = vld [vmem:[#allocation1 + $0x2d] sm:$0xff] }
 0x137   : > { %2485 = vmatpush.bf16.msrb.mxu0 %v4064_v54  ;;  %v4256_v54 = vor.u32 %v4712_v43, %v4255_v40  ;;  %v4534_v28 = vld [vmem:[%s5553_s27 + $0x8c] sm:$0xf]  ;;  %v3809_v37 = vld [vmem:[%s5553_s27 + $0x298] sm:$0xf0] }
 0x138   : > { %2498 = vmatpush.bf16.msrb.mxu1 %v4192_v55  ;;  %v2244_v17 = vpop.f32.mrf.mxu1  ;;  %v4642_v55 = vld [vmem:[%s5553_s27 + $0x3ec] sm:$0xf]  ;;  %v3937_v40 = vld [vmem:[%s5553_s27 + $0x398] sm:$0xf0] }
 0x139   : > { %2511 = vmatpush.bf16.msrb.mxu2 %v4320_v56  ;;  %v2245_v25 = vadd.f32 %v2244_v17, %v2231_v12  ;;  %v3985_v56 = vld [vmem:[%s5553_s27 + $0x3f8] sm:$0xf0]  ;;  %v3972_v12 = vor.u32 %v4638_v5, %v3969_v30  ;;  %v4566_v31 = vld [vmem:[%s5553_s27 + $0x18c] sm:$0xf] }
 0x13a   : > { %2524 = vmatpush.bf16.msrb.mxu3 %v4448_v60  ;;  %v3732_v60 = vor.u32 %v4578_v49, %v3729_v22  ;;  %v3988_v1 = vor.u32 %v4642_v55, %v3985_v56  ;;  %v6069_v17 = vld [vmem:[#allocation1 + $0x3f] sm:$0xff]  ;;  %v4630_v38 = vld [vmem:[%s5553_s27 + $0x38c] sm:$0xf] }
 0x13b   : > { %2486 = vmatpush.bf16.msrb.mxu0 %v4048_v2  ;;  %v3713_v2 = vld [vmem:[%s5553_s27 + $0x1d8] sm:$0xf0]  ;;  %v4530_v45 = vld [vmem:[%s5553_s27 + $0x6c] sm:$0xf]  ;;  %v3940_v49 = vor.u32 %v4630_v38, %v3937_v40 }
 0x13c   : > { %2499 = vmatpush.bf16.msrb.mxu1 %v4176_v3  ;;  %v4606_v3 = vld [vmem:[%s5553_s27 + $0x2cc] sm:$0xf]  ;;  %v3716_v32 = vor.u32 %v4574_v0, %v3713_v2  ;;  %v3793_v51 = vld [vmem:[%s5553_s27 + $0x278] sm:$0xf0] }
 0x13d   : > { %2512 = vmatpush.bf16.msrb.mxu2 %v4304_v4  ;;  %v2257_v41 = vpop.f32.mrf.mxu2  ;;  %v2270_v47 = vpop.f32.mrf.mxu3  ;;  %v3841_v4 = vld [vmem:[%s5553_s27 + $0x2d8] sm:$0xf0]  ;;  %v4594_v22 = vld [vmem:[%s5553_s27 + $0x26c] sm:$0xf] }
 0x13e   : > { %2525 = vmatpush.bf16.msrb.mxu3 %v4432_v7  ;;  %v2258_v46 = vadd.f32 %v2257_v41, %v2245_v25  ;;  %v3588_v7 = vor.u32 %v4542_v62, %v3585_v63  ;;  %v3844_v9 = vor.u32 %v4606_v3, %v3841_v4  ;;  %v4626_v23 = vld [vmem:[%s5553_s27 + $0x36c] sm:$0xf]  ;;  %v3921_v53 = vld [vmem:[%s5553_s27 + $0x378] sm:$0xf0]  ;;  %v3796_v55 = vor.u32 %v4594_v22, %v3793_v51 }
 0x13f   : > { %2487 = vmatpush.bf16.msrb.mxu0 %v4032_v11  ;;  %v4570_v11 = vld [vmem:[%s5553_s27 + $0x1ac] sm:$0xf]  ;;  %v3777_v63 = vld [vmem:[%s5553_s27 + $0x258] sm:$0xf0] }
 0x140   : > { %2500 = vmatpush.bf16.msrb.mxu1 %v4160_v39  ;;  %v6045_v52 = vadd.f32 %v2270_v47, %v2258_v46  ;;  %v2246_v57 = vpop.f32.mrf.mxu1  ;;  %v6060_v39 = vld [vmem:[#allocation1 + $0x36] sm:$0xff]  ;;  %v3537_v46 = vld [vmem:[%s5553_s27 + $0x78] sm:$0xf0] }
 0x141   : > { %2513 = vmatpush.bf16.msrb.mxu2 %v4288_v13  ;;  %v3697_v13 = vld [vmem:[%s5553_s27 + $0x1b8] sm:$0xf0]  ;;  %v4562_v47 = vld [vmem:[%s5553_s27 + $0x16c] sm:$0xf] }
 0x142   : > { %2526 = vmatpush.bf16.msrb.mxu3 %v4416_v18  ;;  %v4634_v18 = vld [vmem:[%s5553_s27 + $0x3ac] sm:$0xf]  ;;  %v3700_v25 = vor.u32 %v4570_v11, %v3697_v13  ;;  %v3521_v57 = vld [vmem:[%s5553_s27 + $0x58] sm:$0xf0] }
 0x143   : > { %2488 = vmatpush.bf16.msrb.mxu0 %v4016_v29  ;;  %v3553_v29 = vld [vmem:[%s5553_s27 + $0x98] sm:$0xf0]  ;;  %v3956_v34 = vor.u32 %v4634_v18, %v3953_v19  ;;  %v4526_v56 = vld [vmem:[%s5553_s27 + $0x4c] sm:$0xf] }
 0x144   : > { %2501 = vmatpush.bf16.msrb.mxu1 %v4144_v35  ;;  %v3681_v35 = vld [vmem:[%s5553_s27 + $0x198] sm:$0xf0]  ;;  %v3556_v41 = vor.u32 %v4534_v28, %v3553_v29  ;;  %v4590_v62 = vld [vmem:[%s5553_s27 + $0x24c] sm:$0xf]  ;;  %v3524_v4 = vor.u32 %v4526_v56, %v3521_v57 }
 0x145   : > { %2514 = vmatpush.bf16.msrb.mxu2 %v4272_v36  ;;  %v2259_v6 = vpop.f32.mrf.mxu2  ;;  %v2272_v8 = vpop.f32.mrf.mxu3  ;;  %v4598_v36 = vld [vmem:[%s5553_s27 + $0x28c] sm:$0xf]  ;;  %v3684_v43 = vor.u32 %v4566_v31, %v3681_v35  ;;  %v3905_v3 = vld [vmem:[%s5553_s27 + $0x358] sm:$0xf0] }
 0x146   : > { %2527 = vmatpush.bf16.msrb.mxu3 %v4400_v42  ;;  %v3812_v44 = vor.u32 %v4598_v36, %v3809_v37  ;;  %v4622_v2 = vld [vmem:[%s5553_s27 + $0x34c] sm:$0xf]  ;;  %v3633_v11 = vld [vmem:[%s5553_s27 + $0x138] sm:$0xf0] }
 0x147   : > { %2489 = vmatpush.bf16.msrb.mxu0 %v4000_v50  ;;  %v2283_v42 = vpop.f32.mrf.mxu0  ;;  %v3665_v50 = vld [vmem:[%s5553_s27 + $0x178] sm:$0xf0]  ;;  %v4522_v8 = vld [vmem:[%s5553_s27 + $0x2c] sm:$0xf]  ;;  %v3908_v10 = vor.u32 %v4622_v2, %v3905_v3 }
 0x148   : > { %2502 = vmatpush.bf16.msrb.mxu1 %v4128_v27  ;;  %v2284_v48 = vadd.f32 %v2283_v42, %v6045_v52  ;;  %v2296_v21 = vpop.f32.mrf.mxu1  ;;  %v3668_v52 = vor.u32 %v4562_v47, %v3665_v50  ;;  %v3761_v13 = vld [vmem:[%s5553_s27 + $0x238] sm:$0xf0]  ;;  %v4618_v14 = vld [vmem:[%s5553_s27 + $0x32c] sm:$0xf] }
 0x149   : > { %2515 = vmatpush.bf16.msrb.mxu2 %v4256_v54  ;;  %v3540_v54 = vor.u32 %v4530_v45, %v3537_v46  ;;  %v3889_v15 = vld [vmem:[%s5553_s27 + $0x338] sm:$0xf0]  ;;  %v4518_v19 = vld [vmem:[%s5553_s27 + $0xc] sm:$0xf] }
 0x14a   : > { %2528 = vmatpush.bf16.msrb.mxu3 %v4384_v58  ;;  %2490 = vmatmul.bf16.vlgmr.msrb.gmra.mxu0 %v6066_v16  ;;  %v2297_v27 = vadd.f32 %v2296_v21, %v2284_v48  ;;  %v4558_v58 = vld [vmem:[%s5553_s27 + $0x14c] sm:$0xf]  ;;  %v3617_v29 = vld [vmem:[%s5553_s27 + $0x118] sm:$0xf0]  ;;  %v3892_v35 = vor.u32 %v4618_v14, %v3889_v15 }
 0x14b   : > { %2534 = vmatpush.bf16.msra.mxu0 %v3604_v59  ;;  %2503 = vmatmul.bf16.vlgmr.msrb.gmra.mxu1 %v6074_v24  ;;  %v4550_v28 = vld [vmem:[%s5553_s27 + $0x10c] sm:$0xf]  ;;  %v3745_v36 = vld [vmem:[%s5553_s27 + $0x218] sm:$0xf0] }
 0x14c   : > { %2547 = vmatpush.bf16.msra.mxu1 %v3732_v60  ;;  %2516 = vmatmul.bf16.vlgmr.msrb.gmra.mxu2 %v6060_v39  ;;  %v3924_v60 = vor.u32 %v4626_v23, %v3921_v53  ;;  %v4582_v31 = vld [vmem:[%s5553_s27 + $0x20c] sm:$0xf]  ;;  %v3873_v38 = vld [vmem:[%s5553_s27 + $0x318] sm:$0xf0]  ;;  %v3620_v48 = vor.u32 %v4550_v28, %v3617_v29 }
 0x14d   : > { %2560 = vmatpush.bf16.msra.mxu2 %v3860_v61  ;;  %2529 = vmatmul.bf16.vlgmr.msrb.gmra.mxu3 %v6069_v17  ;;  %v3649_v61 = vld [vmem:[%s5553_s27 + $0x158] sm:$0xf0]  ;;  %v4614_v37 = vld [vmem:[%s5553_s27 + $0x30c] sm:$0xf]  ;;  %v3748_v21 = vor.u32 %v4582_v31, %v3745_v36 }
 0x14e   : > { %2573 = vmatpush.bf16.msra.mxu3 %v3988_v1  ;;  %v3652_v6 = vor.u32 %v4558_v58, %v3649_v61  ;;  %v4113_v42 = vld [vmem:[%s5553_s27 + $0x4f8] sm:$0xf0]  ;;  %v4738_v46 = vld [vmem:[%s5553_s27 + $0x6ec] sm:$0xf]  ;;  %v3876_v22 = vor.u32 %v4614_v37, %v3873_v38 }
 0x14f   : > { %2535 = vmatpush.bf16.msra.mxu0 %v3588_v7  ;;  %v2309_v59 = vpop.f32.mrf.mxu2  ;;  %v2285_v30 = vpop.f32.mrf.mxu0  ;;  %v3780_v7 = vor.u32 %v4590_v62, %v3777_v63  ;;  %v4241_v45 = vld [vmem:[%s5553_s27 + $0x5f8] sm:$0xf0]  ;;  %v4734_v57 = vld [vmem:[%s5553_s27 + $0x6cc] sm:$0xf] }
 0x150   : > { %2548 = vmatpush.bf16.msra.mxu1 %v3716_v32  ;;  %v2310_v0 = vadd.f32 %v2309_v59, %v2297_v27  ;;  %v2322_v1 = vpop.f32.mrf.mxu3  ;;  %v3505_v32 = vld [vmem:[%s5553_s27 + $0x38] sm:$0xf0]  ;;  %v2298_v33 = vpop.f32.mrf.mxu1  ;;  %v4670_v27 = vld [vmem:[%s5553_s27 + $0x4cc] sm:$0xf] }
 0x151   : > { %2561 = vmatpush.bf16.msra.mxu2 %v3844_v9  ;;  %v4554_v9 = vld [vmem:[%s5553_s27 + $0x12c] sm:$0xf]  ;;  %v3508_v18 = vor.u32 %v4522_v8, %v3505_v32  ;;  %v4369_v47 = vld [vmem:[%s5553_s27 + $0x6f8] sm:$0xf0]  ;;  %v4923_v33 = vld [vmem:[#allocation1 + $0x1b] sm:$0xff] }
 0x152   : > { %2574 = vmatpush.bf16.msra.mxu3 %v3972_v12  ;;  %v6102_v5 = vadd.f32 %v2322_v1, %v2310_v0  ;;  %v4586_v12 = vld [vmem:[%s5553_s27 + $0x22c] sm:$0xf]  ;;  %v4497_v50 = vld [vmem:[%s5553_s27 + $0x7f8] sm:$0xf0]  ;;  %v4372_v53 = vor.u32 %v4738_v46, %v4369_v47 }
 0x153   : > { %2536 = vmatpush.bf16.msra.mxu0 %v3572_v20  ;;  %v3489_v20 = vld [vmem:[%s5553_s27 + $0x18] sm:$0xf0]  ;;  %v4766_v59 = vld [vmem:[%s5553_s27 + $0x7cc] sm:$0xf] }
 0x154   : > { %2549 = vmatpush.bf16.msra.mxu1 %v3700_v25  ;;  %v3636_v25 = vor.u32 %v4554_v9, %v3633_v11  ;;  %v4225_v56 = vld [vmem:[%s5553_s27 + $0x5d8] sm:$0xf0]  ;;  %v4666_v0 = vld [vmem:[%s5553_s27 + $0x4ac] sm:$0xf]  ;;  %v4924_v11 = vld [vmem:[#allocation1 + $0x9] sm:$0xff] }
 0x155   : > { %2562 = vmatpush.bf16.msra.mxu2 %v3828_v26  ;;  %v3764_v26 = vor.u32 %v4586_v12, %v3761_v13  ;;  %v4353_v58 = vld [vmem:[%s5553_s27 + $0x6d8] sm:$0xf0]  ;;  %v4698_v2 = vld [vmem:[%s5553_s27 + $0x5ac] sm:$0xf] }
 0x156   : > { %2575 = vmatpush.bf16.msra.mxu3 %v3956_v34  ;;  %v4356_v63 = vor.u32 %v4734_v57, %v4353_v58  ;;  %v4081_v1 = vld [vmem:[%s5553_s27 + $0x4b8] sm:$0xf0]  ;;  %v4762_v8 = vld [vmem:[%s5553_s27 + $0x7ac] sm:$0xf] }
 0x157   : > { %2537 = vmatpush.bf16.msra.mxu0 %v3556_v41  ;;  %v2311_v34 = vpop.f32.mrf.mxu2  ;;  %v4674_v41 = vld [vmem:[%s5553_s27 + $0x4ec] sm:$0xf]  ;;  %v4209_v30 = vld [vmem:[%s5553_s27 + $0x5b8] sm:$0xf0] }
 0x158   : > { %2550 = vmatpush.bf16.msra.mxu1 %v3684_v43  ;;  %v2324_v40 = vpop.f32.mrf.mxu3  ;;  %v4706_v43 = vld [vmem:[%s5553_s27 + $0x5ec] sm:$0xf]  ;;  %v4116_v51 = vor.u32 %v4674_v41, %v4113_v42  ;;  %v4465_v32 = vld [vmem:[%s5553_s27 + $0x7b8] sm:$0xf0]  ;;  %v4212_v12 = vor.u32 %v4698_v2, %v4209_v30 }
 0x159   : > { %2563 = vmatpush.bf16.msra.mxu2 %v3812_v44  ;;  %v3492_v44 = vor.u32 %v4518_v19, %v3489_v20  ;;  %v4244_v23 = vor.u32 %v4706_v43, %v4241_v45  ;;  %v4922_v9 = vld [vmem:[#allocation1] sm:$0xff]  ;;  %v4662_v14 = vld [vmem:[%s5553_s27 + $0x48c] sm:$0xf]  ;;  %v4468_v19 = vor.u32 %v4762_v8, %v4465_v32 }
 0x15a   : > { %2576 = vmatpush.bf16.msra.mxu3 %v3940_v49  ;;  %v4770_v49 = vld [vmem:[%s5553_s27 + $0x7ec] sm:$0xf]  ;;  %v4065_v15 = vld [vmem:[%s5553_s27 + $0x498] sm:$0xf0] }
 0x15b   : > { %2538 = vmatpush.bf16.msra.mxu0 %v3540_v54  ;;  %v4097_v54 = vld [vmem:[%s5553_s27 + $0x4d8] sm:$0xf0]  ;;  %v4758_v28 = vld [vmem:[%s5553_s27 + $0x78c] sm:$0xf]  ;;  %v4068_v31 = vor.u32 %v4662_v14, %v4065_v15 }
 0x15c   : > { %2551 = vmatpush.bf16.msra.mxu1 %v3668_v52  ;;  %v4702_v52 = vld [vmem:[%s5553_s27 + $0x5cc] sm:$0xf]  ;;  %v4100_v61 = vor.u32 %v4670_v27, %v4097_v54  ;;  %v4193_v20 = vld [vmem:[%s5553_s27 + $0x598] sm:$0xf0] }
 0x15d   : > { %2564 = vmatpush.bf16.msra.mxu2 %v3796_v55  ;;  %v4500_v55 = vor.u32 %v4770_v49, %v4497_v50  ;;  %v4228_v62 = vor.u32 %v4702_v52, %v4225_v56  ;;  %v4449_v29 = vld [vmem:[%s5553_s27 + $0x798] sm:$0xf0]  ;;  %v4658_v37 = vld [vmem:[%s5553_s27 + $0x46c] sm:$0xf] }
 0x15e   : > { %2577 = vmatpush.bf16.msra.mxu3 %v3924_v60  ;;  %v4481_v60 = vld [vmem:[%s5553_s27 + $0x7d8] sm:$0xf0]  ;;  %v4690_v40 = vld [vmem:[%s5553_s27 + $0x56c] sm:$0xf]  ;;  %v4452_v42 = vor.u32 %v4758_v28, %v4449_v29 }
 0x15f   : > { %2539 = vmatpush.bf16.msra.mxu0 %v3524_v4  ;;  %v4484_v3 = vor.u32 %v4766_v59, %v4481_v60  ;;  %v4921_v4 = vld [vmem:[#allocation1 + $0x12] sm:$0xff]  ;;  %v4049_v38 = vld [vmem:[%s5553_s27 + $0x478] sm:$0xf0] }
 0x160   : > { %2552 = vmatpush.bf16.msra.mxu1 %v3652_v6  ;;  %v4730_v6 = vld [vmem:[%s5553_s27 + $0x6ac] sm:$0xf]  ;;  %v4177_v43 = vld [vmem:[%s5553_s27 + $0x578] sm:$0xf0] }
 0x161   : > { %2565 = vmatpush.bf16.msra.mxu2 %v3780_v7  ;;  %v4337_v7 = vld [vmem:[%s5553_s27 + $0x6b8] sm:$0xf0]  ;;  %v4754_v47 = vld [vmem:[%s5553_s27 + $0x76c] sm:$0xf]  ;;  %v4180_v49 = vor.u32 %v4690_v40, %v4177_v43 }
 0x162   : > { %2578 = vmatpush.bf16.msra.mxu3 %v3908_v10  ;;  %v4084_v10 = vor.u32 %v4666_v0, %v4081_v1  ;;  %v4340_v13 = vor.u32 %v4730_v6, %v4337_v7  ;;  %v4305_v45 = vld [vmem:[%s5553_s27 + $0x678] sm:$0xf0]  ;;  %v4718_v52 = vld [vmem:[%s5553_s27 + $0x64c] sm:$0xf] }
 0x163   : > { %2540 = vmatpush.bf16.msra.mxu0 %v3508_v18  ;;  %v4694_v18 = vld [vmem:[%s5553_s27 + $0x58c] sm:$0xf]  ;;  %v4161_v54 = vld [vmem:[%s5553_s27 + $0x558] sm:$0xf0] }
 0x164   : > { %2553 = vmatpush.bf16.msra.mxu1 %v3636_v25  ;;  %v4726_v25 = vld [vmem:[%s5553_s27 + $0x68c] sm:$0xf]  ;;  %v4417_v59 = vld [vmem:[%s5553_s27 + $0x758] sm:$0xf0] }
 0x165   : > { %2566 = vmatpush.bf16.msra.mxu2 %v3764_v26  ;;  %v4321_v26 = vld [vmem:[%s5553_s27 + $0x698] sm:$0xf0]  ;;  %v4750_v58 = vld [vmem:[%s5553_s27 + $0x74c] sm:$0xf] }
 0x166   : > { %2579 = vmatpush.bf16.msra.mxu3 %v3892_v35  ;;  %v4196_v35 = vor.u32 %v4694_v18, %v4193_v20  ;;  %v4324_v36 = vor.u32 %v4726_v25, %v4321_v26  ;;  %v4650_v1 = vld [vmem:[%s5553_s27 + $0x42c] sm:$0xf]  ;;  %v4017_v2 = vld [vmem:[%s5553_s27 + $0x438] sm:$0xf0]  ;;  %v4420_v30 = vor.u32 %v4750_v58, %v4417_v59 }
 0x167   : > { %2541 = vmatpush.bf16.msra.mxu0 %v3492_v44  ;;  %v2335_v34 = vpop.f32.mrf.mxu0  ;;  %v4722_v44 = vld [vmem:[%s5553_s27 + $0x66c] sm:$0xf]  ;;  %v4145_v6 = vld [vmem:[%s5553_s27 + $0x538] sm:$0xf0] }
 0x168   : > { %2554 = vmatpush.bf16.msra.mxu1 %v3620_v48  ;;  %v2348_v41 = vpop.f32.mrf.mxu1  ;;  %v4433_v48 = vld [vmem:[%s5553_s27 + $0x778] sm:$0xf0]  ;;  %v4308_v50 = vor.u32 %v4722_v44, %v4305_v45  ;;  %v4714_v7 = vld [vmem:[%s5553_s27 + $0x62c] sm:$0xf] }
 0x169   : > { %2567 = vmatpush.bf16.msra.mxu2 %v3748_v21  ;;  %v2349_v46 = vadd.f32 %v2348_v41, %v2335_v34  ;;  %v4052_v21 = vor.u32 %v4658_v37, %v4049_v38  ;;  %v4436_v27 = vor.u32 %v4754_v47, %v4433_v48  ;;  %v4273_v8 = vld [vmem:[%s5553_s27 + $0x638] sm:$0xf0]  ;;  %v4746_v32 = vld [vmem:[%s5553_s27 + $0x72c] sm:$0xf] }
 0x16a   : > { %2580 = vmatpush.bf16.msra.mxu3 %v3876_v22  ;;  %2542 = vmatmul.bf16.vlgmr.msra.gmra.mxu0 %v4922_v9  ;;  %v4654_v22 = vld [vmem:[%s5553_s27 + $0x44c] sm:$0xf]  ;;  %v4401_v9 = vld [vmem:[%s5553_s27 + $0x738] sm:$0xf0] }
 0x16b   : > { %2586 = vmatpush.bf16.msrb.mxu0 %v4116_v51  ;;  %2555 = vmatmul.bf16.vlgmr.msra.gmra.mxu1 %v4924_v11  ;;  %v4033_v51 = vld [vmem:[%s5553_s27 + $0x458] sm:$0xf0]  ;;  %v4276_v11 = vor.u32 %v4714_v7, %v4273_v8  ;;  %v4678_v14 = vld [vmem:[%s5553_s27 + $0x50c] sm:$0xf]  ;;  %v4404_v18 = vor.u32 %v4746_v32, %v4401_v9 }
 0x16c   : > { %2599 = vmatpush.bf16.msrb.mxu1 %v4244_v23  ;;  %2568 = vmatmul.bf16.vlgmr.msra.gmra.mxu2 %v4921_v4  ;;  %v4686_v23 = vld [vmem:[%s5553_s27 + $0x54c] sm:$0xf]  ;;  %v4036_v60 = vor.u32 %v4654_v22, %v4033_v51  ;;  %v4257_v25 = vld [vmem:[%s5553_s27 + $0x618] sm:$0xf0] }
 0x16d   : > { %2612 = vmatpush.bf16.msrb.mxu2 %v4372_v53  ;;  %2581 = vmatmul.bf16.vlgmr.msra.gmra.mxu3 %v4923_v33  ;;  %v4020_v33 = vor.u32 %v4650_v1, %v4017_v2  ;;  %v4710_v20 = vld [vmem:[%s5553_s27 + $0x60c] sm:$0xf]  ;;  %v4385_v29 = vld [vmem:[%s5553_s27 + $0x718] sm:$0xf0] }
 0x16e   : > { %2625 = vmatpush.bf16.msrb.mxu3 %v4500_v55  ;;  %v4289_v55 = vld [vmem:[%s5553_s27 + $0x658] sm:$0xf0]  ;;  %v4742_v28 = vld [vmem:[%s5553_s27 + $0x70c] sm:$0xf] }
 0x16f   : > { %2587 = vmatpush.bf16.msrb.mxu0 %v4100_v61  ;;  %v2361_v53 = vpop.f32.mrf.mxu2  ;;  %v4292_v0 = vor.u32 %v4718_v52, %v4289_v55 }
 0x170   : > { %2600 = vmatpush.bf16.msrb.mxu1 %v4228_v62  ;;  %v2362_v56 = vadd.f32 %v2361_v53, %v2349_v46  ;;  %v2374_v57 = vpop.f32.mrf.mxu3  ;;  %v2337_v62 = vpop.f32.mrf.mxu0 }
 0x171   : > { %2613 = vmatpush.bf16.msrb.mxu2 %v4356_v63  ;;  %v4164_v63 = vor.u32 %v4686_v23, %v4161_v54  ;;  %v2350_v4 = vpop.f32.mrf.mxu1 }
 0x172   : > { %2626 = vmatpush.bf16.msrb.mxu3 %v4484_v3  ;;  %v2375_v61 = vadd.f32 %v2374_v57, %v2362_v56  ;;  %v4682_v3 = vld [vmem:[%s5553_s27 + $0x52c] sm:$0xf] }
 0x173   : > { %2588 = vmatpush.bf16.msrb.mxu0 %v4084_v10  ;;  %v4148_v10 = vor.u32 %v4682_v3, %v4145_v6 }
 0x174   : > { %2601 = vmatpush.bf16.msrb.mxu1 %v4212_v12  ;;  %v4646_v12 = vld [vmem:[%s5553_s27 + $0x40c] sm:$0xf] }
 0x175   : > { %2614 = vmatpush.bf16.msrb.mxu2 %v4340_v13  ;;  %v4001_v13 = vld [vmem:[%s5553_s27 + $0x418] sm:$0xf0] }
 0x176   : > { %2627 = vmatpush.bf16.msrb.mxu3 %v4468_v19  ;;  %v4129_v19 = vld [vmem:[%s5553_s27 + $0x518] sm:$0xf0]  ;;  %s6475_s27 = sld [smem:[#allocation24_spill]] }
 0x177   : > { %2589 = vmatpush.bf16.msrb.mxu0 %v4068_v31  ;;  %v2363_v15 = vpop.f32.mrf.mxu2  ;;  %v4004_v31 = vor.u32 %v4646_v12, %v4001_v13  ;;  %v4132_v34 = vor.u32 %v4678_v14, %v4129_v19 }
 0x178   : > { %2602 = vmatpush.bf16.msrb.mxu1 %v4196_v35  ;;  %v2376_v26 = vpop.f32.mrf.mxu3  ;;  %v4260_v35 = vor.u32 %v4710_v20, %v4257_v25 }
 0x179   : > { %2615 = vmatpush.bf16.msrb.mxu2 %v4324_v36  ;;  %v4388_v36 = vor.u32 %v4742_v28, %v4385_v29 }
 0x17a   : > { %2628 = vmatpush.bf16.msrb.mxu3 %v4452_v42 }
 0x17b   : > { %2590 = vmatpush.bf16.msrb.mxu0 %v4052_v21 }
 0x17c   : > { %2603 = vmatpush.bf16.msrb.mxu1 %v4180_v49  ;;  %p4501_p2 = scmp.ne.s32.totalorder %s6475_s27, 7 }
 0x17d   : > { %2616 = vmatpush.bf16.msrb.mxu2 %v4308_v50  ;;  %s6476_s24 = scalar_lea.vmem (!%p4501_p2), [#allocation5], %s5564_s12  ;;  %s6482_s19 = scalar_lea.vmem (!%p4501_p2), [#allocation8], %s5564_s12 }
 0x17e   : > { %2629 = vmatpush.bf16.msrb.mxu3 %v4436_v27 }
 0x17f   : > { %2591 = vmatpush.bf16.msrb.mxu0 %v4036_v60 }
 0x180   : > { %2604 = vmatpush.bf16.msrb.mxu1 %v4164_v63 }
 0x181   : > { %2617 = vmatpush.bf16.msrb.mxu2 %v4292_v0 }
 0x182   : > { %2630 = vmatpush.bf16.msrb.mxu3 %v4420_v30 }
 0x183   : > { %2592 = vmatpush.bf16.msrb.mxu0 %v4020_v33 }
 0x184   : > { %2605 = vmatpush.bf16.msrb.mxu1 %v4148_v10 }
 0x185   : > { %2618 = vmatpush.bf16.msrb.mxu2 %v4276_v11 }
 0x186   : > { %2631 = vmatpush.bf16.msrb.mxu3 %v4404_v18 }
 0x187   : > { %2593 = vmatpush.bf16.msrb.mxu0 %v4004_v31  ;;  %v2387_v37 = vpop.f32.mrf.mxu0  ;;  %v666_v31 = vld [vmem:[%s5610_s0] sm:$0xff] }
 0x188   : > { %2606 = vmatpush.bf16.msrb.mxu1 %v4132_v34  ;;  %v2388_v38 = vadd.f32 %v2387_v37, %v2375_v61  ;;  %v2400_v40 = vpop.f32.mrf.mxu1 }
 0x189   : > { %2619 = vmatpush.bf16.msrb.mxu2 %v4260_v35 }
 0x18a   : > { %2632 = vmatpush.bf16.msrb.mxu3 %v4388_v36  ;;  %2594 = vmatmul.bf16.vlgmr.msrb.gmra.mxu0 %v6066_v16  ;;  %v2401_v41 = vadd.f32 %v2400_v40, %v2388_v38 }
 0x18b   : > { %2607 = vmatmul.bf16.vlgmr.msrb.gmra.mxu1 %v6074_v24 }
 0x18c   : > { %2620 = vmatmul.bf16.vlgmr.msrb.gmra.mxu2 %v6060_v39 }
 0x18d   : > { %2633 = vmatmul.bf16.vlgmr.msrb.gmra.mxu3 %v6069_v17 }
 0x18f   : > { %v2413_v42 = vpop.f32.mrf.mxu2  ;;  %v2389_v46 = vpop.f32.mrf.mxu0 }
 0x190   : > { %v2414_v43 = vadd.f32 %v2413_v42, %v2401_v41  ;;  %v2426_v44 = vpop.f32.mrf.mxu3  ;;  %v2402_v47 = vpop.f32.mrf.mxu1 }
 0x192   : > { %v2427_v45 = vadd.f32 %v2426_v44, %v2414_v43 }
 0x194   : > { %v2642_v48 = vrot.slane %v2427_v45, 6 }
 0x196   : > { %v2646_v16 = vsel %vm2645_vm0, %v6102_v5, %v2642_v48 }
 0x197   : > { %v2415_v24 = vpop.f32.mrf.mxu2 }
 0x198   : > { %v2428_v21 = vpop.f32.mrf.mxu3 }
 0x1a7   : > { %v2439_v39 = vpop.f32.mrf.mxu0 }
 0x1a8   : > { %v2452_v49 = vpop.f32.mrf.mxu1 }
 0x1a9   : > { %v2453_v17 = vadd.f32 %v2452_v49, %v2439_v39 }
 0x1af   : > { %v2465_v50 = vpop.f32.mrf.mxu2  ;;  %v2441_v53 = vpop.f32.mrf.mxu0 }
 0x1b0   : > { %v2466_v22 = vadd.f32 %v2465_v50, %v2453_v17  ;;  %v2478_v51 = vpop.f32.mrf.mxu3  ;;  %v2454_v27 = vpop.f32.mrf.mxu1 }
 0x1b2   : > { %v2479_v23 = vadd.f32 %v2478_v51, %v2466_v22 }
 0x1b7   : > { %v2467_v54 = vpop.f32.mrf.mxu2 }
 0x1b8   : > { %v2480_v52 = vpop.f32.mrf.mxu3 }
 0x1c7   : > { %v2491_v55 = vpop.f32.mrf.mxu0 }
 0x1c8   : > { %v2504_v56 = vpop.f32.mrf.mxu1  ;;  %v2492_v7 = vadd.f32 %v2491_v55, %v2479_v23 }
 0x1ca   : > { %v2505_v32 = vadd.f32 %v2504_v56, %v2492_v7 }
 0x1cf   : > { %v2517_v57 = vpop.f32.mrf.mxu2  ;;  %v2493_v59 = vpop.f32.mrf.mxu0 }
 0x1d0   : > { %v2530_v58 = vpop.f32.mrf.mxu3  ;;  %v2506_v60 = vpop.f32.mrf.mxu1  ;;  %v2518_v12 = vadd.f32 %v2517_v57, %v2505_v32 }
 0x1d2   : > { %v2531_v15 = vadd.f32 %v2530_v58, %v2518_v12 }
 0x1d4   : > { %v2643_v28 = vrot.slane %v2531_v15, 4 }
 0x1d7   : > { %v2519_v5 = vpop.f32.mrf.mxu2 }
 0x1d8   : > { %v2532_v61 = vpop.f32.mrf.mxu3 }
 0x1e7   : > { %v2543_v62 = vpop.f32.mrf.mxu0 }
 0x1e8   : > { %v2556_v63 = vpop.f32.mrf.mxu1 }
 0x1e9   : > { %v2557_v6 = vadd.f32 %v2556_v63, %v2543_v62 }
 0x1ef   : > { %v2569_v0 = vpop.f32.mrf.mxu2  ;;  %v2545_v2 = vpop.f32.mrf.mxu0 }
 0x1f0   : > { %v2582_v1 = vpop.f32.mrf.mxu3  ;;  %v2558_v3 = vpop.f32.mrf.mxu1  ;;  %v2570_v8 = vadd.f32 %v2569_v0, %v2557_v6 }
 0x1f2   : > { %v2583_v9 = vadd.f32 %v2582_v1, %v2570_v8 }
 0x1f7   : > { %v2571_v4 = vpop.f32.mrf.mxu2 }
 0x1f8   : > { %v2584_v30 = vpop.f32.mrf.mxu3 }
 0x207   : > { %v2595_v33 = vpop.f32.mrf.mxu0 }
 0x208   : > { %v2608_v10 = vpop.f32.mrf.mxu1  ;;  %v2596_v11 = vadd.f32 %v2595_v33, %v2583_v9 }
 0x20a   : > { %v2609_v13 = vadd.f32 %v2608_v10, %v2596_v11 }
 0x20f   : > { %v2621_v14 = vpop.f32.mrf.mxu2  ;;  %v2597_v20 = vpop.f32.mrf.mxu0 }
 0x210   : > { %v2622_v18 = vadd.f32 %v2621_v14, %v2609_v13  ;;  %v2634_v19 = vpop.f32.mrf.mxu3  ;;  %v2610_v25 = vpop.f32.mrf.mxu1 }
 0x212   : > { %v2635_v26 = vadd.f32 %v2634_v19, %v2622_v18 }
 0x214   : > { %v2644_v29 = vrot.slane %v2635_v26, 2 }
 0x216   : > { %v2648_v34 = vsel %vm2647_vm1, %v2643_v28, %v2644_v29  ;;  %2657 = sbr.rel (%p4501_p2) target bundleno = 891 (0x37b), region = 92 }
 0x217   : > { %v2650_v35 = vsel %vm2649_vm2, %v2646_v16, %v2648_v34  ;;  %v2623_v36 = vpop.f32.mrf.mxu2 }
 0x218   : > { %v2652_v37 = vadd.f32 %v2650_v35, %v666_v31  ;;  %v2636_v38 = vpop.f32.mrf.mxu3 }
 0x21a   : > { %2653 = vst [vmem:[%s5610_s0] sm:$0xff] %v2652_v37 }
 0x21b   : > { %v2659_v40 = vld [vmem:[%s6476_s24] sm:$0xf]  ;;  %v5290_v45 = vmov 2.0   ;;  %vm2955_vm4 = vcmask 1042432   ;;  %vm2951_vm5 = vcmask 23552  }
 0x21c   : > { %v2661_v41 = vperm.slane %v2659_v40, 0  ;;  %v2662_v42 = vperm.slane %v2659_v40, 1  ;;  %v2663_v43 = vperm.slane %v2659_v40, 2  ;;  %v2664_v44 = vperm.slane %v2659_v40, 3  ;;  %v2931_v40 = vld [vmem:[%s5582_s2 + $0x8] sm:$0x77] }
 0x21d   : > { %4925 = vrcp.f32 %v5290_v45 }
 0x21e   : > { %v2665_v46 = vrot.slane %v2662_v42, 6  ;;  %v2666_v47 = vrot.slane %v2663_v43, 4  ;;  %v2667_v48 = vrot.slane %v2664_v44, 2 }
 0x220   : > { %v2668_v24 = vsel %vm2645_vm0, %v2661_v41, %v2665_v46  ;;  %v2669_v21 = vsel %vm2647_vm1, %v2666_v47, %v2667_v48  ;;  %v2930_v41 = vld [vmem:[%s5582_s2] sm:$0x77]  ;;  %v2929_v46 = vld [vmem:[#allocation10] sm:$0x3]  ;;  %s6479_s2 = scalar_lea.vmem [#allocation7], %s5564_s12 }
 0x221   : > { %v2658_v16 = vld [vmem:[%s5610_s0] sm:$0xff]  ;;  %v2670_v39 = vsel %vm2649_vm2, %v2668_v24, %v2669_v21 }
 0x222   : > { %v2672_v49 = vadd.f32 %v2670_v39, %v2658_v16  ;;  %v2880_v16 = vld [vmem:[%s5601_s9 + $0x78] sm:$0xff] }
 0x223   : > { %v4926_v17 = vpop.eup %4925  ;;  %v2912_v24 = vld [vmem:[%s5601_s9 + $0x178] sm:$0xff] }
 0x224   : > { %2674 = vst [vmem:[#allocation1] ss:$4 sm:$0xff] %v2672_v49  ;;  %v2712_v50 = vmul.f32 2.0, %v4926_v17  ;;  %vm2716_vm3 = vweird.f32 %v4926_v17 }
 0x226   : > { %v2713_v22 = vsub.f32 1.0, %v2712_v50  ;;  %v2879_v50 = vld [vmem:[%s5601_s9 + $0x70] sm:$0xff] }
 0x228   : > { %v2714_v5 = vmul.f32 %v4926_v17, %v2713_v22  ;;  %v2911_v22 = vld [vmem:[%s5601_s9 + $0x170] sm:$0xff] }
 0x22a   : > { %v2715_v30 = vadd.f32 %v4926_v17, %v2714_v5 }
 0x22b   : > { %v2675_v51 = vld.sshfl [vmem:[#allocation1] sm:$0xff pattern:$0x73625140]  ;;  %v2676_v23 = vld.sshfl [vmem:[#allocation1 + $0x8] sm:$0xff pattern:$0x73625140] }
 0x22c   : > { %v2677_v53 = vld.sshfl [vmem:[#allocation1 + $0x10] sm:$0xff pattern:$0x73625140]  ;;  %v2678_v27 = vld.sshfl [vmem:[#allocation1 + $0x18] sm:$0xff pattern:$0x73625140]  ;;  %v6205_v12 = vsel %vm2716_vm3, %v4926_v17, %v2715_v30 }
 0x22d   : > { %v2683_v54 = vsel %vm2645_vm0, %v2675_v51, 0.0  ;;  %v2690_v52 = vsel %vm2645_vm0, %v2676_v23, 0.0  ;;  %v2697_v55 = vsel %vm2645_vm0, %v2677_v53, 0.0  ;;  %v2704_v56 = vsel %vm2645_vm0, %v2678_v27, 0.0  ;;  %v2928_v17 = vld [vmem:[%s5601_s9 + $0x1f8] sm:$0xff]  ;;  %v2895_v51 = vld [vmem:[%s5601_s9 + $0xf0] sm:$0xff] }
 0x22e   : > { %v2684_v57 = vrot.slane %v2683_v54, 4  ;;  %v2691_v58 = vrot.slane %v2690_v52, 4  ;;  %v2698_v59 = vrot.slane %v2697_v55, 4  ;;  %v2705_v60 = vrot.slane %v2704_v56, 4  ;;  %v2927_v23 = vld [vmem:[%s5601_s9 + $0x1f0] sm:$0xff]  ;;  %v2878_v53 = vld [vmem:[%s5601_s9 + $0x68] sm:$0xff] }
 0x22f   : > { %v2910_v27 = vld [vmem:[%s5601_s9 + $0x168] sm:$0xff] }
 0x230   : > { %v2685_v61 = vadd.f32 %v2684_v57, %v2683_v54  ;;  %v2692_v62 = vadd.f32 %v2691_v58, %v2690_v52  ;;  %v2699_v63 = vadd.f32 %v2698_v59, %v2697_v55  ;;  %v2706_v0 = vadd.f32 %v2705_v60, %v2704_v56 }
 0x232   : > { %v2686_v1 = vrot.slane %v2685_v61, 2  ;;  %v2693_v2 = vrot.slane %v2692_v62, 2  ;;  %v2700_v3 = vrot.slane %v2699_v63, 2  ;;  %v2707_v4 = vrot.slane %v2706_v0, 2 }
 0x234   : > { %v2687_v6 = vadd.f32 %v2686_v1, %v2685_v61  ;;  %v2694_v7 = vadd.f32 %v2693_v2, %v2692_v62  ;;  %v2701_v8 = vadd.f32 %v2700_v3, %v2699_v63  ;;  %v2708_v32 = vadd.f32 %v2707_v4, %v2706_v0 }
 0x236   : > { %v2688_v9 = vrot.slane %v2687_v6, 1  ;;  %v2695_v33 = vrot.slane %v2694_v7, 1  ;;  %v2702_v10 = vrot.slane %v2701_v8, 1  ;;  %v2709_v11 = vrot.slane %v2708_v32, 1 }
 0x238   : > { %v2689_v13 = vadd.f32 %v2688_v9, %v2687_v6  ;;  %v2696_v14 = vadd.f32 %v2695_v33, %v2694_v7  ;;  %v2703_v15 = vadd.f32 %v2702_v10, %v2701_v8  ;;  %v2710_v18 = vadd.f32 %v2709_v11, %v2708_v32 }
 0x23a   : > { %v2718_v19 = vmul.f32 %v6205_v12, %v2689_v13  ;;  %v2719_v20 = vmul.f32 %v6205_v12, %v2696_v14  ;;  %v2720_v25 = vmul.f32 %v6205_v12, %v2703_v15  ;;  %v2721_v26 = vmul.f32 %v6205_v12, %v2710_v18 }
 0x23c   : > { %v2726_v28 = vrot.slane %v2719_v20, 6  ;;  %v2727_v29 = vrot.slane %v2720_v25, 4  ;;  %v2728_v31 = vrot.slane %v2721_v26, 2 }
 0x23e   : > { %v2729_v34 = vsel %vm2645_vm0, %v2718_v19, %v2726_v28  ;;  %v2730_v35 = vsel %vm2647_vm1, %v2727_v29, %v2728_v31 }
 0x23f   : > { %v2731_v36 = vsel %vm2649_vm2, %v2729_v34, %v2730_v35 }
 0x240   : > { %v6214_v37 = vsub.f32 %v2672_v49, %v2731_v36  ;;  %v2896_v49 = vld [vmem:[%s5601_s9 + $0xf8] sm:$0xff] }
 0x242   : > { %v2734_v38 = vmul.f32 %v6214_v37, %v6214_v37 }
 0x244   : > { %2736 = vst [vmem:[#allocation1] ss:$4 sm:$0xff] %v2734_v38 }
 0x24b   : > { %v2739_v42 = vld.sshfl [vmem:[#allocation1 + $0x10] sm:$0xff pattern:$0x73625140]  ;;  %v2740_v43 = vld.sshfl [vmem:[#allocation1 + $0x18] sm:$0xff pattern:$0x73625140] }
 0x24c   : > { %2946 = vst [vmem:[#allocation1 + $0x10] ss:$2 sm:$0xff] %v2931_v40  ;;  %v2737_v44 = vld.sshfl [vmem:[#allocation1] sm:$0xff pattern:$0x73625140]  ;;  %v2759_v52 = vsel %vm2645_vm0, %v2739_v42, 0.0 }
 0x24d   : > { %v2738_v45 = vld.sshfl [vmem:[#allocation1 + $0x8] sm:$0xff pattern:$0x73625140]  ;;  %v2766_v55 = vsel %vm2645_vm0, %v2740_v43, 0.0  ;;  %v2760_v57 = vrot.slane %v2759_v52, 4  ;;  %v2745_v59 = vsel %vm2645_vm0, %v2737_v44, 0.0 }
 0x24e   : > { %2944 = vst [vmem:[#allocation1] ss:$2 sm:$0xff] %v2930_v41  ;;  %v2752_v54 = vsel %vm2645_vm0, %v2738_v45, 0.0  ;;  %v2767_v58 = vrot.slane %v2766_v55, 4  ;;  %v2746_v60 = vrot.slane %v2745_v59, 4 }
 0x24f   : > { %v2753_v56 = vrot.slane %v2752_v54, 4  ;;  %v2761_v61 = vadd.f32 %v2760_v57, %v2759_v52 }
 0x250   : > { %v2768_v62 = vadd.f32 %v2767_v58, %v2766_v55  ;;  %v2747_v63 = vadd.f32 %v2746_v60, %v2745_v59  ;;  %v2847_v59 = vld [vmem:[%s6482_s19] sm:$0xf] }
 0x251   : > { %v2754_v5 = vadd.f32 %v2753_v56, %v2752_v54  ;;  %v2762_v1 = vrot.slane %v2761_v61, 2 }
 0x252   : > { %v2769_v2 = vrot.slane %v2768_v62, 2  ;;  %v2748_v3 = vrot.slane %v2747_v63, 2 }
 0x253   : > { %v2949_v47 = vld.sshfl [vmem:[#allocation1 + $0x10] sm:$0xff pattern:$0x75316420]  ;;  %v2950_v48 = vld.sshfl [vmem:[#allocation1 + $0x18] sm:$0xff pattern:$0x75316420]  ;;  %v2763_v30 = vadd.f32 %v2762_v1, %v2761_v61 }
 0x254   : > { %4506 = vmatpush.msk.msra.mxu2 %vm2955_vm4, %v2949_v47  ;;  %4508 = vmatpush.msk.msra.mxu3 %vm2955_vm4, %v2950_v48  ;;  %v2755_v0 = vrot.slane %v2754_v5, 2  ;;  %v2770_v6 = vadd.f32 %v2769_v2, %v2768_v62  ;;  %v2749_v7 = vadd.f32 %v2748_v3, %v2747_v63  ;;  %v2850_v2 = vperm.slane %v2847_v59, 1 }
 0x255   : > { %4507 = vmatmul.msk.f32.vlgmr.msra.gmra.mxu2 %vm2951_vm5, %v2929_v46  ;;  %4509 = vmatmul.msk.f32.vlgmr.msra.gmra.mxu3 %vm2951_vm5, %v2929_v46  ;;  %v2948_v21 = vld.sshfl [vmem:[#allocation1 + $0x8] sm:$0xff pattern:$0x75316420]  ;;  %v2947_v39 = vld.sshfl [vmem:[#allocation1] sm:$0xff pattern:$0x75316420] }
 0x256   : > { %4504 = vmatpush.msk.msra.mxu1 %vm2955_vm4, %v2948_v21  ;;  %4502 = vmatpush.msk.msra.mxu0 %vm2955_vm4, %v2947_v39  ;;  %v2756_v4 = vadd.f32 %v2755_v0, %v2754_v5  ;;  %v2764_v32 = vrot.slane %v2763_v30, 1  ;;  %v2771_v9 = vrot.slane %v2770_v6, 1  ;;  %v2750_v33 = vrot.slane %v2749_v7, 1 }
 0x257   : > { %4505 = vmatmul.msk.f32.vlgmr.msra.gmra.mxu1 %vm2951_vm5, %v2929_v46  ;;  %4503 = vmatmul.msk.f32.vlgmr.msra.gmra.mxu0 %vm2951_vm5, %v2929_v46 }
 0x258   : > { %3089 = vmatpush.msrb.mxu0 %v2880_v16  ;;  %3129 = vmatpush.msrb.mxu2 %v2912_v24  ;;  %v2757_v8 = vrot.slane %v2756_v4, 1  ;;  %v2765_v11 = vadd.f32 %v2764_v32, %v2763_v30  ;;  %v2772_v13 = vadd.f32 %v2771_v9, %v2770_v6  ;;  %v2751_v14 = vadd.f32 %v2750_v33, %v2749_v7  ;;  %v2877_v7 = vld [vmem:[%s5601_s9 + $0x60] sm:$0xff] }
 0x259   : > { %3109 = vmatpush.msrb.mxu1 %v2896_v49  ;;  %3149 = vmatpush.msrb.mxu3 %v2928_v17  ;;  %v2849_v30 = vperm.slane %v2847_v59, 0  ;;  %v2851_v6 = vperm.slane %v2847_v59, 2  ;;  %v2909_v32 = vld [vmem:[%s5601_s9 + $0x160] sm:$0xff]  ;;  %v2904_v17 = vld [vmem:[%s5601_s9 + $0x138] sm:$0xff] }
 0x25a   : > { %3090 = vmatpush.msrb.mxu0 %v2879_v50  ;;  %3130 = vmatpush.msrb.mxu2 %v2911_v22  ;;  %v2758_v10 = vadd.f32 %v2757_v8, %v2756_v4  ;;  %v2775_v18 = vmul.f32 %v2765_v11, %v6205_v12  ;;  %v2776_v19 = vmul.f32 %v2772_v13, %v6205_v12  ;;  %v2894_v8 = vld [vmem:[%s5601_s9 + $0xe8] sm:$0xff] }
 0x25b   : > { %3110 = vmatpush.msrb.mxu1 %v2895_v51  ;;  %3150 = vmatpush.msrb.mxu3 %v2927_v23  ;;  %v2773_v20 = vmul.f32 %v2751_v14, %v6205_v12  ;;  %v2852_v14 = vperm.slane %v2847_v59, 3  ;;  %v2901_v59 = vld [vmem:[%s5601_s9 + $0x120] sm:$0xff] }
 0x25c   : > { %3091 = vmatpush.msrb.mxu0 %v2878_v53  ;;  %3131 = vmatpush.msrb.mxu2 %v2910_v27  ;;  %v2774_v15 = vmul.f32 %v2758_v10, %v6205_v12  ;;  %v2779_v26 = vadd.f32 1e-05, %v2775_v18  ;;  %v2780_v28 = vadd.f32 1e-05, %v2776_v19  ;;  %v2833_v53 = vld [vmem:[%s6479_s2] sm:$0xf] }
 0x25d   : > { %v2777_v29 = vadd.f32 1e-05, %v2773_v20  ;;  %v2836_v58 = vperm.slane %v2833_v53, 1  ;;  %v2835_v5 = vperm.slane %v2833_v53, 0  ;;  %v2837_v61 = vperm.slane %v2833_v53, 2  ;;  %3111 = vmatpush.msrb.mxu1 %v2894_v8  ;;  %v2926_v10 = vld [vmem:[%s5601_s9 + $0x1e8] sm:$0xff] }
 0x25e   : > { %v2778_v25 = vadd.f32 1e-05, %v2774_v15  ;;  %vm2807_vm9 = vweird.f32 %v2779_v26  ;;  %vm2817_vm15 = vweird.f32 %v2780_v28  ;;  %v2838_v62 = vperm.slane %v2833_v53, 3  ;;  %3092 = vmatpush.msrb.mxu0 %v2877_v7  ;;  %3132 = vmatpush.msrb.mxu2 %v2909_v32  ;;  %v2903_v53 = vld [vmem:[%s5601_s9 + $0x130] sm:$0xff]  ;;  %v2920_v27 = vld [vmem:[%s5601_s9 + $0x1b8] sm:$0xff]  ;;  %v2865_v32 = vld [vmem:[%s5601_s9] sm:$0xff] }
 0x25f   : > { %vm2787_vm11 = vweird.f32 %v2777_v29  ;;  %v2839_v1 = vrot.slane %v2836_v58, 6  ;;  %v2840_v3 = vrot.slane %v2837_v61, 4  ;;  %v2853_v15 = vrot.slane %v2850_v2, 6  ;;  %3151 = vmatpush.msrb.mxu3 %v2926_v10  ;;  %v2886_v58 = vld [vmem:[%s5601_s9 + $0xa8] sm:$0xff]  ;;  %v2885_v61 = vld [vmem:[%s5601_s9 + $0xa0] sm:$0xff]  ;;  %v2899_v2 = vld [vmem:[%s5601_s9 + $0x110] sm:$0xff] }
 0x260   : > { %4927 = vrsqrt.f32 %v2778_v25  ;;  %vm2797_vm6 = vweird.f32 %v2778_v25  ;;  %v2841_v4 = vrot.slane %v2838_v62, 2  ;;  %v2854_v20 = vrot.slane %v2851_v6, 4  ;;  %v2900_v62 = vld [vmem:[%s5601_s9 + $0x118] sm:$0xff]  ;;  %v2898_v6 = vld [vmem:[%s5601_s9 + $0x108] sm:$0xff]  ;;  %v2915_v7 = vld [vmem:[%s5601_s9 + $0x190] sm:$0xff] }
 0x261   : > { %4929 = vrsqrt.f32 %v2779_v26  ;;  %v2842_v33 = vsel %vm2645_vm0, %v2835_v5, %v2839_v1  ;;  %v2868_v5 = vld [vmem:[%s5601_s9 + $0x18] sm:$0xff]  ;;  %v2932_v8 = vld [vmem:[%s562_s8] sm:$0xf] }
 0x262   : > { %4931 = vrsqrt.f32 %v2777_v29  ;;  %v2843_v13 = vsel %vm2647_vm1, %v2840_v3, %v2841_v4  ;;  %v2884_v1 = vld [vmem:[%s5601_s9 + $0x98] sm:$0xff]  ;;  %v2866_v4 = vld [vmem:[%s5601_s9 + $0x8] sm:$0xff]  ;;  %v2935_v10 = vperm.slane %v2932_v8, 1 }
 0x263   : > { %4933 = vrsqrt.f32 %v2780_v28  ;;  %v2844_v19 = vsel %vm2649_vm2, %v2842_v33, %v2843_v13  ;;  %v2916_v3 = vld [vmem:[%s5601_s9 + $0x198] sm:$0xff]  ;;  %v2897_v33 = vld [vmem:[%s5601_s9 + $0x100] sm:$0xff] }
 0x264   : > { %v2881_v13 = vld [vmem:[%s5601_s9 + $0x80] sm:$0xff] }
 0x266   : > { %v4928_v31 = vpop.eup %4927 }
 0x267   : > { %v4930_v34 = vpop.eup %4929  ;;  %v2792_v35 = vmul.f32 %v4928_v31, %v2778_v25  ;;  %vm2798_vm7 = vweird.f32 %v4928_v31  ;;  %v2876_v25 = vld [vmem:[%s5601_s9 + $0x58] sm:$0xff] }
 0x268   : > { %v4932_v36 = vpop.eup %4931  ;;  %v2802_v38 = vmul.f32 %v4930_v34, %v2779_v26  ;;  %vm6242_vm8 = vmor %vm2797_vm6, %vm2798_vm7  ;;  %vm2808_vm10 = vweird.f32 %v4930_v34  ;;  %v2893_v26 = vld [vmem:[%s5601_s9 + $0xe0] sm:$0xff]  ;;  %3093 = vmatpush.msrb.mxu0 %v2876_v25  ;;  %v2936_v25 = vperm.slane %v2932_v8, 2 }
 0x269   : > { %v4934_v40 = vpop.eup %4933  ;;  %v2782_v41 = vmul.f32 %v4932_v36, %v2777_v29  ;;  %v2793_v42 = vmul.f32 %v4928_v31, %v2792_v35  ;;  %vm2788_vm12 = vweird.f32 %v4932_v36  ;;  %vm2809_vm13 = vmor %vm2807_vm9, %vm2808_vm10  ;;  %v2855_v29 = vrot.slane %v2852_v14, 2  ;;  %3112 = vmatpush.msrb.mxu1 %v2893_v26  ;;  %v2913_v14 = vld [vmem:[%s5601_s9 + $0x180] sm:$0xff] }
 0x26a   : > { %v2803_v43 = vmul.f32 %v4930_v34, %v2802_v38  ;;  %v2812_v44 = vmul.f32 %v4934_v40, %v2780_v28  ;;  %vm6250_vm14 = vmor %vm2787_vm11, %vm2788_vm12  ;;  %vm2818_vm3 = vweird.f32 %v4934_v40  ;;  %v2908_v28 = vld [vmem:[%s5601_s9 + $0x158] sm:$0xff]  ;;  %v2907_v38 = vld [vmem:[%s5601_s9 + $0x150] sm:$0xff]  ;;  %v2937_v26 = vperm.slane %v2932_v8, 3 }
 0x26b   : > { %v2783_v45 = vmul.f32 %v4932_v36, %v2782_v41  ;;  %v2794_v12 = vmul.f32 0.5, %v2793_v42  ;;  %vm2819_vm4 = vmor %vm2817_vm15, %vm2818_vm3  ;;  %3133 = vmatpush.msrb.mxu2 %v2908_v28  ;;  %v2924_v41 = vld [vmem:[%s5601_s9 + $0x1d8] sm:$0xff] }
 0x26c   : > { %v2804_v46 = vmul.f32 0.5, %v2803_v43  ;;  %v2813_v47 = vmul.f32 %v4934_v40, %v2812_v44  ;;  %v2874_v43 = vld [vmem:[%s5601_s9 + $0x48] sm:$0xff]  ;;  %v2891_v44 = vld [vmem:[%s5601_s9 + $0xd0] sm:$0xff] }
 0x26d   : > { %v2784_v48 = vmul.f32 0.5, %v2783_v45  ;;  %v2795_v16 = vsub.f32 1.5, %v2794_v12  ;;  %3134 = vmatpush.msrb.mxu2 %v2907_v38  ;;  %v2906_v45 = vld [vmem:[%s5601_s9 + $0x148] sm:$0xff] }
 0x26e   : > { %v2805_v24 = vsub.f32 1.5, %v2804_v46  ;;  %v2814_v21 = vmul.f32 0.5, %v2813_v47  ;;  %v2923_v46 = vld [vmem:[%s5601_s9 + $0x1d0] sm:$0xff]  ;;  %v2873_v47 = vld [vmem:[%s5601_s9 + $0x40] sm:$0xff] }
 0x26f   : > { %v2785_v39 = vsub.f32 1.5, %v2784_v48  ;;  %v2796_v49 = vmul.f32 %v4928_v31, %v2795_v16  ;;  %3135 = vmatpush.msrb.mxu2 %v2906_v45  ;;  %v2890_v48 = vld [vmem:[%s5601_s9 + $0xc8] sm:$0xff]  ;;  %v2905_v16 = vld [vmem:[%s5601_s9 + $0x140] sm:$0xff] }
 0x270   : > { %v2806_v50 = vmul.f32 %v4930_v34, %v2805_v24  ;;  %v2815_v22 = vsub.f32 1.5, %v2814_v21  ;;  %v2922_v21 = vld [vmem:[%s5601_s9 + $0x1c8] sm:$0xff] }
 0x271   : > { %v2786_v51 = vmul.f32 %v4932_v36, %v2785_v39  ;;  %v2800_v23 = vsel %vm6242_vm8, %v4928_v31, %v2796_v49  ;;  %v2856_v31 = vsel %vm2645_vm0, %v2849_v30, %v2853_v15  ;;  %3136 = vmatpush.msrb.mxu2 %v2905_v16  ;;  %v2872_v39 = vld [vmem:[%s5601_s9 + $0x38] sm:$0xff]  ;;  %v2889_v49 = vld [vmem:[%s5601_s9 + $0xc0] sm:$0xff]  ;;  %v2883_v30 = vld [vmem:[%s5601_s9 + $0x90] sm:$0xff]  ;;  %v2934_v15 = vperm.slane %v2932_v8, 0 }
 0x272   : > { %v2810_v54 = vsel %vm2809_vm13, %v4930_v34, %v2806_v50  ;;  %v2816_v52 = vmul.f32 %v4934_v40, %v2815_v22  ;;  %v2825_v56 = vrot.slane %v2800_v23, 6  ;;  %v2925_v34 = vld [vmem:[%s5601_s9 + $0x1e0] sm:$0xff]  ;;  %v2888_v23 = vld [vmem:[%s5601_s9 + $0xb8] sm:$0xff] }
 0x273   : > { %v2790_v55 = vsel %vm6250_vm14, %v4932_v36, %v2786_v51  ;;  %v2826_v57 = vrot.slane %v2810_v54, 4  ;;  %3152 = vmatpush.msrb.mxu3 %v2925_v34  ;;  %v2892_v36 = vld [vmem:[%s5601_s9 + $0xd8] sm:$0xff]  ;;  %v2921_v22 = vld [vmem:[%s5601_s9 + $0x1c0] sm:$0xff]  ;;  %v2871_v51 = vld [vmem:[%s5601_s9 + $0x30] sm:$0xff]  ;;  %3137 = vmatpush.msrb.mxu2 %v2904_v17 }
 0x274   : > { %v2820_v60 = vsel %vm2819_vm4, %v4934_v40, %v2816_v52  ;;  %v2828_v0 = vsel %vm2645_vm0, %v2790_v55, %v2825_v56  ;;  %v2857_v40 = vsel %vm2647_vm1, %v2854_v20, %v2855_v29  ;;  %3113 = vmatpush.msrb.mxu1 %v2892_v36  ;;  %v2870_v54 = vld [vmem:[%s5601_s9 + $0x28] sm:$0xff]  ;;  %v2887_v52 = vld [vmem:[%s5601_s9 + $0xb0] sm:$0xff] }
 0x275   : > { %v2827_v63 = vrot.slane %v2820_v60, 2  ;;  %v2858_v42 = vsel %vm2649_vm2, %v2856_v31, %v2857_v40  ;;  %3153 = vmatpush.msrb.mxu3 %v2924_v41  ;;  %v2902_v55 = vld [vmem:[%s5601_s9 + $0x128] sm:$0xff]  ;;  %v2919_v56 = vld [vmem:[%s5601_s9 + $0x1b0] sm:$0xff]  ;;  %3138 = vmatpush.msrb.mxu2 %v2903_v53  ;;  %v3075_v53 = vlaneseq }
 0x276   : > { %3114 = vmatpush.msrb.mxu1 %v2891_v44  ;;  %v2918_v60 = vld [vmem:[%s5601_s9 + $0x1a8] sm:$0xff] }
 0x277   : > { %v2829_v9 = vsel %vm2647_vm1, %v2826_v57, %v2827_v63  ;;  %3154 = vmatpush.msrb.mxu3 %v2923_v46  ;;  %v2869_v57 = vld [vmem:[%s5601_s9 + $0x20] sm:$0xff]  ;;  %3139 = vmatpush.msrb.mxu2 %v2902_v55 }
 0x278   : > { %v2830_v11 = vsel %vm2649_vm2, %v2828_v0, %v2829_v9  ;;  %3115 = vmatpush.msrb.mxu1 %v2890_v48  ;;  %v2917_v63 = vld [vmem:[%s5601_s9 + $0x1a0] sm:$0xff]  ;;  %v2867_v0 = vld [vmem:[%s5601_s9 + $0x10] sm:$0xff]  ;;  %v2882_v9 = vld [vmem:[%s5601_s9 + $0x88] sm:$0xff] }
 0x279   : > { %v2832_v18 = vmul.f32 %v2830_v11, %v6214_v37  ;;  %v2875_v37 = vld [vmem:[%s5601_s9 + $0x50] sm:$0xff]  ;;  %3155 = vmatpush.msrb.mxu3 %v2922_v21  ;;  %3140 = vmatpush.msrb.mxu2 %v2901_v59  ;;  %v2914_v11 = vld [vmem:[%s5601_s9 + $0x188] sm:$0xff] }
 0x27a   : > { %3094 = vmatpush.msrb.mxu0 %v2875_v37  ;;  %3116 = vmatpush.msrb.mxu1 %v2889_v49 }
 0x27b   : > { %v2846_v35 = vmul.f32 %v2844_v19, %v2832_v18  ;;  %3156 = vmatpush.msrb.mxu3 %v2921_v22  ;;  %3141 = vmatpush.msrb.mxu2 %v2900_v62 }
 0x27c   : > { %3095 = vmatpush.msrb.mxu0 %v2874_v43  ;;  %3117 = vmatpush.msrb.mxu1 %v2888_v23 }
 0x27d   : > { %v2860_v12 = vadd.f32 %v2858_v42, %v2846_v35  ;;  %3157 = vmatpush.msrb.mxu3 %v2920_v27  ;;  %3142 = vmatpush.msrb.mxu2 %v2899_v2  ;;  %v3076_v27 = vand.u32 127, %v3075_v53 }
 0x27e   : > { %3096 = vmatpush.msrb.mxu0 %v2873_v47  ;;  %3118 = vmatpush.msrb.mxu1 %v2887_v52 }
 0x27f   : > { %vm2861_vm5 = vcmp.gt.f32.partialorder %v2860_v12, 0.0  ;;  %v2862_v24 = vmul.f32 0.2, %v2860_v12  ;;  %3158 = vmatpush.msrb.mxu3 %v2919_v56  ;;  %3143 = vmatpush.msrb.mxu2 %v2898_v6 }
 0x280   : > { %3097 = vmatpush.msrb.mxu0 %v2872_v39  ;;  %3119 = vmatpush.msrb.mxu1 %v2886_v58 }
 0x281   : > { %v6291_v50 = vsel %vm2861_vm5, %v2860_v12, %v2862_v24  ;;  %3159 = vmatpush.msrb.mxu3 %v2918_v60  ;;  %3144 = vmatpush.msrb.mxu2 %v2897_v33 }
 0x282   : > { %2864 = vst [vmem:[%s5610_s0] sm:$0xff] %v6291_v50  ;;  %3098 = vmatpush.msrb.mxu0 %v2871_v51  ;;  %3120 = vmatpush.msrb.mxu1 %v2885_v61 }
 0x283   : > { %3160 = vmatpush.msrb.mxu3 %v2917_v63 }
 0x284   : > { %3099 = vmatpush.msrb.mxu0 %v2870_v54  ;;  %3121 = vmatpush.msrb.mxu1 %v2884_v1 }
 0x285   : > { %3161 = vmatpush.msrb.mxu3 %v2916_v3 }
 0x286   : > { %3100 = vmatpush.msrb.mxu0 %v2869_v57  ;;  %3122 = vmatpush.msrb.mxu1 %v2883_v30 }
 0x287   : > { %3162 = vmatpush.msrb.mxu3 %v2915_v7 }
 0x288   : > { %3101 = vmatpush.msrb.mxu0 %v2868_v5  ;;  %3123 = vmatpush.msrb.mxu1 %v2882_v9 }
 0x289   : > { %3163 = vmatpush.msrb.mxu3 %v2914_v11 }
 0x28a   : > { %3102 = vmatpush.msrb.mxu0 %v2867_v0  ;;  %3124 = vmatpush.msrb.mxu1 %v2881_v13 }
 0x28b   : > { %3164 = vmatpush.msrb.mxu3 %v2913_v14 }
 0x28c   : > { %3103 = vmatpush.msrb.mxu0 %v2866_v4 }
 0x28e   : > { %3104 = vmatpush.msrb.mxu0 %v2865_v32 }
 0x2d4   : > { %v3001_v18 = vpop.f32.mrf.mxu1  ;;  %v2981_v19 = vpop.f32.mrf.mxu0 }
 0x2d5   : > { %v3002_v20 = vadd.f32 %v3001_v18, %v2935_v10  ;;  %v2982_v29 = vadd.f32 %v2981_v19, %v2934_v15 }
 0x2d7   : > { %v3048_v28 = vrot.slane %v3002_v20, 6 }
 0x2d8   : > { %v3021_v31 = vpop.f32.mrf.mxu2  ;;  %v3041_v34 = vpop.f32.mrf.mxu3 }
 0x2d9   : > { %v3022_v35 = vadd.f32 %v3021_v31, %v2936_v25  ;;  %v3042_v37 = vadd.f32 %v3041_v34, %v2937_v26  ;;  %v3051_v40 = vsel %vm2645_vm0, %v2982_v29, %v3048_v28 }
 0x2db   : > { %v3049_v36 = vrot.slane %v3022_v35, 4  ;;  %v3050_v38 = vrot.slane %v3042_v37, 2 }
 0x2dd   : > { %v3052_v41 = vsel %vm2647_vm1, %v3049_v36, %v3050_v38  ;;  %vm3077_vm1 = vcmp.eq.s32.totalorder %v3076_v27, 1 }
 0x2de   : > { %v3053_v42 = vsel %vm2649_vm2, %v3051_v40, %v3052_v41 }
 0x2df   : > { %v3055_v43 = vmul.f32 %v3053_v42, %v6291_v50 }
 0x2e1   : > { %3057 = vst [vmem:[#allocation1] ss:$4 sm:$0xff] %v3055_v43 }
 0x2e8   : > { %v3058_v44 = vld.sshfl [vmem:[#allocation1] sm:$0xff pattern:$0x73625140]  ;;  %v3059_v45 = vld.sshfl [vmem:[#allocation1 + $0x8] sm:$0xff pattern:$0x73625140] }
 0x2e9   : > { %v3060_v12 = vld.sshfl [vmem:[#allocation1 + $0x10] sm:$0xff pattern:$0x73625140]  ;;  %v3061_v46 = vld.sshfl [vmem:[#allocation1 + $0x18] sm:$0xff pattern:$0x73625140] }
 0x2ea   : > { %v3066_v47 = vsel %vm2645_vm0, %v3058_v44, 0.0  ;;  %v3067_v48 = vsel %vm2645_vm0, %v3059_v45, 0.0  ;;  %3080 = vst [vmem:[#allocation1] ss:$4 sm:$0xff] %v6291_v50  ;;  %v3069_v24 = vsel %vm2645_vm0, %v3060_v12, 0.0  ;;  %v3071_v39 = vsel %vm2645_vm0, %v3061_v46, 0.0 }
 0x2eb   : > { %v3068_v16 = vadd.f32 %v3067_v48, %v3066_v47  ;;  %vm3169_vm0 = vcmask 9216  }
 0x2ed   : > { %v3070_v21 = vadd.f32 %v3069_v24, %v3068_v16 }
 0x2ef   : > { %v3072_v49 = vadd.f32 %v3071_v39, %v3070_v21 }
 0x2f1   : > { %3073 = vadd.xlane.f32.xlu0 %v3072_v49  ;;  %v3081_v17 = vld.sshfl [vmem:[#allocation1] sm:$0xff pattern:$0x73625140]  ;;  %v3083_v22 = vld.sshfl [vmem:[#allocation1 + $0x10] sm:$0xff pattern:$0x73625140] }
 0x2f2   : > { %3105 = vmatmul.f32.vlgmr.msrb.gmra.mxu0 %v3081_v17  ;;  %3145 = vmatmul.f32.vlgmr.msrb.gmra.mxu2 %v3083_v22  ;;  %v3082_v51 = vld.sshfl [vmem:[#allocation1 + $0x8] sm:$0xff pattern:$0x73625140]  ;;  %v3084_v23 = vld.sshfl [vmem:[#allocation1 + $0x18] sm:$0xff pattern:$0x73625140] }
 0x2f3   : > { %3125 = vmatmul.f32.vlgmr.msrb.gmra.mxu1 %v3082_v51  ;;  %3165 = vmatmul.f32.vlgmr.msrb.gmra.mxu3 %v3084_v23 }
 0x364   : > { %v3074_v50 = vpop.xlane.xlu0 %3073 }
 0x365   : > { %v3078_v54 = vsel %vm3077_vm1, %v3074_v50, 0.0 }
 0x36f   : > { %v3106_v52 = vpop.f32.mrf.mxu0 }
 0x370   : > { %v3107_v55 = vadd.f32 %v3106_v52, %v3078_v54  ;;  %v3126_v56 = vpop.f32.mrf.mxu1 }
 0x372   : > { %v3127_v57 = vadd.f32 %v3126_v56, %v3107_v55 }
 0x375   : > { %v3146_v58 = vpop.f32.mrf.mxu2 }
 0x376   : > { %v3147_v59 = vadd.f32 %v3146_v58, %v3127_v57  ;;  %v3166_v60 = vpop.f32.mrf.mxu3 }
 0x378   : > { %v3167_v5 = vadd.f32 %v3166_v60, %v3147_v59 }
 0x37a   : > { %3170 = vst.msk [vmem:[%s5607_s4] sm:$0x3] %vm3169_vm0, %v3167_v5 }
 0x37b PF: > { %s6483_s8 = sld [smem:[#allocation25_spill]]  ;;  %s3189_s30 = sshll.u32 %s5610_s0, 4  ;;  %s3190_s30 = int_to_ptr.vmem [resolvable:$true] %s3189_s30 }
 0x37c   : > { %s6485_s10 = sld [smem:[#allocation43_spill]]  ;;  %s3172_s16 = scalar_lea.sflag [#allocation4], %s5561_s1 }
 0x381   : > { %s4773_s29 = sshll.u32 %s6483_s8, 3 }
 0x382   : > { %s3187_s21 = scalar_lea.hbm %s6485_s10, %s4773_s29  ;;  %s5165_s6 = scalar_lea.hbm %s6485_s10, 16 }
 0x383   : > { %s3191_s25 = sshll.u32 %s3187_s21, 4  ;;  %s3192_s25 = int_to_ptr.hbm [resolvable:$true] %s3191_s25 }
 0x384   : > { %s5159_s5 = sshra.s32 %s3192_s25, 4  ;;  %s5160_s5 = int_to_ptr.hbm [resolvable:$true] %s5159_s5 }
 0x385   : > { %s5161_s7 = scalar_lea.hbm %s5160_s5, 8  ;;  %p5166_p0 = scmp.lt.s32.totalorder %s5160_s5, %s6485_s10 }
 0x386   : > { %p5162_p3 = scmp.ne.s32.totalorder %s5160_s5, %s5161_s7  ;;  %p5167_p13 = scmp.lt.s32.totalorder %s5165_s6, %s5161_s7 }
 0x388   : > { %p5163_p11 = pnand %p5162_p3, %p5453_p7  ;;  %p5168_p5 = por %p5167_p13, %p5166_p0 }
 0x38a   : > { %p5164_p12 = pneg %p5163_p11 }
 0x38c   : > { %p5169_p9 = pnand %p5168_p5, %p5164_p12 }
 0x38e   : > { %5172 = shalt.err (!%p5169_p9)
}
 0x38f   : > { %4790 = dma.vmem_to_hbm [thread:$0]  (%p5453_p7), %s3190_s30, 128, %s3192_s25, %s3172_s16  }
 0x390 PF: > { %s6486_s0 = sld [smem:[#allocation21_spill]]  ;;  %p4822_p1 = scmp.ge.s32.totalorder %s5283_s23, 2 }
 0x392   : > { %p4816_p4 = pnand %p4822_p1, %p5421_p8 }
 0x394   : > { %p4817_p10 = pneg %p4816_p4 }
 0x396   : > { %s3206_s13 = sand.u32 1, %s6486_s0  }
 0x397   : > { %s3207_s11 = scalar_lea.sflag [#allocation4], %s3206_s13 }
 0x398   : > { %5238 = dma.done.wait (%p4817_p10), %s3207_s11, 128  }
 0x399   : > { %5240 = vsyncadd (%p4817_p10), %s3207_s11, 4294967168  ;;  %s36_s23 = sadd.s32 1, %s5283_s23   ;;  %s6488_s13 = sld [smem:[#allocation22_spill]] }
 0x39a   : > { %p33_p6 = scmp.ge.s32.totalorder %s36_s23, 18   ;;  %s6489_s16 = sld [smem:[#allocation23_spill]] }
 0x39b   : > { %s6490_s27 = smov %s5518_s17  ;;  %s6491_s19 = sld [smem:[#allocation26_spill]] }
 0x39c   : > { %s6492_s21 = sld [smem:[#allocation32_spill]]  ;;  %s6494_s14 = smov %s5251_s15 }
 0x39d   : > { %s6493_s24 = sld [smem:[#allocation33_spill]]  ;;  %s6495_s15 = smov %s5515_s26 }
 0x39e   : > { %s6496_s17 = smov %s5263_s18  ;;  %s6497_s18 = smov %s6490_s27 }
 0x39f   : > { %s6498_s20 = smov %s5279_s22  ;;  %35 = sbr.rel (!%p33_p6) target bundleno = 27 (0x1b), region = 193 }
 0x3a3   : > { %s6499_s22 = smov %s6493_s24 }
 0x3a4   :  { %3220 = vsyncpa [#allocation3], 1 }
 0x3a5   :  { %3222 = vsyncpa [#allocation3 + $0x1], 1 }
 0x3a6   :  { %3223 = vsyncpa [#allocation6], 1 }
 0x3a7   :  { %3225 = vsyncpa [#allocation6 + $0x1], 1 }
 0x3a8   :  { %3226 = vsyncpa [#allocation9], 1 }
 0x3a9   :  { %3228 = vsyncpa [#allocation9 + $0x1], 1 }
 0x3aa   :  { %3229 = vsyncpa [#allocation12], 1 }
 0x3ab   :  { %3231 = vsyncpa [#allocation12 + $0x1], 1 }
 0x3ac   :  { %3232 = vsyncpa [#allocation4], 1 }
 0x3ad   :  { %3234 = vsyncpa [#allocation4 + $0x1], 1 }

// kernel: discriminator_forward.2
= control target key start
LH: loop header
LB: loop body
LE: loop exit
PB: predicated region body
PF: predicated region fallthrough
CT: control target
= control target key end

     0   :  { %10 = vsyncpa [#allocation3], 0  ;;  %s7543_s0 = inlined_call_operand.vmem [shape: f32[4,2,9,9,64], index: 0, kind: input, shape index: {}]   ;;  %s7544_s1 = inlined_call_operand.hbm [shape: bf16[64,64], index: 1, kind: input, shape index: {}]   ;;  %s7545_s2 = inlined_call_operand.hbm [shape: bf16[16,64,128], index: 2, kind: input, shape index: {}]   ;;  %s7546_s3 = inlined_call_operand.hbm [shape: f32[1,128], index: 3, kind: input, shape index: {}]   ;;  %s7547_s4 = inlined_call_operand.hbm [shape: f32[1,128], index: 4, kind: input, shape index: {}]   ;;  %s7548_s5 = inlined_call_operand.vmem [shape: bf16[128,128], index: 5, kind: output, shape index: {}]  }
   0x1   :  { %11 = vsyncpa [#allocation5], 0 }
   0x2   :  { %12 = vsyncpa [#allocation8], 0  ;;  %s32_s20 = sshll.u32 %s7545_s2, 4  ;;  %s5714_s21 = smov [#allocation4]   ;;  %s33_s20 = int_to_ptr.hbm [resolvable:$true] %s32_s20 }
   0x3   :  { %s34_s22 = sshll.u32 %s5714_s21, 4  ;;  %s19_s25 = sshll.u32 %s7544_s1, 4  ;;  %s35_s22 = int_to_ptr.vmem [resolvable:$true] %s34_s22  ;;  %s20_s25 = int_to_ptr.hbm [resolvable:$true] %s19_s25 }
   0x4   :  { %s5715_s26 = smov 64   ;;  %s5716_s27 = smov 4  }
   0x5   :  { %40 = dma.hbm_to_vmem [thread:$0]  %s33_s20, 8192, %s35_s22, [#allocation5], %s5715_s26, %s5715_s26, %s5716_s27  }
   0x6   :  { %s5717_s28 = smov [#allocation2]   ;;  %s46_s7 = sshll.u32 %s7546_s3, 4  ;;  %s47_s7 = int_to_ptr.hbm [resolvable:$true] %s46_s7 }
   0x7   :  { %s21_s29 = sshll.u32 %s5717_s28, 4  ;;  %s57_s9 = sshll.u32 %s7547_s4, 4  ;;  %s22_s29 = int_to_ptr.vmem [resolvable:$true] %s21_s29  ;;  %s58_s9 = int_to_ptr.hbm [resolvable:$true] %s57_s9 }
   0x8   :  { %27 = dma.hbm_to_vmem [thread:$0]  %s20_s25, 512, %s22_s29, [#allocation3], %s5715_s26, %s5715_s26, %s5716_s27  }
   0x9   :  { %s5718_s10 = smov [#allocation6]   ;;  %s5719_s1 = smov [#allocation7]  }
   0xa   :  { %s48_s11 = sshll.u32 %s5718_s10, 4  ;;  %s59_s12 = sshll.u32 %s5719_s1, 4  ;;  %s49_s11 = int_to_ptr.vmem [resolvable:$true] %s48_s11  ;;  %s60_s12 = int_to_ptr.vmem [resolvable:$true] %s59_s12 }
   0xb   :  { %51 = dma.hbm_to_vmem [thread:$0]  %s47_s7, 16, %s49_s11, [#allocation5]  }
   0xc   :  { %62 = dma.hbm_to_vmem [thread:$0]  %s58_s9, 16, %s60_s12, [#allocation8]  }
   0xd   :  { %5708 = dma.done.wait [#allocation3], 512  }
   0xe   :  { %5709 = vsyncadd [#allocation3], 4294966784 }
   0xf   :  { %5710 = dma.done.wait [#allocation5], 8208  }
  0x10   :  { %5711 = vsyncadd [#allocation5], 4294959088 }
  0x11   :  { %5712 = dma.done.wait [#allocation8], 16  }
  0x12   :  { %5713 = vsyncadd [#allocation8], 4294967280  ;;  %v5763_v0 = vld [vmem:[#allocation2 + $0x18] sm:$0xff]  ;;  %v5767_v1 = vld [vmem:[#allocation2 + $0x10] sm:$0xff]  ;;  %vm136_vm0 = vcmask 523264  }
  0x13   :  { %165 = vmatpush.bf16.msra.mxu0 %v5763_v0  ;;  %327 = vmatpush.bf16.msra.mxu1 %v5763_v0  ;;  %v5771_v2 = vld [vmem:[#allocation2 + $0x8] sm:$0xff]  ;;  %v5773_v3 = vld [vmem:[#allocation2] sm:$0xff]  ;;  %v89_v5 = vld [vmem:[%s7543_s0 + $0x10] sm:$0xff] }
  0x14   :  { %v88_v4 = vld [vmem:[%s7543_s0] sm:$0xff]  ;;  %v4749_v7 = vld [vmem:[%s7543_s0 + $0x130] sm:$0xff]  ;;  %v5487_v40 = vld [vmem:[#allocation4 + $0x38] sm:$0xff] }
  0x15   :  { %v4748_v6 = vld [vmem:[%s7543_s0 + $0x120] sm:$0xff]  ;;  %v104_v8 = vpack.c.bf16 %v89_v5, %v88_v4  ;;  %v91_v11 = vld [vmem:[%s7543_s0 + $0x30] sm:$0xff]  ;;  %v5483_v41 = vld [vmem:[#allocation4 + $0x18] sm:$0xff]  ;;  %489 = vmatpush.bf16.msra.mxu2 %v5487_v40 }
  0x16   :  { %v291_v9 = vpack.c.bf16 %v4749_v7, %v4748_v6  ;;  %v90_v10 = vld [vmem:[%s7543_s0 + $0x20] sm:$0xff]  ;;  %v4751_v13 = vld [vmem:[%s7543_s0 + $0x150] sm:$0xff]  ;;  %586 = vmatpush.bf16.msra.mxu3 %v5483_v41  ;;  %v5485_v50 = vld [vmem:[#allocation4 + $0x28] sm:$0xff] }
  0x17   :  { %166 = vmatpush.bf16.msra.mxu0 %v5767_v1  ;;  %328 = vmatpush.bf16.msra.mxu1 %v5767_v1  ;;  %v4750_v12 = vld [vmem:[%s7543_s0 + $0x140] sm:$0xff]  ;;  %v105_v14 = vpack.c.bf16 %v91_v11, %v90_v10  ;;  %v93_v17 = vld [vmem:[%s7543_s0 + $0x50] sm:$0xff]  ;;  %v5481_v51 = vld [vmem:[#allocation4 + $0x8] sm:$0xff] }
  0x18   :  { %v292_v15 = vpack.c.bf16 %v4751_v13, %v4750_v12  ;;  %v92_v16 = vld [vmem:[%s7543_s0 + $0x40] sm:$0xff]  ;;  %v4753_v19 = vld [vmem:[%s7543_s0 + $0x170] sm:$0xff] }
  0x19   :  { %v4752_v18 = vld [vmem:[%s7543_s0 + $0x160] sm:$0xff]  ;;  %v106_v20 = vpack.c.bf16 %v93_v17, %v92_v16  ;;  %v95_v23 = vld [vmem:[%s7543_s0 + $0x70] sm:$0xff] }
  0x1a   :  { %v293_v21 = vpack.c.bf16 %v4753_v19, %v4752_v18  ;;  %v94_v22 = vld [vmem:[%s7543_s0 + $0x60] sm:$0xff]  ;;  %v4755_v25 = vld [vmem:[%s7543_s0 + $0x190] sm:$0xff] }
  0x1b   :  { %167 = vmatpush.bf16.msra.mxu0 %v5771_v2  ;;  %329 = vmatpush.bf16.msra.mxu1 %v5771_v2  ;;  %v4754_v24 = vld [vmem:[%s7543_s0 + $0x180] sm:$0xff]  ;;  %v107_v26 = vpack.c.bf16 %v95_v23, %v94_v22  ;;  %v96_v28 = vld [vmem:[%s7543_s0 + $0x90] sm:$0xff] }
  0x1c   :  { %v294_v27 = vpack.c.bf16 %v4755_v25, %v4754_v24  ;;  %v97_v29 = vld [vmem:[%s7543_s0 + $0xa0] sm:$0xff]  ;;  %v4756_v30 = vld [vmem:[%s7543_s0 + $0x1b0] sm:$0xff] }
  0x1d   :  { %v4757_v31 = vld [vmem:[%s7543_s0 + $0x1c0] sm:$0xff]  ;;  %v108_v32 = vpack.c.bf16 %v97_v29, %v96_v28  ;;  %v98_v34 = vld [vmem:[%s7543_s0 + $0xb0] sm:$0xff] }
  0x1e   :  { %v295_v33 = vpack.c.bf16 %v4757_v31, %v4756_v30  ;;  %v99_v35 = vld [vmem:[%s7543_s0 + $0xc0] sm:$0xff]  ;;  %v4758_v36 = vld [vmem:[%s7543_s0 + $0x1d0] sm:$0xff] }
  0x1f   :  { %168 = vmatpush.bf16.msra.mxu0 %v5773_v3  ;;  %330 = vmatpush.bf16.msra.mxu1 %v5773_v3  ;;  %v4759_v37 = vld [vmem:[%s7543_s0 + $0x1e0] sm:$0xff]  ;;  %v109_v38 = vpack.c.bf16 %v99_v35, %v98_v34  ;;  %v100_v42 = vld [vmem:[%s7543_s0 + $0xd0] sm:$0xff] }
  0x20   :  { %v296_v39 = vpack.c.bf16 %v4759_v37, %v4758_v36  ;;  %v101_v43 = vld [vmem:[%s7543_s0 + $0xe0] sm:$0xff]  ;;  %v4760_v44 = vld [vmem:[%s7543_s0 + $0x1f0] sm:$0xff] }
  0x21   :  { %v4761_v45 = vld [vmem:[%s7543_s0 + $0x200] sm:$0xff]  ;;  %v110_v46 = vpack.c.bf16 %v101_v43, %v100_v42  ;;  %v5486_v48 = vld [vmem:[#allocation4 + $0x30] sm:$0xff] }
  0x22   :  { %4740 = vmatmul.msk.bf16.vlgmr.msra.gmra.mxu0 %vm136_vm0, %v104_v8  ;;  %4764 = vmatmul.msk.bf16.vlgmr.msra.gmra.mxu1 %vm136_vm0, %v291_v9  ;;  %v297_v47 = vpack.c.bf16 %v4761_v45, %v4760_v44  ;;  %v5482_v49 = vld [vmem:[#allocation4 + $0x10] sm:$0xff]  ;;  %v5484_v52 = vld [vmem:[#allocation4 + $0x20] sm:$0xff] }
  0x23   :  { %683 = vmatpush.bf16.msrb.mxu0 %v5763_v0  ;;  %490 = vmatpush.bf16.msra.mxu2 %v5486_v48  ;;  %v5480_v53 = vld [vmem:[#allocation4] sm:$0xff]  ;;  %v102_v54 = vld [vmem:[%s7543_s0 + $0xf0] sm:$0xff] }
  0x24   :  { %587 = vmatpush.bf16.msra.mxu3 %v5482_v49  ;;  %v103_v55 = vld [vmem:[%s7543_s0 + $0x100] sm:$0xff]  ;;  %v4762_v56 = vld [vmem:[%s7543_s0 + $0x210] sm:$0xff] }
  0x25   :  { %v4763_v57 = vld [vmem:[%s7543_s0 + $0x220] sm:$0xff]  ;;  %v111_v58 = vpack.c.bf16 %v103_v55, %v102_v54  ;;  %v632_v61 = vld [vmem:[%s7543_s0 + $0x11] sm:$0xff] }
  0x26   :  { %v298_v59 = vpack.c.bf16 %v4763_v57, %v4762_v56  ;;  %v631_v60 = vld [vmem:[%s7543_s0 + $0x1] sm:$0xff]  ;;  %v634_v18 = vld [vmem:[%s7543_s0 + $0x31] sm:$0xff] }
  0x27   :  { %684 = vmatpush.bf16.msrb.mxu0 %v5767_v1  ;;  %491 = vmatpush.bf16.msra.mxu2 %v5485_v50  ;;  %v647_v62 = vpack.c.bf16 %v632_v61, %v631_v60  ;;  %v633_v17 = vld [vmem:[%s7543_s0 + $0x21] sm:$0xff]  ;;  %v636_v35 = vld [vmem:[%s7543_s0 + $0x51] sm:$0xff] }
  0x28   :  { %588 = vmatpush.bf16.msra.mxu3 %v5481_v51  ;;  %v648_v19 = vpack.c.bf16 %v634_v18, %v633_v17  ;;  %v635_v34 = vld [vmem:[%s7543_s0 + $0x41] sm:$0xff] }
  0x29   :  { %v649_v36 = vpack.c.bf16 %v636_v35, %v635_v34  ;;  %v637_v51 = vld [vmem:[%s7543_s0 + $0x61] sm:$0xff] }
  0x2b   :  { %685 = vmatpush.bf16.msrb.mxu0 %v5771_v2  ;;  %492 = vmatpush.bf16.msra.mxu2 %v5484_v52  ;;  %v638_v52 = vld [vmem:[%s7543_s0 + $0x71] sm:$0xff] }
  0x2c   :  { %589 = vmatpush.bf16.msra.mxu3 %v5480_v53  ;;  %v650_v53 = vpack.c.bf16 %v638_v52, %v637_v51 }
  0x2f   :  { %686 = vmatpush.bf16.msrb.mxu0 %v5773_v3  ;;  %958 = vmatpush.bf16.msrb.mxu2 %v5763_v0 }
  0x32   :  { %4741 = vmatmul.msk.bf16.gmra.mxu0 %vm136_vm0, %v105_v14  ;;  %4765 = vmatmul.msk.bf16.gmra.mxu1 %vm136_vm0, %v292_v15 }
  0x33   :  { %1234 = vmatpush.bf16.msra.mxu0 %v5763_v0  ;;  %959 = vmatpush.bf16.msrb.mxu2 %v5767_v1 }
  0x37   :  { %1235 = vmatpush.bf16.msra.mxu0 %v5767_v1  ;;  %960 = vmatpush.bf16.msrb.mxu2 %v5771_v2 }
  0x3b   :  { %1236 = vmatpush.bf16.msra.mxu0 %v5771_v2  ;;  %961 = vmatpush.bf16.msrb.mxu2 %v5773_v3 }
  0x3f   :  { %1237 = vmatpush.bf16.msra.mxu0 %v5773_v3 }
  0x42   :  { %4742 = vmatmul.msk.bf16.gmra.mxu0 %vm136_vm0, %v106_v20  ;;  %4766 = vmatmul.msk.bf16.gmra.mxu1 %vm136_vm0, %v293_v21 }
  0x52   :  { %4743 = vmatmul.msk.bf16.gmra.mxu0 %vm136_vm0, %v107_v26  ;;  %4767 = vmatmul.msk.bf16.gmra.mxu1 %vm136_vm0, %v294_v27 }
  0x62   :  { %4744 = vmatmul.msk.bf16.gmra.mxu0 %vm136_vm0, %v108_v32  ;;  %4768 = vmatmul.msk.bf16.gmra.mxu1 %vm136_vm0, %v295_v33 }
  0x72   :  { %4745 = vmatmul.msk.bf16.gmra.mxu0 %vm136_vm0, %v109_v38  ;;  %4769 = vmatmul.msk.bf16.gmra.mxu1 %vm136_vm0, %v296_v39 }
  0x82   :  { %4746 = vmatmul.msk.bf16.gmra.mxu0 %vm136_vm0, %v110_v46  ;;  %4770 = vmatmul.msk.bf16.gmra.mxu1 %vm136_vm0, %v297_v47 }
  0x92   :  { %4747 = vmatmul.msk.bf16.gmra.mxu0 %vm136_vm0, %v111_v58  ;;  %4771 = vmatmul.msk.bf16.gmra.mxu1 %vm136_vm0, %v298_v59 }
  0x9f   :  { %v170_v63 = vpop.f32.mrf.mxu0  ;;  %v332_v4 = vpop.f32.mrf.mxu1 }
  0xa0   :  { %v226_v5 = vmul.f32 0.2, %v170_v63  ;;  %vm210_vm1 = vcmp.gt.f32.partialorder %v170_v63, 0.0  ;;  %v388_v6 = vmul.f32 0.2, %v332_v4  ;;  %vm372_vm2 = vcmp.gt.f32.partialorder %v332_v4, 0.0 }
  0xa2   :  { %4820 = vmatmul.msk.bf16.vlgmr.msrb.gmra.mxu0 %vm136_vm0, %v647_v62  ;;  %v242_v7 = vsel %vm210_vm1, %v170_v63, %v226_v5  ;;  %v404_v12 = vsel %vm372_vm2, %v332_v4, %v388_v6 }
  0xa3   :  { %1785 = vmatpush.bf16.msrb.mxu0 %v5763_v0 }
  0xa7   :  { %v172_v8 = vpop.f32.mrf.mxu0  ;;  %v334_v9 = vpop.f32.mrf.mxu1  ;;  %1786 = vmatpush.bf16.msrb.mxu0 %v5767_v1 }
  0xa8   :  { %vm211_vm3 = vcmp.gt.f32.partialorder %v172_v8, 0.0  ;;  %v227_v10 = vmul.f32 0.2, %v172_v8  ;;  %vm373_vm4 = vcmp.gt.f32.partialorder %v334_v9, 0.0  ;;  %v389_v11 = vmul.f32 0.2, %v334_v9 }
  0xaa   :  { %v405_v13 = vsel %vm373_vm4, %v334_v9, %v389_v11  ;;  %v243_v14 = vsel %vm211_vm3, %v172_v8, %v227_v10  ;;  %v639_v8 = vld [vmem:[%s7543_s0 + $0x91] sm:$0xff]  ;;  %v640_v9 = vld [vmem:[%s7543_s0 + $0xa1] sm:$0xff] }
  0xab   :  { %v420_v15 = vpack.c.bf16 %v405_v13, %v404_v12  ;;  %v258_v16 = vpack.c.bf16 %v243_v14, %v242_v7  ;;  %1787 = vmatpush.bf16.msrb.mxu0 %v5771_v2  ;;  %v651_v10 = vpack.c.bf16 %v640_v9, %v639_v8 }
  0xad   :  { %4788 = vmatmul.msk.bf16.vlgmr.msra.gmra.mxu2 %vm136_vm0, %v420_v15  ;;  %4812 = vmatmul.msk.bf16.vlgmr.msra.gmra.mxu3 %vm136_vm0, %v258_v16 }
  0xae   :  { %1510 = vmatpush.bf16.msra.mxu2 %v5763_v0 }
  0xaf   :  { %v175_v20 = vpop.f32.mrf.mxu0  ;;  %v337_v21 = vpop.f32.mrf.mxu1  ;;  %1788 = vmatpush.bf16.msrb.mxu0 %v5773_v3 }
  0xb0   :  { %v228_v22 = vmul.f32 0.2, %v175_v20  ;;  %vm212_vm5 = vcmp.gt.f32.partialorder %v175_v20, 0.0  ;;  %v390_v23 = vmul.f32 0.2, %v337_v21  ;;  %vm374_vm6 = vcmp.gt.f32.partialorder %v337_v21, 0.0 }
  0xb2   :  { %4821 = vmatmul.msk.bf16.gmra.mxu0 %vm136_vm0, %v648_v19  ;;  %1511 = vmatpush.bf16.msra.mxu2 %v5767_v1  ;;  %v244_v24 = vsel %vm212_vm5, %v175_v20, %v228_v22  ;;  %v406_v29 = vsel %vm374_vm6, %v337_v21, %v390_v23 }
  0xb6   :  { %1512 = vmatpush.bf16.msra.mxu2 %v5771_v2 }
  0xb7   :  { %v177_v25 = vpop.f32.mrf.mxu0  ;;  %v339_v26 = vpop.f32.mrf.mxu1 }
  0xb8   :  { %vm213_vm7 = vcmp.gt.f32.partialorder %v177_v25, 0.0  ;;  %v229_v27 = vmul.f32 0.2, %v177_v25  ;;  %vm375_vm8 = vcmp.gt.f32.partialorder %v339_v26, 0.0  ;;  %v391_v28 = vmul.f32 0.2, %v339_v26 }
  0xba   :  { %v407_v30 = vsel %vm375_vm8, %v339_v26, %v391_v28  ;;  %v245_v31 = vsel %vm213_vm7, %v177_v25, %v229_v27  ;;  %1513 = vmatpush.bf16.msra.mxu2 %v5773_v3  ;;  %v641_v25 = vld [vmem:[%s7543_s0 + $0xb1] sm:$0xff]  ;;  %v642_v26 = vld [vmem:[%s7543_s0 + $0xc1] sm:$0xff] }
  0xbb   :  { %v421_v32 = vpack.c.bf16 %v407_v30, %v406_v29  ;;  %v259_v33 = vpack.c.bf16 %v245_v31, %v244_v24  ;;  %v652_v27 = vpack.c.bf16 %v642_v26, %v641_v25  ;;  %v4852_v26 = vld [vmem:[%s7543_s0 + $0x121] sm:$0xff] }
  0xbd   :  { %4789 = vmatmul.msk.bf16.gmra.mxu2 %vm136_vm0, %v421_v32  ;;  %4813 = vmatmul.msk.bf16.gmra.mxu3 %vm136_vm0, %v259_v33 }
  0xbf   :  { %v180_v37 = vpop.f32.mrf.mxu0  ;;  %v342_v38 = vpop.f32.mrf.mxu1 }
  0xc0   :  { %v230_v39 = vmul.f32 0.2, %v180_v37  ;;  %vm214_vm9 = vcmp.gt.f32.partialorder %v180_v37, 0.0  ;;  %v392_v40 = vmul.f32 0.2, %v342_v38  ;;  %vm376_vm10 = vcmp.gt.f32.partialorder %v342_v38, 0.0 }
  0xc2   :  { %4822 = vmatmul.msk.bf16.gmra.mxu0 %vm136_vm0, %v649_v36  ;;  %v246_v41 = vsel %vm214_vm9, %v180_v37, %v230_v39  ;;  %v408_v46 = vsel %vm376_vm10, %v342_v38, %v392_v40 }
  0xc7   :  { %v182_v42 = vpop.f32.mrf.mxu0  ;;  %v344_v43 = vpop.f32.mrf.mxu1 }
  0xc8   :  { %vm215_vm11 = vcmp.gt.f32.partialorder %v182_v42, 0.0  ;;  %v231_v44 = vmul.f32 0.2, %v182_v42  ;;  %vm377_vm12 = vcmp.gt.f32.partialorder %v344_v43, 0.0  ;;  %v393_v45 = vmul.f32 0.2, %v344_v43 }
  0xca   :  { %v409_v47 = vsel %vm377_vm12, %v344_v43, %v393_v45  ;;  %v247_v48 = vsel %vm215_vm11, %v182_v42, %v231_v44  ;;  %v643_v42 = vld [vmem:[%s7543_s0 + $0xd1] sm:$0xff]  ;;  %v644_v43 = vld [vmem:[%s7543_s0 + $0xe1] sm:$0xff] }
  0xcb   :  { %v422_v49 = vpack.c.bf16 %v409_v47, %v408_v46  ;;  %v260_v50 = vpack.c.bf16 %v247_v48, %v246_v41  ;;  %v5491_v44 = vld [vmem:[#allocation4 + $0x58] sm:$0xff]  ;;  %v653_v45 = vpack.c.bf16 %v644_v43, %v643_v42  ;;  %v5490_v48 = vld [vmem:[#allocation4 + $0x50] sm:$0xff]  ;;  %v4854_v42 = vld [vmem:[%s7543_s0 + $0x141] sm:$0xff] }
  0xcc   :  { %845 = vmatpush.bf16.msrb.mxu1 %v5491_v44 }
  0xcd   :  { %4790 = vmatmul.msk.bf16.gmra.mxu2 %vm136_vm0, %v422_v49  ;;  %4814 = vmatmul.msk.bf16.gmra.mxu3 %vm136_vm0, %v260_v50  ;;  %v5489_v50 = vld [vmem:[#allocation4 + $0x48] sm:$0xff] }
  0xcf   :  { %v185_v54 = vpop.f32.mrf.mxu0  ;;  %v347_v55 = vpop.f32.mrf.mxu1 }
  0xd0   :  { %v232_v56 = vmul.f32 0.2, %v185_v54  ;;  %vm216_vm13 = vcmp.gt.f32.partialorder %v185_v54, 0.0  ;;  %v394_v57 = vmul.f32 0.2, %v347_v55  ;;  %vm378_vm14 = vcmp.gt.f32.partialorder %v347_v55, 0.0  ;;  %846 = vmatpush.bf16.msrb.mxu1 %v5490_v48 }
  0xd2   :  { %4823 = vmatmul.msk.bf16.gmra.mxu0 %vm136_vm0, %v650_v53  ;;  %v248_v58 = vsel %vm216_vm13, %v185_v54, %v232_v56  ;;  %v410_v63 = vsel %vm378_vm14, %v347_v55, %v394_v57  ;;  %v5488_v57 = vld [vmem:[#allocation4 + $0x40] sm:$0xff] }
  0xd4   :  { %847 = vmatpush.bf16.msrb.mxu1 %v5489_v50  ;;  %v4904_v50 = vld [vmem:[%s7543_s0 + $0x280] sm:$0xff] }
  0xd7   :  { %v187_v59 = vpop.f32.mrf.mxu0  ;;  %v349_v60 = vpop.f32.mrf.mxu1 }
  0xd8   :  { %vm217_vm15 = vcmp.gt.f32.partialorder %v187_v59, 0.0  ;;  %v233_v61 = vmul.f32 0.2, %v187_v59  ;;  %vm379_vm1 = vcmp.gt.f32.partialorder %v349_v60, 0.0  ;;  %v395_v62 = vmul.f32 0.2, %v349_v60  ;;  %848 = vmatpush.bf16.msrb.mxu1 %v5488_v57 }
  0xd9   :  { %v4856_v57 = vld [vmem:[%s7543_s0 + $0x161] sm:$0xff] }
  0xda   :  { %v411_v4 = vsel %vm379_vm1, %v349_v60, %v395_v62  ;;  %v249_v5 = vsel %vm217_vm15, %v187_v59, %v233_v61 }
  0xdb   :  { %v423_v6 = vpack.c.bf16 %v411_v4, %v410_v63  ;;  %v261_v7 = vpack.c.bf16 %v249_v5, %v248_v58  ;;  %v645_v63 = vld [vmem:[%s7543_s0 + $0xf1] sm:$0xff]  ;;  %v646_v4 = vld [vmem:[%s7543_s0 + $0x101] sm:$0xff] }
  0xdc   :  { %v654_v5 = vpack.c.bf16 %v646_v4, %v645_v63 }
  0xdd   :  { %4791 = vmatmul.msk.bf16.gmra.mxu2 %vm136_vm0, %v423_v6  ;;  %4815 = vmatmul.msk.bf16.gmra.mxu3 %vm136_vm0, %v261_v7 }
  0xdf   :  { %v190_v11 = vpop.f32.mrf.mxu0  ;;  %v352_v12 = vpop.f32.mrf.mxu1 }
  0xe0   :  { %v234_v13 = vmul.f32 0.2, %v190_v11  ;;  %vm218_vm2 = vcmp.gt.f32.partialorder %v190_v11, 0.0  ;;  %v396_v14 = vmul.f32 0.2, %v352_v12  ;;  %vm380_vm3 = vcmp.gt.f32.partialorder %v352_v12, 0.0 }
  0xe2   :  { %4824 = vmatmul.msk.bf16.gmra.mxu0 %vm136_vm0, %v651_v10  ;;  %v250_v15 = vsel %vm218_vm2, %v190_v11, %v234_v13  ;;  %v412_v20 = vsel %vm380_vm3, %v352_v12, %v396_v14 }
  0xe7   :  { %v192_v16 = vpop.f32.mrf.mxu0  ;;  %v354_v17 = vpop.f32.mrf.mxu1 }
  0xe8   :  { %vm219_vm4 = vcmp.gt.f32.partialorder %v192_v16, 0.0  ;;  %v235_v18 = vmul.f32 0.2, %v192_v16  ;;  %vm381_vm5 = vcmp.gt.f32.partialorder %v354_v17, 0.0  ;;  %v397_v19 = vmul.f32 0.2, %v354_v17 }
  0xea   :  { %v413_v21 = vsel %vm381_vm5, %v354_v17, %v397_v19  ;;  %v251_v22 = vsel %vm219_vm4, %v192_v16, %v235_v18 }
  0xeb   :  { %v424_v23 = vpack.c.bf16 %v413_v21, %v412_v20  ;;  %v262_v24 = vpack.c.bf16 %v251_v22, %v250_v15  ;;  %v4900_v20 = vld [vmem:[%s7543_s0 + $0x240] sm:$0xff]  ;;  %v4901_v21 = vld [vmem:[%s7543_s0 + $0x250] sm:$0xff]  ;;  %v5495_v22 = vld [vmem:[#allocation4 + $0x78] sm:$0xff] }
  0xec   :  { %1120 = vmatpush.bf16.msrb.mxu3 %v5495_v22 }
  0xed   :  { %4792 = vmatmul.msk.bf16.gmra.mxu2 %vm136_vm0, %v424_v23  ;;  %4816 = vmatmul.msk.bf16.gmra.mxu3 %vm136_vm0, %v262_v24  ;;  %v1198_v23 = vpack.c.bf16 %v4901_v21, %v4900_v20 }
  0xef   :  { %v195_v28 = vpop.f32.mrf.mxu0  ;;  %v357_v29 = vpop.f32.mrf.mxu1 }
  0xf0   :  { %v236_v30 = vmul.f32 0.2, %v195_v28  ;;  %vm220_vm6 = vcmp.gt.f32.partialorder %v195_v28, 0.0  ;;  %v398_v31 = vmul.f32 0.2, %v357_v29  ;;  %vm382_vm7 = vcmp.gt.f32.partialorder %v357_v29, 0.0 }
  0xf2   :  { %4825 = vmatmul.msk.bf16.gmra.mxu0 %vm136_vm0, %v652_v27  ;;  %v252_v32 = vsel %vm220_vm6, %v195_v28, %v236_v30  ;;  %v414_v37 = vsel %vm382_vm7, %v357_v29, %v398_v31  ;;  %v4853_v27 = vld [vmem:[%s7543_s0 + $0x131] sm:$0xff] }
  0xf3   :  { %v922_v31 = vpack.c.bf16 %v4853_v27, %v4852_v26  ;;  %v4909_v26 = vld [vmem:[%s7543_s0 + $0x2e0] sm:$0xff]  ;;  %v5493_v27 = vld [vmem:[#allocation4 + $0x68] sm:$0xff] }
  0xf7   :  { %v197_v33 = vpop.f32.mrf.mxu0  ;;  %v359_v34 = vpop.f32.mrf.mxu1 }
  0xf8   :  { %vm221_vm8 = vcmp.gt.f32.partialorder %v197_v33, 0.0  ;;  %v237_v35 = vmul.f32 0.2, %v197_v33  ;;  %vm383_vm9 = vcmp.gt.f32.partialorder %v359_v34, 0.0  ;;  %v399_v36 = vmul.f32 0.2, %v359_v34 }
  0xfa   :  { %v415_v38 = vsel %vm383_vm9, %v359_v34, %v399_v36  ;;  %v253_v39 = vsel %vm221_vm8, %v197_v33, %v237_v35  ;;  %v4902_v34 = vld [vmem:[%s7543_s0 + $0x260] sm:$0xff]  ;;  %v4903_v35 = vld [vmem:[%s7543_s0 + $0x270] sm:$0xff] }
  0xfb   :  { %v425_v40 = vpack.c.bf16 %v415_v38, %v414_v37  ;;  %v263_v41 = vpack.c.bf16 %v253_v39, %v252_v32  ;;  %v1199_v36 = vpack.c.bf16 %v4903_v35, %v4902_v34  ;;  %v4860_v34 = vld [vmem:[%s7543_s0 + $0x1b1] sm:$0xff]  ;;  %v4861_v35 = vld [vmem:[%s7543_s0 + $0x1c1] sm:$0xff] }
  0xfd   :  { %4793 = vmatmul.msk.bf16.gmra.mxu2 %vm136_vm0, %v425_v40  ;;  %4817 = vmatmul.msk.bf16.gmra.mxu3 %vm136_vm0, %v263_v41 }
  0xff   :  { %v200_v46 = vpop.f32.mrf.mxu0  ;;  %v362_v47 = vpop.f32.mrf.mxu1 }
 0x100   :  { %v238_v49 = vmul.f32 0.2, %v200_v46  ;;  %vm222_vm10 = vcmp.gt.f32.partialorder %v200_v46, 0.0  ;;  %v400_v51 = vmul.f32 0.2, %v362_v47  ;;  %vm384_vm11 = vcmp.gt.f32.partialorder %v362_v47, 0.0 }
 0x102   :  { %4826 = vmatmul.msk.bf16.gmra.mxu0 %vm136_vm0, %v653_v45  ;;  %v254_v52 = vsel %vm222_vm10, %v200_v46, %v238_v49  ;;  %v416_v58 = vsel %vm384_vm11, %v362_v47, %v400_v51  ;;  %v5494_v51 = vld [vmem:[#allocation4 + $0x70] sm:$0xff] }
 0x103   :  { %1121 = vmatpush.bf16.msrb.mxu3 %v5494_v51 }
 0x107   :  { %v202_v53 = vpop.f32.mrf.mxu0  ;;  %v364_v54 = vpop.f32.mrf.mxu1  ;;  %1122 = vmatpush.bf16.msrb.mxu3 %v5493_v27  ;;  %v4915_v27 = vld [vmem:[%s7543_s0 + $0x340] sm:$0xff] }
 0x108   :  { %vm223_vm12 = vcmp.gt.f32.partialorder %v202_v53, 0.0  ;;  %v239_v55 = vmul.f32 0.2, %v202_v53  ;;  %vm385_vm13 = vcmp.gt.f32.partialorder %v364_v54, 0.0  ;;  %v401_v56 = vmul.f32 0.2, %v364_v54 }
 0x10a   :  { %v417_v59 = vsel %vm385_vm13, %v364_v54, %v401_v56  ;;  %v255_v60 = vsel %vm223_vm12, %v202_v53, %v239_v55 }
 0x10b   :  { %v426_v61 = vpack.c.bf16 %v417_v59, %v416_v58  ;;  %v264_v62 = vpack.c.bf16 %v255_v60, %v254_v52  ;;  %v4857_v58 = vld [vmem:[%s7543_s0 + $0x171] sm:$0xff] }
 0x10c   :  { %v924_v4 = vpack.c.bf16 %v4857_v58, %v4856_v57 }
 0x10d   :  { %4794 = vmatmul.msk.bf16.gmra.mxu2 %vm136_vm0, %v426_v61  ;;  %4818 = vmatmul.msk.bf16.gmra.mxu3 %vm136_vm0, %v264_v62 }
 0x10f   :  { %v205_v6 = vpop.f32.mrf.mxu0  ;;  %v367_v7 = vpop.f32.mrf.mxu1 }
 0x110   :  { %v240_v8 = vmul.f32 0.2, %v205_v6  ;;  %vm224_vm14 = vcmp.gt.f32.partialorder %v205_v6, 0.0  ;;  %v402_v9 = vmul.f32 0.2, %v367_v7  ;;  %vm386_vm15 = vcmp.gt.f32.partialorder %v367_v7, 0.0 }
 0x112   :  { %4827 = vmatmul.msk.bf16.gmra.mxu0 %vm136_vm0, %v654_v5  ;;  %v256_v10 = vsel %vm224_vm14, %v205_v6, %v240_v8  ;;  %v418_v15 = vsel %vm386_vm15, %v367_v7, %v402_v9  ;;  %v4906_v7 = vld [vmem:[%s7543_s0 + $0x2a0] sm:$0xff]  ;;  %v4907_v8 = vld [vmem:[%s7543_s0 + $0x2b0] sm:$0xff] }
 0x113   :  { %v1201_v9 = vpack.c.bf16 %v4907_v8, %v4906_v7 }
 0x117   :  { %v207_v11 = vpop.f32.mrf.mxu0  ;;  %v369_v12 = vpop.f32.mrf.mxu1 }
 0x118   :  { %vm225_vm1 = vcmp.gt.f32.partialorder %v207_v11, 0.0  ;;  %v241_v13 = vmul.f32 0.2, %v207_v11  ;;  %vm387_vm2 = vcmp.gt.f32.partialorder %v369_v12, 0.0  ;;  %v403_v14 = vmul.f32 0.2, %v369_v12 }
 0x11a   :  { %v419_v16 = vsel %vm387_vm2, %v369_v12, %v403_v14  ;;  %v257_v17 = vsel %vm225_vm1, %v207_v11, %v241_v13 }
 0x11b   :  { %v427_v18 = vpack.c.bf16 %v419_v16, %v418_v15  ;;  %v265_v19 = vpack.c.bf16 %v257_v17, %v256_v10  ;;  %v4858_v15 = vld [vmem:[%s7543_s0 + $0x181] sm:$0xff]  ;;  %v4859_v16 = vld [vmem:[%s7543_s0 + $0x191] sm:$0xff] }
 0x11c   :  { %v925_v22 = vpack.c.bf16 %v4859_v16, %v4858_v15  ;;  %v4865_v15 = vld [vmem:[%s7543_s0 + $0x201] sm:$0xff] }
 0x11d   :  { %4795 = vmatmul.msk.bf16.gmra.mxu2 %vm136_vm0, %v427_v18  ;;  %4819 = vmatmul.msk.bf16.gmra.mxu3 %vm136_vm0, %v265_v19 }
 0x11f   :  { %v688_v24 = vpop.f32.mrf.mxu0 }
 0x120   :  { %v744_v25 = vmul.f32 0.2, %v688_v24  ;;  %vm728_vm3 = vcmp.gt.f32.partialorder %v688_v24, 0.0 }
 0x122   :  { %4916 = vmatmul.msk.bf16.vlgmr.msra.gmra.mxu0 %vm136_vm0, %v1198_v23  ;;  %v760_v29 = vsel %vm728_vm3, %v688_v24, %v744_v25  ;;  %v4908_v25 = vld [vmem:[%s7543_s0 + $0x2d0] sm:$0xff] }
 0x123   :  { %2336 = vmatpush.bf16.msra.mxu0 %v5763_v0 }
 0x127   :  { %v690_v28 = vpop.f32.mrf.mxu0  ;;  %2337 = vmatpush.bf16.msra.mxu0 %v5767_v1 }
 0x128   :  { %vm729_vm4 = vcmp.gt.f32.partialorder %v690_v28, 0.0  ;;  %v745_v30 = vmul.f32 0.2, %v690_v28 }
 0x12a   :  { %v761_v32 = vsel %vm729_vm4, %v690_v28, %v745_v30  ;;  %v1202_v28 = vpack.c.bf16 %v4909_v26, %v4908_v25  ;;  %v4914_v26 = vld [vmem:[%s7543_s0 + $0x330] sm:$0xff] }
 0x12b   :  { %v776_v33 = vpack.c.bf16 %v761_v32, %v760_v29  ;;  %2338 = vmatpush.bf16.msra.mxu0 %v5771_v2 }
 0x12d   :  { %4844 = vmatmul.msk.bf16.vlgmr.msrb.gmra.mxu1 %vm136_vm0, %v776_v33  ;;  %4868 = vmatmul.msk.bf16.vlgmr.msrb.gmra.mxu2 %vm136_vm0, %v922_v31 }
 0x12e   :  { %2060 = vmatpush.bf16.msrb.mxu2 %v5763_v0  ;;  %v4855_v0 = vld [vmem:[%s7543_s0 + $0x151] sm:$0xff] }
 0x12f   :  { %v693_v37 = vpop.f32.mrf.mxu0  ;;  %2339 = vmatpush.bf16.msra.mxu0 %v5773_v3 }
 0x130   :  { %v494_v38 = vpop.f32.mrf.mxu2  ;;  %v591_v39 = vpop.f32.mrf.mxu3  ;;  %v746_v41 = vmul.f32 0.2, %v693_v37  ;;  %vm730_vm5 = vcmp.gt.f32.partialorder %v693_v37, 0.0 }
 0x131   :  { %v6009_v40 = vadd.f32 %v591_v39, %v494_v38 }
 0x132   :  { %4917 = vmatmul.msk.bf16.gmra.mxu0 %vm136_vm0, %v1199_v36  ;;  %2061 = vmatpush.bf16.msrb.mxu2 %v5767_v1  ;;  %v762_v44 = vsel %vm730_vm5, %v693_v37, %v746_v41  ;;  %v923_v1 = vpack.c.bf16 %v4855_v0, %v4854_v42  ;;  %v926_v42 = vpack.c.bf16 %v4861_v35, %v4860_v34  ;;  %v5499_v34 = vld [vmem:[#allocation4 + $0x98] sm:$0xff] }
 0x133   :  { %1396 = vmatpush.bf16.msra.mxu1 %v5499_v34 }
 0x136   :  { %2062 = vmatpush.bf16.msrb.mxu2 %v5771_v2  ;;  %v4905_v2 = vld [vmem:[%s7543_s0 + $0x290] sm:$0xff] }
 0x137   :  { %v695_v43 = vpop.f32.mrf.mxu0  ;;  %v1200_v52 = vpack.c.bf16 %v4905_v2, %v4904_v50 }
 0x138   :  { %vm731_vm6 = vcmp.gt.f32.partialorder %v695_v43, 0.0  ;;  %v747_v45 = vmul.f32 0.2, %v695_v43  ;;  %v6020_v46 = vpop.f32.mrf.mxu2  ;;  %v6022_v47 = vpop.f32.mrf.mxu3 }
 0x13a   :  { %v763_v48 = vsel %vm731_vm6, %v695_v43, %v747_v45  ;;  %2063 = vmatpush.bf16.msrb.mxu2 %v5773_v3  ;;  %v4911_v45 = vld [vmem:[%s7543_s0 + $0x300] sm:$0xff] }
 0x13b   :  { %v777_v49 = vpack.c.bf16 %v763_v48, %v762_v44  ;;  %v4910_v44 = vld [vmem:[%s7543_s0 + $0x2f0] sm:$0xff] }
 0x13d   :  { %4845 = vmatmul.msk.bf16.gmra.mxu1 %vm136_vm0, %v777_v49  ;;  %4869 = vmatmul.msk.bf16.gmra.mxu2 %vm136_vm0, %v923_v1  ;;  %v1203_v1 = vpack.c.bf16 %v4911_v45, %v4910_v44 }
 0x13f   :  { %v698_v53 = vpop.f32.mrf.mxu0 }
 0x140   :  { %v499_v54 = vpop.f32.mrf.mxu2  ;;  %v596_v55 = vpop.f32.mrf.mxu3  ;;  %v748_v56 = vmul.f32 0.2, %v698_v53  ;;  %vm732_vm7 = vcmp.gt.f32.partialorder %v698_v53, 0.0 }
 0x141   :  { %v6033_v3 = vadd.f32 %v596_v55, %v499_v54 }
 0x142   :  { %4918 = vmatmul.msk.bf16.gmra.mxu0 %vm136_vm0, %v1200_v52  ;;  %v764_v60 = vsel %vm732_vm7, %v698_v53, %v748_v56  ;;  %v4862_v52 = vld [vmem:[%s7543_s0 + $0x1d1] sm:$0xff]  ;;  %v4863_v53 = vld [vmem:[%s7543_s0 + $0x1e1] sm:$0xff] }
 0x147   :  { %v700_v59 = vpop.f32.mrf.mxu0 }
 0x148   :  { %vm733_vm8 = vcmp.gt.f32.partialorder %v700_v59, 0.0  ;;  %v749_v61 = vmul.f32 0.2, %v700_v59  ;;  %v6042_v62 = vpop.f32.mrf.mxu2  ;;  %v6044_v63 = vpop.f32.mrf.mxu3 }
 0x14a   :  { %v765_v5 = vsel %vm733_vm8, %v700_v59, %v749_v61  ;;  %v927_v59 = vpack.c.bf16 %v4863_v53, %v4862_v52  ;;  %v5497_v52 = vld [vmem:[#allocation4 + $0x88] sm:$0xff] }
 0x14b   :  { %v778_v6 = vpack.c.bf16 %v765_v5, %v764_v60  ;;  %v4913_v5 = vld [vmem:[%s7543_s0 + $0x320] sm:$0xff] }
 0x14d   :  { %4846 = vmatmul.msk.bf16.gmra.mxu1 %vm136_vm0, %v778_v6  ;;  %4870 = vmatmul.msk.bf16.gmra.mxu2 %vm136_vm0, %v924_v4  ;;  %v4912_v4 = vld [vmem:[%s7543_s0 + $0x310] sm:$0xff]  ;;  %v5492_v6 = vld [vmem:[#allocation4 + $0x60] sm:$0xff] }
 0x14e   :  { %v1204_v7 = vpack.c.bf16 %v4913_v5, %v4912_v4  ;;  %1123 = vmatpush.bf16.msrb.mxu3 %v5492_v6  ;;  %v6162_v4 = vld [vmem:[#allocation2 + $0x18] sm:$0xff]  ;;  %v4948_v6 = vld [vmem:[%s7543_s0 + $0x360] sm:$0xff] }
 0x14f   :  { %v703_v10 = vpop.f32.mrf.mxu0 }
 0x150   :  { %v504_v11 = vpop.f32.mrf.mxu2  ;;  %v601_v12 = vpop.f32.mrf.mxu3  ;;  %v750_v14 = vmul.f32 0.2, %v703_v10  ;;  %vm734_vm9 = vcmp.gt.f32.partialorder %v703_v10, 0.0 }
 0x151   :  { %v6054_v13 = vadd.f32 %v601_v12, %v504_v11 }
 0x152   :  { %4919 = vmatmul.msk.bf16.gmra.mxu0 %vm136_vm0, %v1201_v9  ;;  %v766_v18 = vsel %vm734_vm9, %v703_v10, %v750_v14  ;;  %v4864_v14 = vld [vmem:[%s7543_s0 + $0x1f1] sm:$0xff] }
 0x157   :  { %v705_v17 = vpop.f32.mrf.mxu0 }
 0x158   :  { %vm735_vm10 = vcmp.gt.f32.partialorder %v705_v17, 0.0  ;;  %v751_v19 = vmul.f32 0.2, %v705_v17  ;;  %v6063_v20 = vpop.f32.mrf.mxu2  ;;  %v6065_v21 = vpop.f32.mrf.mxu3 }
 0x15a   :  { %v767_v23 = vsel %vm735_vm10, %v705_v17, %v751_v19 }
 0x15b   :  { %v779_v24 = vpack.c.bf16 %v767_v23, %v766_v18  ;;  %v928_v23 = vpack.c.bf16 %v4865_v15, %v4864_v14 }
 0x15d   :  { %4847 = vmatmul.msk.bf16.gmra.mxu1 %vm136_vm0, %v779_v24  ;;  %4871 = vmatmul.msk.bf16.gmra.mxu2 %vm136_vm0, %v925_v22 }
 0x15f   :  { %v708_v29 = vpop.f32.mrf.mxu0 }
 0x160   :  { %v509_v30 = vpop.f32.mrf.mxu2  ;;  %v606_v31 = vpop.f32.mrf.mxu3  ;;  %v752_v33 = vmul.f32 0.2, %v708_v29  ;;  %vm736_vm11 = vcmp.gt.f32.partialorder %v708_v29, 0.0 }
 0x161   :  { %v6075_v32 = vadd.f32 %v606_v31, %v509_v30 }
 0x162   :  { %4920 = vmatmul.msk.bf16.gmra.mxu0 %vm136_vm0, %v1202_v28  ;;  %v768_v37 = vsel %vm736_vm11, %v708_v29, %v752_v33  ;;  %v1205_v28 = vpack.c.bf16 %v4915_v27, %v4914_v26  ;;  %v6185_v26 = vld [vmem:[#allocation2 + $0x8] sm:$0xff] }
 0x167   :  { %v710_v36 = vpop.f32.mrf.mxu0 }
 0x168   :  { %vm737_vm12 = vcmp.gt.f32.partialorder %v710_v36, 0.0  ;;  %v753_v38 = vmul.f32 0.2, %v710_v36  ;;  %v6084_v39 = vpop.f32.mrf.mxu2  ;;  %v6086_v41 = vpop.f32.mrf.mxu3 }
 0x16a   :  { %v769_v0 = vsel %vm737_vm12, %v710_v36, %v753_v38  ;;  %v4866_v36 = vld [vmem:[%s7543_s0 + $0x211] sm:$0xff] }
 0x16b   :  { %v780_v43 = vpack.c.bf16 %v769_v0, %v768_v37  ;;  %v4867_v37 = vld [vmem:[%s7543_s0 + $0x221] sm:$0xff] }
 0x16c   :  { %v929_v45 = vpack.c.bf16 %v4867_v37, %v4866_v36  ;;  %v4950_v36 = vld [vmem:[%s7543_s0 + $0x380] sm:$0xff]  ;;  %v4951_v37 = vld [vmem:[%s7543_s0 + $0x390] sm:$0xff] }
 0x16d   :  { %4848 = vmatmul.msk.bf16.gmra.mxu1 %vm136_vm0, %v780_v43  ;;  %4872 = vmatmul.msk.bf16.gmra.mxu2 %vm136_vm0, %v926_v42 }
 0x16f   :  { %v713_v48 = vpop.f32.mrf.mxu0 }
 0x170   :  { %v514_v49 = vpop.f32.mrf.mxu2  ;;  %v611_v50 = vpop.f32.mrf.mxu3  ;;  %v754_v51 = vmul.f32 0.2, %v713_v48  ;;  %vm738_vm13 = vcmp.gt.f32.partialorder %v713_v48, 0.0 }
 0x171   :  { %v6096_v2 = vadd.f32 %v611_v50, %v514_v49  ;;  %v4996_v50 = vld [vmem:[%s7543_s0 + $0x241] sm:$0xff] }
 0x172   :  { %4921 = vmatmul.msk.bf16.gmra.mxu0 %vm136_vm0, %v1203_v1  ;;  %v770_v55 = vsel %vm738_vm13, %v713_v48, %v754_v51  ;;  %v5498_v1 = vld [vmem:[#allocation4 + $0x90] sm:$0xff] }
 0x173   :  { %1397 = vmatpush.bf16.msra.mxu1 %v5498_v1  ;;  %v4997_v51 = vld [vmem:[%s7543_s0 + $0x251] sm:$0xff]  ;;  %v1475_v1 = vpack.c.bf16 %v4951_v37, %v4950_v36  ;;  %v5002_v36 = vld [vmem:[%s7543_s0 + $0x2a1] sm:$0xff] }
 0x174   :  { %v1749_v53 = vpack.c.bf16 %v4997_v51, %v4996_v50  ;;  %v5003_v37 = vld [vmem:[%s7543_s0 + $0x2b1] sm:$0xff] }
 0x177   :  { %v715_v54 = vpop.f32.mrf.mxu0  ;;  %1398 = vmatpush.bf16.msra.mxu1 %v5497_v52 }
 0x178   :  { %vm739_vm14 = vcmp.gt.f32.partialorder %v715_v54, 0.0  ;;  %v755_v56 = vmul.f32 0.2, %v715_v54  ;;  %v6105_v57 = vpop.f32.mrf.mxu2  ;;  %v6107_v58 = vpop.f32.mrf.mxu3 }
 0x17a   :  { %v771_v60 = vsel %vm739_vm14, %v715_v54, %v755_v56  ;;  %v5503_v54 = vld [vmem:[#allocation4 + $0xb8] sm:$0xff] }
 0x17b   :  { %v781_v61 = vpack.c.bf16 %v771_v60, %v770_v55  ;;  %1672 = vmatpush.bf16.msra.mxu3 %v5503_v54  ;;  %v5000_v54 = vld [vmem:[%s7543_s0 + $0x281] sm:$0xff] }
 0x17d   :  { %4849 = vmatmul.msk.bf16.gmra.mxu1 %vm136_vm0, %v781_v61  ;;  %4873 = vmatmul.msk.bf16.gmra.mxu2 %vm136_vm0, %v927_v59  ;;  %v5496_v61 = vld [vmem:[#allocation4 + $0x80] sm:$0xff] }
 0x17e   :  { %1399 = vmatpush.bf16.msra.mxu1 %v5496_v61  ;;  %v5502_v61 = vld [vmem:[#allocation4 + $0xb0] sm:$0xff] }
 0x17f   :  { %v718_v8 = vpop.f32.mrf.mxu0  ;;  %1673 = vmatpush.bf16.msra.mxu3 %v5502_v61 }
 0x180   :  { %v519_v9 = vpop.f32.mrf.mxu2  ;;  %v616_v10 = vpop.f32.mrf.mxu3  ;;  %v756_v12 = vmul.f32 0.2, %v718_v8  ;;  %vm740_vm15 = vcmp.gt.f32.partialorder %v718_v8, 0.0 }
 0x181   :  { %v6117_v11 = vadd.f32 %v616_v10, %v519_v9  ;;  %v6171_v9 = vld [vmem:[#allocation2 + $0x10] sm:$0xff] }
 0x182   :  { %4922 = vmatmul.msk.bf16.gmra.mxu0 %vm136_vm0, %v1204_v7  ;;  %v772_v17 = vsel %vm740_vm15, %v718_v8, %v756_v12  ;;  %v4949_v7 = vld [vmem:[%s7543_s0 + $0x370] sm:$0xff] }
 0x183   :  { %v1474_v15 = vpack.c.bf16 %v4949_v7, %v4948_v6  ;;  %v599_v6 = vadd.f32 %v6044_v63, %v6042_v62 }
 0x187   :  { %v720_v16 = vpop.f32.mrf.mxu0 }
 0x188   :  { %vm741_vm1 = vcmp.gt.f32.partialorder %v720_v16, 0.0  ;;  %v757_v18 = vmul.f32 0.2, %v720_v16  ;;  %v6126_v19 = vpop.f32.mrf.mxu2  ;;  %v6128_v22 = vpop.f32.mrf.mxu3 }
 0x18a   :  { %v773_v24 = vsel %vm741_vm1, %v720_v16, %v757_v18 }
 0x18b   :  { %v782_v25 = vpack.c.bf16 %v773_v24, %v772_v17  ;;  %v4998_v24 = vld [vmem:[%s7543_s0 + $0x261] sm:$0xff] }
 0x18d   :  { %4850 = vmatmul.msk.bf16.gmra.mxu1 %vm136_vm0, %v782_v25  ;;  %4874 = vmatmul.msk.bf16.gmra.mxu2 %vm136_vm0, %v928_v23  ;;  %v4999_v25 = vld [vmem:[%s7543_s0 + $0x271] sm:$0xff] }
 0x18e   :  { %v1750_v27 = vpack.c.bf16 %v4999_v25, %v4998_v24 }
 0x18f   :  { %v723_v29 = vpop.f32.mrf.mxu0 }
 0x190   :  { %v524_v30 = vpop.f32.mrf.mxu2  ;;  %v621_v31 = vpop.f32.mrf.mxu3  ;;  %v758_v35 = vmul.f32 0.2, %v723_v29  ;;  %vm742_vm2 = vcmp.gt.f32.partialorder %v723_v29, 0.0 }
 0x191   :  { %v6138_v33 = vadd.f32 %v621_v31, %v524_v30  ;;  %v594_v30 = vadd.f32 %v6022_v47, %v6020_v46 }
 0x192   :  { %4923 = vmatmul.msk.bf16.gmra.mxu0 %vm136_vm0, %v1205_v28  ;;  %v774_v42 = vsel %vm742_vm2, %v723_v29, %v758_v35  ;;  %v6191_v28 = vld [vmem:[#allocation2] sm:$0xff] }
 0x197   :  { %v725_v38 = vpop.f32.mrf.mxu0 }
 0x198   :  { %vm743_vm3 = vcmp.gt.f32.partialorder %v725_v38, 0.0  ;;  %v759_v0 = vmul.f32 0.2, %v725_v38  ;;  %v6147_v43 = vpop.f32.mrf.mxu2  ;;  %v6149_v44 = vpop.f32.mrf.mxu3 }
 0x19a   :  { %v775_v48 = vsel %vm743_vm3, %v725_v38, %v759_v0 }
 0x19b   :  { %v783_v49 = vpack.c.bf16 %v775_v48, %v774_v42 }
 0x19d   :  { %4851 = vmatmul.msk.bf16.gmra.mxu1 %vm136_vm0, %v783_v49  ;;  %4875 = vmatmul.msk.bf16.gmra.mxu2 %vm136_vm0, %v929_v45 }
 0x19f   :  { %v1239_v55 = vpop.f32.mrf.mxu0 }
 0x1a0   :  { %v529_v56 = vpop.f32.mrf.mxu2  ;;  %v626_v59 = vpop.f32.mrf.mxu3  ;;  %v1295_v5 = vmul.f32 0.2, %v1239_v55  ;;  %vm1279_vm4 = vcmp.gt.f32.partialorder %v1239_v55, 0.0 }
 0x1a1   :  { %v6159_v60 = vadd.f32 %v626_v59, %v529_v56 }
 0x1a2   :  { %5012 = vmatmul.msk.bf16.vlgmr.msrb.gmra.mxu0 %vm136_vm0, %v1749_v53  ;;  %v1311_v12 = vsel %vm1279_vm4, %v1239_v55, %v1295_v5  ;;  %v5001_v55 = vld [vmem:[%s7543_s0 + $0x291] sm:$0xff] }
 0x1a3   :  { %2887 = vmatpush.bf16.msrb.mxu0 %v6162_v4  ;;  %v1751_v59 = vpack.c.bf16 %v5001_v55, %v5000_v54 }
 0x1a7   :  { %v1241_v8 = vpop.f32.mrf.mxu0  ;;  %2888 = vmatpush.bf16.msrb.mxu0 %v6171_v9 }
 0x1a8   :  { %v6174_v10 = vpop.f32.mrf.mxu2  ;;  %vm1280_vm5 = vcmp.gt.f32.partialorder %v1241_v8, 0.0  ;;  %v1296_v14 = vmul.f32 0.2, %v1241_v8 }
 0x1aa   :  { %v850_v16 = vpop.f32.mrf.mxu1  ;;  %v1312_v17 = vsel %vm1280_vm5, %v1241_v8, %v1296_v14  ;;  %v4952_v14 = vld [vmem:[%s7543_s0 + $0x3a0] sm:$0xff] }
 0x1ab   :  { %v6177_v18 = vadd.f32 %v850_v16, %v6009_v40  ;;  %v1327_v23 = vpack.c.bf16 %v1312_v17, %v1311_v12  ;;  %2889 = vmatpush.bf16.msrb.mxu0 %v6185_v26 }
 0x1ad   :  { %4964 = vmatmul.msk.bf16.vlgmr.msra.gmra.mxu2 %vm136_vm0, %v1474_v15  ;;  %4940 = vmatmul.msk.bf16.vlgmr.msra.gmra.mxu1 %vm136_vm0, %v1327_v23  ;;  %v4953_v15 = vld [vmem:[%s7543_s0 + $0x3b0] sm:$0xff] }
 0x1ae   :  { %2612 = vmatpush.bf16.msra.mxu2 %v6162_v4  ;;  %v1476_v25 = vpack.c.bf16 %v4953_v15, %v4952_v14 }
 0x1af   :  { %v1244_v40 = vpop.f32.mrf.mxu0  ;;  %2890 = vmatpush.bf16.msrb.mxu0 %v6191_v28 }
 0x1b0   :  { %v963_v29 = vpop.f32.mrf.mxu2  ;;  %v1297_v35 = vmul.f32 0.2, %v1244_v40  ;;  %vm1281_vm6 = vcmp.gt.f32.partialorder %v1244_v40, 0.0 }
 0x1b1   :  { %v1019_v46 = vmul.f32 0.2, %v963_v29  ;;  %vm1003_vm7 = vcmp.gt.f32.partialorder %v963_v29, 0.0 }
 0x1b2   :  { %v852_v31 = vpop.f32.mrf.mxu1  ;;  %5013 = vmatmul.msk.bf16.gmra.mxu0 %vm136_vm0, %v1750_v27  ;;  %2613 = vmatpush.bf16.msra.mxu2 %v6171_v9  ;;  %v1313_v42 = vsel %vm1281_vm6, %v1244_v40, %v1297_v35 }
 0x1b3   :  { %v6198_v34 = vadd.f32 %v852_v31, %v594_v30  ;;  %v1035_v50 = vsel %vm1003_vm7, %v963_v29, %v1019_v46 }
 0x1b6   :  { %2614 = vmatpush.bf16.msra.mxu2 %v6185_v26 }
 0x1b7   :  { %v1246_v47 = vpop.f32.mrf.mxu0 }
 0x1b8   :  { %v965_v38 = vpop.f32.mrf.mxu2  ;;  %vm1282_vm8 = vcmp.gt.f32.partialorder %v1246_v47, 0.0  ;;  %v1298_v0 = vmul.f32 0.2, %v1246_v47 }
 0x1b9   :  { %vm1004_vm9 = vcmp.gt.f32.partialorder %v965_v38, 0.0  ;;  %v1020_v45 = vmul.f32 0.2, %v965_v38 }
 0x1ba   :  { %v855_v48 = vpop.f32.mrf.mxu1  ;;  %v1314_v49 = vsel %vm1282_vm8, %v1246_v47, %v1298_v0  ;;  %2615 = vmatpush.bf16.msra.mxu2 %v6191_v28  ;;  %v1752_v47 = vpack.c.bf16 %v5003_v37, %v5002_v36 }
 0x1bb   :  { %v1036_v51 = vsel %vm1004_vm9, %v965_v38, %v1020_v45  ;;  %v6209_v52 = vadd.f32 %v855_v48, %v6033_v3  ;;  %v1328_v53 = vpack.c.bf16 %v1314_v49, %v1313_v42  ;;  %v604_v42 = vadd.f32 %v6065_v21, %v6063_v20  ;;  %v4954_v48 = vld [vmem:[%s7543_s0 + $0x3c0] sm:$0xff]  ;;  %v4955_v49 = vld [vmem:[%s7543_s0 + $0x3d0] sm:$0xff] }
 0x1bc   :  { %v1051_v56 = vpack.c.bf16 %v1036_v51, %v1035_v50  ;;  %v1477_v55 = vpack.c.bf16 %v4955_v49, %v4954_v48 }
 0x1bd   :  { %4965 = vmatmul.msk.bf16.gmra.mxu2 %vm136_vm0, %v1475_v1  ;;  %4941 = vmatmul.msk.bf16.gmra.mxu1 %vm136_vm0, %v1328_v53 }
 0x1be   :  { %4892 = vmatmul.msk.bf16.vlgmr.msrb.gmra.mxu3 %vm136_vm0, %v1051_v56 }
 0x1bf   :  { %v1249_v3 = vpop.f32.mrf.mxu0 }
 0x1c0   :  { %v968_v5 = vpop.f32.mrf.mxu2  ;;  %v1299_v12 = vmul.f32 0.2, %v1249_v3  ;;  %vm1283_vm10 = vcmp.gt.f32.partialorder %v1249_v3, 0.0 }
 0x1c1   :  { %v1021_v16 = vmul.f32 0.2, %v968_v5  ;;  %vm1005_vm11 = vcmp.gt.f32.partialorder %v968_v5, 0.0 }
 0x1c2   :  { %v857_v7 = vpop.f32.mrf.mxu1  ;;  %5014 = vmatmul.msk.bf16.gmra.mxu0 %vm136_vm0, %v1751_v59  ;;  %v1315_v62 = vsel %vm1283_vm10, %v1249_v3, %v1299_v12  ;;  %v5005_v12 = vld [vmem:[%s7543_s0 + $0x2e1] sm:$0xff] }
 0x1c3   :  { %v6223_v8 = vadd.f32 %v857_v7, %v599_v6  ;;  %v1037_v29 = vsel %vm1005_vm11, %v968_v5, %v1021_v16  ;;  %v5004_v7 = vld [vmem:[%s7543_s0 + $0x2d1] sm:$0xff] }
 0x1c4   :  { %v1753_v15 = vpack.c.bf16 %v5005_v12, %v5004_v7 }
 0x1c7   :  { %v1251_v17 = vpop.f32.mrf.mxu0 }
 0x1c8   :  { %v970_v23 = vpop.f32.mrf.mxu2  ;;  %vm1284_vm12 = vcmp.gt.f32.partialorder %v1251_v17, 0.0  ;;  %v1300_v63 = vmul.f32 0.2, %v1251_v17 }
 0x1c9   :  { %vm1006_vm13 = vcmp.gt.f32.partialorder %v970_v23, 0.0  ;;  %v1022_v24 = vmul.f32 0.2, %v970_v23 }
 0x1ca   :  { %v860_v27 = vpop.f32.mrf.mxu1  ;;  %v1316_v40 = vsel %vm1284_vm12, %v1251_v17, %v1300_v63 }
 0x1cb   :  { %v6232_v30 = vadd.f32 %v860_v27, %v6054_v13  ;;  %v1038_v31 = vsel %vm1006_vm13, %v970_v23, %v1022_v24  ;;  %v1329_v35 = vpack.c.bf16 %v1316_v40, %v1315_v62  ;;  %v609_v23 = vadd.f32 %v6086_v41, %v6084_v39  ;;  %v4957_v27 = vld [vmem:[%s7543_s0 + $0x400] sm:$0xff] }
 0x1cc   :  { %v1052_v46 = vpack.c.bf16 %v1038_v31, %v1037_v29 }
 0x1cd   :  { %4966 = vmatmul.msk.bf16.gmra.mxu2 %vm136_vm0, %v1476_v25  ;;  %4942 = vmatmul.msk.bf16.gmra.mxu1 %vm136_vm0, %v1329_v35  ;;  %v4956_v25 = vld [vmem:[%s7543_s0 + $0x3f0] sm:$0xff] }
 0x1ce   :  { %4893 = vmatmul.msk.bf16.gmra.mxu3 %vm136_vm0, %v1052_v46  ;;  %v1478_v36 = vpack.c.bf16 %v4957_v27, %v4956_v25  ;;  %v5500_v25 = vld [vmem:[#allocation4 + $0xa0] sm:$0xff] }
 0x1cf   :  { %v1254_v13 = vpop.f32.mrf.mxu0 }
 0x1d0   :  { %v973_v38 = vpop.f32.mrf.mxu2  ;;  %v1301_v1 = vmul.f32 0.2, %v1254_v13  ;;  %vm1285_vm14 = vcmp.gt.f32.partialorder %v1254_v13, 0.0 }
 0x1d1   :  { %v1023_v50 = vmul.f32 0.2, %v973_v38  ;;  %vm1007_vm15 = vcmp.gt.f32.partialorder %v973_v38, 0.0 }
 0x1d2   :  { %v862_v0 = vpop.f32.mrf.mxu1  ;;  %5015 = vmatmul.msk.bf16.gmra.mxu0 %vm136_vm0, %v1752_v47  ;;  %v1317_v20 = vsel %vm1285_vm14, %v1254_v13, %v1301_v1  ;;  %v5007_v1 = vld [vmem:[%s7543_s0 + $0x301] sm:$0xff] }
 0x1d3   :  { %v6246_v45 = vadd.f32 %v862_v0, %v604_v42  ;;  %v1039_v61 = vsel %vm1007_vm15, %v973_v38, %v1023_v50  ;;  %v5006_v0 = vld [vmem:[%s7543_s0 + $0x2f1] sm:$0xff] }
 0x1d4   :  { %v1754_v49 = vpack.c.bf16 %v5007_v1, %v5006_v0 }
 0x1d7   :  { %v1256_v51 = vpop.f32.mrf.mxu0 }
 0x1d8   :  { %v975_v53 = vpop.f32.mrf.mxu2  ;;  %vm1286_vm1 = vcmp.gt.f32.partialorder %v1256_v51, 0.0  ;;  %v1302_v21 = vmul.f32 0.2, %v1256_v51 }
 0x1d9   :  { %vm1008_vm2 = vcmp.gt.f32.partialorder %v975_v53, 0.0  ;;  %v1024_v54 = vmul.f32 0.2, %v975_v53 }
 0x1da   :  { %v865_v56 = vpop.f32.mrf.mxu1  ;;  %v1318_v59 = vsel %vm1286_vm1, %v1256_v51, %v1302_v21  ;;  %v614_v51 = vadd.f32 %v6107_v58, %v6105_v57 }
 0x1db   :  { %v6255_v3 = vadd.f32 %v865_v56, %v6075_v32  ;;  %v1040_v5 = vsel %vm1008_vm2, %v975_v53, %v1024_v54  ;;  %v1330_v6 = vpack.c.bf16 %v1318_v59, %v1317_v20  ;;  %v5501_v32 = vld [vmem:[#allocation4 + $0xa8] sm:$0xff]  ;;  %v4958_v54 = vld [vmem:[%s7543_s0 + $0x410] sm:$0xff] }
 0x1dc   :  { %v1053_v14 = vpack.c.bf16 %v1040_v5, %v1039_v61  ;;  %1674 = vmatpush.bf16.msra.mxu3 %v5501_v32 }
 0x1dd   :  { %4967 = vmatmul.msk.bf16.gmra.mxu2 %vm136_vm0, %v1477_v55  ;;  %4943 = vmatmul.msk.bf16.gmra.mxu1 %vm136_vm0, %v1330_v6  ;;  %v4959_v55 = vld [vmem:[%s7543_s0 + $0x420] sm:$0xff] }
 0x1de   :  { %4894 = vmatmul.msk.bf16.gmra.mxu3 %vm136_vm0, %v1053_v14  ;;  %v1479_v6 = vpack.c.bf16 %v4959_v55, %v4958_v54  ;;  %v624_v55 = vadd.f32 %v6149_v44, %v6147_v43 }
 0x1df   :  { %v1259_v16 = vpop.f32.mrf.mxu0 }
 0x1e0   :  { %v978_v17 = vpop.f32.mrf.mxu2  ;;  %v1303_v24 = vmul.f32 0.2, %v1259_v16  ;;  %vm1287_vm3 = vcmp.gt.f32.partialorder %v1259_v16, 0.0  ;;  %1675 = vmatpush.bf16.msra.mxu3 %v5500_v25 }
 0x1e1   :  { %v1025_v40 = vmul.f32 0.2, %v978_v17  ;;  %vm1009_vm4 = vcmp.gt.f32.partialorder %v978_v17, 0.0 }
 0x1e2   :  { %v867_v62 = vpop.f32.mrf.mxu1  ;;  %5016 = vmatmul.msk.bf16.gmra.mxu0 %vm136_vm0, %v1753_v15  ;;  %v1319_v39 = vsel %vm1287_vm3, %v1259_v16, %v1303_v24 }
 0x1e3   :  { %v6269_v63 = vadd.f32 %v867_v62, %v609_v23  ;;  %v1041_v47 = vsel %vm1009_vm4, %v978_v17, %v1025_v40  ;;  %v5008_v17 = vld [vmem:[%s7543_s0 + $0x311] sm:$0xff]  ;;  %v5009_v23 = vld [vmem:[%s7543_s0 + $0x321] sm:$0xff]  ;;  %v619_v40 = vadd.f32 %v6128_v22, %v6126_v19 }
 0x1e4   :  { %v1755_v24 = vpack.c.bf16 %v5009_v23, %v5008_v17 }
 0x1e7   :  { %v1261_v29 = vpop.f32.mrf.mxu0 }
 0x1e8   :  { %v980_v31 = vpop.f32.mrf.mxu2  ;;  %vm1288_vm5 = vcmp.gt.f32.partialorder %v1261_v29, 0.0  ;;  %v1304_v41 = vmul.f32 0.2, %v1261_v29 }
 0x1e9   :  { %vm1010_vm6 = vcmp.gt.f32.partialorder %v980_v31, 0.0  ;;  %v1026_v35 = vmul.f32 0.2, %v980_v31 }
 0x1ea   :  { %v870_v37 = vpop.f32.mrf.mxu1  ;;  %v1320_v46 = vsel %vm1288_vm5, %v1261_v29, %v1304_v41  ;;  %v4960_v41 = vld [vmem:[%s7543_s0 + $0x430] sm:$0xff] }
 0x1eb   :  { %v6278_v13 = vadd.f32 %v870_v37, %v6096_v2  ;;  %v1042_v38 = vsel %vm1010_vm6, %v980_v31, %v1026_v35  ;;  %v1331_v42 = vpack.c.bf16 %v1320_v46, %v1319_v39  ;;  %v4961_v35 = vld [vmem:[%s7543_s0 + $0x440] sm:$0xff] }
 0x1ec   :  { %v1054_v48 = vpack.c.bf16 %v1042_v38, %v1041_v47  ;;  %v1480_v38 = vpack.c.bf16 %v4961_v35, %v4960_v41  ;;  %v628_v41 = vpop.f32.mrf.mxu3  ;;  %v5511_v35 = vld [vmem:[#allocation4 + $0xf8] sm:$0xff] }
 0x1ed   :  { %4968 = vmatmul.msk.bf16.gmra.mxu2 %vm136_vm0, %v1478_v36  ;;  %4944 = vmatmul.msk.bf16.gmra.mxu1 %vm136_vm0, %v1331_v42 }
 0x1ee   :  { %4895 = vmatmul.msk.bf16.gmra.mxu3 %vm136_vm0, %v1054_v48 }
 0x1ef   :  { %v1264_v2 = vpop.f32.mrf.mxu0  ;;  %2222 = vmatpush.bf16.msrb.mxu3 %v5511_v35 }
 0x1f0   :  { %v983_v50 = vpop.f32.mrf.mxu2  ;;  %v1305_v21 = vmul.f32 0.2, %v1264_v2  ;;  %vm1289_vm7 = vcmp.gt.f32.partialorder %v1264_v2, 0.0 }
 0x1f1   :  { %v1027_v56 = vmul.f32 0.2, %v983_v50  ;;  %vm1011_vm8 = vcmp.gt.f32.partialorder %v983_v50, 0.0 }
 0x1f2   :  { %v872_v53 = vpop.f32.mrf.mxu1  ;;  %5017 = vmatmul.msk.bf16.gmra.mxu0 %vm136_vm0, %v1754_v49  ;;  %v1321_v57 = vsel %vm1289_vm7, %v1264_v2, %v1305_v21 }
 0x1f3   :  { %v6292_v20 = vadd.f32 %v872_v53, %v614_v51  ;;  %v1043_v14 = vsel %vm1011_vm8, %v983_v50, %v1027_v56  ;;  %v5010_v50 = vld [vmem:[%s7543_s0 + $0x331] sm:$0xff]  ;;  %v5011_v51 = vld [vmem:[%s7543_s0 + $0x341] sm:$0xff] }
 0x1f4   :  { %v1756_v21 = vpack.c.bf16 %v5011_v51, %v5010_v50 }
 0x1f7   :  { %v1266_v59 = vpop.f32.mrf.mxu0 }
 0x1f8   :  { %v985_v61 = vpop.f32.mrf.mxu2  ;;  %vm1290_vm9 = vcmp.gt.f32.partialorder %v1266_v59, 0.0  ;;  %v1306_v58 = vmul.f32 0.2, %v1266_v59 }
 0x1f9   :  { %vm1012_vm10 = vcmp.gt.f32.partialorder %v985_v61, 0.0  ;;  %v1028_v5 = vmul.f32 0.2, %v985_v61 }
 0x1fa   :  { %v875_v7 = vpop.f32.mrf.mxu1  ;;  %v1322_v12 = vsel %vm1290_vm9, %v1266_v59, %v1306_v58  ;;  %v4962_v58 = vld [vmem:[%s7543_s0 + $0x450] sm:$0xff] }
 0x1fb   :  { %v1044_v15 = vsel %vm1012_vm10, %v985_v61, %v1028_v5  ;;  %v6301_v32 = vadd.f32 %v875_v7, %v6117_v11  ;;  %v1332_v16 = vpack.c.bf16 %v1322_v12, %v1321_v57  ;;  %v5507_v61 = vld [vmem:[#allocation4 + $0xd8] sm:$0xff]  ;;  %v4963_v5 = vld [vmem:[%s7543_s0 + $0x460] sm:$0xff] }
 0x1fc   :  { %v1055_v62 = vpack.c.bf16 %v1044_v15, %v1043_v14  ;;  %1947 = vmatpush.bf16.msrb.mxu1 %v5507_v61  ;;  %v1481_v15 = vpack.c.bf16 %v4963_v5, %v4962_v58  ;;  %v5094_v61 = vld [vmem:[%s7543_s0 + $0x30] sm:$0xff] }
 0x1fd   :  { %4969 = vmatmul.msk.bf16.gmra.mxu2 %vm136_vm0, %v1479_v6  ;;  %4945 = vmatmul.msk.bf16.gmra.mxu1 %vm136_vm0, %v1332_v16  ;;  %v5506_v16 = vld [vmem:[#allocation4 + $0xd0] sm:$0xff] }
 0x1fe   :  { %4896 = vmatmul.msk.bf16.gmra.mxu3 %vm136_vm0, %v1055_v62 }
 0x1ff   :  { %v1269_v11 = vpop.f32.mrf.mxu0 }
 0x200   :  { %v988_v27 = vpop.f32.mrf.mxu2  ;;  %v1307_v39 = vmul.f32 0.2, %v1269_v11  ;;  %vm1291_vm11 = vcmp.gt.f32.partialorder %v1269_v11, 0.0  ;;  %1948 = vmatpush.bf16.msrb.mxu1 %v5506_v16 }
 0x201   :  { %v1029_v36 = vmul.f32 0.2, %v988_v27  ;;  %vm1013_vm12 = vcmp.gt.f32.partialorder %v988_v27, 0.0 }
 0x202   :  { %v877_v29 = vpop.f32.mrf.mxu1  ;;  %5018 = vmatmul.msk.bf16.gmra.mxu0 %vm136_vm0, %v1755_v24  ;;  %v1323_v19 = vsel %vm1291_vm11, %v1269_v11, %v1307_v39  ;;  %v5505_v39 = vld [vmem:[#allocation4 + $0xc8] sm:$0xff] }
 0x203   :  { %v6315_v31 = vadd.f32 %v877_v29, %v619_v40  ;;  %v1045_v1 = vsel %vm1013_vm12, %v988_v27, %v1029_v36  ;;  %v5092_v27 = vld [vmem:[%s7543_s0 + $0x10] sm:$0xff]  ;;  %v5093_v40 = vld [vmem:[%s7543_s0 + $0x20] sm:$0xff] }
 0x204   :  { %1949 = vmatpush.bf16.msrb.mxu1 %v5505_v39  ;;  %v5097_v39 = vld [vmem:[%s7543_s0 + $0x60] sm:$0xff] }
 0x207   :  { %v1271_v37 = vpop.f32.mrf.mxu0 }
 0x208   :  { %v990_v46 = vpop.f32.mrf.mxu2  ;;  %vm1292_vm13 = vcmp.gt.f32.partialorder %v1271_v37, 0.0  ;;  %v1308_v22 = vmul.f32 0.2, %v1271_v37 }
 0x209   :  { %vm1014_vm14 = vcmp.gt.f32.partialorder %v990_v46, 0.0  ;;  %v1030_v47 = vmul.f32 0.2, %v990_v46 }
 0x20a   :  { %v880_v42 = vpop.f32.mrf.mxu1  ;;  %v1324_v0 = vsel %vm1292_vm13, %v1271_v37, %v1308_v22 }
 0x20b   :  { %v1046_v48 = vsel %vm1014_vm14, %v990_v46, %v1030_v47  ;;  %v6324_v49 = vadd.f32 %v880_v42, %v6138_v33  ;;  %v1333_v2 = vpack.c.bf16 %v1324_v0, %v1323_v19  ;;  %v629_v46 = vadd.f32 %v628_v41, %v6174_v10  ;;  %v5504_v19 = vld [vmem:[#allocation4 + $0xc0] sm:$0xff]  ;;  %v5045_v0 = vld [vmem:[%s7543_s0 + $0x371] sm:$0xff] }
 0x20c   :  { %v1056_v53 = vpack.c.bf16 %v1046_v48, %v1045_v1  ;;  %1950 = vmatpush.bf16.msrb.mxu1 %v5504_v19  ;;  %v5044_v42 = vld [vmem:[%s7543_s0 + $0x361] sm:$0xff] }
 0x20d   :  { %4970 = vmatmul.msk.bf16.gmra.mxu2 %vm136_vm0, %v1480_v38  ;;  %4946 = vmatmul.msk.bf16.gmra.mxu1 %vm136_vm0, %v1333_v2 }
 0x20e   :  { %4897 = vmatmul.msk.bf16.gmra.mxu3 %vm136_vm0, %v1056_v53  ;;  %v2024_v53 = vpack.c.bf16 %v5045_v0, %v5044_v42  ;;  %v5048_v42 = vld [vmem:[%s7543_s0 + $0x3a1] sm:$0xff]  ;;  %v5049_v0 = vld [vmem:[%s7543_s0 + $0x3b1] sm:$0xff] }
 0x20f   :  { %v1274_v54 = vpop.f32.mrf.mxu0 }
 0x210   :  { %v993_v33 = vpop.f32.mrf.mxu2  ;;  %v1309_v57 = vmul.f32 0.2, %v1274_v54  ;;  %vm1293_vm15 = vcmp.gt.f32.partialorder %v1274_v54, 0.0 }
 0x211   :  { %v1031_v6 = vmul.f32 0.2, %v993_v33  ;;  %vm1015_vm1 = vcmp.gt.f32.partialorder %v993_v33, 0.0 }
 0x212   :  { %v882_v56 = vpop.f32.mrf.mxu1  ;;  %5019 = vmatmul.msk.bf16.gmra.mxu0 %vm136_vm0, %v1756_v21  ;;  %v1325_v44 = vsel %vm1293_vm15, %v1274_v54, %v1309_v57  ;;  %v5095_v57 = vld [vmem:[%s7543_s0 + $0x40] sm:$0xff] }
 0x213   :  { %v6338_v59 = vadd.f32 %v882_v56, %v624_v55  ;;  %v1047_v62 = vsel %vm1015_vm1, %v993_v33, %v1031_v6  ;;  %v2301_v5 = vpack.c.bf16 %v5095_v57, %v5094_v61  ;;  %v5098_v57 = vld [vmem:[%s7543_s0 + $0x70] sm:$0xff] }
 0x217   :  { %v1276_v7 = vpop.f32.mrf.mxu0 }
 0x218   :  { %v995_v43 = vpop.f32.mrf.mxu2  ;;  %vm1294_vm2 = vcmp.gt.f32.partialorder %v1276_v7, 0.0  ;;  %v1310_v12 = vmul.f32 0.2, %v1276_v7 }
 0x219   :  { %vm1016_vm3 = vcmp.gt.f32.partialorder %v995_v43, 0.0  ;;  %v1032_v14 = vmul.f32 0.2, %v995_v43 }
 0x21a   :  { %v885_v17 = vpop.f32.mrf.mxu1  ;;  %v1326_v23 = vsel %vm1294_vm2, %v1276_v7, %v1310_v12  ;;  %v5046_v12 = vld [vmem:[%s7543_s0 + $0x381] sm:$0xff] }
 0x21b   :  { %v1048_v24 = vsel %vm1016_vm3, %v995_v43, %v1032_v14  ;;  %v6347_v25 = vadd.f32 %v885_v17, %v6159_v60  ;;  %v1334_v11 = vpack.c.bf16 %v1326_v23, %v1325_v44  ;;  %v2300_v60 = vpack.c.bf16 %v5093_v40, %v5092_v27 }
 0x21c   :  { %v1057_v29 = vpack.c.bf16 %v1048_v24, %v1047_v62 }
 0x21d   :  { %4971 = vmatmul.msk.bf16.gmra.mxu2 %vm136_vm0, %v1481_v15  ;;  %4947 = vmatmul.msk.bf16.gmra.mxu1 %vm136_vm0, %v1334_v11 }
 0x21e   :  { %4898 = vmatmul.msk.bf16.gmra.mxu3 %vm136_vm0, %v1057_v29 }
 0x21f   :  { %v1790_v36 = vpop.f32.mrf.mxu0 }
 0x220   :  { %v998_v37 = vpop.f32.mrf.mxu2  ;;  %v1846_v38 = vmul.f32 0.2, %v1790_v36  ;;  %vm1830_vm4 = vcmp.gt.f32.partialorder %v1790_v36, 0.0 }
 0x221   :  { %v1033_v10 = vmul.f32 0.2, %v998_v37  ;;  %vm1017_vm5 = vcmp.gt.f32.partialorder %v998_v37, 0.0 }
 0x222   :  { %v887_v22 = vpop.f32.mrf.mxu1  ;;  %5108 = vmatmul.msk.bf16.vlgmr.msra.gmra.mxu0 %vm136_vm0, %v2300_v60  ;;  %v1862_v2 = vsel %vm1830_vm4, %v1790_v36, %v1846_v38 }
 0x223   :  { %v6360_v47 = vadd.f32 %v887_v22, %v629_v46  ;;  %3438 = vmatpush.bf16.msra.mxu0 %v6162_v4  ;;  %v1049_v33 = vsel %vm1017_vm5, %v998_v37, %v1033_v10 }
 0x227   :  { %v1792_v1 = vpop.f32.mrf.mxu0  ;;  %3439 = vmatpush.bf16.msra.mxu0 %v6171_v9 }
 0x228   :  { %v1000_v48 = vpop.f32.mrf.mxu2  ;;  %vm1831_vm6 = vcmp.gt.f32.partialorder %v1792_v1, 0.0  ;;  %v1847_v50 = vmul.f32 0.2, %v1792_v1 }
 0x229   :  { %vm1018_vm7 = vcmp.gt.f32.partialorder %v1000_v48, 0.0  ;;  %v1034_v51 = vmul.f32 0.2, %v1000_v48 }
 0x22a   :  { %v1863_v21 = vsel %vm1831_vm6, %v1792_v1, %v1847_v50  ;;  %v1401_v54 = vpop.f32.mrf.mxu1 }
 0x22b   :  { %v1050_v55 = vsel %vm1018_vm7, %v1000_v48, %v1034_v51  ;;  %v1878_v56 = vpack.c.bf16 %v1863_v21, %v1862_v2  ;;  %3440 = vmatpush.bf16.msra.mxu0 %v6185_v26 }
 0x22c   :  { %v1058_v58 = vpack.c.bf16 %v1050_v55, %v1049_v33 }
 0x22d   :  { %5060 = vmatmul.msk.bf16.vlgmr.msrb.gmra.mxu2 %vm136_vm0, %v2024_v53  ;;  %5036 = vmatmul.msk.bf16.vlgmr.msrb.gmra.mxu1 %vm136_vm0, %v1878_v56  ;;  %v2026_v53 = vpack.c.bf16 %v5049_v0, %v5048_v42 }
 0x22e   :  { %4899 = vmatmul.msk.bf16.gmra.mxu3 %vm136_vm0, %v1058_v58  ;;  %3162 = vmatpush.bf16.msrb.mxu2 %v6162_v4  ;;  %v5047_v4 = vld [vmem:[%s7543_s0 + $0x391] sm:$0xff]  ;;  %v5099_v58 = vld [vmem:[%s7543_s0 + $0x80] sm:$0xff] }
 0x22f   :  { %v1795_v6 = vpop.f32.mrf.mxu0  ;;  %3441 = vmatpush.bf16.msra.mxu0 %v6191_v28  ;;  %v2025_v62 = vpack.c.bf16 %v5047_v4, %v5046_v12 }
 0x230   :  { %v1515_v7 = vpop.f32.mrf.mxu2  ;;  %v1848_v44 = vmul.f32 0.2, %v1795_v6  ;;  %vm1832_vm8 = vcmp.gt.f32.partialorder %v1795_v6, 0.0 }
 0x231   :  { %v1571_v14 = vmul.f32 0.2, %v1515_v7  ;;  %vm1555_vm9 = vcmp.gt.f32.partialorder %v1515_v7, 0.0 }
 0x232   :  { %v6382_v43 = vpop.f32.mrf.mxu1  ;;  %5109 = vmatmul.msk.bf16.gmra.mxu0 %vm136_vm0, %v2301_v5  ;;  %3163 = vmatpush.bf16.msrb.mxu2 %v6171_v9  ;;  %v1864_v17 = vsel %vm1832_vm8, %v1795_v6, %v1848_v44 }
 0x233   :  { %v1587_v27 = vsel %vm1555_vm9, %v1515_v7, %v1571_v14 }
 0x236   :  { %3164 = vmatpush.bf16.msrb.mxu2 %v6185_v26  ;;  %v5096_v26 = vld [vmem:[%s7543_s0 + $0x50] sm:$0xff] }
 0x237   :  { %v1797_v15 = vpop.f32.mrf.mxu0  ;;  %v2302_v60 = vpack.c.bf16 %v5097_v39, %v5096_v26 }
 0x238   :  { %v1517_v16 = vpop.f32.mrf.mxu2  ;;  %vm1833_vm10 = vcmp.gt.f32.partialorder %v1797_v15, 0.0  ;;  %v1849_v23 = vmul.f32 0.2, %v1797_v15 }
 0x239   :  { %vm1556_vm11 = vcmp.gt.f32.partialorder %v1517_v16, 0.0  ;;  %v1572_v9 = vmul.f32 0.2, %v1517_v16 }
 0x23a   :  { %v1865_v24 = vsel %vm1833_vm10, %v1797_v15, %v1849_v23  ;;  %v1406_v11 = vpop.f32.mrf.mxu1  ;;  %3165 = vmatpush.bf16.msrb.mxu2 %v6191_v28  ;;  %v5510_v28 = vld [vmem:[#allocation4 + $0xf0] sm:$0xff] }
 0x23b   :  { %v1588_v40 = vsel %vm1556_vm11, %v1517_v16, %v1572_v9  ;;  %v1879_v29 = vpack.c.bf16 %v1865_v24, %v1864_v17  ;;  %2223 = vmatpush.bf16.msrb.mxu3 %v5510_v28  ;;  %v5050_v16 = vld [vmem:[%s7543_s0 + $0x3c1] sm:$0xff]  ;;  %v5051_v17 = vld [vmem:[%s7543_s0 + $0x3d1] sm:$0xff] }
 0x23c   :  { %v1603_v41 = vpack.c.bf16 %v1588_v40, %v1587_v27  ;;  %v2027_v40 = vpack.c.bf16 %v5051_v17, %v5050_v16 }
 0x23d   :  { %5061 = vmatmul.msk.bf16.gmra.mxu2 %vm136_vm0, %v2025_v62  ;;  %5037 = vmatmul.msk.bf16.gmra.mxu1 %vm136_vm0, %v1879_v29 }
 0x23e   :  { %4988 = vmatmul.msk.bf16.vlgmr.msra.gmra.mxu3 %vm136_vm0, %v1603_v41 }
 0x23f   :  { %v1800_v35 = vpop.f32.mrf.mxu0 }
 0x240   :  { %v1520_v36 = vpop.f32.mrf.mxu2  ;;  %v1850_v38 = vmul.f32 0.2, %v1800_v35  ;;  %vm1834_vm12 = vcmp.gt.f32.partialorder %v1800_v35, 0.0 }
 0x241   :  { %v1125_v37 = vpop.f32.mrf.mxu3  ;;  %v1573_v10 = vmul.f32 0.2, %v1520_v36  ;;  %vm1557_vm13 = vcmp.gt.f32.partialorder %v1520_v36, 0.0 }
 0x242   :  { %v1165_v46 = vadd.f32 %v1125_v37, %v6177_v18  ;;  %v6404_v19 = vpop.f32.mrf.mxu1  ;;  %5110 = vmatmul.msk.bf16.gmra.mxu0 %vm136_vm0, %v2302_v60  ;;  %v1866_v48 = vsel %vm1834_vm12, %v1800_v35, %v1850_v38  ;;  %v5100_v35 = vld [vmem:[%s7543_s0 + $0xa0] sm:$0xff]  ;;  %v5509_v38 = vld [vmem:[#allocation4 + $0xe8] sm:$0xff] }
 0x243   :  { %v1589_v55 = vsel %vm1557_vm13, %v1520_v36, %v1573_v10  ;;  %v5101_v36 = vld [vmem:[%s7543_s0 + $0xb0] sm:$0xff]  ;;  %2224 = vmatpush.bf16.msrb.mxu3 %v5509_v38 }
 0x244   :  { %v6407_v22 = vadd.f32 %v1401_v54, %v1165_v46 }
 0x247   :  { %v1802_v1 = vpop.f32.mrf.mxu0 }
 0x248   :  { %v1522_v18 = vpop.f32.mrf.mxu2  ;;  %vm1835_vm14 = vcmp.gt.f32.partialorder %v1802_v1, 0.0  ;;  %v1851_v2 = vmul.f32 0.2, %v1802_v1 }
 0x249   :  { %vm1558_vm15 = vcmp.gt.f32.partialorder %v1522_v18, 0.0  ;;  %v1574_v50 = vmul.f32 0.2, %v1522_v18  ;;  %v1127_v51 = vpop.f32.mrf.mxu3 }
 0x24a   :  { %v1166_v21 = vadd.f32 %v1127_v51, %v6198_v34  ;;  %v1867_v54 = vsel %vm1835_vm14, %v1802_v1, %v1851_v2  ;;  %v1411_v33 = vpop.f32.mrf.mxu1  ;;  %v2303_v34 = vpack.c.bf16 %v5099_v58, %v5098_v57  ;;  %v5052_v2 = vld [vmem:[%s7543_s0 + $0x3f1] sm:$0xff] }
 0x24b   :  { %v1590_v56 = vsel %vm1558_vm15, %v1522_v18, %v1574_v50  ;;  %v1880_v61 = vpack.c.bf16 %v1867_v54, %v1866_v48  ;;  %v5053_v50 = vld [vmem:[%s7543_s0 + $0x401] sm:$0xff] }
 0x24c   :  { %v1604_v5 = vpack.c.bf16 %v1590_v56, %v1589_v55  ;;  %v6423_v6 = vadd.f32 %v6382_v43, %v1166_v21  ;;  %v2028_v56 = vpack.c.bf16 %v5053_v50, %v5052_v2 }
 0x24d   :  { %5062 = vmatmul.msk.bf16.gmra.mxu2 %vm136_vm0, %v2026_v53  ;;  %5038 = vmatmul.msk.bf16.gmra.mxu1 %vm136_vm0, %v1880_v61 }
 0x24e   :  { %4989 = vmatmul.msk.bf16.gmra.mxu3 %vm136_vm0, %v1604_v5 }
 0x24f   :  { %v1805_v7 = vpop.f32.mrf.mxu0 }
 0x250   :  { %v1525_v44 = vpop.f32.mrf.mxu2  ;;  %v1852_v43 = vmul.f32 0.2, %v1805_v7  ;;  %vm1836_vm1 = vcmp.gt.f32.partialorder %v1805_v7, 0.0 }
 0x251   :  { %v1130_v12 = vpop.f32.mrf.mxu3  ;;  %v1575_v23 = vmul.f32 0.2, %v1525_v44  ;;  %vm1559_vm2 = vcmp.gt.f32.partialorder %v1525_v44, 0.0 }
 0x252   :  { %v1167_v4 = vadd.f32 %v1130_v12, %v6209_v52  ;;  %v6429_v14 = vpop.f32.mrf.mxu1  ;;  %5111 = vmatmul.msk.bf16.gmra.mxu0 %vm136_vm0, %v2303_v34  ;;  %v1868_v62 = vsel %vm1836_vm1, %v1805_v7, %v1852_v43  ;;  %v5103_v12 = vld [vmem:[%s7543_s0 + $0xd0] sm:$0xff] }
 0x253   :  { %v1591_v41 = vsel %vm1559_vm2, %v1525_v44, %v1575_v23  ;;  %v5102_v44 = vld [vmem:[%s7543_s0 + $0xc0] sm:$0xff] }
 0x254   :  { %v6432_v15 = vadd.f32 %v1406_v11, %v1167_v4 }
 0x257   :  { %v1807_v9 = vpop.f32.mrf.mxu0 }
 0x258   :  { %v1527_v52 = vpop.f32.mrf.mxu2  ;;  %vm1837_vm3 = vcmp.gt.f32.partialorder %v1807_v9, 0.0  ;;  %v1853_v24 = vmul.f32 0.2, %v1807_v9 }
 0x259   :  { %vm1560_vm4 = vcmp.gt.f32.partialorder %v1527_v52, 0.0  ;;  %v1576_v11 = vmul.f32 0.2, %v1527_v52  ;;  %v1132_v27 = vpop.f32.mrf.mxu3 }
 0x25a   :  { %v1168_v29 = vadd.f32 %v1132_v27, %v6223_v8  ;;  %v1869_v26 = vsel %vm1837_vm3, %v1807_v9, %v1853_v24  ;;  %v1416_v39 = vpop.f32.mrf.mxu1  ;;  %v2304_v8 = vpack.c.bf16 %v5101_v36, %v5100_v35  ;;  %v5054_v24 = vld [vmem:[%s7543_s0 + $0x411] sm:$0xff] }
 0x25b   :  { %v1592_v60 = vsel %vm1560_vm4, %v1527_v52, %v1576_v11  ;;  %v1881_v28 = vpack.c.bf16 %v1869_v26, %v1868_v62  ;;  %v5055_v11 = vld [vmem:[%s7543_s0 + $0x421] sm:$0xff] }
 0x25c   :  { %v1605_v37 = vpack.c.bf16 %v1592_v60, %v1591_v41  ;;  %v6448_v46 = vadd.f32 %v6404_v19, %v1168_v29  ;;  %v2029_v60 = vpack.c.bf16 %v5055_v11, %v5054_v24 }
 0x25d   :  { %5063 = vmatmul.msk.bf16.gmra.mxu2 %vm136_vm0, %v2027_v40  ;;  %5039 = vmatmul.msk.bf16.gmra.mxu1 %vm136_vm0, %v1881_v28 }
 0x25e   :  { %4990 = vmatmul.msk.bf16.gmra.mxu3 %vm136_vm0, %v1605_v37 }
 0x25f   :  { %v1810_v42 = vpop.f32.mrf.mxu0 }
 0x260   :  { %v1530_v0 = vpop.f32.mrf.mxu2  ;;  %v1854_v48 = vmul.f32 0.2, %v1810_v42  ;;  %vm1838_vm5 = vcmp.gt.f32.partialorder %v1810_v42, 0.0 }
 0x261   :  { %v1135_v10 = vpop.f32.mrf.mxu3  ;;  %v1577_v51 = vmul.f32 0.2, %v1530_v0  ;;  %vm1561_vm6 = vcmp.gt.f32.partialorder %v1530_v0, 0.0 }
 0x262   :  { %v1169_v1 = vadd.f32 %v1135_v10, %v6232_v30  ;;  %v6454_v18 = vpop.f32.mrf.mxu1  ;;  %5112 = vmatmul.msk.bf16.gmra.mxu0 %vm136_vm0, %v2304_v8  ;;  %v1870_v21 = vsel %vm1838_vm5, %v1810_v42, %v1854_v48  ;;  %v5104_v42 = vld [vmem:[%s7543_s0 + $0xe0] sm:$0xff] }
 0x263   :  { %v1593_v5 = vsel %vm1561_vm6, %v1530_v0, %v1577_v51  ;;  %v5105_v0 = vld [vmem:[%s7543_s0 + $0xf0] sm:$0xff]  ;;  %v5508_v48 = vld [vmem:[#allocation4 + $0xe0] sm:$0xff] }
 0x264   :  { %v6457_v19 = vadd.f32 %v1411_v33, %v1169_v1  ;;  %2225 = vmatpush.bf16.msrb.mxu3 %v5508_v48 }
 0x267   :  { %v1812_v53 = vpop.f32.mrf.mxu0 }
 0x268   :  { %v1532_v30 = vpop.f32.mrf.mxu2  ;;  %vm1839_vm7 = vcmp.gt.f32.partialorder %v1812_v53, 0.0  ;;  %v1855_v54 = vmul.f32 0.2, %v1812_v53 }
 0x269   :  { %vm1562_vm8 = vcmp.gt.f32.partialorder %v1532_v30, 0.0  ;;  %v1578_v33 = vmul.f32 0.2, %v1532_v30  ;;  %v1137_v55 = vpop.f32.mrf.mxu3 }
 0x26a   :  { %v1170_v61 = vadd.f32 %v1137_v55, %v6246_v45  ;;  %v1871_v57 = vsel %vm1839_vm7, %v1812_v53, %v1855_v54  ;;  %v1421_v58 = vpop.f32.mrf.mxu1  ;;  %v2305_v45 = vpack.c.bf16 %v5103_v12, %v5102_v44  ;;  %v5056_v54 = vld [vmem:[%s7543_s0 + $0x431] sm:$0xff] }
 0x26b   :  { %v1594_v34 = vsel %vm1562_vm8, %v1532_v30, %v1578_v33  ;;  %v1882_v7 = vpack.c.bf16 %v1871_v57, %v1870_v21  ;;  %v5057_v33 = vld [vmem:[%s7543_s0 + $0x441] sm:$0xff] }
 0x26c   :  { %v1606_v4 = vpack.c.bf16 %v1594_v34, %v1593_v5  ;;  %v6473_v43 = vadd.f32 %v6429_v14, %v1170_v61  ;;  %v2030_v34 = vpack.c.bf16 %v5057_v33, %v5056_v54 }
 0x26d   :  { %5064 = vmatmul.msk.bf16.gmra.mxu2 %vm136_vm0, %v2028_v56  ;;  %5040 = vmatmul.msk.bf16.gmra.mxu1 %vm136_vm0, %v1882_v7 }
 0x26e   :  { %4991 = vmatmul.msk.bf16.gmra.mxu3 %vm136_vm0, %v1606_v4 }
 0x26f   :  { %v1815_v16 = vpop.f32.mrf.mxu0 }
 0x270   :  { %v1535_v17 = vpop.f32.mrf.mxu2  ;;  %v1856_v14 = vmul.f32 0.2, %v1815_v16  ;;  %vm1840_vm9 = vcmp.gt.f32.partialorder %v1815_v16, 0.0 }
 0x271   :  { %v1140_v23 = vpop.f32.mrf.mxu3  ;;  %v1579_v27 = vmul.f32 0.2, %v1535_v17  ;;  %vm1563_vm10 = vcmp.gt.f32.partialorder %v1535_v17, 0.0 }
 0x272   :  { %v1171_v9 = vadd.f32 %v1140_v23, %v6255_v3  ;;  %v6479_v52 = vpop.f32.mrf.mxu1  ;;  %5113 = vmatmul.msk.bf16.gmra.mxu0 %vm136_vm0, %v2305_v45  ;;  %v1872_v29 = vsel %vm1840_vm9, %v1815_v16, %v1856_v14  ;;  %v5107_v23 = vld [vmem:[%s7543_s0 + $0x110] sm:$0xff] }
 0x273   :  { %v1595_v37 = vsel %vm1563_vm10, %v1535_v17, %v1579_v27  ;;  %v5106_v17 = vld [vmem:[%s7543_s0 + $0x100] sm:$0xff] }
 0x274   :  { %v6482_v62 = vadd.f32 %v1416_v39, %v1171_v9 }
 0x277   :  { %v1817_v40 = vpop.f32.mrf.mxu0 }
 0x278   :  { %v1537_v3 = vpop.f32.mrf.mxu2  ;;  %vm1841_vm11 = vcmp.gt.f32.partialorder %v1817_v40, 0.0  ;;  %v1857_v26 = vmul.f32 0.2, %v1817_v40 }
 0x279   :  { %vm1564_vm12 = vcmp.gt.f32.partialorder %v1537_v3, 0.0  ;;  %v1580_v39 = vmul.f32 0.2, %v1537_v3  ;;  %v1142_v41 = vpop.f32.mrf.mxu3 }
 0x27a   :  { %v1172_v28 = vadd.f32 %v1142_v41, %v6269_v63  ;;  %v1873_v35 = vsel %vm1841_vm11, %v1817_v40, %v1857_v26  ;;  %v1426_v36 = vpop.f32.mrf.mxu1  ;;  %v2306_v63 = vpack.c.bf16 %v5105_v0, %v5104_v42  ;;  %v5515_v26 = vld [vmem:[#allocation4 + $0x118] sm:$0xff]  ;;  %v5059_v41 = vld [vmem:[%s7543_s0 + $0x461] sm:$0xff]  ;;  %v5514_v42 = vld [vmem:[#allocation4 + $0x110] sm:$0xff] }
 0x27b   :  { %v1596_v8 = vsel %vm1564_vm12, %v1537_v3, %v1580_v39  ;;  %v1883_v38 = vpack.c.bf16 %v1873_v35, %v1872_v29  ;;  %v5058_v39 = vld [vmem:[%s7543_s0 + $0x451] sm:$0xff]  ;;  %2498 = vmatpush.bf16.msra.mxu1 %v5515_v26 }
 0x27c   :  { %v1607_v10 = vpack.c.bf16 %v1596_v8, %v1595_v37  ;;  %v6498_v1 = vadd.f32 %v6454_v18, %v1172_v28 }
 0x27d   :  { %5065 = vmatmul.msk.bf16.gmra.mxu2 %vm136_vm0, %v2029_v60  ;;  %5041 = vmatmul.msk.bf16.gmra.mxu1 %vm136_vm0, %v1883_v38  ;;  %v2031_v38 = vpack.c.bf16 %v5059_v41, %v5058_v39  ;;  %v5190_v41 = vld [vmem:[%s7543_s0 + $0x31] sm:$0xff] }
 0x27e   :  { %4992 = vmatmul.msk.bf16.gmra.mxu3 %vm136_vm0, %v1607_v10 }
 0x27f   :  { %v1820_v2 = vpop.f32.mrf.mxu0  ;;  %2499 = vmatpush.bf16.msra.mxu1 %v5514_v42 }
 0x280   :  { %v1540_v50 = vpop.f32.mrf.mxu2  ;;  %v1858_v21 = vmul.f32 0.2, %v1820_v2  ;;  %vm1842_vm13 = vcmp.gt.f32.partialorder %v1820_v2, 0.0 }
 0x281   :  { %v1145_v51 = vpop.f32.mrf.mxu3  ;;  %v1581_v55 = vmul.f32 0.2, %v1540_v50  ;;  %vm1565_vm14 = vcmp.gt.f32.partialorder %v1540_v50, 0.0 }
 0x282   :  { %v1173_v53 = vadd.f32 %v1145_v51, %v6278_v13  ;;  %v6504_v30 = vpop.f32.mrf.mxu1  ;;  %5114 = vmatmul.msk.bf16.gmra.mxu0 %vm136_vm0, %v2306_v63  ;;  %v1874_v61 = vsel %vm1842_vm13, %v1820_v2, %v1858_v21  ;;  %v5188_v51 = vld [vmem:[%s7543_s0 + $0x11] sm:$0xff] }
 0x283   :  { %v1597_v4 = vsel %vm1565_vm14, %v1540_v50, %v1581_v55  ;;  %v5519_v55 = vld [vmem:[#allocation4 + $0x138] sm:$0xff] }
 0x284   :  { %v6507_v18 = vadd.f32 %v1421_v58, %v1173_v53  ;;  %v5189_v53 = vld [vmem:[%s7543_s0 + $0x21] sm:$0xff]  ;;  %2774 = vmatpush.bf16.msra.mxu3 %v5519_v55 }
 0x285   :  { %v2851_v33 = vpack.c.bf16 %v5189_v53, %v5188_v51 }
 0x287   :  { %v1822_v56 = vpop.f32.mrf.mxu0 }
 0x288   :  { %v1542_v13 = vpop.f32.mrf.mxu2  ;;  %vm1843_vm15 = vcmp.gt.f32.partialorder %v1822_v56, 0.0  ;;  %v1859_v57 = vmul.f32 0.2, %v1822_v56 }
 0x289   :  { %vm1566_vm1 = vcmp.gt.f32.partialorder %v1542_v13, 0.0  ;;  %v1582_v58 = vmul.f32 0.2, %v1542_v13  ;;  %v1147_v5 = vpop.f32.mrf.mxu3 }
 0x28a   :  { %v1174_v7 = vadd.f32 %v1147_v5, %v6292_v20  ;;  %v1875_v44 = vsel %vm1843_vm15, %v1822_v56, %v1859_v57  ;;  %v6516_v12 = vpop.f32.mrf.mxu1  ;;  %v2307_v20 = vpack.c.bf16 %v5107_v23, %v5106_v17  ;;  %v5512_v57 = vld [vmem:[#allocation4 + $0x100] sm:$0xff] }
 0x28b   :  { %v1598_v45 = vsel %vm1566_vm1, %v1542_v13, %v1582_v58  ;;  %v1884_v16 = vpack.c.bf16 %v1875_v44, %v1874_v61  ;;  %v5140_v44 = vld [vmem:[%s7543_s0 + $0x130] sm:$0xff] }
 0x28c   :  { %v1608_v9 = vpack.c.bf16 %v1598_v45, %v1597_v4  ;;  %v6525_v14 = vadd.f32 %v6479_v52, %v1174_v7 }
 0x28d   :  { %5066 = vmatmul.msk.bf16.gmra.mxu2 %vm136_vm0, %v2030_v34  ;;  %5042 = vmatmul.msk.bf16.gmra.mxu1 %vm136_vm0, %v1884_v16  ;;  %v6573_v16 = vld [vmem:[#allocation2 + $0x10] sm:$0xff] }
 0x28e   :  { %4993 = vmatmul.msk.bf16.gmra.mxu3 %vm136_vm0, %v1608_v9 }
 0x28f   :  { %v1825_v24 = vpop.f32.mrf.mxu0 }
 0x290   :  { %v1545_v11 = vpop.f32.mrf.mxu2  ;;  %v1860_v52 = vmul.f32 0.2, %v1825_v24  ;;  %vm1844_vm2 = vcmp.gt.f32.partialorder %v1825_v24, 0.0 }
 0x291   :  { %v1150_v27 = vpop.f32.mrf.mxu3  ;;  %v1583_v60 = vmul.f32 0.2, %v1545_v11  ;;  %vm1567_vm3 = vcmp.gt.f32.partialorder %v1545_v11, 0.0 }
 0x292   :  { %v1175_v40 = vadd.f32 %v1150_v27, %v6301_v32  ;;  %v6531_v3 = vpop.f32.mrf.mxu1  ;;  %5115 = vmatmul.msk.bf16.gmra.mxu0 %vm136_vm0, %v2307_v20  ;;  %v1876_v35 = vsel %vm1844_vm2, %v1825_v24, %v1860_v52 }
 0x293   :  { %v1599_v48 = vsel %vm1567_vm3, %v1545_v11, %v1583_v60  ;;  %v5191_v60 = vld [vmem:[%s7543_s0 + $0x41] sm:$0xff] }
 0x294   :  { %v6534_v29 = vadd.f32 %v1426_v36, %v1175_v40 }
 0x297   :  { %v1827_v32 = vpop.f32.mrf.mxu0 }
 0x298   :  { %v1547_v28 = vpop.f32.mrf.mxu2  ;;  %vm1845_vm4 = vcmp.gt.f32.partialorder %v1827_v32, 0.0  ;;  %v1861_v36 = vmul.f32 0.2, %v1827_v32 }
 0x299   :  { %vm1568_vm5 = vcmp.gt.f32.partialorder %v1547_v28, 0.0  ;;  %v1584_v37 = vmul.f32 0.2, %v1547_v28  ;;  %v1152_v8 = vpop.f32.mrf.mxu3 }
 0x29a   :  { %v1176_v0 = vadd.f32 %v1152_v8, %v6315_v31  ;;  %v1877_v10 = vsel %vm1845_vm4, %v1827_v32, %v1861_v36  ;;  %v6543_v63 = vpop.f32.mrf.mxu1  ;;  %v5513_v31 = vld [vmem:[#allocation4 + $0x108] sm:$0xff] }
 0x29b   :  { %v1600_v2 = vsel %vm1568_vm5, %v1547_v28, %v1584_v37  ;;  %v1885_v50 = vpack.c.bf16 %v1877_v10, %v1876_v35  ;;  %2500 = vmatpush.bf16.msra.mxu1 %v5513_v31  ;;  %v6585_v32 = vld [vmem:[#allocation2 + $0x8] sm:$0xff]  ;;  %v2852_v35 = vpack.c.bf16 %v5191_v60, %v5190_v41  ;;  %v6595_v37 = vld [vmem:[#allocation2] sm:$0xff] }
 0x29c   :  { %v1609_v21 = vpack.c.bf16 %v1600_v2, %v1599_v48  ;;  %v6552_v54 = vadd.f32 %v6504_v30, %v1176_v0  ;;  %v6561_v30 = vld [vmem:[#allocation2 + $0x18] sm:$0xff]  ;;  %v5142_v48 = vld [vmem:[%s7543_s0 + $0x150] sm:$0xff]  ;;  %v5143_v2 = vld [vmem:[%s7543_s0 + $0x160] sm:$0xff] }
 0x29d   :  { %5067 = vmatmul.msk.bf16.gmra.mxu2 %vm136_vm0, %v2031_v38  ;;  %5043 = vmatmul.msk.bf16.gmra.mxu1 %vm136_vm0, %v1885_v50 }
 0x29e   :  { %4994 = vmatmul.msk.bf16.gmra.mxu3 %vm136_vm0, %v1609_v21 }
 0x29f   :  { %v2341_v56 = vpop.f32.mrf.mxu0  ;;  %2501 = vmatpush.bf16.msra.mxu1 %v5512_v57 }
 0x2a0   :  { %v1550_v13 = vpop.f32.mrf.mxu2  ;;  %v2397_v7 = vmul.f32 0.2, %v2341_v56  ;;  %vm2381_vm6 = vcmp.gt.f32.partialorder %v2341_v56, 0.0 }
 0x2a1   :  { %v1155_v61 = vpop.f32.mrf.mxu3  ;;  %v1585_v4 = vmul.f32 0.2, %v1550_v13  ;;  %vm1569_vm7 = vcmp.gt.f32.partialorder %v1550_v13, 0.0 }
 0x2a2   :  { %v1177_v58 = vadd.f32 %v1155_v61, %v6324_v49  ;;  %v6558_v5 = vpop.f32.mrf.mxu1  ;;  %5204 = vmatmul.msk.bf16.vlgmr.msrb.gmra.mxu0 %vm136_vm0, %v2851_v33  ;;  %v5141_v49 = vld [vmem:[%s7543_s0 + $0x140] sm:$0xff]  ;;  %v2577_v33 = vpack.c.bf16 %v5143_v2, %v5142_v48  ;;  %v5194_v48 = vld [vmem:[%s7543_s0 + $0x71] sm:$0xff] }
 0x2a3   :  { %3989 = vmatpush.bf16.msrb.mxu0 %v6561_v30  ;;  %v2576_v24 = vpack.c.bf16 %v5141_v49, %v5140_v44  ;;  %v1601_v52 = vsel %vm1569_vm7, %v1550_v13, %v1585_v4  ;;  %v5193_v44 = vld [vmem:[%s7543_s0 + $0x61] sm:$0xff] }
 0x2a4   :  { %v6565_v34 = vadd.f32 %v6516_v12, %v1177_v58  ;;  %v2413_v12 = vsel %vm2381_vm6, %v2341_v56, %v2397_v7  ;;  %v5192_v7 = vld [vmem:[%s7543_s0 + $0x51] sm:$0xff]  ;;  %v5195_v2 = vld [vmem:[%s7543_s0 + $0x81] sm:$0xff] }
 0x2a7   :  { %v2343_v45 = vpop.f32.mrf.mxu0  ;;  %3990 = vmatpush.bf16.msrb.mxu0 %v6573_v16 }
 0x2a8   :  { %v1552_v17 = vpop.f32.mrf.mxu2  ;;  %vm2382_vm8 = vcmp.gt.f32.partialorder %v2343_v45, 0.0  ;;  %v2398_v23 = vmul.f32 0.2, %v2343_v45 }
 0x2a9   :  { %vm1570_vm9 = vcmp.gt.f32.partialorder %v1552_v17, 0.0  ;;  %v1586_v9 = vmul.f32 0.2, %v1552_v17  ;;  %v1157_v20 = vpop.f32.mrf.mxu3 }
 0x2aa   :  { %v1178_v11 = vadd.f32 %v1157_v20, %v6338_v59  ;;  %v2414_v27 = vsel %vm2382_vm8, %v2343_v45, %v2398_v23  ;;  %v6577_v40 = vpop.f32.mrf.mxu1  ;;  %v5518_v45 = vld [vmem:[#allocation4 + $0x130] sm:$0xff] }
 0x2ab   :  { %v1602_v26 = vsel %vm1570_vm9, %v1552_v17, %v1586_v9  ;;  %v2429_v39 = vpack.c.bf16 %v2414_v27, %v2413_v12  ;;  %3991 = vmatpush.bf16.msrb.mxu0 %v6585_v32  ;;  %2775 = vmatpush.bf16.msra.mxu3 %v5518_v45  ;;  %v5145_v27 = vld [vmem:[%s7543_s0 + $0x180] sm:$0xff] }
 0x2ac   :  { %v1610_v28 = vpack.c.bf16 %v1602_v26, %v1601_v52  ;;  %v6589_v59 = vadd.f32 %v6531_v3, %v1178_v11  ;;  %v5144_v11 = vld [vmem:[%s7543_s0 + $0x170] sm:$0xff] }
 0x2ad   :  { %5156 = vmatmul.msk.bf16.vlgmr.msra.gmra.mxu2 %vm136_vm0, %v2576_v24  ;;  %5132 = vmatmul.msk.bf16.vlgmr.msra.gmra.mxu1 %vm136_vm0, %v2429_v39 }
 0x2ae   :  { %4995 = vmatmul.msk.bf16.gmra.mxu3 %vm136_vm0, %v1610_v28  ;;  %3714 = vmatpush.bf16.msra.mxu2 %v6561_v30  ;;  %v2578_v28 = vpack.c.bf16 %v5145_v27, %v5144_v11  ;;  %v5197_v11 = vld [vmem:[%s7543_s0 + $0xb1] sm:$0xff] }
 0x2af   :  { %v2346_v36 = vpop.f32.mrf.mxu0  ;;  %3992 = vmatpush.bf16.msrb.mxu0 %v6595_v37 }
 0x2b0   :  { %v2065_v8 = vpop.f32.mrf.mxu2  ;;  %v2399_v10 = vmul.f32 0.2, %v2346_v36  ;;  %vm2383_vm10 = vcmp.gt.f32.partialorder %v2346_v36, 0.0 }
 0x2b1   :  { %v1160_v38 = vpop.f32.mrf.mxu3  ;;  %vm2105_vm11 = vcmp.gt.f32.partialorder %v2065_v8, 0.0 }
 0x2b2   :  { %v1179_v42 = vadd.f32 %v1160_v38, %v6347_v25  ;;  %v6599_v3 = vpop.f32.mrf.mxu1  ;;  %5205 = vmatmul.msk.bf16.gmra.mxu0 %vm136_vm0, %v2852_v35  ;;  %3715 = vmatpush.bf16.msra.mxu2 %v6573_v16  ;;  %v2121_v25 = vmul.f32 0.2, %v2065_v8  ;;  %v2415_v53 = vsel %vm2383_vm10, %v2346_v36, %v2399_v10 }
 0x2b4   :  { %v6604_v0 = vadd.f32 %v6543_v63, %v1179_v42  ;;  %v2137_v61 = vsel %vm2105_vm11, %v2065_v8, %v2121_v25 }
 0x2b6   :  { %3716 = vmatpush.bf16.msra.mxu2 %v6585_v32 }
 0x2b7   :  { %v2348_v50 = vpop.f32.mrf.mxu0 }
 0x2b8   :  { %v2067_v51 = vpop.f32.mrf.mxu2  ;;  %vm2384_vm12 = vcmp.gt.f32.partialorder %v2348_v50, 0.0  ;;  %v2400_v63 = vmul.f32 0.2, %v2348_v50 }
 0x2b9   :  { %vm2106_vm13 = vcmp.gt.f32.partialorder %v2067_v51, 0.0  ;;  %v2122_v21 = vmul.f32 0.2, %v2067_v51  ;;  %v1162_v31 = vpop.f32.mrf.mxu3 }
 0x2ba   :  { %v1180_v55 = vadd.f32 %v1162_v31, %v6360_v47  ;;  %v2416_v56 = vsel %vm2384_vm12, %v2348_v50, %v2400_v63  ;;  %v1957_v13 = vpop.f32.mrf.mxu1  ;;  %3717 = vmatpush.bf16.msra.mxu2 %v6595_v37  ;;  %v2853_v47 = vpack.c.bf16 %v5193_v44, %v5192_v7 }
 0x2bb   :  { %v2138_v57 = vsel %vm2106_vm13, %v2067_v51, %v2122_v21  ;;  %v2430_v58 = vpack.c.bf16 %v2416_v56, %v2415_v53  ;;  %v5147_v56 = vld [vmem:[%s7543_s0 + $0x1a0] sm:$0xff] }
 0x2bc   :  { %v2153_v49 = vpack.c.bf16 %v2138_v57, %v2137_v61  ;;  %v6622_v4 = vadd.f32 %v6558_v5, %v1180_v55  ;;  %v5146_v55 = vld [vmem:[%s7543_s0 + $0x190] sm:$0xff] }
 0x2bd   :  { %5157 = vmatmul.msk.bf16.gmra.mxu2 %vm136_vm0, %v2577_v33  ;;  %5133 = vmatmul.msk.bf16.gmra.mxu1 %vm136_vm0, %v2430_v58 }
 0x2be   :  { %5084 = vmatmul.msk.bf16.vlgmr.msrb.gmra.mxu3 %vm136_vm0, %v2153_v49  ;;  %v2579_v49 = vpack.c.bf16 %v5147_v56, %v5146_v55  ;;  %v5198_v55 = vld [vmem:[%s7543_s0 + $0xc1] sm:$0xff]  ;;  %v5199_v56 = vld [vmem:[%s7543_s0 + $0xd1] sm:$0xff] }
 0x2bf   :  { %v2351_v17 = vpop.f32.mrf.mxu0 }
 0x2c0   :  { %v2070_v12 = vpop.f32.mrf.mxu2  ;;  %v2401_v24 = vmul.f32 0.2, %v2351_v17  ;;  %vm2385_vm14 = vcmp.gt.f32.partialorder %v2351_v17, 0.0 }
 0x2c1   :  { %v1677_v23 = vpop.f32.mrf.mxu3  ;;  %v2123_v52 = vmul.f32 0.2, %v2070_v12  ;;  %vm2107_vm15 = vcmp.gt.f32.partialorder %v2070_v12, 0.0 }
 0x2c2   :  { %v1717_v9 = vadd.f32 %v1677_v23, %v6407_v22  ;;  %v6628_v20 = vpop.f32.mrf.mxu1  ;;  %5206 = vmatmul.msk.bf16.gmra.mxu0 %vm136_vm0, %v2853_v47  ;;  %v2417_v39 = vsel %vm2385_vm14, %v2351_v17, %v2401_v24  ;;  %v5196_v24 = vld [vmem:[%s7543_s0 + $0xa1] sm:$0xff] }
 0x2c3   :  { %v2139_v38 = vsel %vm2107_vm15, %v2070_v12, %v2123_v52 }
 0x2c4   :  { %v6632_v5 = vadd.f32 %v6577_v40, %v1717_v9 }
 0x2c7   :  { %v2353_v26 = vpop.f32.mrf.mxu0 }
 0x2c8   :  { %v2072_v22 = vpop.f32.mrf.mxu2  ;;  %vm2386_vm1 = vcmp.gt.f32.partialorder %v2353_v26, 0.0  ;;  %v2402_v41 = vmul.f32 0.2, %v2353_v26 }
 0x2c9   :  { %vm2108_vm2 = vcmp.gt.f32.partialorder %v2072_v22, 0.0  ;;  %v2124_v40 = vmul.f32 0.2, %v2072_v22  ;;  %v1679_v60 = vpop.f32.mrf.mxu3 }
 0x2ca   :  { %v1718_v35 = vadd.f32 %v1679_v60, %v6423_v6  ;;  %v2418_v36 = vsel %vm2386_vm1, %v2353_v26, %v2402_v41  ;;  %v1962_v8 = vpop.f32.mrf.mxu1  ;;  %v2854_v6 = vpack.c.bf16 %v5195_v2, %v5194_v48  ;;  %v5517_v26 = vld [vmem:[#allocation4 + $0x128] sm:$0xff] }
 0x2cb   :  { %v2140_v42 = vsel %vm2108_vm2, %v2072_v22, %v2124_v40  ;;  %v2431_v10 = vpack.c.bf16 %v2418_v36, %v2417_v39  ;;  %2776 = vmatpush.bf16.msra.mxu3 %v5517_v26  ;;  %v5149_v36 = vld [vmem:[%s7543_s0 + $0x1d0] sm:$0xff] }
 0x2cc   :  { %v2154_v25 = vpack.c.bf16 %v2140_v42, %v2139_v38  ;;  %v6648_v50 = vadd.f32 %v6599_v3, %v1718_v35  ;;  %v5148_v35 = vld [vmem:[%s7543_s0 + $0x1c0] sm:$0xff] }
 0x2cd   :  { %5158 = vmatmul.msk.bf16.gmra.mxu2 %vm136_vm0, %v2578_v28  ;;  %5134 = vmatmul.msk.bf16.gmra.mxu1 %vm136_vm0, %v2431_v10 }
 0x2ce   :  { %5085 = vmatmul.msk.bf16.gmra.mxu3 %vm136_vm0, %v2154_v25  ;;  %v2580_v25 = vpack.c.bf16 %v5149_v36, %v5148_v35  ;;  %v5201_v35 = vld [vmem:[%s7543_s0 + $0xf1] sm:$0xff] }
 0x2cf   :  { %v2356_v51 = vpop.f32.mrf.mxu0 }
 0x2d0   :  { %v2075_v53 = vpop.f32.mrf.mxu2  ;;  %v2403_v3 = vmul.f32 0.2, %v2356_v51  ;;  %vm2387_vm3 = vcmp.gt.f32.partialorder %v2356_v51, 0.0 }
 0x2d1   :  { %v1682_v63 = vpop.f32.mrf.mxu3  ;;  %v2125_v61 = vmul.f32 0.2, %v2075_v53  ;;  %vm2109_vm4 = vcmp.gt.f32.partialorder %v2075_v53, 0.0 }
 0x2d2   :  { %v1719_v21 = vadd.f32 %v1682_v63, %v6432_v15  ;;  %v6654_v31 = vpop.f32.mrf.mxu1  ;;  %5207 = vmatmul.msk.bf16.gmra.mxu0 %vm136_vm0, %v2854_v6  ;;  %v2419_v58 = vsel %vm2387_vm3, %v2356_v51, %v2403_v3 }
 0x2d3   :  { %v2141_v12 = vsel %vm2109_vm4, %v2075_v53, %v2125_v61 }
 0x2d4   :  { %v6657_v33 = vadd.f32 %v1957_v13, %v1719_v21 }
 0x2d7   :  { %v2358_v57 = vpop.f32.mrf.mxu0 }
 0x2d8   :  { %v2077_v15 = vpop.f32.mrf.mxu2  ;;  %vm2388_vm5 = vcmp.gt.f32.partialorder %v2358_v57, 0.0  ;;  %v2404_v7 = vmul.f32 0.2, %v2358_v57 }
 0x2d9   :  { %vm2110_vm6 = vcmp.gt.f32.partialorder %v2077_v15, 0.0  ;;  %v2126_v13 = vmul.f32 0.2, %v2077_v15  ;;  %v1684_v44 = vpop.f32.mrf.mxu3 }
 0x2da   :  { %v1720_v47 = vadd.f32 %v1684_v44, %v6448_v46  ;;  %v2420_v45 = vsel %vm2388_vm5, %v2358_v57, %v2404_v7  ;;  %v1967_v17 = vpop.f32.mrf.mxu1  ;;  %v2855_v46 = vpack.c.bf16 %v5197_v11, %v5196_v24 }
 0x2db   :  { %v2142_v23 = vsel %vm2110_vm6, %v2077_v15, %v2126_v13  ;;  %v2432_v9 = vpack.c.bf16 %v2420_v45, %v2419_v58  ;;  %v5151_v45 = vld [vmem:[%s7543_s0 + $0x1f0] sm:$0xff] }
 0x2dc   :  { %v2155_v27 = vpack.c.bf16 %v2142_v23, %v2141_v12  ;;  %v6673_v52 = vadd.f32 %v6628_v20, %v1720_v47  ;;  %v5150_v47 = vld [vmem:[%s7543_s0 + $0x1e0] sm:$0xff] }
 0x2dd   :  { %5159 = vmatmul.msk.bf16.gmra.mxu2 %vm136_vm0, %v2579_v49  ;;  %5135 = vmatmul.msk.bf16.gmra.mxu1 %vm136_vm0, %v2432_v9 }
 0x2de   :  { %5086 = vmatmul.msk.bf16.gmra.mxu3 %vm136_vm0, %v2155_v27  ;;  %v2581_v27 = vpack.c.bf16 %v5151_v45, %v5150_v47  ;;  %v5202_v47 = vld [vmem:[%s7543_s0 + $0x101] sm:$0xff]  ;;  %v5203_v45 = vld [vmem:[%s7543_s0 + $0x111] sm:$0xff] }
 0x2df   :  { %v2361_v22 = vpop.f32.mrf.mxu0 }
 0x2e0   :  { %v2080_v39 = vpop.f32.mrf.mxu2  ;;  %v2405_v28 = vmul.f32 0.2, %v2361_v22  ;;  %vm2389_vm7 = vcmp.gt.f32.partialorder %v2361_v22, 0.0 }
 0x2e1   :  { %v1687_v41 = vpop.f32.mrf.mxu3  ;;  %v2127_v38 = vmul.f32 0.2, %v2080_v39  ;;  %vm2111_vm8 = vcmp.gt.f32.partialorder %v2080_v39, 0.0 }
 0x2e2   :  { %v1721_v40 = vadd.f32 %v1687_v41, %v6457_v19  ;;  %v6679_v60 = vpop.f32.mrf.mxu1  ;;  %5208 = vmatmul.msk.bf16.gmra.mxu0 %vm136_vm0, %v2855_v46  ;;  %v2421_v10 = vsel %vm2389_vm7, %v2361_v22, %v2405_v28  ;;  %v5200_v28 = vld [vmem:[%s7543_s0 + $0xe1] sm:$0xff] }
 0x2e3   :  { %v2143_v63 = vsel %vm2111_vm8, %v2080_v39, %v2127_v38 }
 0x2e4   :  { %v6682_v20 = vadd.f32 %v1962_v8, %v1721_v40 }
 0x2e7   :  { %v2363_v42 = vpop.f32.mrf.mxu0 }
 0x2e8   :  { %v2082_v19 = vpop.f32.mrf.mxu2  ;;  %vm2390_vm9 = vcmp.gt.f32.partialorder %v2363_v42, 0.0  ;;  %v2406_v48 = vmul.f32 0.2, %v2363_v42 }
 0x2e9   :  { %vm2112_vm10 = vcmp.gt.f32.partialorder %v2082_v19, 0.0  ;;  %v2128_v8 = vmul.f32 0.2, %v2082_v19  ;;  %v1689_v2 = vpop.f32.mrf.mxu3 }
 0x2ea   :  { %v1722_v6 = vadd.f32 %v1689_v2, %v6473_v43  ;;  %v2422_v51 = vsel %vm2390_vm9, %v2363_v42, %v2406_v48  ;;  %v1972_v53 = vpop.f32.mrf.mxu1  ;;  %v2856_v43 = vpack.c.bf16 %v5199_v56, %v5198_v55  ;;  %v5516_v42 = vld [vmem:[#allocation4 + $0x120] sm:$0xff] }
 0x2eb   :  { %v2144_v21 = vsel %vm2112_vm10, %v2082_v19, %v2128_v8  ;;  %v2433_v3 = vpack.c.bf16 %v2422_v51, %v2421_v10  ;;  %2777 = vmatpush.bf16.msra.mxu3 %v5516_v42  ;;  %v5153_v51 = vld [vmem:[%s7543_s0 + $0x210] sm:$0xff] }
 0x2ec   :  { %v2156_v61 = vpack.c.bf16 %v2144_v21, %v2143_v63  ;;  %v6698_v57 = vadd.f32 %v6654_v31, %v1722_v6  ;;  %v5152_v6 = vld [vmem:[%s7543_s0 + $0x200] sm:$0xff]  ;;  %v5522_v42 = vld [vmem:[#allocation4 + $0x150] sm:$0xff] }
 0x2ed   :  { %5160 = vmatmul.msk.bf16.gmra.mxu2 %vm136_vm0, %v2580_v25  ;;  %5136 = vmatmul.msk.bf16.gmra.mxu1 %vm136_vm0, %v2433_v3 }
 0x2ee   :  { %5087 = vmatmul.msk.bf16.gmra.mxu3 %vm136_vm0, %v2156_v61  ;;  %v2582_v61 = vpack.c.bf16 %v5153_v51, %v5152_v6  ;;  %v5284_v51 = vld [vmem:[%s7543_s0 + $0x250] sm:$0xff] }
 0x2ef   :  { %v2366_v15 = vpop.f32.mrf.mxu0 }
 0x2f0   :  { %v2085_v58 = vpop.f32.mrf.mxu2  ;;  %v2407_v31 = vmul.f32 0.2, %v2366_v15  ;;  %vm2391_vm11 = vcmp.gt.f32.partialorder %v2366_v15, 0.0 }
 0x2f1   :  { %v1692_v7 = vpop.f32.mrf.mxu3  ;;  %v2129_v12 = vmul.f32 0.2, %v2085_v58  ;;  %vm2113_vm12 = vcmp.gt.f32.partialorder %v2085_v58, 0.0 }
 0x2f2   :  { %v1723_v13 = vadd.f32 %v1692_v7, %v6482_v62  ;;  %v6704_v44 = vpop.f32.mrf.mxu1  ;;  %5209 = vmatmul.msk.bf16.gmra.mxu0 %vm136_vm0, %v2856_v43  ;;  %v2423_v9 = vsel %vm2391_vm11, %v2366_v15, %v2407_v31 }
 0x2f3   :  { %v2145_v39 = vsel %vm2113_vm12, %v2085_v58, %v2129_v12 }
 0x2f4   :  { %v6707_v49 = vadd.f32 %v1967_v17, %v1723_v13 }
 0x2f7   :  { %v2368_v23 = vpop.f32.mrf.mxu0 }
 0x2f8   :  { %v2087_v62 = vpop.f32.mrf.mxu2  ;;  %vm2392_vm13 = vcmp.gt.f32.partialorder %v2368_v23, 0.0  ;;  %v2408_v24 = vmul.f32 0.2, %v2368_v23 }
 0x2f9   :  { %vm2114_vm14 = vcmp.gt.f32.partialorder %v2087_v62, 0.0  ;;  %v2130_v17 = vmul.f32 0.2, %v2087_v62  ;;  %v1694_v11 = vpop.f32.mrf.mxu3 }
 0x2fa   :  { %v1724_v46 = vadd.f32 %v1694_v11, %v6498_v1  ;;  %v2424_v26 = vsel %vm2392_vm13, %v2368_v23, %v2408_v24  ;;  %v1977_v22 = vpop.f32.mrf.mxu1  ;;  %v2857_v1 = vpack.c.bf16 %v5201_v35, %v5200_v28 }
 0x2fb   :  { %v2146_v41 = vsel %vm2114_vm14, %v2087_v62, %v2130_v17  ;;  %v2434_v40 = vpack.c.bf16 %v2424_v26, %v2423_v9  ;;  %v5154_v26 = vld [vmem:[%s7543_s0 + $0x220] sm:$0xff] }
 0x2fc   :  { %v2157_v36 = vpack.c.bf16 %v2146_v41, %v2145_v39  ;;  %v6723_v38 = vadd.f32 %v6679_v60, %v1724_v46  ;;  %v5523_v46 = vld [vmem:[#allocation4 + $0x158] sm:$0xff]  ;;  %v5155_v39 = vld [vmem:[%s7543_s0 + $0x230] sm:$0xff] }
 0x2fd   :  { %5161 = vmatmul.msk.bf16.gmra.mxu2 %vm136_vm0, %v2581_v27  ;;  %5137 = vmatmul.msk.bf16.gmra.mxu1 %vm136_vm0, %v2434_v40 }
 0x2fe   :  { %5088 = vmatmul.msk.bf16.gmra.mxu3 %vm136_vm0, %v2157_v36  ;;  %3049 = vmatpush.bf16.msrb.mxu1 %v5523_v46 }
 0x2ff   :  { %v2371_v19 = vpop.f32.mrf.mxu0 }
 0x300   :  { %v2090_v10 = vpop.f32.mrf.mxu2  ;;  %v2409_v25 = vmul.f32 0.2, %v2371_v19  ;;  %vm2393_vm15 = vcmp.gt.f32.partialorder %v2371_v19, 0.0 }
 0x301   :  { %v1697_v48 = vpop.f32.mrf.mxu3  ;;  %v2131_v63 = vmul.f32 0.2, %v2090_v10  ;;  %vm2115_vm1 = vcmp.gt.f32.partialorder %v2090_v10, 0.0 }
 0x302   :  { %v1725_v8 = vadd.f32 %v1697_v48, %v6507_v18  ;;  %v6729_v2 = vpop.f32.mrf.mxu1  ;;  %5210 = vmatmul.msk.bf16.gmra.mxu0 %vm136_vm0, %v2857_v1  ;;  %v2425_v3 = vsel %vm2393_vm15, %v2371_v19, %v2409_v25  ;;  %v2583_v1 = vpack.c.bf16 %v5155_v39, %v5154_v26  ;;  %3050 = vmatpush.bf16.msrb.mxu1 %v5522_v42 }
 0x303   :  { %v2147_v7 = vsel %vm2115_vm1, %v2090_v10, %v2131_v63  ;;  %v5285_v63 = vld [vmem:[%s7543_s0 + $0x260] sm:$0xff] }
 0x304   :  { %v6732_v60 = vadd.f32 %v1972_v53, %v1725_v8 }
 0x307   :  { %v2373_v21 = vpop.f32.mrf.mxu0 }
 0x308   :  { %v2092_v18 = vpop.f32.mrf.mxu2  ;;  %vm2394_vm2 = vcmp.gt.f32.partialorder %v2373_v21, 0.0  ;;  %v2410_v55 = vmul.f32 0.2, %v2373_v21 }
 0x309   :  { %vm2116_vm3 = vcmp.gt.f32.partialorder %v2092_v18, 0.0  ;;  %v2132_v53 = vmul.f32 0.2, %v2092_v18  ;;  %v1699_v56 = vpop.f32.mrf.mxu3 }
 0x30a   :  { %v1726_v43 = vadd.f32 %v1699_v56, %v6525_v14  ;;  %v2426_v15 = vsel %vm2394_vm2, %v2373_v21, %v2410_v55  ;;  %v6741_v58 = vpop.f32.mrf.mxu1  ;;  %v2858_v14 = vpack.c.bf16 %v5203_v45, %v5202_v47  ;;  %v5527_v55 = vld [vmem:[#allocation4 + $0x178] sm:$0xff]  ;;  %v5237_v47 = vld [vmem:[%s7543_s0 + $0x141] sm:$0xff] }
 0x30b   :  { %v2148_v13 = vsel %vm2116_vm3, %v2092_v18, %v2132_v53  ;;  %v2435_v31 = vpack.c.bf16 %v2426_v15, %v2425_v3  ;;  %v3402_v3 = vpack.c.bf16 %v5285_v63, %v5284_v51  ;;  %3324 = vmatpush.bf16.msrb.mxu3 %v5527_v55 }
 0x30c   :  { %v2158_v12 = vpack.c.bf16 %v2148_v13, %v2147_v7  ;;  %v6750_v23 = vadd.f32 %v6704_v44, %v1726_v43  ;;  %v5520_v43 = vld [vmem:[#allocation4 + $0x140] sm:$0xff] }
 0x30d   :  { %5162 = vmatmul.msk.bf16.gmra.mxu2 %vm136_vm0, %v2582_v61  ;;  %5138 = vmatmul.msk.bf16.gmra.mxu1 %vm136_vm0, %v2435_v31  ;;  %v5236_v31 = vld [vmem:[%s7543_s0 + $0x131] sm:$0xff] }
 0x30e   :  { %5089 = vmatmul.msk.bf16.gmra.mxu3 %vm136_vm0, %v2158_v12 }
 0x30f   :  { %v2376_v62 = vpop.f32.mrf.mxu0 }
 0x310   :  { %v2095_v9 = vpop.f32.mrf.mxu2  ;;  %v2411_v44 = vmul.f32 0.2, %v2376_v62  ;;  %vm2395_vm4 = vcmp.gt.f32.partialorder %v2376_v62, 0.0 }
 0x311   :  { %v1702_v24 = vpop.f32.mrf.mxu3  ;;  %v2133_v41 = vmul.f32 0.2, %v2095_v9  ;;  %vm2117_vm5 = vcmp.gt.f32.partialorder %v2095_v9, 0.0 }
 0x312   :  { %v1727_v17 = vadd.f32 %v1702_v24, %v6534_v29  ;;  %v6756_v11 = vpop.f32.mrf.mxu1  ;;  %5211 = vmatmul.msk.bf16.gmra.mxu0 %vm136_vm0, %v2858_v14  ;;  %v2427_v28 = vsel %vm2395_vm4, %v2376_v62, %v2411_v44  ;;  %v3126_v24 = vpack.c.bf16 %v5237_v47, %v5236_v31 }
 0x313   :  { %v2149_v8 = vsel %vm2117_vm5, %v2095_v9, %v2133_v41 }
 0x314   :  { %v6759_v27 = vadd.f32 %v1977_v22, %v1727_v17 }
 0x317   :  { %v2378_v29 = vpop.f32.mrf.mxu0 }
 0x318   :  { %v2097_v40 = vpop.f32.mrf.mxu2  ;;  %vm2396_vm6 = vcmp.gt.f32.partialorder %v2378_v29, 0.0  ;;  %v2412_v22 = vmul.f32 0.2, %v2378_v29 }
 0x319   :  { %vm2118_vm7 = vcmp.gt.f32.partialorder %v2097_v40, 0.0  ;;  %v2134_v35 = vmul.f32 0.2, %v2097_v40  ;;  %v1704_v36 = vpop.f32.mrf.mxu3 }
 0x31a   :  { %v1728_v19 = vadd.f32 %v1704_v36, %v6552_v54  ;;  %v2428_v10 = vsel %vm2396_vm6, %v2378_v29, %v2412_v22  ;;  %v6768_v48 = vpop.f32.mrf.mxu1  ;;  %v5521_v54 = vld [vmem:[#allocation4 + $0x148] sm:$0xff]  ;;  %v5286_v29 = vld [vmem:[%s7543_s0 + $0x270] sm:$0xff] }
 0x31b   :  { %v2150_v25 = vsel %vm2118_vm7, %v2097_v40, %v2134_v35  ;;  %v2436_v6 = vpack.c.bf16 %v2428_v10, %v2427_v28  ;;  %3051 = vmatpush.bf16.msrb.mxu1 %v5521_v54  ;;  %v5287_v40 = vld [vmem:[%s7543_s0 + $0x280] sm:$0xff] }
 0x31c   :  { %v2159_v21 = vpack.c.bf16 %v2150_v25, %v2149_v8  ;;  %v6777_v18 = vadd.f32 %v6729_v2, %v1728_v19  ;;  %v5239_v8 = vld [vmem:[%s7543_s0 + $0x161] sm:$0xff] }
 0x31d   :  { %5163 = vmatmul.msk.bf16.gmra.mxu2 %vm136_vm0, %v2583_v1  ;;  %5139 = vmatmul.msk.bf16.gmra.mxu1 %vm136_vm0, %v2436_v6 }
 0x31e   :  { %5090 = vmatmul.msk.bf16.gmra.mxu3 %vm136_vm0, %v2159_v21 }
 0x31f   :  { %v2892_v53 = vpop.f32.mrf.mxu0  ;;  %3052 = vmatpush.bf16.msrb.mxu1 %v5520_v43  ;;  %v5289_v43 = vld [vmem:[%s7543_s0 + $0x2a0] sm:$0xff] }
 0x320   :  { %v2100_v56 = vpop.f32.mrf.mxu2  ;;  %v2948_v13 = vmul.f32 0.2, %v2892_v53  ;;  %vm2932_vm8 = vcmp.gt.f32.partialorder %v2892_v53, 0.0 }
 0x321   :  { %v1707_v61 = vpop.f32.mrf.mxu3  ;;  %v2135_v45 = vmul.f32 0.2, %v2100_v56  ;;  %vm2119_vm9 = vcmp.gt.f32.partialorder %v2100_v56, 0.0 }
 0x322   :  { %v1729_v15 = vadd.f32 %v1707_v61, %v6565_v34  ;;  %v6783_v7 = vpop.f32.mrf.mxu1  ;;  %5300 = vmatmul.msk.bf16.vlgmr.msra.gmra.mxu0 %vm136_vm0, %v3402_v3  ;;  %v2964_v14 = vsel %vm2932_vm8, %v2892_v53, %v2948_v13  ;;  %v5288_v61 = vld [vmem:[%s7543_s0 + $0x290] sm:$0xff] }
 0x323   :  { %v2151_v26 = vsel %vm2119_vm9, %v2100_v56, %v2135_v45 }
 0x324   :  { %v6787_v2 = vadd.f32 %v6741_v58, %v1729_v15 }
 0x327   :  { %v2894_v34 = vpop.f32.mrf.mxu0 }
 0x328   :  { %v2102_v12 = vpop.f32.mrf.mxu2  ;;  %vm2933_vm10 = vcmp.gt.f32.partialorder %v2894_v34, 0.0  ;;  %v2949_v62 = vmul.f32 0.2, %v2894_v34 }
 0x329   :  { %vm2120_vm11 = vcmp.gt.f32.partialorder %v2102_v12, 0.0  ;;  %v2136_v58 = vmul.f32 0.2, %v2102_v12  ;;  %v1709_v9 = vpop.f32.mrf.mxu3 }
 0x32a   :  { %v1730_v17 = vadd.f32 %v1709_v9, %v6589_v59  ;;  %v2965_v44 = vsel %vm2933_vm10, %v2894_v34, %v2949_v62  ;;  %v2503_v46 = vpop.f32.mrf.mxu1  ;;  %v3403_v59 = vpack.c.bf16 %v5287_v40, %v5286_v29  ;;  %v5240_v62 = vld [vmem:[%s7543_s0 + $0x171] sm:$0xff] }
 0x32b   :  { %v2152_v39 = vsel %vm2120_vm11, %v2102_v12, %v2136_v58  ;;  %v2980_v41 = vpack.c.bf16 %v2965_v44, %v2964_v14  ;;  %v5241_v58 = vld [vmem:[%s7543_s0 + $0x181] sm:$0xff] }
 0x32c   :  { %v2160_v28 = vpack.c.bf16 %v2152_v39, %v2151_v26  ;;  %v6803_v22 = vadd.f32 %v6756_v11, %v1730_v17  ;;  %v3128_v39 = vpack.c.bf16 %v5241_v58, %v5240_v62 }
 0x32d   :  { %5252 = vmatmul.msk.bf16.vlgmr.msrb.gmra.mxu2 %vm136_vm0, %v3126_v24  ;;  %5228 = vmatmul.msk.bf16.vlgmr.msrb.gmra.mxu1 %vm136_vm0, %v2980_v41 }
 0x32e   :  { %5091 = vmatmul.msk.bf16.gmra.mxu3 %vm136_vm0, %v2160_v28  ;;  %4264 = vmatpush.bf16.msrb.mxu2 %v6561_v30  ;;  %v5238_v30 = vld [vmem:[%s7543_s0 + $0x151] sm:$0xff] }
 0x32f   :  { %v2897_v35 = vpop.f32.mrf.mxu0  ;;  %v3127_v21 = vpack.c.bf16 %v5239_v8, %v5238_v30 }
 0x330   :  { %v2617_v36 = vpop.f32.mrf.mxu2  ;;  %v2950_v10 = vmul.f32 0.2, %v2897_v35  ;;  %vm2934_vm12 = vcmp.gt.f32.partialorder %v2897_v35, 0.0 }
 0x331   :  { %v1712_v1 = vpop.f32.mrf.mxu3  ;;  %vm2657_vm13 = vcmp.gt.f32.partialorder %v2617_v36, 0.0 }
 0x332   :  { %v1731_v42 = vadd.f32 %v1712_v1, %v6604_v0  ;;  %v6810_v19 = vpop.f32.mrf.mxu1  ;;  %5301 = vmatmul.msk.bf16.gmra.mxu0 %vm136_vm0, %v3403_v59  ;;  %4265 = vmatpush.bf16.msrb.mxu2 %v6573_v16  ;;  %v2673_v0 = vmul.f32 0.2, %v2617_v36  ;;  %v2966_v16 = vsel %vm2934_vm12, %v2897_v35, %v2950_v10  ;;  %v5291_v1 = vld [vmem:[%s7543_s0 + $0x2c0] sm:$0xff] }
 0x334   :  { %v6815_v11 = vadd.f32 %v6768_v48, %v1731_v42  ;;  %v2689_v53 = vsel %vm2657_vm13, %v2617_v36, %v2673_v0  ;;  %v5290_v36 = vld [vmem:[%s7543_s0 + $0x2b0] sm:$0xff] }
 0x336   :  { %4266 = vmatpush.bf16.msrb.mxu2 %v6585_v32 }
 0x337   :  { %v2899_v25 = vpop.f32.mrf.mxu0 }
 0x338   :  { %v2619_v6 = vpop.f32.mrf.mxu2  ;;  %vm2935_vm14 = vcmp.gt.f32.partialorder %v2899_v25, 0.0  ;;  %v2951_v48 = vmul.f32 0.2, %v2899_v25 }
 0x339   :  { %vm2658_vm15 = vcmp.gt.f32.partialorder %v2619_v6, 0.0  ;;  %v2674_v51 = vmul.f32 0.2, %v2619_v6  ;;  %v1714_v63 = vpop.f32.mrf.mxu3 }
 0x33a   :  { %v1732_v54 = vadd.f32 %v1714_v63, %v6622_v4  ;;  %v2967_v3 = vsel %vm2935_vm14, %v2899_v25, %v2951_v48  ;;  %v2508_v55 = vpop.f32.mrf.mxu1  ;;  %4267 = vmatpush.bf16.msrb.mxu2 %v6595_v37  ;;  %v3404_v37 = vpack.c.bf16 %v5289_v43, %v5288_v61  ;;  %v5526_v4 = vld [vmem:[#allocation4 + $0x170] sm:$0xff] }
 0x33b   :  { %v2690_v56 = vsel %vm2658_vm15, %v2619_v6, %v2674_v51  ;;  %v2981_v32 = vpack.c.bf16 %v2967_v3, %v2966_v16  ;;  %3325 = vmatpush.bf16.msrb.mxu3 %v5526_v4  ;;  %v5242_v48 = vld [vmem:[%s7543_s0 + $0x191] sm:$0xff]  ;;  %v5243_v51 = vld [vmem:[%s7543_s0 + $0x1a1] sm:$0xff] }
 0x33c   :  { %v2705_v15 = vpack.c.bf16 %v2690_v56, %v2689_v53  ;;  %v6833_v13 = vadd.f32 %v6783_v7, %v1732_v54  ;;  %v3129_v56 = vpack.c.bf16 %v5243_v51, %v5242_v48 }
 0x33d   :  { %5253 = vmatmul.msk.bf16.gmra.mxu2 %vm136_vm0, %v3127_v21  ;;  %5229 = vmatmul.msk.bf16.gmra.mxu1 %vm136_vm0, %v2981_v32 }
 0x33e   :  { %5180 = vmatmul.msk.bf16.vlgmr.msra.gmra.mxu3 %vm136_vm0, %v2705_v15 }
 0x33f   :  { %v2902_v31 = vpop.f32.mrf.mxu0 }
 0x340   :  { %v2622_v47 = vpop.f32.mrf.mxu2  ;;  %v2952_v14 = vmul.f32 0.2, %v2902_v31  ;;  %vm2936_vm1 = vcmp.gt.f32.partialorder %v2902_v31, 0.0 }
 0x341   :  { %v2227_v45 = vpop.f32.mrf.mxu3  ;;  %v2675_v9 = vmul.f32 0.2, %v2622_v47  ;;  %vm2659_vm2 = vcmp.gt.f32.partialorder %v2622_v47, 0.0 }
 0x342   :  { %v2267_v34 = vadd.f32 %v2227_v45, %v6632_v5  ;;  %v6839_v12 = vpop.f32.mrf.mxu1  ;;  %5302 = vmatmul.msk.bf16.gmra.mxu0 %vm136_vm0, %v3404_v37  ;;  %v2968_v17 = vsel %vm2936_vm1, %v2902_v31, %v2952_v14  ;;  %v5292_v31 = vld [vmem:[%s7543_s0 + $0x2e0] sm:$0xff]  ;;  %v5525_v14 = vld [vmem:[#allocation4 + $0x168] sm:$0xff] }
 0x343   :  { %v2691_v28 = vsel %vm2659_vm2, %v2622_v47, %v2675_v9  ;;  %v5293_v47 = vld [vmem:[%s7543_s0 + $0x2f0] sm:$0xff]  ;;  %3326 = vmatpush.bf16.msrb.mxu3 %v5525_v14 }
 0x344   :  { %v6842_v7 = vadd.f32 %v2503_v46, %v2267_v34 }
 0x347   :  { %v2904_v24 = vpop.f32.mrf.mxu0 }
 0x348   :  { %v2624_v5 = vpop.f32.mrf.mxu2  ;;  %vm2937_vm3 = vcmp.gt.f32.partialorder %v2904_v24, 0.0  ;;  %v2953_v44 = vmul.f32 0.2, %v2904_v24 }
 0x349   :  { %vm2660_vm4 = vcmp.gt.f32.partialorder %v2624_v5, 0.0  ;;  %v2676_v46 = vmul.f32 0.2, %v2624_v5  ;;  %v2229_v26 = vpop.f32.mrf.mxu3 }
 0x34a   :  { %v2268_v41 = vadd.f32 %v2229_v26, %v6648_v50  ;;  %v2969_v29 = vsel %vm2937_vm3, %v2904_v24, %v2953_v44  ;;  %v2513_v40 = vpop.f32.mrf.mxu1  ;;  %v3405_v50 = vpack.c.bf16 %v5291_v1, %v5290_v36  ;;  %v5244_v44 = vld [vmem:[%s7543_s0 + $0x1c1] sm:$0xff] }
 0x34b   :  { %v2692_v59 = vsel %vm2660_vm4, %v2624_v5, %v2676_v46  ;;  %v2982_v35 = vpack.c.bf16 %v2969_v29, %v2968_v17  ;;  %v5245_v46 = vld [vmem:[%s7543_s0 + $0x1d1] sm:$0xff] }
 0x34c   :  { %v2706_v42 = vpack.c.bf16 %v2692_v59, %v2691_v28  ;;  %v6858_v10 = vadd.f32 %v6810_v19, %v2268_v41  ;;  %v3130_v59 = vpack.c.bf16 %v5245_v46, %v5244_v44 }
 0x34d   :  { %5254 = vmatmul.msk.bf16.gmra.mxu2 %vm136_vm0, %v3128_v39  ;;  %5230 = vmatmul.msk.bf16.gmra.mxu1 %vm136_vm0, %v2982_v35 }
 0x34e   :  { %5181 = vmatmul.msk.bf16.gmra.mxu3 %vm136_vm0, %v2706_v42 }
 0x34f   :  { %v2907_v30 = vpop.f32.mrf.mxu0 }
 0x350   :  { %v2627_v8 = vpop.f32.mrf.mxu2  ;;  %v2954_v19 = vmul.f32 0.2, %v2907_v30  ;;  %vm2938_vm5 = vcmp.gt.f32.partialorder %v2907_v30, 0.0 }
 0x351   :  { %v2232_v0 = vpop.f32.mrf.mxu3  ;;  %v2677_v63 = vmul.f32 0.2, %v2627_v8  ;;  %vm2661_vm6 = vcmp.gt.f32.partialorder %v2627_v8, 0.0 }
 0x352   :  { %v2269_v25 = vadd.f32 %v2232_v0, %v6657_v33  ;;  %v6864_v6 = vpop.f32.mrf.mxu1  ;;  %5303 = vmatmul.msk.bf16.gmra.mxu0 %vm136_vm0, %v3405_v50  ;;  %v2970_v54 = vsel %vm2938_vm5, %v2907_v30, %v2954_v19  ;;  %v5295_v0 = vld [vmem:[%s7543_s0 + $0x310] sm:$0xff] }
 0x353   :  { %v2693_v15 = vsel %vm2661_vm6, %v2627_v8, %v2677_v63  ;;  %v5294_v8 = vld [vmem:[%s7543_s0 + $0x300] sm:$0xff] }
 0x354   :  { %v6867_v16 = vadd.f32 %v2508_v55, %v2269_v25 }
 0x357   :  { %v2909_v21 = vpop.f32.mrf.mxu0 }
 0x358   :  { %v2629_v33 = vpop.f32.mrf.mxu2  ;;  %vm2939_vm7 = vcmp.gt.f32.partialorder %v2909_v21, 0.0  ;;  %v2955_v3 = vmul.f32 0.2, %v2909_v21 }
 0x359   :  { %vm2662_vm8 = vcmp.gt.f32.partialorder %v2629_v33, 0.0  ;;  %v2678_v55 = vmul.f32 0.2, %v2629_v33  ;;  %v2234_v53 = vpop.f32.mrf.mxu3 }
 0x35a   :  { %v2270_v32 = vadd.f32 %v2234_v53, %v6673_v52  ;;  %v2971_v61 = vsel %vm2939_vm7, %v2909_v21, %v2955_v3  ;;  %v2518_v43 = vpop.f32.mrf.mxu1  ;;  %v3406_v52 = vpack.c.bf16 %v5293_v47, %v5292_v31  ;;  %v5246_v3 = vld [vmem:[%s7543_s0 + $0x1e1] sm:$0xff] }
 0x35b   :  { %v2694_v37 = vsel %vm2662_vm8, %v2629_v33, %v2678_v55  ;;  %v2983_v4 = vpack.c.bf16 %v2971_v61, %v2970_v54  ;;  %v5247_v55 = vld [vmem:[%s7543_s0 + $0x1f1] sm:$0xff] }
 0x35c   :  { %v2707_v45 = vpack.c.bf16 %v2694_v37, %v2693_v15  ;;  %v6883_v34 = vadd.f32 %v6839_v12, %v2270_v32  ;;  %v3131_v37 = vpack.c.bf16 %v5247_v55, %v5246_v3 }
 0x35d   :  { %5255 = vmatmul.msk.bf16.gmra.mxu2 %vm136_vm0, %v3129_v56  ;;  %5231 = vmatmul.msk.bf16.gmra.mxu1 %vm136_vm0, %v2983_v4 }
 0x35e   :  { %5182 = vmatmul.msk.bf16.gmra.mxu3 %vm136_vm0, %v2707_v45 }
 0x35f   :  { %v2912_v62 = vpop.f32.mrf.mxu0 }
 0x360   :  { %v2632_v58 = vpop.f32.mrf.mxu2  ;;  %v2956_v17 = vmul.f32 0.2, %v2912_v62  ;;  %vm2940_vm9 = vcmp.gt.f32.partialorder %v2912_v62, 0.0 }
 0x361   :  { %v2237_v9 = vpop.f32.mrf.mxu3  ;;  %v2679_v26 = vmul.f32 0.2, %v2632_v58  ;;  %vm2663_vm10 = vcmp.gt.f32.partialorder %v2632_v58, 0.0 }
 0x362   :  { %v2271_v24 = vadd.f32 %v2237_v9, %v6682_v20  ;;  %v6889_v5 = vpop.f32.mrf.mxu1  ;;  %5304 = vmatmul.msk.bf16.gmra.mxu0 %vm136_vm0, %v3406_v52  ;;  %v2972_v41 = vsel %vm2940_vm9, %v2912_v62, %v2956_v17  ;;  %v5296_v62 = vld [vmem:[%s7543_s0 + $0x320] sm:$0xff] }
 0x363   :  { %v2695_v42 = vsel %vm2663_vm10, %v2632_v58, %v2679_v26  ;;  %v5297_v58 = vld [vmem:[%s7543_s0 + $0x330] sm:$0xff]  ;;  %v5524_v17 = vld [vmem:[#allocation4 + $0x160] sm:$0xff] }
 0x364   :  { %v6892_v12 = vadd.f32 %v2513_v40, %v2271_v24  ;;  %3327 = vmatpush.bf16.msrb.mxu3 %v5524_v17 }
 0x367   :  { %v2914_v39 = vpop.f32.mrf.mxu0 }
 0x368   :  { %v2634_v20 = vpop.f32.mrf.mxu2  ;;  %vm2941_vm11 = vcmp.gt.f32.partialorder %v2914_v39, 0.0  ;;  %v2957_v29 = vmul.f32 0.2, %v2914_v39 }
 0x369   :  { %vm2664_vm12 = vcmp.gt.f32.partialorder %v2634_v20, 0.0  ;;  %v2680_v40 = vmul.f32 0.2, %v2634_v20  ;;  %v2239_v28 = vpop.f32.mrf.mxu3 }
 0x36a   :  { %v2272_v35 = vadd.f32 %v2239_v28, %v6698_v57  ;;  %v2973_v36 = vsel %vm2941_vm11, %v2914_v39, %v2957_v29  ;;  %v2523_v1 = vpop.f32.mrf.mxu1  ;;  %v3407_v57 = vpack.c.bf16 %v5295_v0, %v5294_v8  ;;  %v5248_v29 = vld [vmem:[%s7543_s0 + $0x201] sm:$0xff] }
 0x36b   :  { %v2696_v50 = vsel %vm2664_vm12, %v2634_v20, %v2680_v40  ;;  %v2984_v30 = vpack.c.bf16 %v2973_v36, %v2972_v41  ;;  %v5249_v40 = vld [vmem:[%s7543_s0 + $0x211] sm:$0xff] }
 0x36c   :  { %v2708_v25 = vpack.c.bf16 %v2696_v50, %v2695_v42  ;;  %v6908_v19 = vadd.f32 %v6864_v6, %v2272_v35  ;;  %v3132_v50 = vpack.c.bf16 %v5249_v40, %v5248_v29 }
 0x36d   :  { %5256 = vmatmul.msk.bf16.gmra.mxu2 %vm136_vm0, %v3130_v59  ;;  %5232 = vmatmul.msk.bf16.gmra.mxu1 %vm136_vm0, %v2984_v30 }
 0x36e   :  { %5183 = vmatmul.msk.bf16.gmra.mxu3 %vm136_vm0, %v2708_v25 }
 0x36f   :  { %v2917_v48 = vpop.f32.mrf.mxu0 }
 0x370   :  { %v2637_v51 = vpop.f32.mrf.mxu2  ;;  %v2958_v6 = vmul.f32 0.2, %v2917_v48  ;;  %vm2942_vm13 = vcmp.gt.f32.partialorder %v2917_v48, 0.0 }
 0x371   :  { %v2242_v63 = vpop.f32.mrf.mxu3  ;;  %v2681_v53 = vmul.f32 0.2, %v2637_v51  ;;  %vm2665_vm14 = vcmp.gt.f32.partialorder %v2637_v51, 0.0 }
 0x372   :  { %v2273_v21 = vadd.f32 %v2242_v63, %v6707_v49  ;;  %v6914_v33 = vpop.f32.mrf.mxu1  ;;  %5305 = vmatmul.msk.bf16.gmra.mxu0 %vm136_vm0, %v3407_v57  ;;  %v2974_v32 = vsel %vm2942_vm13, %v2917_v48, %v2958_v6  ;;  %v5299_v63 = vld [vmem:[%s7543_s0 + $0x350] sm:$0xff] }
 0x373   :  { %v2697_v45 = vsel %vm2665_vm14, %v2637_v51, %v2681_v53  ;;  %v5298_v51 = vld [vmem:[%s7543_s0 + $0x340] sm:$0xff] }
 0x374   :  { %v6917_v54 = vadd.f32 %v2518_v43, %v2273_v21 }
 0x377   :  { %v2919_v56 = vpop.f32.mrf.mxu0 }
 0x378   :  { %v2639_v49 = vpop.f32.mrf.mxu2  ;;  %vm2943_vm15 = vcmp.gt.f32.partialorder %v2919_v56, 0.0  ;;  %v2959_v61 = vmul.f32 0.2, %v2919_v56 }
 0x379   :  { %vm2666_vm1 = vcmp.gt.f32.partialorder %v2639_v49, 0.0  ;;  %v2682_v43 = vmul.f32 0.2, %v2639_v49  ;;  %v2244_v15 = vpop.f32.mrf.mxu3 }
 0x37a   :  { %v2274_v4 = vadd.f32 %v2244_v15, %v6723_v38  ;;  %v2975_v31 = vsel %vm2943_vm15, %v2919_v56, %v2959_v61  ;;  %v2528_v47 = vpop.f32.mrf.mxu1  ;;  %v3408_v38 = vpack.c.bf16 %v5297_v58, %v5296_v62  ;;  %v5531_v61 = vld [vmem:[#allocation4 + $0x198] sm:$0xff]  ;;  %v5530_v62 = vld [vmem:[#allocation4 + $0x190] sm:$0xff] }
 0x37b   :  { %v2698_v52 = vsel %vm2666_vm1, %v2639_v49, %v2682_v43  ;;  %v2985_v14 = vpack.c.bf16 %v2975_v31, %v2974_v32  ;;  %v5250_v43 = vld [vmem:[%s7543_s0 + $0x221] sm:$0xff]  ;;  %v5251_v15 = vld [vmem:[%s7543_s0 + $0x231] sm:$0xff]  ;;  %3600 = vmatpush.bf16.msra.mxu1 %v5531_v61 }
 0x37c   :  { %v2709_v9 = vpack.c.bf16 %v2698_v52, %v2697_v45  ;;  %v6933_v24 = vadd.f32 %v6889_v5, %v2274_v4  ;;  %v5382_v61 = vld [vmem:[%s7543_s0 + $0x271] sm:$0xff] }
 0x37d   :  { %5257 = vmatmul.msk.bf16.gmra.mxu2 %vm136_vm0, %v3131_v37  ;;  %5233 = vmatmul.msk.bf16.gmra.mxu1 %vm136_vm0, %v2985_v14  ;;  %v3133_v14 = vpack.c.bf16 %v5251_v15, %v5250_v43  ;;  %v5383_v43 = vld [vmem:[%s7543_s0 + $0x281] sm:$0xff] }
 0x37e   :  { %5184 = vmatmul.msk.bf16.gmra.mxu3 %vm136_vm0, %v2709_v9 }
 0x37f   :  { %v2922_v44 = vpop.f32.mrf.mxu0  ;;  %3601 = vmatpush.bf16.msra.mxu1 %v5530_v62  ;;  %v5335_v62 = vld [vmem:[%s7543_s0 + $0x3a0] sm:$0xff] }
 0x380   :  { %v2642_v46 = vpop.f32.mrf.mxu2  ;;  %v2960_v41 = vmul.f32 0.2, %v2922_v44  ;;  %vm2944_vm2 = vcmp.gt.f32.partialorder %v2922_v44, 0.0 }
 0x381   :  { %v2247_v26 = vpop.f32.mrf.mxu3  ;;  %v2683_v28 = vmul.f32 0.2, %v2642_v46  ;;  %vm2667_vm3 = vcmp.gt.f32.partialorder %v2642_v46, 0.0 }
 0x382   :  { %v2275_v39 = vadd.f32 %v2247_v26, %v6732_v60  ;;  %v6939_v20 = vpop.f32.mrf.mxu1  ;;  %5306 = vmatmul.msk.bf16.gmra.mxu0 %vm136_vm0, %v3408_v38  ;;  %v2976_v35 = vsel %vm2944_vm2, %v2922_v44, %v2960_v41  ;;  %v5380_v26 = vld [vmem:[%s7543_s0 + $0x251] sm:$0xff] }
 0x383   :  { %v2699_v25 = vsel %vm2667_vm3, %v2642_v46, %v2683_v28  ;;  %v5535_v28 = vld [vmem:[#allocation4 + $0x1b8] sm:$0xff] }
 0x384   :  { %v6942_v5 = vadd.f32 %v2523_v1, %v2275_v39  ;;  %v5381_v39 = vld [vmem:[%s7543_s0 + $0x261] sm:$0xff]  ;;  %3876 = vmatpush.bf16.msra.mxu3 %v5535_v28 }
 0x385   :  { %v3953_v40 = vpack.c.bf16 %v5381_v39, %v5380_v26 }
 0x387   :  { %v2924_v59 = vpop.f32.mrf.mxu0 }
 0x388   :  { %v2644_v60 = vpop.f32.mrf.mxu2  ;;  %vm2945_vm4 = vcmp.gt.f32.partialorder %v2924_v59, 0.0  ;;  %v2961_v36 = vmul.f32 0.2, %v2924_v59 }
 0x389   :  { %vm2668_vm5 = vcmp.gt.f32.partialorder %v2644_v60, 0.0  ;;  %v2684_v1 = vmul.f32 0.2, %v2644_v60  ;;  %v2249_v42 = vpop.f32.mrf.mxu3 }
 0x38a   :  { %v2276_v30 = vadd.f32 %v2249_v42, %v6750_v23  ;;  %v2977_v8 = vsel %vm2945_vm4, %v2924_v59, %v2961_v36  ;;  %v6951_v0 = vpop.f32.mrf.mxu1  ;;  %v3409_v23 = vpack.c.bf16 %v5299_v63, %v5298_v51  ;;  %v5528_v36 = vld [vmem:[#allocation4 + $0x180] sm:$0xff] }
 0x38b   :  { %v2700_v57 = vsel %vm2668_vm5, %v2644_v60, %v2684_v1  ;;  %v2986_v48 = vpack.c.bf16 %v2977_v8, %v2976_v35  ;;  %v5333_v8 = vld [vmem:[%s7543_s0 + $0x380] sm:$0xff] }
 0x38c   :  { %v2710_v21 = vpack.c.bf16 %v2700_v57, %v2699_v25  ;;  %v6960_v6 = vadd.f32 %v6914_v33, %v2276_v30  ;;  %v5332_v30 = vld [vmem:[%s7543_s0 + $0x370] sm:$0xff] }
 0x38d   :  { %5258 = vmatmul.msk.bf16.gmra.mxu2 %vm136_vm0, %v3132_v50  ;;  %5234 = vmatmul.msk.bf16.gmra.mxu1 %vm136_vm0, %v2986_v48 }
 0x38e   :  { %5185 = vmatmul.msk.bf16.gmra.mxu3 %vm136_vm0, %v2710_v21  ;;  %v3678_v21 = vpack.c.bf16 %v5333_v8, %v5332_v30 }
 0x38f   :  { %v2927_v3 = vpop.f32.mrf.mxu0 }
 0x390   :  { %v2647_v55 = vpop.f32.mrf.mxu2  ;;  %v2962_v33 = vmul.f32 0.2, %v2927_v3  ;;  %vm2946_vm6 = vcmp.gt.f32.partialorder %v2927_v3, 0.0 }
 0x391   :  { %v2252_v53 = vpop.f32.mrf.mxu3  ;;  %v2685_v37 = vmul.f32 0.2, %v2647_v55  ;;  %vm2669_vm7 = vcmp.gt.f32.partialorder %v2647_v55, 0.0 }
 0x392   :  { %v2277_v56 = vadd.f32 %v2252_v53, %v6759_v27  ;;  %v6966_v49 = vpop.f32.mrf.mxu1  ;;  %5307 = vmatmul.msk.bf16.gmra.mxu0 %vm136_vm0, %v3409_v23  ;;  %v2978_v31 = vsel %vm2946_vm6, %v2927_v3, %v2962_v33 }
 0x393   :  { %v2701_v17 = vsel %vm2669_vm7, %v2647_v55, %v2685_v37 }
 0x394   :  { %v6969_v32 = vadd.f32 %v2528_v47, %v2277_v56 }
 0x397   :  { %v2929_v27 = vpop.f32.mrf.mxu0 }
 0x398   :  { %v2649_v4 = vpop.f32.mrf.mxu2  ;;  %vm2947_vm8 = vcmp.gt.f32.partialorder %v2929_v27, 0.0  ;;  %v2963_v47 = vmul.f32 0.2, %v2929_v27 }
 0x399   :  { %vm2670_vm9 = vcmp.gt.f32.partialorder %v2649_v4, 0.0  ;;  %v2686_v45 = vmul.f32 0.2, %v2649_v4  ;;  %v2254_v52 = vpop.f32.mrf.mxu3 }
 0x39a   :  { %v2278_v58 = vadd.f32 %v2254_v52, %v6777_v18  ;;  %v2979_v9 = vsel %vm2947_vm8, %v2929_v27, %v2963_v47  ;;  %v2538_v38 = vpop.f32.mrf.mxu1  ;;  %v5529_v18 = vld [vmem:[#allocation4 + $0x188] sm:$0xff] }
 0x39b   :  { %v2702_v44 = vsel %vm2670_vm9, %v2649_v4, %v2686_v45  ;;  %v2987_v46 = vpack.c.bf16 %v2979_v9, %v2978_v31  ;;  %3602 = vmatpush.bf16.msra.mxu1 %v5529_v18 }
 0x39c   :  { %v2711_v41 = vpack.c.bf16 %v2702_v44, %v2701_v17  ;;  %v6985_v29 = vadd.f32 %v6939_v20, %v2278_v58 }
 0x39d   :  { %5259 = vmatmul.msk.bf16.gmra.mxu2 %vm136_vm0, %v3133_v14  ;;  %5235 = vmatmul.msk.bf16.gmra.mxu1 %vm136_vm0, %v2987_v46  ;;  %v5334_v14 = vld [vmem:[%s7543_s0 + $0x390] sm:$0xff] }
 0x39e   :  { %5186 = vmatmul.msk.bf16.gmra.mxu3 %vm136_vm0, %v2711_v41  ;;  %v3679_v26 = vpack.c.bf16 %v5335_v62, %v5334_v14 }
 0x39f   :  { %v3443_v59 = vpop.f32.mrf.mxu0  ;;  %3603 = vmatpush.bf16.msra.mxu1 %v5528_v36 }
 0x3a0   :  { %v2652_v60 = vpop.f32.mrf.mxu2  ;;  %v3499_v50 = vmul.f32 0.2, %v3443_v59  ;;  %vm3483_vm10 = vcmp.gt.f32.partialorder %v3443_v59, 0.0 }
 0x3a1   :  { %v2257_v35 = vpop.f32.mrf.mxu3  ;;  %v2687_v25 = vmul.f32 0.2, %v2652_v60  ;;  %vm2671_vm11 = vcmp.gt.f32.partialorder %v2652_v60, 0.0 }
 0x3a2   :  { %v2279_v1 = vadd.f32 %v2257_v35, %v6787_v2  ;;  %v6991_v42 = vpop.f32.mrf.mxu1  ;;  %5396 = vmatmul.msk.bf16.vlgmr.msrb.gmra.mxu0 %vm136_vm0, %v3953_v40  ;;  %v3515_v48 = vsel %vm3483_vm10, %v3443_v59, %v3499_v50  ;;  %v5385_v35 = vld [vmem:[%s7543_s0 + $0x2a1] sm:$0xff]  ;;  %v5534_v50 = vld [vmem:[#allocation4 + $0x1b0] sm:$0xff] }
 0x3a3   :  { %v2703_v53 = vsel %vm2671_vm11, %v2652_v60, %v2687_v25  ;;  %v5384_v60 = vld [vmem:[%s7543_s0 + $0x291] sm:$0xff]  ;;  %3877 = vmatpush.bf16.msra.mxu3 %v5534_v50 }
 0x3a4   :  { %v6995_v20 = vadd.f32 %v6951_v0, %v2279_v1 }
 0x3a7   :  { %v3445_v2 = vpop.f32.mrf.mxu0 }
 0x3a8   :  { %v2654_v57 = vpop.f32.mrf.mxu2  ;;  %vm3484_vm12 = vcmp.gt.f32.partialorder %v3445_v2, 0.0  ;;  %v3500_v51 = vmul.f32 0.2, %v3445_v2 }
 0x3a9   :  { %vm2672_vm13 = vcmp.gt.f32.partialorder %v2654_v57, 0.0  ;;  %v2688_v0 = vmul.f32 0.2, %v2654_v57  ;;  %v2259_v63 = vpop.f32.mrf.mxu3 }
 0x3aa   :  { %v2280_v23 = vadd.f32 %v2259_v63, %v6803_v22  ;;  %v3516_v3 = vsel %vm3484_vm12, %v3445_v2, %v3500_v51  ;;  %v3054_v55 = vpop.f32.mrf.mxu1  ;;  %v3954_v22 = vpack.c.bf16 %v5383_v43, %v5382_v61  ;;  %v5336_v51 = vld [vmem:[%s7543_s0 + $0x3b0] sm:$0xff] }
 0x3ab   :  { %v2704_v56 = vsel %vm2672_vm13, %v2654_v57, %v2688_v0  ;;  %v3531_v33 = vpack.c.bf16 %v3516_v3, %v3515_v48  ;;  %v5337_v0 = vld [vmem:[%s7543_s0 + $0x3c0] sm:$0xff] }
 0x3ac   :  { %v2712_v15 = vpack.c.bf16 %v2704_v56, %v2703_v53  ;;  %v7011_v37 = vadd.f32 %v6966_v49, %v2280_v23  ;;  %v3680_v56 = vpack.c.bf16 %v5337_v0, %v5336_v51 }
 0x3ad   :  { %5348 = vmatmul.msk.bf16.vlgmr.msra.gmra.mxu2 %vm136_vm0, %v3678_v21  ;;  %5324 = vmatmul.msk.bf16.vlgmr.msra.gmra.mxu1 %vm136_vm0, %v3531_v33 }
 0x3ae   :  { %5187 = vmatmul.msk.bf16.gmra.mxu3 %vm136_vm0, %v2712_v15 }
 0x3af   :  { %v3448_v27 = vpop.f32.mrf.mxu0 }
 0x3b0   :  { %v3167_v4 = vpop.f32.mrf.mxu2  ;;  %v3501_v49 = vmul.f32 0.2, %v3448_v27  ;;  %vm3485_vm14 = vcmp.gt.f32.partialorder %v3448_v27, 0.0 }
 0x3b1   :  { %v2262_v31 = vpop.f32.mrf.mxu3  ;;  %v3223_v58 = vmul.f32 0.2, %v3167_v4  ;;  %vm3207_vm15 = vcmp.gt.f32.partialorder %v3167_v4, 0.0 }
 0x3b2   :  { %v2281_v47 = vadd.f32 %v2262_v31, %v6815_v11  ;;  %v7017_v45 = vpop.f32.mrf.mxu1  ;;  %5397 = vmatmul.msk.bf16.gmra.mxu0 %vm136_vm0, %v3954_v22  ;;  %v3517_v17 = vsel %vm3485_vm14, %v3448_v27, %v3501_v49  ;;  %v5387_v31 = vld [vmem:[%s7543_s0 + $0x2c1] sm:$0xff] }
 0x3b3   :  { %v3239_v40 = vsel %vm3207_vm15, %v3167_v4, %v3223_v58  ;;  %v5386_v4 = vld [vmem:[%s7543_s0 + $0x2b1] sm:$0xff] }
 0x3b4   :  { %v7020_v52 = vadd.f32 %v2538_v38, %v2281_v47 }
 0x3b7   :  { %v3450_v9 = vpop.f32.mrf.mxu0 }
 0x3b8   :  { %v3169_v11 = vpop.f32.mrf.mxu2  ;;  %vm3486_vm1 = vcmp.gt.f32.partialorder %v3450_v9, 0.0  ;;  %v3502_v44 = vmul.f32 0.2, %v3450_v9 }
 0x3b9   :  { %vm3208_vm2 = vcmp.gt.f32.partialorder %v3169_v11, 0.0  ;;  %v3224_v38 = vmul.f32 0.2, %v3169_v11  ;;  %v2264_v46 = vpop.f32.mrf.mxu3 }
 0x3ba   :  { %v2282_v39 = vadd.f32 %v2264_v46, %v6833_v13  ;;  %v3518_v41 = vsel %vm3486_vm1, %v3450_v9, %v3502_v44  ;;  %v3059_v18 = vpop.f32.mrf.mxu1  ;;  %v3955_v13 = vpack.c.bf16 %v5385_v35, %v5384_v60  ;;  %v5338_v44 = vld [vmem:[%s7543_s0 + $0x3d0] sm:$0xff] }
 0x3bb   :  { %v3240_v28 = vsel %vm3208_vm2, %v3169_v11, %v3224_v38  ;;  %v3532_v59 = vpack.c.bf16 %v3518_v41, %v3517_v17  ;;  %v5339_v38 = vld [vmem:[%s7543_s0 + $0x3e0] sm:$0xff] }
 0x3bc   :  { %v3255_v36 = vpack.c.bf16 %v3240_v28, %v3239_v40  ;;  %v7036_v1 = vadd.f32 %v6991_v42, %v2282_v39  ;;  %v3681_v28 = vpack.c.bf16 %v5339_v38, %v5338_v44 }
 0x3bd   :  { %5349 = vmatmul.msk.bf16.gmra.mxu2 %vm136_vm0, %v3679_v26  ;;  %5325 = vmatmul.msk.bf16.gmra.mxu1 %vm136_vm0, %v3532_v59 }
 0x3be   :  { %5276 = vmatmul.msk.bf16.vlgmr.msrb.gmra.mxu3 %vm136_vm0, %v3255_v36 }
 0x3bf   :  { %v3453_v30 = vpop.f32.mrf.mxu0 }
 0x3c0   :  { %v3172_v8 = vpop.f32.mrf.mxu2  ;;  %v3503_v48 = vmul.f32 0.2, %v3453_v30  ;;  %vm3487_vm3 = vcmp.gt.f32.partialorder %v3453_v30, 0.0 }
 0x3c1   :  { %v2779_v25 = vpop.f32.mrf.mxu3  ;;  %v3225_v63 = vmul.f32 0.2, %v3172_v8  ;;  %vm3209_vm4 = vcmp.gt.f32.partialorder %v3172_v8, 0.0 }
 0x3c2   :  { %v2819_v2 = vadd.f32 %v2779_v25, %v6842_v7  ;;  %v7042_v57 = vpop.f32.mrf.mxu1  ;;  %5398 = vmatmul.msk.bf16.gmra.mxu0 %vm136_vm0, %v3955_v13  ;;  %v3519_v23 = vsel %vm3487_vm3, %v3453_v30, %v3503_v48  ;;  %v5388_v30 = vld [vmem:[%s7543_s0 + $0x2e1] sm:$0xff] }
 0x3c3   :  { %v3241_v15 = vsel %vm3209_vm4, %v3172_v8, %v3225_v63  ;;  %v5389_v8 = vld [vmem:[%s7543_s0 + $0x2f1] sm:$0xff]  ;;  %v5533_v48 = vld [vmem:[#allocation4 + $0x1a8] sm:$0xff] }
 0x3c4   :  { %v7045_v42 = vadd.f32 %v3054_v55, %v2819_v2  ;;  %3878 = vmatpush.bf16.msra.mxu3 %v5533_v48 }
 0x3c7   :  { %v3455_v21 = vpop.f32.mrf.mxu0 }
 0x3c8   :  { %v3174_v7 = vpop.f32.mrf.mxu2  ;;  %vm3488_vm5 = vcmp.gt.f32.partialorder %v3455_v21, 0.0  ;;  %v3504_v3 = vmul.f32 0.2, %v3455_v21 }
 0x3c9   :  { %vm3210_vm6 = vcmp.gt.f32.partialorder %v3174_v7, 0.0  ;;  %v3226_v55 = vmul.f32 0.2, %v3174_v7  ;;  %v2781_v53 = vpop.f32.mrf.mxu3 }
 0x3ca   :  { %v2820_v33 = vadd.f32 %v2781_v53, %v6858_v10  ;;  %v3520_v61 = vsel %vm3488_vm5, %v3455_v21, %v3504_v3  ;;  %v3064_v43 = vpop.f32.mrf.mxu1  ;;  %v3956_v10 = vpack.c.bf16 %v5387_v31, %v5386_v4  ;;  %v5340_v3 = vld [vmem:[%s7543_s0 + $0x400] sm:$0xff] }
 0x3cb   :  { %v3242_v22 = vsel %vm3210_vm6, %v3174_v7, %v3226_v55  ;;  %v3533_v27 = vpack.c.bf16 %v3520_v61, %v3519_v23  ;;  %v5341_v55 = vld [vmem:[%s7543_s0 + $0x410] sm:$0xff] }
 0x3cc   :  { %v3256_v47 = vpack.c.bf16 %v3242_v22, %v3241_v15  ;;  %v7061_v49 = vadd.f32 %v7017_v45, %v2820_v33  ;;  %v3682_v22 = vpack.c.bf16 %v5341_v55, %v5340_v3 }
 0x3cd   :  { %5350 = vmatmul.msk.bf16.gmra.mxu2 %vm136_vm0, %v3680_v56  ;;  %5326 = vmatmul.msk.bf16.gmra.mxu1 %vm136_vm0, %v3533_v27 }
 0x3ce   :  { %5277 = vmatmul.msk.bf16.gmra.mxu3 %vm136_vm0, %v3256_v47 }
 0x3cf   :  { %v3458_v14 = vpop.f32.mrf.mxu0 }
 0x3d0   :  { %v3177_v62 = vpop.f32.mrf.mxu2  ;;  %v3505_v45 = vmul.f32 0.2, %v3458_v14  ;;  %vm3489_vm7 = vcmp.gt.f32.partialorder %v3458_v14, 0.0 }
 0x3d1   :  { %v2784_v58 = vpop.f32.mrf.mxu3  ;;  %v3227_v46 = vmul.f32 0.2, %v3177_v62  ;;  %vm3211_vm8 = vcmp.gt.f32.partialorder %v3177_v62, 0.0 }
 0x3d2   :  { %v2821_v9 = vadd.f32 %v2784_v58, %v6867_v16  ;;  %v7067_v11 = vpop.f32.mrf.mxu1  ;;  %5399 = vmatmul.msk.bf16.gmra.mxu0 %vm136_vm0, %v3956_v10  ;;  %v3521_v39 = vsel %vm3489_vm7, %v3458_v14, %v3505_v45  ;;  %v5391_v58 = vld [vmem:[%s7543_s0 + $0x311] sm:$0xff] }
 0x3d3   :  { %v3243_v36 = vsel %vm3211_vm8, %v3177_v62, %v3227_v46  ;;  %v5390_v62 = vld [vmem:[%s7543_s0 + $0x301] sm:$0xff] }
 0x3d4   :  { %v7070_v17 = vadd.f32 %v3059_v18, %v2821_v9 }
 0x3d7   :  { %v3460_v26 = vpop.f32.mrf.mxu0 }
 0x3d8   :  { %v3179_v16 = vpop.f32.mrf.mxu2  ;;  %vm3490_vm9 = vcmp.gt.f32.partialorder %v3460_v26, 0.0  ;;  %v3506_v41 = vmul.f32 0.2, %v3460_v26 }
 0x3d9   :  { %vm3212_vm10 = vcmp.gt.f32.partialorder %v3179_v16, 0.0  ;;  %v3228_v18 = vmul.f32 0.2, %v3179_v16  ;;  %v2786_v40 = vpop.f32.mrf.mxu3 }
 0x3da   :  { %v2822_v59 = vadd.f32 %v2786_v40, %v6883_v34  ;;  %v3522_v60 = vsel %vm3490_vm9, %v3460_v26, %v3506_v41  ;;  %v3069_v35 = vpop.f32.mrf.mxu1  ;;  %v3957_v34 = vpack.c.bf16 %v5389_v8, %v5388_v30  ;;  %v5342_v41 = vld [vmem:[%s7543_s0 + $0x420] sm:$0xff] }
 0x3db   :  { %v3244_v13 = vsel %vm3212_vm10, %v3179_v16, %v3228_v18  ;;  %v3534_v50 = vpack.c.bf16 %v3522_v60, %v3521_v39  ;;  %v5343_v18 = vld [vmem:[%s7543_s0 + $0x430] sm:$0xff] }
 0x3dc   :  { %v3257_v25 = vpack.c.bf16 %v3244_v13, %v3243_v36  ;;  %v7086_v2 = vadd.f32 %v7042_v57, %v2822_v59  ;;  %v3683_v13 = vpack.c.bf16 %v5343_v18, %v5342_v41 }
 0x3dd   :  { %5351 = vmatmul.msk.bf16.gmra.mxu2 %vm136_vm0, %v3681_v28  ;;  %5327 = vmatmul.msk.bf16.gmra.mxu1 %vm136_vm0, %v3534_v50 }
 0x3de   :  { %5278 = vmatmul.msk.bf16.gmra.mxu3 %vm136_vm0, %v3257_v25 }
 0x3df   :  { %v3463_v51 = vpop.f32.mrf.mxu0 }
 0x3e0   :  { %v3182_v0 = vpop.f32.mrf.mxu2  ;;  %v3507_v23 = vmul.f32 0.2, %v3463_v51  ;;  %vm3491_vm11 = vcmp.gt.f32.partialorder %v3463_v51, 0.0 }
 0x3e1   :  { %v2789_v63 = vpop.f32.mrf.mxu3  ;;  %v3229_v53 = vmul.f32 0.2, %v3182_v0  ;;  %vm3213_vm12 = vcmp.gt.f32.partialorder %v3182_v0, 0.0 }
 0x3e2   :  { %v2823_v21 = vadd.f32 %v2789_v63, %v6892_v12  ;;  %v7092_v7 = vpop.f32.mrf.mxu1  ;;  %5400 = vmatmul.msk.bf16.gmra.mxu0 %vm136_vm0, %v3957_v34  ;;  %v3523_v33 = vsel %vm3491_vm11, %v3463_v51, %v3507_v23  ;;  %v5392_v51 = vld [vmem:[%s7543_s0 + $0x321] sm:$0xff] }
 0x3e3   :  { %v3245_v47 = vsel %vm3213_vm12, %v3182_v0, %v3229_v53  ;;  %v5393_v0 = vld [vmem:[%s7543_s0 + $0x331] sm:$0xff]  ;;  %v5532_v23 = vld [vmem:[#allocation4 + $0x1a0] sm:$0xff] }
 0x3e4   :  { %v7095_v57 = vadd.f32 %v3064_v43, %v2823_v21  ;;  %3879 = vmatpush.bf16.msra.mxu3 %v5532_v23 }
 0x3e7   :  { %v3465_v56 = vpop.f32.mrf.mxu0 }
 0x3e8   :  { %v3184_v12 = vpop.f32.mrf.mxu2  ;;  %vm3492_vm13 = vcmp.gt.f32.partialorder %v3465_v56, 0.0  ;;  %v3508_v61 = vmul.f32 0.2, %v3465_v56 }
 0x3e9   :  { %vm3214_vm14 = vcmp.gt.f32.partialorder %v3184_v12, 0.0  ;;  %v3230_v43 = vmul.f32 0.2, %v3184_v12  ;;  %v2791_v15 = vpop.f32.mrf.mxu3 }
 0x3ea   :  { %v2824_v27 = vadd.f32 %v2791_v15, %v6908_v19  ;;  %v3524_v4 = vsel %vm3492_vm13, %v3465_v56, %v3508_v61  ;;  %v3074_v31 = vpop.f32.mrf.mxu1  ;;  %v3958_v19 = vpack.c.bf16 %v5391_v58, %v5390_v62  ;;  %v5344_v61 = vld [vmem:[%s7543_s0 + $0x440] sm:$0xff] }
 0x3eb   :  { %v3246_v10 = vsel %vm3214_vm14, %v3184_v12, %v3230_v43  ;;  %v3535_v14 = vpack.c.bf16 %v3524_v4, %v3523_v33  ;;  %v5345_v43 = vld [vmem:[%s7543_s0 + $0x450] sm:$0xff] }
 0x3ec   :  { %v3258_v9 = vpack.c.bf16 %v3246_v10, %v3245_v47  ;;  %v7111_v45 = vadd.f32 %v7067_v11, %v2824_v27  ;;  %v3684_v10 = vpack.c.bf16 %v5345_v43, %v5344_v61  ;;  %v5543_v61 = vld [vmem:[#allocation4 + $0x1f8] sm:$0xff] }
 0x3ed   :  { %5352 = vmatmul.msk.bf16.gmra.mxu2 %vm136_vm0, %v3682_v22  ;;  %5328 = vmatmul.msk.bf16.gmra.mxu1 %vm136_vm0, %v3535_v14 }
 0x3ee   :  { %5279 = vmatmul.msk.bf16.gmra.mxu3 %vm136_vm0, %v3258_v9 }
 0x3ef   :  { %v3468_v44 = vpop.f32.mrf.mxu0  ;;  %4426 = vmatpush.bf16.msrb.mxu3 %v5543_v61 }
 0x3f0   :  { %v3187_v38 = vpop.f32.mrf.mxu2  ;;  %v3509_v11 = vmul.f32 0.2, %v3468_v44  ;;  %vm3493_vm15 = vcmp.gt.f32.partialorder %v3468_v44, 0.0 }
 0x3f1   :  { %v2794_v46 = vpop.f32.mrf.mxu3  ;;  %v3231_v40 = vmul.f32 0.2, %v3187_v38  ;;  %vm3215_vm1 = vcmp.gt.f32.partialorder %v3187_v38, 0.0 }
 0x3f2   :  { %v2825_v26 = vadd.f32 %v2794_v46, %v6917_v54  ;;  %v7117_v16 = vpop.f32.mrf.mxu1  ;;  %5401 = vmatmul.msk.bf16.gmra.mxu0 %vm136_vm0, %v3958_v19  ;;  %v3525_v59 = vsel %vm3493_vm15, %v3468_v44, %v3509_v11  ;;  %v5395_v46 = vld [vmem:[%s7543_s0 + $0x351] sm:$0xff] }
 0x3f3   :  { %v3247_v25 = vsel %vm3215_vm1, %v3187_v38, %v3231_v40  ;;  %v5394_v38 = vld [vmem:[%s7543_s0 + $0x341] sm:$0xff] }
 0x3f4   :  { %v7120_v39 = vadd.f32 %v3069_v35, %v2825_v26 }
 0x3f7   :  { %v3470_v28 = vpop.f32.mrf.mxu0 }
 0x3f8   :  { %v3189_v54 = vpop.f32.mrf.mxu2  ;;  %vm3494_vm2 = vcmp.gt.f32.partialorder %v3470_v28, 0.0  ;;  %v3510_v60 = vmul.f32 0.2, %v3470_v28 }
 0x3f9   :  { %vm3216_vm3 = vcmp.gt.f32.partialorder %v3189_v54, 0.0  ;;  %v3232_v35 = vmul.f32 0.2, %v3189_v54  ;;  %v2796_v36 = vpop.f32.mrf.mxu3 }
 0x3fa   :  { %v2826_v50 = vadd.f32 %v2796_v36, %v6933_v24  ;;  %v3526_v30 = vsel %vm3494_vm2, %v3470_v28, %v3510_v60  ;;  %v3079_v8 = vpop.f32.mrf.mxu1  ;;  %v3959_v24 = vpack.c.bf16 %v5393_v0, %v5392_v51  ;;  %v5539_v60 = vld [vmem:[#allocation4 + $0x1d8] sm:$0xff]  ;;  %v5347_v36 = vld [vmem:[%s7543_s0 + $0x470] sm:$0xff] }
 0x3fb   :  { %v3248_v34 = vsel %vm3216_vm3, %v3189_v54, %v3232_v35  ;;  %v3536_v48 = vpack.c.bf16 %v3526_v30, %v3525_v59  ;;  %v5346_v35 = vld [vmem:[%s7543_s0 + $0x460] sm:$0xff]  ;;  %4151 = vmatpush.bf16.msrb.mxu1 %v5539_v60  ;;  %v5538_v51 = vld [vmem:[#allocation4 + $0x1d0] sm:$0xff] }
 0x3fc   :  { %v3259_v63 = vpack.c.bf16 %v3248_v34, %v3247_v25  ;;  %v7136_v21 = vadd.f32 %v7092_v7, %v2826_v50 }
 0x3fd   :  { %5353 = vmatmul.msk.bf16.gmra.mxu2 %vm136_vm0, %v3683_v13  ;;  %5329 = vmatmul.msk.bf16.gmra.mxu1 %vm136_vm0, %v3536_v48  ;;  %v3685_v48 = vpack.c.bf16 %v5347_v36, %v5346_v35 }
 0x3fe   :  { %5280 = vmatmul.msk.bf16.gmra.mxu3 %vm136_vm0, %v3259_v63 }
 0x3ff   :  { %v3473_v3 = vpop.f32.mrf.mxu0  ;;  %4152 = vmatpush.bf16.msrb.mxu1 %v5538_v51 }
 0x400   :  { %v3192_v55 = vpop.f32.mrf.mxu2  ;;  %v3511_v33 = vmul.f32 0.2, %v3473_v3  ;;  %vm3495_vm4 = vcmp.gt.f32.partialorder %v3473_v3, 0.0 }
 0x401   :  { %v2799_v53 = vpop.f32.mrf.mxu3  ;;  %v3233_v15 = vmul.f32 0.2, %v3192_v55  ;;  %vm3217_vm5 = vcmp.gt.f32.partialorder %v3192_v55, 0.0 }
 0x402   :  { %v2827_v56 = vadd.f32 %v2799_v53, %v6942_v5  ;;  %v7142_v12 = vpop.f32.mrf.mxu1  ;;  %5402 = vmatmul.msk.bf16.gmra.mxu0 %vm136_vm0, %v3959_v24  ;;  %v3527_v27 = vsel %vm3495_vm4, %v3473_v3, %v3511_v33  ;;  %v5537_v33 = vld [vmem:[#allocation4 + $0x1c8] sm:$0xff] }
 0x403   :  { %v3249_v9 = vsel %vm3217_vm5, %v3192_v55, %v3233_v15  ;;  %4153 = vmatpush.bf16.msrb.mxu1 %v5537_v33 }
 0x404   :  { %v7145_v7 = vadd.f32 %v3074_v31, %v2827_v56 }
 0x407   :  { %v3475_v22 = vpop.f32.mrf.mxu0 }
 0x408   :  { %v3194_v5 = vpop.f32.mrf.mxu2  ;;  %vm3496_vm6 = vcmp.gt.f32.partialorder %v3475_v22, 0.0  ;;  %v3512_v4 = vmul.f32 0.2, %v3475_v22 }
 0x409   :  { %vm3218_vm7 = vcmp.gt.f32.partialorder %v3194_v5, 0.0  ;;  %v3234_v31 = vmul.f32 0.2, %v3194_v5  ;;  %v2801_v47 = vpop.f32.mrf.mxu3 }
 0x40a   :  { %v2828_v14 = vadd.f32 %v2801_v47, %v6960_v6  ;;  %v3528_v62 = vsel %vm3496_vm6, %v3475_v22, %v3512_v4  ;;  %v3084_v58 = vpop.f32.mrf.mxu1  ;;  %v3960_v6 = vpack.c.bf16 %v5395_v46, %v5394_v38  ;;  %v5536_v22 = vld [vmem:[#allocation4 + $0x1c0] sm:$0xff] }
 0x40b   :  { %v3250_v19 = vsel %vm3218_vm7, %v3194_v5, %v3234_v31  ;;  %v3537_v44 = vpack.c.bf16 %v3528_v62, %v3527_v27  ;;  %4154 = vmatpush.bf16.msrb.mxu1 %v5536_v22  ;;  %v5428_v31 = vld [vmem:[%s7543_s0 + $0x371] sm:$0xff]  ;;  %v5429_v47 = vld [vmem:[%s7543_s0 + $0x381] sm:$0xff] }
 0x40c   :  { %v3260_v26 = vpack.c.bf16 %v3250_v19, %v3249_v9  ;;  %v7161_v11 = vadd.f32 %v7117_v16, %v2828_v14 }
 0x40d   :  { %5354 = vmatmul.msk.bf16.gmra.mxu2 %vm136_vm0, %v3684_v10  ;;  %5330 = vmatmul.msk.bf16.gmra.mxu1 %vm136_vm0, %v3537_v44  ;;  %v4228_v44 = vpack.c.bf16 %v5429_v47, %v5428_v31  ;;  %v5433_v47 = vld [vmem:[%s7543_s0 + $0x3c1] sm:$0xff] }
 0x40e   :  { %5281 = vmatmul.msk.bf16.gmra.mxu3 %vm136_vm0, %v3260_v26 }
 0x40f   :  { %v3478_v41 = vpop.f32.mrf.mxu0 }
 0x410   :  { %v3197_v18 = vpop.f32.mrf.mxu2  ;;  %v3513_v16 = vmul.f32 0.2, %v3478_v41  ;;  %vm3497_vm8 = vcmp.gt.f32.partialorder %v3478_v41, 0.0 }
 0x411   :  { %v2804_v40 = vpop.f32.mrf.mxu3  ;;  %v3235_v13 = vmul.f32 0.2, %v3197_v18  ;;  %vm3219_vm9 = vcmp.gt.f32.partialorder %v3197_v18, 0.0 }
 0x412   :  { %v2829_v28 = vadd.f32 %v2804_v40, %v6969_v32  ;;  %v7167_v54 = vpop.f32.mrf.mxu1  ;;  %5403 = vmatmul.msk.bf16.gmra.mxu0 %vm136_vm0, %v3960_v6  ;;  %v3529_v30 = vsel %vm3497_vm8, %v3478_v41, %v3513_v16 }
 0x413   :  { %v3251_v23 = vsel %vm3219_vm9, %v3197_v18, %v3235_v13 }
 0x414   :  { %v7170_v59 = vadd.f32 %v3079_v8, %v2829_v28 }
 0x417   :  { %v3480_v32 = vpop.f32.mrf.mxu0 }
 0x418   :  { %v3199_v50 = vpop.f32.mrf.mxu2  ;;  %vm3498_vm10 = vcmp.gt.f32.partialorder %v3480_v32, 0.0  ;;  %v3514_v8 = vmul.f32 0.2, %v3480_v32 }
 0x419   :  { %vm3220_vm11 = vcmp.gt.f32.partialorder %v3199_v50, 0.0  ;;  %v3236_v25 = vmul.f32 0.2, %v3199_v50  ;;  %v2806_v34 = vpop.f32.mrf.mxu3 }
 0x41a   :  { %v2830_v0 = vadd.f32 %v2806_v34, %v6985_v29  ;;  %v3530_v63 = vsel %vm3498_vm10, %v3480_v32, %v3514_v8  ;;  %v3089_v24 = vpop.f32.mrf.mxu1 }
 0x41b   :  { %v3252_v3 = vsel %vm3220_vm11, %v3199_v50, %v3236_v25  ;;  %v3538_v55 = vpack.c.bf16 %v3530_v63, %v3529_v30  ;;  %v5431_v50 = vld [vmem:[%s7543_s0 + $0x3a1] sm:$0xff] }
 0x41c   :  { %v3261_v53 = vpack.c.bf16 %v3252_v3, %v3251_v23  ;;  %v7180_v56 = vadd.f32 %v7142_v12, %v2830_v0 }
 0x41d   :  { %5355 = vmatmul.msk.bf16.gmra.mxu2 %vm136_vm0, %v3685_v48  ;;  %5331 = vmatmul.msk.bf16.gmra.mxu1 %vm136_vm0, %v3538_v55 }
 0x41e   :  { %5282 = vmatmul.msk.bf16.gmra.mxu3 %vm136_vm0, %v3261_v53 }
 0x41f   :  { %v3994_v43 = vpop.f32.mrf.mxu0 }
 0x420   :  { %v3202_v29 = vpop.f32.mrf.mxu2  ;;  %v4050_v4 = vmul.f32 0.2, %v3994_v43  ;;  %vm4034_vm12 = vcmp.gt.f32.partialorder %v3994_v43, 0.0 }
 0x421   :  { %v2809_v15 = vpop.f32.mrf.mxu3  ;;  %v3237_v10 = vmul.f32 0.2, %v3202_v29  ;;  %vm3221_vm13 = vcmp.gt.f32.partialorder %v3202_v29, 0.0 }
 0x422   :  { %v2831_v5 = vadd.f32 %v2809_v15, %v6995_v20  ;;  %v3091_v27 = vpop.f32.mrf.mxu1  ;;  %v4066_v9 = vsel %vm4034_vm12, %v3994_v43, %v4050_v4  ;;  %v5542_v43 = vld [vmem:[#allocation4 + $0x1f0] sm:$0xff] }
 0x423   :  { %v3253_v6 = vsel %vm3221_vm13, %v3202_v29, %v3237_v10  ;;  %4427 = vmatpush.bf16.msrb.mxu3 %v5542_v43  ;;  %v5541_v43 = vld [vmem:[#allocation4 + $0x1e8] sm:$0xff] }
 0x424   :  { %v7186_v12 = vadd.f32 %v3084_v58, %v2831_v5 }
 0x427   :  { %v3996_v14 = vpop.f32.mrf.mxu0  ;;  %4428 = vmatpush.bf16.msrb.mxu3 %v5541_v43  ;;  %v5540_v43 = vld [vmem:[#allocation4 + $0x1e0] sm:$0xff] }
 0x428   :  { %v3204_v62 = vpop.f32.mrf.mxu2  ;;  %vm4035_vm14 = vcmp.gt.f32.partialorder %v3996_v14, 0.0  ;;  %v4051_v20 = vmul.f32 0.2, %v3996_v14 }
 0x429   :  { %vm3222_vm15 = vcmp.gt.f32.partialorder %v3204_v62, 0.0  ;;  %v3238_v58 = vmul.f32 0.2, %v3204_v62  ;;  %v2811_v19 = vpop.f32.mrf.mxu3 }
 0x42a   :  { %v2832_v38 = vadd.f32 %v2811_v19, %v7011_v37  ;;  %v4067_v46 = vsel %vm4035_vm14, %v3996_v14, %v4051_v20  ;;  %v3605_v26 = vpop.f32.mrf.mxu1 }
 0x42b   :  { %v3254_v41 = vsel %vm3222_vm15, %v3204_v62, %v3238_v58  ;;  %v4082_v18 = vpack.c.bf16 %v4067_v46, %v4066_v9  ;;  %4429 = vmatpush.bf16.msrb.mxu3 %v5540_v43 }
 0x42c   :  { %v3262_v40 = vpack.c.bf16 %v3254_v41, %v3253_v6  ;;  %v7196_v28 = vadd.f32 %v7167_v54, %v2832_v38  ;;  %v5430_v54 = vld [vmem:[%s7543_s0 + $0x391] sm:$0xff] }
 0x42d   :  { %5444 = vmatmul.msk.bf16.vlgmr.msrb.gmra.mxu2 %vm136_vm0, %v4228_v44  ;;  %5420 = vmatmul.msk.bf16.vlgmr.msrb.gmra.mxu1 %vm136_vm0, %v4082_v18  ;;  %v4229_v0 = vpack.c.bf16 %v5431_v50, %v5430_v54  ;;  %v5435_v50 = vld [vmem:[%s7543_s0 + $0x3e1] sm:$0xff] }
 0x42e   :  { %5283 = vmatmul.msk.bf16.gmra.mxu3 %vm136_vm0, %v3262_v40 }
 0x42f   :  { %v3999_v16 = vpop.f32.mrf.mxu0 }
 0x430   :  { %v3719_v60 = vpop.f32.mrf.mxu2  ;;  %v4052_v32 = vmul.f32 0.2, %v3999_v16  ;;  %vm4036_vm1 = vcmp.gt.f32.partialorder %v3999_v16, 0.0 }
 0x431   :  { %v2814_v35 = vpop.f32.mrf.mxu3  ;;  %v3775_v30 = vmul.f32 0.2, %v3719_v60  ;;  %vm3759_vm2 = vcmp.gt.f32.partialorder %v3719_v60, 0.0 }
 0x432   :  { %v2833_v37 = vadd.f32 %v2814_v35, %v7020_v52  ;;  %v3607_v36 = vpop.f32.mrf.mxu1  ;;  %v4068_v34 = vsel %vm4036_vm1, %v3999_v16, %v4052_v32 }
 0x433   :  { %v3791_v3 = vsel %vm3759_vm2, %v3719_v60, %v3775_v30 }
 0x434   :  { %v7202_v13 = vadd.f32 %v3089_v24, %v2833_v37 }
 0x437   :  { %v4001_v8 = vpop.f32.mrf.mxu0 }
 0x438   :  { %v3721_v25 = vpop.f32.mrf.mxu2  ;;  %vm4037_vm3 = vcmp.gt.f32.partialorder %v4001_v8, 0.0  ;;  %v4053_v52 = vmul.f32 0.2, %v4001_v8 }
 0x439   :  { %vm3760_vm4 = vcmp.gt.f32.partialorder %v3721_v25, 0.0  ;;  %v3776_v48 = vmul.f32 0.2, %v3721_v25  ;;  %v2816_v51 = vpop.f32.mrf.mxu3 }
 0x43a   :  { %v2834_v63 = vadd.f32 %v2816_v51, %v7036_v1  ;;  %v4069_v24 = vsel %vm4037_vm3, %v4001_v8, %v4053_v52  ;;  %v3610_v23 = vpop.f32.mrf.mxu1 }
 0x43b   :  { %v3792_v55 = vsel %vm3760_vm4, %v3721_v25, %v3776_v48  ;;  %v4083_v53 = vpack.c.bf16 %v4069_v24, %v4068_v34 }
 0x43c   :  { %v3807_v33 = vpack.c.bf16 %v3792_v55, %v3791_v3  ;;  %v7211_v61 = vadd.f32 %v3091_v27, %v2834_v63  ;;  %v5432_v27 = vld [vmem:[%s7543_s0 + $0x3b1] sm:$0xff] }
 0x43d   :  { %5445 = vmatmul.msk.bf16.gmra.mxu2 %vm136_vm0, %v4229_v0  ;;  %5421 = vmatmul.msk.bf16.gmra.mxu1 %vm136_vm0, %v4083_v53  ;;  %v4230_v19 = vpack.c.bf16 %v5433_v47, %v5432_v27  ;;  %v5437_v47 = vld [vmem:[%s7543_s0 + $0x411] sm:$0xff] }
 0x43e   :  { %5372 = vmatmul.msk.bf16.vlgmr.msra.gmra.mxu3 %vm136_vm0, %v3807_v33 }
 0x43f   :  { %v4004_v29 = vpop.f32.mrf.mxu0 }
 0x440   :  { %v3724_v15 = vpop.f32.mrf.mxu2  ;;  %v4054_v31 = vmul.f32 0.2, %v4004_v29  ;;  %vm4038_vm5 = vcmp.gt.f32.partialorder %v4004_v29, 0.0 }
 0x441   :  { %v3329_v22 = vpop.f32.mrf.mxu3  ;;  %v3777_v10 = vmul.f32 0.2, %v3724_v15  ;;  %vm3761_vm6 = vcmp.gt.f32.partialorder %v3724_v15, 0.0 }
 0x442   :  { %v3369_v1 = vadd.f32 %v3329_v22, %v7045_v42  ;;  %v3612_v5 = vpop.f32.mrf.mxu1  ;;  %v4070_v9 = vsel %vm4038_vm5, %v4004_v29, %v4054_v31 }
 0x444   :  { %v7217_v4 = vadd.f32 %v3605_v26, %v3369_v1  ;;  %v3793_v26 = vsel %vm3761_vm6, %v3724_v15, %v3777_v10 }
 0x447   :  { %v4006_v14 = vpop.f32.mrf.mxu0 }
 0x448   :  { %v3726_v62 = vpop.f32.mrf.mxu2  ;;  %vm4039_vm7 = vcmp.gt.f32.partialorder %v4006_v14, 0.0  ;;  %v4055_v42 = vmul.f32 0.2, %v4006_v14 }
 0x449   :  { %vm3762_vm8 = vcmp.gt.f32.partialorder %v3726_v62, 0.0  ;;  %v3778_v20 = vmul.f32 0.2, %v3726_v62  ;;  %v3331_v58 = vpop.f32.mrf.mxu3 }
 0x44a   :  { %v3370_v44 = vadd.f32 %v3331_v58, %v7061_v49  ;;  %v4071_v38 = vsel %vm4039_vm7, %v4006_v14, %v4055_v42  ;;  %v3615_v46 = vpop.f32.mrf.mxu1 }
 0x44b   :  { %v3794_v6 = vsel %vm3762_vm8, %v3726_v62, %v3778_v20  ;;  %v4084_v41 = vpack.c.bf16 %v4071_v38, %v4070_v9 }
 0x44c   :  { %v3808_v18 = vpack.c.bf16 %v3794_v6, %v3793_v26  ;;  %v7226_v40 = vadd.f32 %v3607_v36, %v3370_v44  ;;  %v5434_v36 = vld [vmem:[%s7543_s0 + $0x3d1] sm:$0xff] }
 0x44d   :  { %5446 = vmatmul.msk.bf16.gmra.mxu2 %vm136_vm0, %v4230_v19  ;;  %5422 = vmatmul.msk.bf16.gmra.mxu1 %vm136_vm0, %v4084_v41  ;;  %v4231_v51 = vpack.c.bf16 %v5435_v50, %v5434_v36  ;;  %v5439_v50 = vld [vmem:[%s7543_s0 + $0x431] sm:$0xff] }
 0x44e   :  { %5373 = vmatmul.msk.bf16.gmra.mxu3 %vm136_vm0, %v3808_v18 }
 0x44f   :  { %v4009_v16 = vpop.f32.mrf.mxu0 }
 0x450   :  { %v3729_v60 = vpop.f32.mrf.mxu2  ;;  %v4056_v54 = vmul.f32 0.2, %v4009_v16  ;;  %vm4040_vm9 = vcmp.gt.f32.partialorder %v4009_v16, 0.0 }
 0x451   :  { %v3334_v35 = vpop.f32.mrf.mxu3  ;;  %v3779_v30 = vmul.f32 0.2, %v3729_v60  ;;  %vm3763_vm10 = vcmp.gt.f32.partialorder %v3729_v60, 0.0 }
 0x452   :  { %v3371_v37 = vadd.f32 %v3334_v35, %v7070_v17  ;;  %v3617_v49 = vpop.f32.mrf.mxu1  ;;  %v4072_v34 = vsel %vm4040_vm9, %v4009_v16, %v4056_v54 }
 0x454   :  { %v7232_v32 = vadd.f32 %v3610_v23, %v3371_v37  ;;  %v3795_v23 = vsel %vm3763_vm10, %v3729_v60, %v3779_v30 }
 0x457   :  { %v4011_v8 = vpop.f32.mrf.mxu0 }
 0x458   :  { %v3731_v25 = vpop.f32.mrf.mxu2  ;;  %vm4041_vm11 = vcmp.gt.f32.partialorder %v4011_v8, 0.0  ;;  %v4057_v17 = vmul.f32 0.2, %v4011_v8 }
 0x459   :  { %vm3764_vm12 = vcmp.gt.f32.partialorder %v3731_v25, 0.0  ;;  %v3780_v52 = vmul.f32 0.2, %v3731_v25  ;;  %v3336_v48 = vpop.f32.mrf.mxu3 }
 0x45a   :  { %v3372_v0 = vadd.f32 %v3336_v48, %v7086_v2  ;;  %v4073_v63 = vsel %vm4041_vm11, %v4011_v8, %v4057_v17  ;;  %v3620_v24 = vpop.f32.mrf.mxu1 }
 0x45b   :  { %v3796_v3 = vsel %vm3764_vm12, %v3731_v25, %v3780_v52  ;;  %v4085_v55 = vpack.c.bf16 %v4073_v63, %v4072_v34 }
 0x45c   :  { %v3809_v53 = vpack.c.bf16 %v3796_v3, %v3795_v23  ;;  %v7241_v33 = vadd.f32 %v3612_v5, %v3372_v0  ;;  %v5436_v5 = vld [vmem:[%s7543_s0 + $0x401] sm:$0xff] }
 0x45d   :  { %5447 = vmatmul.msk.bf16.gmra.mxu2 %vm136_vm0, %v4231_v51  ;;  %5423 = vmatmul.msk.bf16.gmra.mxu1 %vm136_vm0, %v4085_v55  ;;  %v4232_v58 = vpack.c.bf16 %v5437_v47, %v5436_v5  ;;  %v5441_v5 = vld [vmem:[%s7543_s0 + $0x451] sm:$0xff] }
 0x45e   :  { %5374 = vmatmul.msk.bf16.gmra.mxu3 %vm136_vm0, %v3809_v53 }
 0x45f   :  { %v4014_v29 = vpop.f32.mrf.mxu0 }
 0x460   :  { %v3734_v15 = vpop.f32.mrf.mxu2  ;;  %v4058_v27 = vmul.f32 0.2, %v4014_v29  ;;  %vm4042_vm13 = vcmp.gt.f32.partialorder %v4014_v29, 0.0 }
 0x461   :  { %v3339_v22 = vpop.f32.mrf.mxu3  ;;  %v3781_v10 = vmul.f32 0.2, %v3734_v15  ;;  %vm3765_vm14 = vcmp.gt.f32.partialorder %v3734_v15, 0.0 }
 0x462   :  { %v3373_v2 = vadd.f32 %v3339_v22, %v7095_v57  ;;  %v3622_v1 = vpop.f32.mrf.mxu1  ;;  %v4074_v9 = vsel %vm4042_vm13, %v4014_v29, %v4058_v27 }
 0x464   :  { %v7247_v31 = vadd.f32 %v3615_v46, %v3373_v2  ;;  %v3797_v46 = vsel %vm3765_vm14, %v3734_v15, %v3781_v10 }
 0x467   :  { %v4016_v14 = vpop.f32.mrf.mxu0 }
 0x468   :  { %v3736_v62 = vpop.f32.mrf.mxu2  ;;  %vm4043_vm15 = vcmp.gt.f32.partialorder %v4016_v14, 0.0  ;;  %v4059_v57 = vmul.f32 0.2, %v4016_v14 }
 0x469   :  { %vm3766_vm1 = vcmp.gt.f32.partialorder %v3736_v62, 0.0  ;;  %v3782_v42 = vmul.f32 0.2, %v3736_v62  ;;  %v3341_v20 = vpop.f32.mrf.mxu3 }
 0x46a   :  { %v3374_v19 = vadd.f32 %v3341_v20, %v7111_v45  ;;  %v4075_v44 = vsel %vm4043_vm15, %v4016_v14, %v4059_v57  ;;  %v3625_v38 = vpop.f32.mrf.mxu1 }
 0x46b   :  { %v3798_v26 = vsel %vm3766_vm1, %v3736_v62, %v3782_v42  ;;  %v4086_v6 = vpack.c.bf16 %v4075_v44, %v4074_v9 }
 0x46c   :  { %v3810_v41 = vpack.c.bf16 %v3798_v26, %v3797_v46  ;;  %v7256_v18 = vadd.f32 %v3617_v49, %v3374_v19  ;;  %v5438_v49 = vld [vmem:[%s7543_s0 + $0x421] sm:$0xff] }
 0x46d   :  { %5448 = vmatmul.msk.bf16.gmra.mxu2 %vm136_vm0, %v4232_v58  ;;  %5424 = vmatmul.msk.bf16.gmra.mxu1 %vm136_vm0, %v4086_v6  ;;  %v4233_v48 = vpack.c.bf16 %v5439_v50, %v5438_v49  ;;  %v5443_v49 = vld [vmem:[%s7543_s0 + $0x471] sm:$0xff] }
 0x46e   :  { %5375 = vmatmul.msk.bf16.gmra.mxu3 %vm136_vm0, %v3810_v41 }
 0x46f   :  { %v4019_v16 = vpop.f32.mrf.mxu0 }
 0x470   :  { %v3739_v60 = vpop.f32.mrf.mxu2  ;;  %v4060_v36 = vmul.f32 0.2, %v4019_v16  ;;  %vm4044_vm2 = vcmp.gt.f32.partialorder %v4019_v16, 0.0 }
 0x471   :  { %v3344_v35 = vpop.f32.mrf.mxu3  ;;  %v3783_v30 = vmul.f32 0.2, %v3739_v60  ;;  %vm3767_vm3 = vcmp.gt.f32.partialorder %v3739_v60, 0.0 }
 0x472   :  { %v3375_v37 = vadd.f32 %v3344_v35, %v7120_v39  ;;  %v3627_v45 = vpop.f32.mrf.mxu1  ;;  %v4076_v34 = vsel %vm4044_vm2, %v4019_v16, %v4060_v36 }
 0x473   :  { %v3799_v63 = vsel %vm3767_vm3, %v3739_v60, %v3783_v30 }
 0x474   :  { %v7262_v54 = vadd.f32 %v3620_v24, %v3375_v37 }
 0x477   :  { %v4021_v8 = vpop.f32.mrf.mxu0 }
 0x478   :  { %v3741_v25 = vpop.f32.mrf.mxu2  ;;  %vm4045_vm4 = vcmp.gt.f32.partialorder %v4021_v8, 0.0  ;;  %v4061_v39 = vmul.f32 0.2, %v4021_v8 }
 0x479   :  { %vm3768_vm5 = vcmp.gt.f32.partialorder %v3741_v25, 0.0  ;;  %v3784_v17 = vmul.f32 0.2, %v3741_v25  ;;  %v3346_v52 = vpop.f32.mrf.mxu3 }
 0x47a   :  { %v3376_v51 = vadd.f32 %v3346_v52, %v7136_v21  ;;  %v4077_v0 = vsel %vm4045_vm4, %v4021_v8, %v4061_v39  ;;  %v3630_v53 = vpop.f32.mrf.mxu1 }
 0x47b   :  { %v3800_v24 = vsel %vm3768_vm5, %v3741_v25, %v3784_v17  ;;  %v4087_v23 = vpack.c.bf16 %v4077_v0, %v4076_v34 }
 0x47c   :  { %v3811_v3 = vpack.c.bf16 %v3800_v24, %v3799_v63  ;;  %v7271_v55 = vadd.f32 %v3622_v1, %v3376_v51  ;;  %v5440_v1 = vld [vmem:[%s7543_s0 + $0x441] sm:$0xff] }
 0x47d   :  { %5449 = vmatmul.msk.bf16.gmra.mxu2 %vm136_vm0, %v4233_v48  ;;  %5425 = vmatmul.msk.bf16.gmra.mxu1 %vm136_vm0, %v4087_v23  ;;  %v4234_v20 = vpack.c.bf16 %v5441_v5, %v5440_v1 }
 0x47e   :  { %5376 = vmatmul.msk.bf16.gmra.mxu3 %vm136_vm0, %v3811_v3 }
 0x47f   :  { %v4024_v29 = vpop.f32.mrf.mxu0 }
 0x480   :  { %v3744_v15 = vpop.f32.mrf.mxu2  ;;  %v4062_v27 = vmul.f32 0.2, %v4024_v29  ;;  %vm4046_vm6 = vcmp.gt.f32.partialorder %v4024_v29, 0.0 }
 0x481   :  { %v3349_v22 = vpop.f32.mrf.mxu3  ;;  %v3785_v47 = vmul.f32 0.2, %v3744_v15  ;;  %vm3769_vm7 = vcmp.gt.f32.partialorder %v3744_v15, 0.0 }
 0x482   :  { %v3377_v21 = vadd.f32 %v3349_v22, %v7145_v7  ;;  %v3632_v10 = vpop.f32.mrf.mxu1  ;;  %v4078_v9 = vsel %vm4046_vm6, %v4024_v29, %v4062_v27 }
 0x483   :  { %v3801_v44 = vsel %vm3769_vm7, %v3744_v15, %v3785_v47 }
 0x484   :  { %v7277_v2 = vadd.f32 %v3625_v38, %v3377_v21 }
 0x487   :  { %v4026_v14 = vpop.f32.mrf.mxu0 }
 0x488   :  { %v3746_v62 = vpop.f32.mrf.mxu2  ;;  %vm4047_vm8 = vcmp.gt.f32.partialorder %v4026_v14, 0.0  ;;  %v4063_v7 = vmul.f32 0.2, %v4026_v14 }
 0x489   :  { %vm3770_vm9 = vcmp.gt.f32.partialorder %v3746_v62, 0.0  ;;  %v3786_v57 = vmul.f32 0.2, %v3746_v62  ;;  %v3351_v42 = vpop.f32.mrf.mxu3 }
 0x48a   :  { %v3378_v58 = vadd.f32 %v3351_v42, %v7161_v11  ;;  %v4079_v19 = vsel %vm4047_vm8, %v4026_v14, %v4063_v7  ;;  %v3635_v35 = vpop.f32.mrf.mxu1 }
 0x48b   :  { %v3802_v38 = vsel %vm3770_vm9, %v3746_v62, %v3786_v57  ;;  %v4088_v46 = vpack.c.bf16 %v4079_v19, %v4078_v9 }
 0x48c   :  { %v3812_v26 = vpack.c.bf16 %v3802_v38, %v3801_v44  ;;  %v7286_v6 = vadd.f32 %v3627_v45, %v3378_v58  ;;  %v5442_v45 = vld [vmem:[%s7543_s0 + $0x461] sm:$0xff] }
 0x48d   :  { %5450 = vmatmul.msk.bf16.gmra.mxu2 %vm136_vm0, %v4234_v20  ;;  %5426 = vmatmul.msk.bf16.gmra.mxu1 %vm136_vm0, %v4088_v46  ;;  %v4235_v17 = vpack.c.bf16 %v5443_v49, %v5442_v45 }
 0x48e   :  { %5377 = vmatmul.msk.bf16.gmra.mxu3 %vm136_vm0, %v3812_v26 }
 0x48f   :  { %v4029_v41 = vpop.f32.mrf.mxu0 }
 0x490   :  { %v3749_v16 = vpop.f32.mrf.mxu2  ;;  %v4064_v36 = vmul.f32 0.2, %v4029_v41  ;;  %vm4048_vm10 = vcmp.gt.f32.partialorder %v4029_v41, 0.0 }
 0x491   :  { %v3354_v60 = vpop.f32.mrf.mxu3  ;;  %v3787_v50 = vmul.f32 0.2, %v3749_v16  ;;  %vm3771_vm11 = vcmp.gt.f32.partialorder %v3749_v16, 0.0 }
 0x492   :  { %v3379_v37 = vadd.f32 %v3354_v60, %v7170_v59  ;;  %v4080_v25 = vsel %vm4048_vm10, %v4029_v41, %v4064_v36  ;;  %v3637_v63 = vpop.f32.mrf.mxu1 }
 0x493   :  { %v3803_v51 = vsel %vm3771_vm11, %v3749_v16, %v3787_v50 }
 0x494   :  { %v7292_v11 = vadd.f32 %v3630_v53, %v3379_v37 }
 0x497   :  { %v4031_v30 = vpop.f32.mrf.mxu0 }
 0x498   :  { %v3751_v8 = vpop.f32.mrf.mxu2  ;;  %vm4049_vm12 = vcmp.gt.f32.partialorder %v4031_v30, 0.0  ;;  %v4065_v34 = vmul.f32 0.2, %v4031_v30 }
 0x499   :  { %vm3772_vm13 = vcmp.gt.f32.partialorder %v3751_v8, 0.0  ;;  %v3788_v59 = vmul.f32 0.2, %v3751_v8  ;;  %v3356_v39 = vpop.f32.mrf.mxu3 }
 0x49a   :  { %v3380_v52 = vadd.f32 %v3356_v39, %v7180_v56  ;;  %v4081_v48 = vsel %vm4049_vm12, %v4031_v30, %v4065_v34  ;;  %v3640_v56 = vpop.f32.mrf.mxu1 }
 0x49b   :  { %v3804_v0 = vsel %vm3772_vm13, %v3751_v8, %v3788_v59  ;;  %v4089_v24 = vpack.c.bf16 %v4081_v48, %v4080_v25 }
 0x49c   :  { %v3813_v23 = vpack.c.bf16 %v3804_v0, %v3803_v51  ;;  %v7301_v3 = vadd.f32 %v3632_v10, %v3380_v52 }
 0x49d   :  { %5451 = vmatmul.msk.bf16.gmra.mxu2 %vm136_vm0, %v4235_v17  ;;  %5427 = vmatmul.msk.bf16.gmra.mxu1 %vm136_vm0, %v4089_v24 }
 0x49e   :  { %5378 = vmatmul.msk.bf16.gmra.mxu3 %vm136_vm0, %v3813_v23 }
 0x4a0   :  { %v3754_v53 = vpop.f32.mrf.mxu2 }
 0x4a1   :  { %v3359_v43 = vpop.f32.mrf.mxu3  ;;  %v3789_v22 = vmul.f32 0.2, %v3754_v53  ;;  %vm3773_vm14 = vcmp.gt.f32.partialorder %v3754_v53, 0.0 }
 0x4a2   :  { %v3381_v29 = vadd.f32 %v3359_v43, %v7186_v12  ;;  %v3642_v9 = vpop.f32.mrf.mxu1 }
 0x4a3   :  { %v3805_v47 = vsel %vm3773_vm14, %v3754_v53, %v3789_v22 }
 0x4a4   :  { %v7307_v15 = vadd.f32 %v3635_v35, %v3381_v29 }
 0x4a8   :  { %v3756_v21 = vpop.f32.mrf.mxu2 }
 0x4a9   :  { %vm3774_vm15 = vcmp.gt.f32.partialorder %v3756_v21, 0.0  ;;  %v3790_v27 = vmul.f32 0.2, %v3756_v21  ;;  %v3361_v1 = vpop.f32.mrf.mxu3 }
 0x4aa   :  { %v3382_v5 = vadd.f32 %v3361_v1, %v7196_v28  ;;  %v4156_v44 = vpop.f32.mrf.mxu1 }
 0x4ab   :  { %v3806_v10 = vsel %vm3774_vm15, %v3756_v21, %v3790_v27 }
 0x4ac   :  { %v3814_v14 = vpack.c.bf16 %v3806_v10, %v3805_v47  ;;  %v7310_v62 = vadd.f32 %v3637_v63, %v3382_v5 }
 0x4ae   :  { %5379 = vmatmul.msk.bf16.gmra.mxu3 %vm136_vm0, %v3814_v14 }
 0x4b0   :  { %v4269_v12 = vpop.f32.mrf.mxu2 }
 0x4b1   :  { %v3364_v7 = vpop.f32.mrf.mxu3  ;;  %v4325_v20 = vmul.f32 0.2, %v4269_v12  ;;  %vm4309_vm1 = vcmp.gt.f32.partialorder %v4269_v12, 0.0 }
 0x4b2   :  { %v3383_v57 = vadd.f32 %v3364_v7, %v7202_v13  ;;  %v4158_v37 = vpop.f32.mrf.mxu1 }
 0x4b3   :  { %v4341_v46 = vsel %vm4309_vm1, %v4269_v12, %v4325_v20 }
 0x4b4   :  { %v7314_v42 = vadd.f32 %v3640_v56, %v3383_v57 }
 0x4b8   :  { %v4271_v58 = vpop.f32.mrf.mxu2 }
 0x4b9   :  { %vm4310_vm2 = vcmp.gt.f32.partialorder %v4271_v58, 0.0  ;;  %v4326_v19 = vmul.f32 0.2, %v4271_v58  ;;  %v3366_v28 = vpop.f32.mrf.mxu3 }
 0x4ba   :  { %v3384_v38 = vadd.f32 %v3366_v28, %v7211_v61  ;;  %v4161_v39 = vpop.f32.mrf.mxu1 }
 0x4bb   :  { %v4342_v26 = vsel %vm4310_vm2, %v4271_v58, %v4326_v19 }
 0x4bc   :  { %v4357_v41 = vpack.c.bf16 %v4342_v26, %v4341_v46  ;;  %v7317_v16 = vadd.f32 %v3642_v9, %v3384_v38 }
 0x4be   :  { %5468 = vmatmul.msk.bf16.vlgmr.msrb.gmra.mxu3 %vm136_vm0, %v4357_v41 }
 0x4c0   :  { %v4274_v60 = vpop.f32.mrf.mxu2 }
 0x4c1   :  { %v3881_v13 = vpop.f32.mrf.mxu3  ;;  %v4327_v45 = vmul.f32 0.2, %v4274_v60  ;;  %vm4311_vm3 = vcmp.gt.f32.partialorder %v4274_v60, 0.0 }
 0x4c2   :  { %v3921_v35 = vadd.f32 %v3881_v13, %v7217_v4  ;;  %v4163_v0 = vpop.f32.mrf.mxu1 }
 0x4c3   :  { %v4343_v8 = vsel %vm4311_vm3, %v4274_v60, %v4327_v45 }
 0x4c4   :  { %v7321_v36 = vadd.f32 %v4156_v44, %v3921_v35 }
 0x4c8   :  { %v4276_v49 = vpop.f32.mrf.mxu2 }
 0x4c9   :  { %vm4312_vm4 = vcmp.gt.f32.partialorder %v4276_v49, 0.0  ;;  %v4328_v50 = vmul.f32 0.2, %v4276_v49  ;;  %v3883_v61 = vpop.f32.mrf.mxu3 }
 0x4ca   :  { %v3922_v30 = vadd.f32 %v3883_v61, %v7226_v40  ;;  %v4166_v21 = vpop.f32.mrf.mxu1 }
 0x4cb   :  { %v4344_v25 = vsel %vm4312_vm4, %v4276_v49, %v4328_v50 }
 0x4cc   :  { %v4358_v34 = vpack.c.bf16 %v4344_v25, %v4343_v8  ;;  %v7324_v59 = vadd.f32 %v4158_v37, %v3922_v30 }
 0x4ce   :  { %5469 = vmatmul.msk.bf16.gmra.mxu3 %vm136_vm0, %v4358_v34 }
 0x4d0   :  { %v4279_v4 = vpop.f32.mrf.mxu2 }
 0x4d1   :  { %v3886_v17 = vpop.f32.mrf.mxu3  ;;  %v4329_v51 = vmul.f32 0.2, %v4279_v4  ;;  %vm4313_vm5 = vcmp.gt.f32.partialorder %v4279_v4, 0.0 }
 0x4d2   :  { %v3923_v52 = vadd.f32 %v3886_v17, %v7232_v32 }
 0x4d3   :  { %v4345_v53 = vsel %vm4313_vm5, %v4279_v4, %v4329_v51 }
 0x4d4   :  { %v7328_v48 = vadd.f32 %v4161_v39, %v3923_v52 }
 0x4d8   :  { %v4281_v63 = vpop.f32.mrf.mxu2 }
 0x4d9   :  { %vm4314_vm6 = vcmp.gt.f32.partialorder %v4281_v63, 0.0  ;;  %v4330_v40 = vmul.f32 0.2, %v4281_v63  ;;  %v3888_v24 = vpop.f32.mrf.mxu3 }
 0x4da   :  { %v3924_v23 = vadd.f32 %v3888_v24, %v7241_v33 }
 0x4db   :  { %v4346_v43 = vsel %vm4314_vm6, %v4281_v63, %v4330_v40 }
 0x4dc   :  { %v4359_v29 = vpack.c.bf16 %v4346_v43, %v4345_v53  ;;  %v7331_v56 = vadd.f32 %v4163_v0, %v3924_v23 }
 0x4de   :  { %5470 = vmatmul.msk.bf16.gmra.mxu3 %vm136_vm0, %v4359_v29 }
 0x4e0   :  { %v4284_v22 = vpop.f32.mrf.mxu2 }
 0x4e1   :  { %v3891_v32 = vpop.f32.mrf.mxu3  ;;  %v4331_v5 = vmul.f32 0.2, %v4284_v22  ;;  %vm4315_vm7 = vcmp.gt.f32.partialorder %v4284_v22, 0.0 }
 0x4e2   :  { %v3925_v27 = vadd.f32 %v3891_v32, %v7247_v31 }
 0x4e3   :  { %v4347_v9 = vsel %vm4315_vm7, %v4284_v22, %v4331_v5 }
 0x4e4   :  { %v7335_v1 = vadd.f32 %v4166_v21, %v3925_v27 }
 0x4e8   :  { %v4286_v47 = vpop.f32.mrf.mxu2 }
 0x4e9   :  { %vm4316_vm8 = vcmp.gt.f32.partialorder %v4286_v47, 0.0  ;;  %v4332_v10 = vmul.f32 0.2, %v4286_v47  ;;  %v3893_v33 = vpop.f32.mrf.mxu3 }
 0x4ea   :  { %v7338_v14 = vadd.f32 %v3893_v33, %v7256_v18 }
 0x4eb   :  { %v4348_v12 = vsel %vm4316_vm8, %v4286_v47, %v4332_v10 }
 0x4ec   :  { %v4360_v7 = vpack.c.bf16 %v4348_v12, %v4347_v9  ;;  %v4168_v9 = vpop.f32.mrf.mxu1 }
 0x4ee   :  { %5471 = vmatmul.msk.bf16.gmra.mxu3 %vm136_vm0, %v4360_v7 }
 0x4f0   :  { %v4289_v57 = vpop.f32.mrf.mxu2 }
 0x4f1   :  { %v3896_v20 = vpop.f32.mrf.mxu3  ;;  %v4333_v58 = vmul.f32 0.2, %v4289_v57  ;;  %vm4317_vm9 = vcmp.gt.f32.partialorder %v4289_v57, 0.0 }
 0x4f2   :  { %v7342_v31 = vadd.f32 %v3896_v20, %v7262_v54 }
 0x4f3   :  { %v4349_v18 = vsel %vm4317_vm9, %v4289_v57, %v4333_v58 }
 0x4f8   :  { %v4291_v19 = vpop.f32.mrf.mxu2 }
 0x4f9   :  { %vm4318_vm10 = vcmp.gt.f32.partialorder %v4291_v19, 0.0  ;;  %v4334_v28 = vmul.f32 0.2, %v4291_v19  ;;  %v3898_v44 = vpop.f32.mrf.mxu3 }
 0x4fa   :  { %v7345_v38 = vadd.f32 %v3898_v44, %v7271_v55  ;;  %v4201_v44 = vadd.f32 %v4168_v9, %v7338_v14 }
 0x4fb   :  { %v4350_v46 = vsel %vm4318_vm10, %v4291_v19, %v4334_v28 }
 0x4fc   :  { %v4361_v26 = vpack.c.bf16 %v4350_v46, %v4349_v18 }
 0x4fe   :  { %5472 = vmatmul.msk.bf16.gmra.mxu3 %vm136_vm0, %v4361_v26 }
 0x500   :  { %v4294_v41 = vpop.f32.mrf.mxu2 }
 0x501   :  { %v3901_v60 = vpop.f32.mrf.mxu3  ;;  %v4335_v54 = vmul.f32 0.2, %v4294_v41  ;;  %vm4319_vm11 = vcmp.gt.f32.partialorder %v4294_v41, 0.0 }
 0x502   :  { %v7349_v13 = vadd.f32 %v3901_v60, %v7277_v2 }
 0x503   :  { %v4351_v55 = vsel %vm4319_vm11, %v4294_v41, %v4335_v54 }
 0x508   :  { %v4296_v35 = vpop.f32.mrf.mxu2 }
 0x509   :  { %vm4320_vm12 = vcmp.gt.f32.partialorder %v4296_v35, 0.0  ;;  %v4336_v37 = vmul.f32 0.2, %v4296_v35  ;;  %v3903_v45 = vpop.f32.mrf.mxu3 }
 0x50a   :  { %v7352_v49 = vadd.f32 %v3903_v45, %v7286_v6 }
 0x50b   :  { %v4352_v50 = vsel %vm4320_vm12, %v4296_v35, %v4336_v37 }
 0x50c   :  { %v4362_v61 = vpack.c.bf16 %v4352_v50, %v4351_v55 }
 0x50e   :  { %5473 = vmatmul.msk.bf16.gmra.mxu3 %vm136_vm0, %v4362_v61 }
 0x510   :  { %v4299_v30 = vpop.f32.mrf.mxu2 }
 0x511   :  { %v3906_v8 = vpop.f32.mrf.mxu3  ;;  %v4337_v2 = vmul.f32 0.2, %v4299_v30  ;;  %vm4321_vm13 = vcmp.gt.f32.partialorder %v4299_v30, 0.0 }
 0x512   :  { %v7356_v25 = vadd.f32 %v3906_v8, %v7292_v11 }
 0x513   :  { %v4353_v6 = vsel %vm4321_vm13, %v4299_v30, %v4337_v2 }
 0x518   :  { %v4301_v34 = vpop.f32.mrf.mxu2 }
 0x519   :  { %vm4322_vm14 = vcmp.gt.f32.partialorder %v4301_v34, 0.0  ;;  %v4338_v39 = vmul.f32 0.2, %v4301_v34  ;;  %v3908_v4 = vpop.f32.mrf.mxu3 }
 0x51a   :  { %v7359_v17 = vadd.f32 %v3908_v4, %v7301_v3 }
 0x51b   :  { %v4354_v52 = vsel %vm4322_vm14, %v4301_v34, %v4338_v39 }
 0x51c   :  { %v4363_v51 = vpack.c.bf16 %v4354_v52, %v4353_v6 }
 0x51e   :  { %5474 = vmatmul.msk.bf16.gmra.mxu3 %vm136_vm0, %v4363_v51 }
 0x520   :  { %v4304_v0 = vpop.f32.mrf.mxu2 }
 0x521   :  { %v3911_v63 = vpop.f32.mrf.mxu3  ;;  %v4339_v11 = vmul.f32 0.2, %v4304_v0  ;;  %vm4323_vm15 = vcmp.gt.f32.partialorder %v4304_v0, 0.0 }
 0x522   :  { %v7363_v40 = vadd.f32 %v3911_v63, %v7307_v15 }
 0x523   :  { %v4355_v3 = vsel %vm4323_vm15, %v4304_v0, %v4339_v11 }
 0x528   :  { %v4306_v24 = vpop.f32.mrf.mxu2 }
 0x529   :  { %vm4324_vm1 = vcmp.gt.f32.partialorder %v4306_v24, 0.0  ;;  %v4340_v23 = vmul.f32 0.2, %v4306_v24  ;;  %v3913_v53 = vpop.f32.mrf.mxu3 }
 0x52a   :  { %v7366_v43 = vadd.f32 %v3913_v53, %v7310_v62 }
 0x52b   :  { %v4356_v29 = vsel %vm4324_vm1, %v4306_v24, %v4340_v23 }
 0x52c   :  { %v4364_v22 = vpack.c.bf16 %v4356_v29, %v4355_v3 }
 0x52e   :  { %5475 = vmatmul.msk.bf16.gmra.mxu3 %vm136_vm0, %v4364_v22 }
 0x531   :  { %v3916_v32 = vpop.f32.mrf.mxu3 }
 0x532   :  { %v7370_v21 = vadd.f32 %v3916_v32, %v7314_v42 }
 0x539   :  { %v3918_v15 = vpop.f32.mrf.mxu3 }
 0x53a   :  { %v7373_v27 = vadd.f32 %v3918_v15, %v7317_v16 }
 0x541   :  { %v4431_v5 = vpop.f32.mrf.mxu3 }
 0x542   :  { %v7376_v47 = vadd.f32 %v4431_v5, %v7321_v36  ;;  %v4171_v36 = vpop.f32.mrf.mxu1 }
 0x549   :  { %v4433_v10 = vpop.f32.mrf.mxu3 }
 0x54a   :  { %v7379_v62 = vadd.f32 %v4433_v10, %v7324_v59  ;;  %v4173_v28 = vpop.f32.mrf.mxu1  ;;  %v5720_v10 = vmov 128.0  }
 0x54b   :  { %5600 = vrcp.f32 %v5720_v10 }
 0x54c   :  { %v4487_v33 = vadd.f32 %v7379_v62, %v7376_v47 }
 0x551   :  { %v4436_v12 = vpop.f32.mrf.mxu3 }
 0x552   :  { %v7384_v42 = vadd.f32 %v4436_v12, %v7328_v48  ;;  %v4176_v26 = vpop.f32.mrf.mxu1  ;;  %v5601_v12 = vpop.eup %5600 }
 0x553   :  { %v4204_v55 = vadd.f32 %v4176_v26, %v7349_v13  ;;  %vm4513_vm0 = vweird.f32 %v5601_v12 }
 0x554   :  { %v4488_v7 = vadd.f32 %v4487_v33, %v7384_v42 }
 0x559   :  { %v4438_v16 = vpop.f32.mrf.mxu3 }
 0x55a   :  { %v7388_v57 = vadd.f32 %v4438_v16, %v7331_v56  ;;  %v4202_v56 = vadd.f32 %v4171_v36, %v7342_v31  ;;  %v4178_v35 = vpop.f32.mrf.mxu1 }
 0x55b   :  { %v4205_v31 = vadd.f32 %v4178_v35, %v7352_v49 }
 0x55c   :  { %v4489_v20 = vadd.f32 %v4488_v7, %v7388_v57 }
 0x561   :  { %v4441_v58 = vpop.f32.mrf.mxu3 }
 0x562   :  { %v7392_v59 = vadd.f32 %v4441_v58, %v7335_v1  ;;  %v4203_v1 = vadd.f32 %v4173_v28, %v7345_v38  ;;  %v4181_v30 = vpop.f32.mrf.mxu1 }
 0x563   :  { %v4206_v38 = vadd.f32 %v4181_v30, %v7356_v25 }
 0x564   :  { %v4490_v19 = vadd.f32 %v4489_v20, %v7392_v59 }
 0x569   :  { %v4443_v48 = vpop.f32.mrf.mxu3 }
 0x56a   :  { %v7396_v18 = vadd.f32 %v4443_v48, %v4201_v44  ;;  %v4183_v4 = vpop.f32.mrf.mxu1 }
 0x56b   :  { %v4207_v63 = vadd.f32 %v4183_v4, %v7359_v17 }
 0x56c   :  { %v4491_v46 = vadd.f32 %v4490_v19, %v7396_v18 }
 0x571   :  { %v4446_v41 = vpop.f32.mrf.mxu3 }
 0x572   :  { %v7400_v60 = vadd.f32 %v4446_v41, %v4202_v56  ;;  %v4186_v0 = vpop.f32.mrf.mxu1 }
 0x573   :  { %v4208_v23 = vadd.f32 %v4186_v0, %v7363_v40  ;;  %v4509_v40 = vmul.f32 128.0, %v5601_v12 }
 0x574   :  { %v4492_v54 = vadd.f32 %v4491_v46, %v7400_v60 }
 0x575   :  { %v4510_v19 = vsub.f32 1.0, %v4509_v40 }
 0x577   :  { %v4511_v44 = vmul.f32 %v5601_v12, %v4510_v19 }
 0x579   :  { %v4448_v37 = vpop.f32.mrf.mxu3  ;;  %v4512_v26 = vadd.f32 %v5601_v12, %v4511_v44 }
 0x57a   :  { %v7404_v45 = vadd.f32 %v4448_v37, %v4203_v1  ;;  %v4188_v53 = vpop.f32.mrf.mxu1 }
 0x57b   :  { %v4209_v22 = vadd.f32 %v4188_v53, %v7366_v43  ;;  %v4514_v41 = vsel %vm4513_vm0, %v5601_v12, %v4512_v26 }
 0x57c   :  { %v4493_v14 = vadd.f32 %v4492_v54, %v7404_v45 }
 0x581   :  { %v4451_v50 = vpop.f32.mrf.mxu3 }
 0x582   :  { %v4479_v61 = vadd.f32 %v4451_v50, %v4204_v55  ;;  %v4191_v25 = vpop.f32.mrf.mxu1 }
 0x583   :  { %v4210_v33 = vadd.f32 %v4191_v25, %v7370_v21 }
 0x584   :  { %v4494_v8 = vadd.f32 %v4493_v14, %v4479_v61 }
 0x589   :  { %v4453_v2 = vpop.f32.mrf.mxu3 }
 0x58a   :  { %v4480_v34 = vadd.f32 %v4453_v2, %v4205_v31  ;;  %v4193_v16 = vpop.f32.mrf.mxu1 }
 0x58b   :  { %v4211_v36 = vadd.f32 %v4193_v16, %v7373_v27 }
 0x58c   :  { %v4495_v39 = vadd.f32 %v4494_v8, %v4480_v34 }
 0x591   :  { %v4456_v6 = vpop.f32.mrf.mxu3 }
 0x592   :  { %v4481_v52 = vadd.f32 %v4456_v6, %v4206_v38 }
 0x594   :  { %v4496_v51 = vadd.f32 %v4495_v39, %v4481_v52 }
 0x599   :  { %v4458_v11 = vpop.f32.mrf.mxu3 }
 0x59a   :  { %v4482_v13 = vadd.f32 %v4458_v11, %v4207_v63 }
 0x59c   :  { %v4497_v24 = vadd.f32 %v4496_v51, %v4482_v13 }
 0x5a1   :  { %v4461_v3 = vpop.f32.mrf.mxu3 }
 0x5a2   :  { %v4483_v49 = vadd.f32 %v4461_v3, %v4208_v23 }
 0x5a4   :  { %v4498_v29 = vadd.f32 %v4497_v24, %v4483_v49 }
 0x5a9   :  { %v4463_v32 = vpop.f32.mrf.mxu3 }
 0x5aa   :  { %v4484_v15 = vadd.f32 %v4463_v32, %v4209_v22 }
 0x5ac   :  { %v4499_v5 = vadd.f32 %v4498_v29, %v4484_v15 }
 0x5b1   :  { %v4466_v17 = vpop.f32.mrf.mxu3 }
 0x5b2   :  { %v4485_v9 = vadd.f32 %v4466_v17, %v4210_v33 }
 0x5b4   :  { %v4500_v7 = vadd.f32 %v4499_v5, %v4485_v9 }
 0x5b9   :  { %v4468_v20 = vpop.f32.mrf.mxu3 }
 0x5ba   :  { %v4486_v58 = vadd.f32 %v4468_v20, %v4211_v36 }
 0x5bc   :  { %v4501_v43 = vadd.f32 %v4500_v7, %v4486_v58 }
 0x5be   :  { %v4502_v28 = vrot.slane %v4501_v43, 4 }
 0x5c0   :  { %v4503_v48 = vadd.f32 %v4502_v28, %v4501_v43 }
 0x5c2   :  { %v4504_v46 = vrot.slane %v4503_v48, 2 }
 0x5c4   :  { %v4505_v56 = vadd.f32 %v4504_v46, %v4503_v48 }
 0x5c6   :  { %v4506_v21 = vrot.slane %v4505_v56, 1 }
 0x5c8   :  { %v4507_v54 = vadd.f32 %v4506_v21, %v4505_v56 }
 0x5ca   :  { %v4515_v1 = vmul.f32 %v4514_v41, %v4507_v54 }
 0x5cc   :  { %v7416_v35 = vsub.f32 %v7376_v47, %v4515_v1  ;;  %v7419_v27 = vsub.f32 %v7379_v62, %v4515_v1  ;;  %v7422_v37 = vsub.f32 %v7384_v42, %v4515_v1  ;;  %v7425_v14 = vsub.f32 %v7388_v57, %v4515_v1 }
 0x5cd   :  { %v7428_v55 = vsub.f32 %v7392_v59, %v4515_v1  ;;  %v7431_v50 = vsub.f32 %v7396_v18, %v4515_v1  ;;  %v7434_v30 = vsub.f32 %v7400_v60, %v4515_v1  ;;  %v7437_v47 = vsub.f32 %v7404_v45, %v4515_v1 }
 0x5ce   :  { %v7439_v62 = vsub.f32 %v4479_v61, %v4515_v1  ;;  %v7441_v8 = vsub.f32 %v4480_v34, %v4515_v1  ;;  %v7443_v42 = vsub.f32 %v4481_v52, %v4515_v1  ;;  %v7445_v57 = vsub.f32 %v4482_v13, %v4515_v1 }
 0x5cf   :  { %v7447_v31 = vsub.f32 %v4483_v49, %v4515_v1  ;;  %v7449_v59 = vsub.f32 %v4484_v15, %v4515_v1  ;;  %v7451_v18 = vsub.f32 %v4485_v9, %v4515_v1  ;;  %v7453_v2 = vsub.f32 %v4486_v58, %v4515_v1 }
 0x5d0   :  { %v4532_v60 = vmul.f32 %v7416_v35, %v7416_v35  ;;  %v4533_v45 = vmul.f32 %v7419_v27, %v7419_v27  ;;  %v4534_v61 = vmul.f32 %v7422_v37, %v7422_v37  ;;  %v4535_v39 = vmul.f32 %v7425_v14, %v7425_v14 }
 0x5d1   :  { %v4536_v38 = vmul.f32 %v7428_v55, %v7428_v55  ;;  %v4537_v52 = vmul.f32 %v7431_v50, %v7431_v50  ;;  %v4538_v0 = vmul.f32 %v7434_v30, %v7434_v30  ;;  %v4539_v11 = vmul.f32 %v7437_v47, %v7437_v47 }
 0x5d2   :  { %v4548_v34 = vadd.f32 %v4533_v45, %v4532_v60  ;;  %v4540_v24 = vmul.f32 %v7439_v62, %v7439_v62  ;;  %v4541_v53 = vmul.f32 %v7441_v8, %v7441_v8  ;;  %v4542_v49 = vmul.f32 %v7443_v42, %v7443_v42 }
 0x5d3   :  { %v4543_v22 = vmul.f32 %v7445_v57, %v7445_v57  ;;  %v4544_v15 = vmul.f32 %v7447_v31, %v7447_v31  ;;  %v4545_v5 = vmul.f32 %v7449_v59, %v7449_v59  ;;  %v4546_v33 = vmul.f32 %v7451_v18, %v7451_v18 }
 0x5d4   :  { %v4549_v4 = vadd.f32 %v4548_v34, %v4534_v61  ;;  %v4547_v9 = vmul.f32 %v7453_v2, %v7453_v2  ;;  %v5598_v61 = vld [vmem:[#allocation6] ss:$0 sm:$0xff] }
 0x5d6   :  { %v4550_v6 = vadd.f32 %v4549_v4, %v4535_v39 }
 0x5d8   :  { %v4551_v51 = vadd.f32 %v4550_v6, %v4536_v38 }
 0x5da   :  { %v4552_v63 = vadd.f32 %v4551_v51, %v4537_v52 }
 0x5dc   :  { %v4553_v13 = vadd.f32 %v4552_v63, %v4538_v0  ;;  %v5599_v63 = vld [vmem:[#allocation7] ss:$0 sm:$0xff] }
 0x5de   :  { %v4554_v23 = vadd.f32 %v4553_v13, %v4539_v11 }
 0x5e0   :  { %v4555_v3 = vadd.f32 %v4554_v23, %v4540_v24 }
 0x5e2   :  { %v4556_v29 = vadd.f32 %v4555_v3, %v4541_v53 }
 0x5e4   :  { %v4557_v32 = vadd.f32 %v4556_v29, %v4542_v49 }
 0x5e6   :  { %v4558_v25 = vadd.f32 %v4557_v32, %v4543_v22 }
 0x5e8   :  { %v4559_v10 = vadd.f32 %v4558_v25, %v4544_v15 }
 0x5ea   :  { %v4560_v17 = vadd.f32 %v4559_v10, %v4545_v5 }
 0x5ec   :  { %v4561_v12 = vadd.f32 %v4560_v17, %v4546_v33 }
 0x5ee   :  { %v4562_v7 = vadd.f32 %v4561_v12, %v4547_v9 }
 0x5f0   :  { %v4563_v16 = vrot.slane %v4562_v7, 4 }
 0x5f2   :  { %v4564_v40 = vadd.f32 %v4563_v16, %v4562_v7 }
 0x5f4   :  { %v4565_v36 = vrot.slane %v4564_v40, 2 }
 0x5f6   :  { %v4566_v20 = vadd.f32 %v4565_v36, %v4564_v40 }
 0x5f8   :  { %v4567_v58 = vrot.slane %v4566_v20, 1 }
 0x5fa   :  { %v4568_v19 = vadd.f32 %v4567_v58, %v4566_v20 }
 0x5fc   :  { %v4569_v43 = vmul.f32 %v4568_v19, %v4514_v41 }
 0x5fe   :  { %v4570_v28 = vadd.f32 1e-05, %v4569_v43 }
 0x600   :  { %5602 = vrsqrt.f32 %v4570_v28  ;;  %vm4577_vm3 = vweird.f32 %v4570_v28 }
 0x606   :  { %v5603_v44 = vpop.eup %5602 }
 0x607   :  { %v4572_v48 = vmul.f32 %v5603_v44, %v4570_v28  ;;  %vm4578_vm2 = vweird.f32 %v5603_v44 }
 0x608   :  { %vm4579_vm4 = vmor %vm4577_vm3, %vm4578_vm2 }
 0x609   :  { %v4573_v46 = vmul.f32 %v5603_v44, %v4572_v48 }
 0x60b   :  { %v4574_v26 = vmul.f32 0.5, %v4573_v46 }
 0x60d   :  { %v4575_v56 = vsub.f32 1.5, %v4574_v26 }
 0x60f   :  { %v4576_v21 = vmul.f32 %v5603_v44, %v4575_v56 }
 0x611   :  { %v4580_v54 = vsel %vm4579_vm4, %v5603_v44, %v4576_v21 }
 0x612   :  { %v4581_v1 = vmul.f32 %v4580_v54, %v7416_v35  ;;  %v4582_v60 = vmul.f32 %v4580_v54, %v7419_v27  ;;  %v4583_v45 = vmul.f32 %v4580_v54, %v7422_v37  ;;  %v4584_v41 = vmul.f32 %v4580_v54, %v7425_v14 }
 0x613   :  { %v4585_v34 = vmul.f32 %v4580_v54, %v7428_v55  ;;  %v4586_v39 = vmul.f32 %v4580_v54, %v7431_v50  ;;  %v4587_v4 = vmul.f32 %v4580_v54, %v7434_v30  ;;  %v4588_v38 = vmul.f32 %v4580_v54, %v7437_v47 }
 0x614   :  { %v4589_v6 = vmul.f32 %v4580_v54, %v7439_v62  ;;  %v4590_v52 = vmul.f32 %v4580_v54, %v7441_v8  ;;  %v4591_v35 = vmul.f32 %v4580_v54, %v7443_v42  ;;  %v4592_v27 = vmul.f32 %v4580_v54, %v7445_v57 }
 0x615   :  { %v4593_v37 = vmul.f32 %v4580_v54, %v7447_v31  ;;  %v4594_v14 = vmul.f32 %v4580_v54, %v7449_v59  ;;  %v4595_v55 = vmul.f32 %v4580_v54, %v7451_v18  ;;  %v4596_v50 = vmul.f32 %v4580_v54, %v7453_v2 }
 0x616   :  { %v4601_v51 = vmul.f32 %v5598_v61, %v4581_v1  ;;  %v4602_v30 = vmul.f32 %v5598_v61, %v4582_v60  ;;  %v4603_v0 = vmul.f32 %v5598_v61, %v4583_v45  ;;  %v4604_v47 = vmul.f32 %v5598_v61, %v4584_v41 }
 0x617   :  { %v4605_v62 = vmul.f32 %v5598_v61, %v4585_v34  ;;  %v4606_v11 = vmul.f32 %v5598_v61, %v4586_v39  ;;  %v4607_v8 = vmul.f32 %v5598_v61, %v4587_v4  ;;  %v4608_v13 = vmul.f32 %v5598_v61, %v4588_v38 }
 0x618   :  { %v4609_v42 = vmul.f32 %v5598_v61, %v4589_v6  ;;  %v4610_v24 = vmul.f32 %v5598_v61, %v4590_v52  ;;  %v4611_v57 = vmul.f32 %v5598_v61, %v4591_v35  ;;  %v4612_v23 = vmul.f32 %v5598_v61, %v4592_v27 }
 0x619   :  { %v4613_v31 = vmul.f32 %v5598_v61, %v4593_v37  ;;  %v4614_v53 = vmul.f32 %v5598_v61, %v4594_v14  ;;  %v4615_v59 = vmul.f32 %v5598_v61, %v4595_v55  ;;  %v4616_v3 = vmul.f32 %v5598_v61, %v4596_v50 }
 0x61a   :  { %v4621_v18 = vadd.f32 %v5599_v63, %v4601_v51  ;;  %v4622_v49 = vadd.f32 %v5599_v63, %v4602_v30  ;;  %v4623_v2 = vadd.f32 %v5599_v63, %v4603_v0  ;;  %v4624_v29 = vadd.f32 %v5599_v63, %v4604_v47 }
 0x61b   :  { %v4625_v22 = vadd.f32 %v5599_v63, %v4605_v62  ;;  %v4626_v32 = vadd.f32 %v5599_v63, %v4606_v11  ;;  %v4627_v15 = vadd.f32 %v5599_v63, %v4607_v8  ;;  %v4628_v25 = vadd.f32 %v5599_v63, %v4608_v13 }
 0x61c   :  { %v4629_v5 = vadd.f32 %v5599_v63, %v4609_v42  ;;  %v4630_v10 = vadd.f32 %v5599_v63, %v4610_v24  ;;  %v4631_v33 = vadd.f32 %v5599_v63, %v4611_v57  ;;  %v4632_v17 = vadd.f32 %v5599_v63, %v4612_v23 }
 0x61d   :  { %v4633_v9 = vadd.f32 %v5599_v63, %v4613_v31  ;;  %v4634_v12 = vadd.f32 %v5599_v63, %v4614_v53  ;;  %v4635_v7 = vadd.f32 %v5599_v63, %v4615_v59  ;;  %v4636_v16 = vadd.f32 %v5599_v63, %v4616_v3 }
 0x61e   :  { %vm4637_vm5 = vcmp.gt.f32.partialorder %v4621_v18, 0.0  ;;  %vm4638_vm6 = vcmp.gt.f32.partialorder %v4622_v49, 0.0  ;;  %vm4639_vm7 = vcmp.gt.f32.partialorder %v4623_v2, 0.0  ;;  %vm4640_vm8 = vcmp.gt.f32.partialorder %v4624_v29, 0.0 }
 0x61f   :  { %vm4641_vm9 = vcmp.gt.f32.partialorder %v4625_v22, 0.0  ;;  %vm4642_vm10 = vcmp.gt.f32.partialorder %v4626_v32, 0.0  ;;  %vm4643_vm11 = vcmp.gt.f32.partialorder %v4627_v15, 0.0  ;;  %vm4644_vm12 = vcmp.gt.f32.partialorder %v4628_v25, 0.0 }
 0x620   :  { %vm4645_vm13 = vcmp.gt.f32.partialorder %v4629_v5, 0.0  ;;  %vm4646_vm14 = vcmp.gt.f32.partialorder %v4630_v10, 0.0  ;;  %vm4647_vm15 = vcmp.gt.f32.partialorder %v4631_v33, 0.0  ;;  %vm4648_vm1 = vcmp.gt.f32.partialorder %v4632_v17, 0.0 }
 0x621   :  { %vm4649_vm0 = vcmp.gt.f32.partialorder %v4633_v9, 0.0  ;;  %vm4650_vm2 = vcmp.gt.f32.partialorder %v4634_v12, 0.0  ;;  %vm4651_vm3 = vcmp.gt.f32.partialorder %v4635_v7, 0.0  ;;  %vm4652_vm4 = vcmp.gt.f32.partialorder %v4636_v16, 0.0 }
 0x622   :  { %v4653_v40 = vmul.f32 0.2, %v4621_v18  ;;  %v4654_v36 = vmul.f32 0.2, %v4622_v49  ;;  %v4655_v20 = vmul.f32 0.2, %v4623_v2 }
 0x623   :  { %v4656_v58 = vmul.f32 0.2, %v4624_v29  ;;  %v4657_v19 = vmul.f32 0.2, %v4625_v22  ;;  %v4658_v43 = vmul.f32 0.2, %v4626_v32 }
 0x624   :  { %v4659_v28 = vmul.f32 0.2, %v4627_v15  ;;  %v4660_v44 = vmul.f32 0.2, %v4628_v25  ;;  %v4661_v48 = vmul.f32 0.2, %v4629_v5  ;;  %v4669_v46 = vsel %vm4637_vm5, %v4621_v18, %v4653_v40 }
 0x625   :  { %v4662_v26 = vmul.f32 0.2, %v4630_v10  ;;  %v4663_v56 = vmul.f32 0.2, %v4631_v33  ;;  %v4664_v21 = vmul.f32 0.2, %v4632_v17  ;;  %v4670_v54 = vsel %vm4638_vm6, %v4622_v49, %v4654_v36 }
 0x626   :  { %v4665_v1 = vmul.f32 0.2, %v4633_v9  ;;  %v4666_v60 = vmul.f32 0.2, %v4634_v12  ;;  %v4667_v45 = vmul.f32 0.2, %v4635_v7  ;;  %v4671_v41 = vsel %vm4639_vm7, %v4623_v2, %v4655_v20 }
 0x627   :  { %v4668_v61 = vmul.f32 0.2, %v4636_v16  ;;  %v4672_v34 = vsel %vm4640_vm8, %v4624_v29, %v4656_v58  ;;  %v4673_v39 = vsel %vm4641_vm9, %v4625_v22, %v4657_v19  ;;  %v4674_v4 = vsel %vm4642_vm10, %v4626_v32, %v4658_v43 }
 0x628   :  { %v4675_v38 = vsel %vm4643_vm11, %v4627_v15, %v4659_v28  ;;  %v4676_v6 = vsel %vm4644_vm12, %v4628_v25, %v4660_v44  ;;  %v4677_v52 = vsel %vm4645_vm13, %v4629_v5, %v4661_v48  ;;  %v4678_v35 = vsel %vm4646_vm14, %v4630_v10, %v4662_v26 }
 0x629   :  { %v4679_v27 = vsel %vm4647_vm15, %v4631_v33, %v4663_v56  ;;  %v4680_v37 = vsel %vm4648_vm1, %v4632_v17, %v4664_v21  ;;  %v4681_v14 = vsel %vm4649_vm0, %v4633_v9, %v4665_v1  ;;  %v4682_v55 = vsel %vm4650_vm2, %v4634_v12, %v4666_v60 }
 0x62a   :  { %v4683_v50 = vsel %vm4651_vm3, %v4635_v7, %v4667_v45  ;;  %v4684_v51 = vsel %vm4652_vm4, %v4636_v16, %v4668_v61  ;;  %v5547_v30 = vpack.c.bf16 %v4670_v54, %v4669_v46  ;;  %v5552_v0 = vpack.c.bf16 %v4672_v34, %v4671_v41 }
 0x62b   :  { %v5557_v47 = vpack.c.bf16 %v4674_v4, %v4673_v39  ;;  %v5562_v63 = vpack.c.bf16 %v4676_v6, %v4675_v38  ;;  %v5567_v62 = vpack.c.bf16 %v4678_v35, %v4677_v52  ;;  %v5572_v11 = vpack.c.bf16 %v4680_v37, %v4679_v27 }
 0x62c   :  { %5548 = vst [vmem:[%s7548_s5] sm:$0xff] %v5547_v30   ;;  %v5577_v8 = vpack.c.bf16 %v4682_v55, %v4681_v14  ;;  %v5582_v13 = vpack.c.bf16 %v4684_v51, %v4683_v50 }
 0x62d   :  { %5584 = vst [vmem:[%s7548_s5 + $0x8] sm:$0xff] %v5552_v0  }
 0x62e   :  { %5585 = vst [vmem:[%s7548_s5 + $0x10] sm:$0xff] %v5557_v47  }
 0x62f   :  { %5586 = vst [vmem:[%s7548_s5 + $0x18] sm:$0xff] %v5562_v63  }
 0x630   :  { %5587 = vst [vmem:[%s7548_s5 + $0x20] sm:$0xff] %v5567_v62  }
 0x631   :  { %5588 = vst [vmem:[%s7548_s5 + $0x28] sm:$0xff] %v5572_v11  }
 0x632   :  { %5589 = vst [vmem:[%s7548_s5 + $0x30] sm:$0xff] %v5577_v8  }
 0x633   :  { %5590 = vst [vmem:[%s7548_s5 + $0x38] sm:$0xff] %v5582_v13  }
 0x634   :  { %4721 = vsyncpa [#allocation3], 1 }
 0x635   :  { %4722 = vsyncpa [#allocation5], 1 }
 0x636   :  { %4723 = vsyncpa [#allocation8], 1 }

</bundles_post_ra>
